<compile_context>
chip_gen: v6e
topology: v6e:2x2x1
jax: 0.10.0
libtpu: 0.0.40
codegen_flags: <defaults>
</compile_context>

<pallas_src>
import functools

import jax
import jax.numpy as jnp
from jax.experimental import pallas as pl
from jax.experimental.pallas import tpu as pltpu


# ---------------------------------------------------------------------------
# Pallas kernels
# ---------------------------------------------------------------------------
def conv_block_kernel(p_ref, w_ref, scale_ref, bias_ref, o_ref, *, rows):
    """Fused Conv2d(k=2,s=1,p=1) + BatchNorm2d(eval) + ReLU + MaxPool2d(2,2).

    p_ref:     (4*rows, K) bf16  im2col patch rows, pool-offset major; each
                                 slab of `rows` rows is one 2x2 pool offset,
                                 rows ordered (n, i, j) within a slab.
    w_ref:     (K, Cout)   bf16  conv weights, K index = (kh*2+kw)*Cin + c
    scale_ref: (1, Cout)   f32   folded BN scale = gamma / sqrt(var + eps)
    bias_ref:  (1, Cout)   f32   folded bias     = (conv_b - mean)*scale + beta
    o_ref:     (rows, Cout) bf16 pooled output
    """
    # Single MXU matmul over all four pool-offset slabs (4x better row fill
    # than four separate small matmuls).
    y = jnp.dot(p_ref[...], w_ref[...], preferred_element_type=jnp.float32)
    # BN affine applied before the max so semantics hold for any sign of scale.
    y = y * scale_ref[...] + bias_ref[...]
    m = jnp.maximum(jnp.maximum(y[0 * rows:1 * rows], y[1 * rows:2 * rows]),
                    jnp.maximum(y[2 * rows:3 * rows], y[3 * rows:4 * rows]))
    # relu(max(.)) == maxpool of relu'd BN outputs (relu is monotone).
    o_ref[...] = jnp.maximum(m, 0.0).astype(o_ref.dtype)


def conv4_mlp_kernel(p_ref, w4_ref, scale_ref, bias_ref,
                     w1_ref, b1_ref, w2_ref, b2_ref, w3_ref, b3_ref,
                     o_ref, *, rows, batch):
    """Last conv block fused with Linear(2048,512)+ReLU, Linear(512,128)+ReLU,
    Linear(128,2).  Dropout(0.1) layers are identity in eval mode.

    p_ref : (4*rows, 512) bf16, rows = 4*batch.  Within each pool-offset slab
            rows are ordered (spatial s = i*2+j, batch n), so PyTorch's NCHW
            flatten is absorbed by the per-spatial w1 slabs below.
    w1_ref: (4, 512, 512) bf16 with w1_ref[s, c, o] == W1.T[c*4 + s, o].
    """
    y = jnp.dot(p_ref[...], w4_ref[...], preferred_element_type=jnp.float32)
    y = y * scale_ref[...] + bias_ref[...]
    a = jnp.maximum(jnp.maximum(y[0 * rows:1 * rows], y[1 * rows:2 * rows]),
                    jnp.maximum(y[2 * rows:3 * rows], y[3 * rows:4 * rows]))
    a = jnp.maximum(a, 0.0).astype(jnp.bfloat16)     # (4*batch, 512), (s, n) rows

    # Linear(2048, 512):  h[n] = sum_s  a[s*batch + n, :] @ w1[s]
    h = jnp.dot(a[0:batch], w1_ref[0], preferred_element_type=jnp.float32)
    for s in range(1, 4):
        h = h + jnp.dot(a[s * batch:(s + 1) * batch], w1_ref[s],
                        preferred_element_type=jnp.float32)
    h = jnp.maximum(h + b1_ref[...], 0.0)            # Dropout(0.1): identity (eval)
    h = jnp.dot(h.astype(jnp.bfloat16), w2_ref[...],
                preferred_element_type=jnp.float32)
    h = jnp.maximum(h + b2_ref[...], 0.0)            # Dropout(0.1): identity (eval)
    o = jnp.dot(h.astype(jnp.bfloat16), w3_ref[...],
                preferred_element_type=jnp.float32)
    o_ref[...] = (o + b3_ref[...]).astype(o_ref.dtype)


# ---------------------------------------------------------------------------
# Wrappers around pallas_call
# ---------------------------------------------------------------------------
def conv_bn_relu_pool(patches, wmat, scale, bias, *, rows):
    K = patches.shape[1]
    Cout = wmat.shape[1]
    return pl.pallas_call(
        functools.partial(conv_block_kernel, rows=rows),
        out_shape=jax.ShapeDtypeStruct((rows, Cout), jnp.bfloat16),
        grid=(1,),
        in_specs=[
            pl.BlockSpec((4 * rows, K), lambda i: (0, 0)),
            pl.BlockSpec((K, Cout), lambda i: (0, 0)),
            pl.BlockSpec((1, Cout), lambda i: (0, 0)),
            pl.BlockSpec((1, Cout), lambda i: (0, 0)),
        ],
        out_specs=pl.BlockSpec((rows, Cout), lambda i: (0, 0)),
        compiler_params=pltpu.CompilerParams(
            dimension_semantics=("arbitrary",),
            allow_input_fusion=[True, False, False, False]),
    )(patches, wmat, scale, bias)


def conv4_mlp_head(patches, w4, scale4, bias4, w1r, b1, w2, b2, w3, b3,
                   *, rows, batch):
    return pl.pallas_call(
        functools.partial(conv4_mlp_kernel, rows=rows, batch=batch),
        out_shape=jax.ShapeDtypeStruct((batch, 2), jnp.float32),
        grid=(1,),
        in_specs=[
            pl.BlockSpec(patches.shape, lambda i: (0, 0)),
            pl.BlockSpec(w4.shape, lambda i: (0, 0)),
            pl.BlockSpec(scale4.shape, lambda i: (0, 0)),
            pl.BlockSpec(bias4.shape, lambda i: (0, 0)),
            pl.BlockSpec(w1r.shape, lambda i: (0, 0, 0)),
            pl.BlockSpec(b1.shape, lambda i: (0, 0)),
            pl.BlockSpec(w2.shape, lambda i: (0, 0)),
            pl.BlockSpec(b2.shape, lambda i: (0, 0)),
            pl.BlockSpec(w3.shape, lambda i: (0, 0)),
            pl.BlockSpec(b3.shape, lambda i: (0, 0)),
        ],
        out_specs=pl.BlockSpec((batch, 2), lambda i: (0, 0)),
        compiler_params=pltpu.CompilerParams(
            dimension_semantics=("arbitrary",),
            allow_input_fusion=[True] + [False] * 9),
    )(patches, w4, scale4, bias4, w1r, b1, w2, b2, w3, b3)


# ---------------------------------------------------------------------------
# Glue: im2col patch extraction for the fused conv+pool kernels
# ---------------------------------------------------------------------------
def extract_pool_patches(x_nhwc):
    """x_nhwc: (N, H, W, C), H and W even.  Returns (4, N, Hp, Wp, 4*C).

    Slab p = di*2 + dj holds, for each pooled position (i, j), the 2x2 conv
    receptive field of conv-output position (2i+di, 2j+dj) on the zero-padded
    input (padding=1).  The last conv row/col is dropped, matching MaxPool2d's
    floor behaviour.
    """
    N, H, W, C = x_nhwc.shape
    Hp, Wp = H // 2, W // 2
    xp = jnp.pad(x_nhwc, ((0, 0), (1, 1), (1, 1), (0, 0)))
    slabs = []
    for di in range(2):
        for dj in range(2):
            feats = []
            for kh in range(2):
                for kw in range(2):
                    sl = xp[:, di + kh: di + kh + 2 * Hp: 2,
                              dj + kw: dj + kw + 2 * Wp: 2, :]
                    feats.append(sl)                       # (N, Hp, Wp, C)
            slabs.append(jnp.concatenate(feats, axis=-1))  # (N, Hp, Wp, 4C)
    return jnp.stack(slabs, axis=0)                        # (4, N, Hp, Wp, 4C)


# ---------------------------------------------------------------------------
# Deterministic synthetic parameters (shapes from Model_VGG_v2.__init__)
# ---------------------------------------------------------------------------
def init_params(key):
    eps = 1e-5  # PyTorch BatchNorm2d default
    conv_dims = [(3, 32), (32, 64), (64, 128), (128, 512)]
    conv_params = []
    for cin, cout in conv_dims:
        key, kw, kb, kg, kbe, km, kv = jax.random.split(key, 7)
        w = jax.random.normal(kw, (cout, cin, 2, 2), jnp.float32) * 0.1  # torch OIHW
        b = jax.random.normal(kb, (cout,), jnp.float32) * 0.05
        gamma = 1.0 + 0.1 * jax.random.normal(kg, (cout,), jnp.float32)
        beta = 0.1 * jax.random.normal(kbe, (cout,), jnp.float32)
        mean = 0.05 * jax.random.normal(km, (cout,), jnp.float32)
        var = 1.0 + 0.1 * jnp.abs(jax.random.normal(kv, (cout,), jnp.float32))
        # fold conv bias + eval-mode BN into a per-channel affine
        scale = gamma / jnp.sqrt(var + eps)
        bias = (b - mean) * scale + beta
        # weight matrix: K index = (kh*2 + kw)*cin + c, matching patch layout
        wmat = jnp.transpose(w, (2, 3, 1, 0)).reshape(4 * cin, cout)
        conv_params.append((wmat.astype(jnp.bfloat16),
                            scale.reshape(1, cout), bias.reshape(1, cout)))

    lin_dims = [(2048, 512), (512, 128), (128, 2)]
    lin = []
    for fin, fout in lin_dims:
        key, kw, kb = jax.random.split(key, 3)
        w = jax.random.normal(kw, (fin, fout), jnp.float32) / jnp.sqrt(float(fin))
        b = jax.random.normal(kb, (1, fout), jnp.float32) * 0.05
        lin.append((w, b))
    (w1, b1), (w2, b2), (w3, b3) = lin
    # NCHW flatten: feat[n, c*4 + s] = conv4_out[n, c, i, j] with s = i*2 + j.
    # Reorder w1 (2048, 512) -> (4, 512, 512) so that w1r[s, c, :] == w1[c*4+s, :].
    w1r = jnp.transpose(w1.reshape(512, 4, 512), (1, 0, 2)).astype(jnp.bfloat16)
    mlp_params = ((w1r, b1),
                  (w2.astype(jnp.bfloat16), b2),
                  (w3.astype(jnp.bfloat16), b3))
    return {"conv": conv_params, "mlp": mlp_params}


# ---------------------------------------------------------------------------
# Full forward pass (matches Model_VGG_v2.forward in eval mode)
# ---------------------------------------------------------------------------
def model_forward(x_nchw, params):
    # x_nchw: (N, 3, 32, 32) float32, same NCHW convention as the PyTorch module.
    N = x_nchw.shape[0]
    x = jnp.transpose(x_nchw, (0, 2, 3, 1)).astype(jnp.bfloat16)   # NHWC, bf16

    # Conv blocks 1-3: one pallas_call each; batch + 4 pool offsets folded into
    # the matmul row dimension (single grid step per call).
    for wmat, scale, bias in params["conv"][:3]:
        _, H, W, C = x.shape
        Hp, Wp, Cout = H // 2, W // 2, wmat.shape[1]
        rows = N * Hp * Wp
        patches = extract_pool_patches(x).reshape(4 * rows, 4 * C)
        y = conv_bn_relu_pool(patches, wmat, scale, bias, rows=rows)
        x = y.reshape(N, Hp, Wp, Cout)

    # Conv block 4 fused with the whole MLP head in a single pallas_call.
    wmat4, scale4, bias4 = params["conv"][3]
    _, H, W, C = x.shape
    Hp, Wp = H // 2, W // 2                                        # 2, 2
    rows = Hp * Wp * N
    p = extract_pool_patches(x)                                    # (4, N, 2, 2, 4C)
    p = jnp.transpose(p, (0, 2, 3, 1, 4)).reshape(4 * rows, 4 * C)  # (s, n) row order
    (w1r, b1), (w2, b2), (w3, b3) = params["mlp"]
    # TODO(synk): a fully fused single-call network (in-kernel im2col for all
    # four blocks + cross-call w1 prefetch) would remove the remaining launches.
    return conv4_mlp_head(p, wmat4, scale4, bias4, w1r, b1, w2, b2, w3, b3,
                          rows=rows, batch=N)                      # (N, 2)


if __name__ == "__main__":
    key = jax.random.PRNGKey(0)
    pkey, xkey = jax.random.split(key)
    params = init_params(pkey)
    # 32x32 input is the smallest spatial size consistent with Linear(2048, 512)
    # after four conv(k=2,s=1,p=1)+pool(2,2) blocks: 512 * 2 * 2 = 2048.
    x = jax.random.normal(xkey, (2, 3, 32, 32), jnp.float32)

    fwd = jax.jit(functools.partial(model_forward, params=params))
    out = fwd(x)
    jax.block_until_ready(out)
    assert out.shape == (2, 2) and out.dtype == jnp.float32
    print("KERNEL_OK")
</pallas_src>

<mosaic_0001>
module attributes {stable_mosaic.version = 11 : i64} {
  func.func @conv_block_kernel(%arg0: i32, %arg1: memref<2048x12xbf16, #tpu.memory_space<vmem>>, %arg2: memref<12x32xbf16, #tpu.memory_space<vmem>>, %arg3: memref<1x32xf32, #tpu.memory_space<vmem>>, %arg4: memref<1x32xf32, #tpu.memory_space<vmem>>, %arg5: memref<512x32xbf16, #tpu.memory_space<vmem>>) attributes {dimension_semantics = [#tpu.dimension_semantics<arbitrary>], iteration_bounds = array<i64: 1>, scalar_prefetch = 0 : i64, scratch_operands = 0 : i64, tpu.core_type = #tpu.core_type<tc>, window_params = [{pipeline_mode = #tpu.pipeline_mode<synchronous>, transform_indices = @transform_0, window_bounds = array<i64: 2048, 12>}, {pipeline_mode = #tpu.pipeline_mode<synchronous>, transform_indices = @transform_1, window_bounds = array<i64: 12, 32>}, {pipeline_mode = #tpu.pipeline_mode<synchronous>, transform_indices = @transform_2, window_bounds = array<i64: 1, 32>}, {pipeline_mode = #tpu.pipeline_mode<synchronous>, transform_indices = @transform_3, window_bounds = array<i64: 1, 32>}, {pipeline_mode = #tpu.pipeline_mode<synchronous>, transform_indices = @transform_4, window_bounds = array<i64: 512, 32>}]} {
    %c0 = arith.constant 0 : index
    %c0_0 = arith.constant 0 : index
    %0 = vector.load %arg1[%c0, %c0_0] : memref<2048x12xbf16, #tpu.memory_space<vmem>>, vector<2048x12xbf16>
    %c0_1 = arith.constant 0 : index
    %c0_2 = arith.constant 0 : index
    %1 = vector.load %arg2[%c0_1, %c0_2] : memref<12x32xbf16, #tpu.memory_space<vmem>>, vector<12x32xbf16>
    %cst = arith.constant dense<0.000000e+00> : vector<2048x32xf32>
    %2 = tpu.matmul %0, %1, %cst {dimension_numbers = #tpu.dot_dimension_numbers<[1], [0], [0], [1], [0, 0, 1, 1], [], []>} : vector<2048x12xbf16>, vector<12x32xbf16>, vector<2048x32xf32> -> vector<2048x32xf32>
    %c0_3 = arith.constant 0 : index
    %c0_4 = arith.constant 0 : index
    %3 = vector.load %arg3[%c0_3, %c0_4] : memref<1x32xf32, #tpu.memory_space<vmem>>, vector<1x32xf32>
    %4 = vector.broadcast %3 : vector<1x32xf32> to vector<2048x32xf32>
    %5 = arith.mulf %2, %4 : vector<2048x32xf32>
    %c0_5 = arith.constant 0 : index
    %c0_6 = arith.constant 0 : index
    %6 = vector.load %arg4[%c0_5, %c0_6] : memref<1x32xf32, #tpu.memory_space<vmem>>, vector<1x32xf32>
    %7 = vector.broadcast %6 : vector<1x32xf32> to vector<2048x32xf32>
    %8 = arith.addf %5, %7 : vector<2048x32xf32>
    %9 = vector.extract_strided_slice %8 {offsets = [0, 0], sizes = [512, 32], strides = [1, 1]} : vector<2048x32xf32> to vector<512x32xf32>
    %10 = vector.extract_strided_slice %8 {offsets = [512, 0], sizes = [512, 32], strides = [1, 1]} : vector<2048x32xf32> to vector<512x32xf32>
    %11 = arith.maximumf %9, %10 : vector<512x32xf32>
    %12 = vector.extract_strided_slice %8 {offsets = [1024, 0], sizes = [512, 32], strides = [1, 1]} : vector<2048x32xf32> to vector<512x32xf32>
    %13 = vector.extract_strided_slice %8 {offsets = [1536, 0], sizes = [512, 32], strides = [1, 1]} : vector<2048x32xf32> to vector<512x32xf32>
    %14 = arith.maximumf %12, %13 : vector<512x32xf32>
    %15 = arith.maximumf %11, %14 : vector<512x32xf32>
    %cst_7 = arith.constant 0.000000e+00 : f32
    %16 = vector.broadcast %cst_7 : f32 to vector<512x32xf32>
    %17 = arith.maximumf %15, %16 : vector<512x32xf32>
    %18 = arith.truncf %17 : vector<512x32xf32> to vector<512x32xbf16>
    %c0_8 = arith.constant 0 : index
    %c0_9 = arith.constant 0 : index
    %19 = vector.load %arg5[%c0_8, %c0_9] : memref<512x32xbf16, #tpu.memory_space<vmem>>, vector<512x32xbf16>
    tpu.vector_store %arg5[%c0_8, %c0_9], %18 {strides = array<i32>} : memref<512x32xbf16, #tpu.memory_space<vmem>>, vector<512x32xbf16>,
    return
  }
  func.func @transform_0(%arg0: i32) -> (i32, i32) {
    %c0_i32 = arith.constant 0 : i32
    %c0_i32_0 = arith.constant 0 : i32
    %c0_i32_1 = arith.constant 0 : i32
    return %c0_i32, %c0_i32_0 : i32, i32
  }
  func.func @transform_1(%arg0: i32) -> (i32, i32) {
    %c0_i32 = arith.constant 0 : i32
    %c0_i32_0 = arith.constant 0 : i32
    %c0_i32_1 = arith.constant 0 : i32
    return %c0_i32, %c0_i32_0 : i32, i32
  }
  func.func @transform_2(%arg0: i32) -> (i32, i32) {
    %c0_i32 = arith.constant 0 : i32
    %c0_i32_0 = arith.constant 0 : i32
    %c0_i32_1 = arith.constant 0 : i32
    return %c0_i32, %c0_i32_0 : i32, i32
  }
  func.func @transform_3(%arg0: i32) -> (i32, i32) {
    %c0_i32 = arith.constant 0 : i32
    %c0_i32_0 = arith.constant 0 : i32
    %c0_i32_1 = arith.constant 0 : i32
    return %c0_i32, %c0_i32_0 : i32, i32
  }
  func.func @transform_4(%arg0: i32) -> (i32, i32) {
    %c0_i32 = arith.constant 0 : i32
    %c0_i32_0 = arith.constant 0 : i32
    %c0_i32_1 = arith.constant 0 : i32
    return %c0_i32, %c0_i32_0 : i32, i32
  }
}

module attributes {stable_mosaic.version = 11 : i64} {
  func.func @conv_block_kernel(%arg0: i32, %arg1: memref<512x128xbf16, #tpu.memory_space<vmem>>, %arg2: memref<128x64xbf16, #tpu.memory_space<vmem>>, %arg3: memref<1x64xf32, #tpu.memory_space<vmem>>, %arg4: memref<1x64xf32, #tpu.memory_space<vmem>>, %arg5: memref<128x64xbf16, #tpu.memory_space<vmem>>) attributes {dimension_semantics = [#tpu.dimension_semantics<arbitrary>], iteration_bounds = array<i64: 1>, scalar_prefetch = 0 : i64, scratch_operands = 0 : i64, tpu.core_type = #tpu.core_type<tc>, window_params = [{pipeline_mode = #tpu.pipeline_mode<synchronous>, transform_indices = @transform_0, window_bounds = array<i64: 512, 128>}, {pipeline_mode = #tpu.pipeline_mode<synchronous>, transform_indices = @transform_1, window_bounds = array<i64: 128, 64>}, {pipeline_mode = #tpu.pipeline_mode<synchronous>, transform_indices = @transform_2, window_bounds = array<i64: 1, 64>}, {pipeline_mode = #tpu.pipeline_mode<synchronous>, transform_indices = @transform_3, window_bounds = array<i64: 1, 64>}, {pipeline_mode = #tpu.pipeline_mode<synchronous>, transform_indices = @transform_4, window_bounds = array<i64: 128, 64>}]} {
    %c0 = arith.constant 0 : index
    %c0_0 = arith.constant 0 : index
    %0 = vector.load %arg1[%c0, %c0_0] : memref<512x128xbf16, #tpu.memory_space<vmem>>, vector<512x128xbf16>
    %c0_1 = arith.constant 0 : index
    %c0_2 = arith.constant 0 : index
    %1 = vector.load %arg2[%c0_1, %c0_2] : memref<128x64xbf16, #tpu.memory_space<vmem>>, vector<128x64xbf16>
    %cst = arith.constant dense<0.000000e+00> : vector<512x64xf32>
    %2 = tpu.matmul %0, %1, %cst {dimension_numbers = #tpu.dot_dimension_numbers<[1], [0], [0], [1], [0, 0, 1, 1], [], []>} : vector<512x128xbf16>, vector<128x64xbf16>, vector<512x64xf32> -> vector<512x64xf32>
    %c0_3 = arith.constant 0 : index
    %c0_4 = arith.constant 0 : index
    %3 = vector.load %arg3[%c0_3, %c0_4] : memref<1x64xf32, #tpu.memory_space<vmem>>, vector<1x64xf32>
    %4 = vector.broadcast %3 : vector<1x64xf32> to vector<512x64xf32>
    %5 = arith.mulf %2, %4 : vector<512x64xf32>
    %c0_5 = arith.constant 0 : index
    %c0_6 = arith.constant 0 : index
    %6 = vector.load %arg4[%c0_5, %c0_6] : memref<1x64xf32, #tpu.memory_space<vmem>>, vector<1x64xf32>
    %7 = vector.broadcast %6 : vector<1x64xf32> to vector<512x64xf32>
    %8 = arith.addf %5, %7 : vector<512x64xf32>
    %9 = vector.extract_strided_slice %8 {offsets = [0, 0], sizes = [128, 64], strides = [1, 1]} : vector<512x64xf32> to vector<128x64xf32>
    %10 = vector.extract_strided_slice %8 {offsets = [128, 0], sizes = [128, 64], strides = [1, 1]} : vector<512x64xf32> to vector<128x64xf32>
    %11 = arith.maximumf %9, %10 : vector<128x64xf32>
    %12 = vector.extract_strided_slice %8 {offsets = [256, 0], sizes = [128, 64], strides = [1, 1]} : vector<512x64xf32> to vector<128x64xf32>
    %13 = vector.extract_strided_slice %8 {offsets = [384, 0], sizes = [128, 64], strides = [1, 1]} : vector<512x64xf32> to vector<128x64xf32>
    %14 = arith.maximumf %12, %13 : vector<128x64xf32>
    %15 = arith.maximumf %11, %14 : vector<128x64xf32>
    %cst_7 = arith.constant 0.000000e+00 : f32
    %16 = vector.broadcast %cst_7 : f32 to vector<128x64xf32>
    %17 = arith.maximumf %15, %16 : vector<128x64xf32>
    %18 = arith.truncf %17 : vector<128x64xf32> to vector<128x64xbf16>
    %c0_8 = arith.constant 0 : index
    %c0_9 = arith.constant 0 : index
    %19 = vector.load %arg5[%c0_8, %c0_9] : memref<128x64xbf16, #tpu.memory_space<vmem>>, vector<128x64xbf16>
    tpu.vector_store %arg5[%c0_8, %c0_9], %18 {strides = array<i32>} : memref<128x64xbf16, #tpu.memory_space<vmem>>, vector<128x64xbf16>,
    return
  }
  func.func @transform_0(%arg0: i32) -> (i32, i32) {
    %c0_i32 = arith.constant 0 : i32
    %c0_i32_0 = arith.constant 0 : i32
    %c0_i32_1 = arith.constant 0 : i32
    return %c0_i32, %c0_i32_0 : i32, i32
  }
  func.func @transform_1(%arg0: i32) -> (i32, i32) {
    %c0_i32 = arith.constant 0 : i32
    %c0_i32_0 = arith.constant 0 : i32
    %c0_i32_1 = arith.constant 0 : i32
    return %c0_i32, %c0_i32_0 : i32, i32
  }
  func.func @transform_2(%arg0: i32) -> (i32, i32) {
    %c0_i32 = arith.constant 0 : i32
    %c0_i32_0 = arith.constant 0 : i32
    %c0_i32_1 = arith.constant 0 : i32
    return %c0_i32, %c0_i32_0 : i32, i32
  }
  func.func @transform_3(%arg0: i32) -> (i32, i32) {
    %c0_i32 = arith.constant 0 : i32
    %c0_i32_0 = arith.constant 0 : i32
    %c0_i32_1 = arith.constant 0 : i32
    return %c0_i32, %c0_i32_0 : i32, i32
  }
  func.func @transform_4(%arg0: i32) -> (i32, i32) {
    %c0_i32 = arith.constant 0 : i32
    %c0_i32_0 = arith.constant 0 : i32
    %c0_i32_1 = arith.constant 0 : i32
    return %c0_i32, %c0_i32_0 : i32, i32
  }
}

module attributes {stable_mosaic.version = 11 : i64} {
  func.func @conv_block_kernel(%arg0: i32, %arg1: memref<128x256xbf16, #tpu.memory_space<vmem>>, %arg2: memref<256x128xbf16, #tpu.memory_space<vmem>>, %arg3: memref<1x128xf32, #tpu.memory_space<vmem>>, %arg4: memref<1x128xf32, #tpu.memory_space<vmem>>, %arg5: memref<32x128xbf16, #tpu.memory_space<vmem>>) attributes {dimension_semantics = [#tpu.dimension_semantics<arbitrary>], iteration_bounds = array<i64: 1>, scalar_prefetch = 0 : i64, scratch_operands = 0 : i64, tpu.core_type = #tpu.core_type<tc>, window_params = [{pipeline_mode = #tpu.pipeline_mode<synchronous>, transform_indices = @transform_0, window_bounds = array<i64: 128, 256>}, {pipeline_mode = #tpu.pipeline_mode<synchronous>, transform_indices = @transform_1, window_bounds = array<i64: 256, 128>}, {pipeline_mode = #tpu.pipeline_mode<synchronous>, transform_indices = @transform_2, window_bounds = array<i64: 1, 128>}, {pipeline_mode = #tpu.pipeline_mode<synchronous>, transform_indices = @transform_3, window_bounds = array<i64: 1, 128>}, {pipeline_mode = #tpu.pipeline_mode<synchronous>, transform_indices = @transform_4, window_bounds = array<i64: 32, 128>}]} {
    %c0 = arith.constant 0 : index
    %c0_0 = arith.constant 0 : index
    %0 = vector.load %arg1[%c0, %c0_0] : memref<128x256xbf16, #tpu.memory_space<vmem>>, vector<128x256xbf16>
    %c0_1 = arith.constant 0 : index
    %c0_2 = arith.constant 0 : index
    %1 = vector.load %arg2[%c0_1, %c0_2] : memref<256x128xbf16, #tpu.memory_space<vmem>>, vector<256x128xbf16>
    %cst = arith.constant dense<0.000000e+00> : vector<128x128xf32>
    %2 = tpu.matmul %0, %1, %cst {dimension_numbers = #tpu.dot_dimension_numbers<[1], [0], [0], [1], [0, 0, 1, 1], [], []>} : vector<128x256xbf16>, vector<256x128xbf16>, vector<128x128xf32> -> vector<128x128xf32>
    %c0_3 = arith.constant 0 : index
    %c0_4 = arith.constant 0 : index
    %3 = vector.load %arg3[%c0_3, %c0_4] : memref<1x128xf32, #tpu.memory_space<vmem>>, vector<1x128xf32>
    %4 = vector.broadcast %3 : vector<1x128xf32> to vector<128x128xf32>
    %5 = arith.mulf %2, %4 : vector<128x128xf32>
    %c0_5 = arith.constant 0 : index
    %c0_6 = arith.constant 0 : index
    %6 = vector.load %arg4[%c0_5, %c0_6] : memref<1x128xf32, #tpu.memory_space<vmem>>, vector<1x128xf32>
    %7 = vector.broadcast %6 : vector<1x128xf32> to vector<128x128xf32>
    %8 = arith.addf %5, %7 : vector<128x128xf32>
    %9 = vector.extract_strided_slice %8 {offsets = [0, 0], sizes = [32, 128], strides = [1, 1]} : vector<128x128xf32> to vector<32x128xf32>
    %10 = vector.extract_strided_slice %8 {offsets = [32, 0], sizes = [32, 128], strides = [1, 1]} : vector<128x128xf32> to vector<32x128xf32>
    %11 = arith.maximumf %9, %10 : vector<32x128xf32>
    %12 = vector.extract_strided_slice %8 {offsets = [64, 0], sizes = [32, 128], strides = [1, 1]} : vector<128x128xf32> to vector<32x128xf32>
    %13 = vector.extract_strided_slice %8 {offsets = [96, 0], sizes = [32, 128], strides = [1, 1]} : vector<128x128xf32> to vector<32x128xf32>
    %14 = arith.maximumf %12, %13 : vector<32x128xf32>
    %15 = arith.maximumf %11, %14 : vector<32x128xf32>
    %cst_7 = arith.constant 0.000000e+00 : f32
    %16 = vector.broadcast %cst_7 : f32 to vector<32x128xf32>
    %17 = arith.maximumf %15, %16 : vector<32x128xf32>
    %18 = arith.truncf %17 : vector<32x128xf32> to vector<32x128xbf16>
    %c0_8 = arith.constant 0 : index
    %c0_9 = arith.constant 0 : index
    %19 = vector.load %arg5[%c0_8, %c0_9] : memref<32x128xbf16, #tpu.memory_space<vmem>>, vector<32x128xbf16>
    tpu.vector_store %arg5[%c0_8, %c0_9], %18 {strides = array<i32>} : memref<32x128xbf16, #tpu.memory_space<vmem>>, vector<32x128xbf16>,
    return
  }
  func.func @transform_0(%arg0: i32) -> (i32, i32) {
    %c0_i32 = arith.constant 0 : i32
    %c0_i32_0 = arith.constant 0 : i32
    %c0_i32_1 = arith.constant 0 : i32
    return %c0_i32, %c0_i32_0 : i32, i32
  }
  func.func @transform_1(%arg0: i32) -> (i32, i32) {
    %c0_i32 = arith.constant 0 : i32
    %c0_i32_0 = arith.constant 0 : i32
    %c0_i32_1 = arith.constant 0 : i32
    return %c0_i32, %c0_i32_0 : i32, i32
  }
  func.func @transform_2(%arg0: i32) -> (i32, i32) {
    %c0_i32 = arith.constant 0 : i32
    %c0_i32_0 = arith.constant 0 : i32
    %c0_i32_1 = arith.constant 0 : i32
    return %c0_i32, %c0_i32_0 : i32, i32
  }
  func.func @transform_3(%arg0: i32) -> (i32, i32) {
    %c0_i32 = arith.constant 0 : i32
    %c0_i32_0 = arith.constant 0 : i32
    %c0_i32_1 = arith.constant 0 : i32
    return %c0_i32, %c0_i32_0 : i32, i32
  }
  func.func @transform_4(%arg0: i32) -> (i32, i32) {
    %c0_i32 = arith.constant 0 : i32
    %c0_i32_0 = arith.constant 0 : i32
    %c0_i32_1 = arith.constant 0 : i32
    return %c0_i32, %c0_i32_0 : i32, i32
  }
}

module attributes {stable_mosaic.version = 11 : i64} {
  func.func @conv4_mlp_kernel(%arg0: i32, %arg1: memref<32x512xbf16, #tpu.memory_space<vmem>>, %arg2: memref<512x512xbf16, #tpu.memory_space<vmem>>, %arg3: memref<1x512xf32, #tpu.memory_space<vmem>>, %arg4: memref<1x512xf32, #tpu.memory_space<vmem>>, %arg5: memref<4x512x512xbf16, #tpu.memory_space<vmem>>, %arg6: memref<1x512xf32, #tpu.memory_space<vmem>>, %arg7: memref<512x128xbf16, #tpu.memory_space<vmem>>, %arg8: memref<1x128xf32, #tpu.memory_space<vmem>>, %arg9: memref<128x2xbf16, #tpu.memory_space<vmem>>, %arg10: memref<1x2xf32, #tpu.memory_space<vmem>>, %arg11: memref<2x2xf32, #tpu.memory_space<vmem>>) attributes {dimension_semantics = [#tpu.dimension_semantics<arbitrary>], iteration_bounds = array<i64: 1>, scalar_prefetch = 0 : i64, scratch_operands = 0 : i64, tpu.core_type = #tpu.core_type<tc>, window_params = [{pipeline_mode = #tpu.pipeline_mode<synchronous>, transform_indices = @transform_0, window_bounds = array<i64: 32, 512>}, {pipeline_mode = #tpu.pipeline_mode<synchronous>, transform_indices = @transform_1, window_bounds = array<i64: 512, 512>}, {pipeline_mode = #tpu.pipeline_mode<synchronous>, transform_indices = @transform_2, window_bounds = array<i64: 1, 512>}, {pipeline_mode = #tpu.pipeline_mode<synchronous>, transform_indices = @transform_3, window_bounds = array<i64: 1, 512>}, {pipeline_mode = #tpu.pipeline_mode<synchronous>, transform_indices = @transform_4, window_bounds = array<i64: 4, 512, 512>}, {pipeline_mode = #tpu.pipeline_mode<synchronous>, transform_indices = @transform_5, window_bounds = array<i64: 1, 512>}, {pipeline_mode = #tpu.pipeline_mode<synchronous>, transform_indices = @transform_6, window_bounds = array<i64: 512, 128>}, {pipeline_mode = #tpu.pipeline_mode<synchronous>, transform_indices = @transform_7, window_bounds = array<i64: 1, 128>}, {pipeline_mode = #tpu.pipeline_mode<synchronous>, transform_indices = @transform_8, window_bounds = array<i64: 128, 2>}, {pipeline_mode = #tpu.pipeline_mode<synchronous>, transform_indices = @transform_9, window_bounds = array<i64: 1, 2>}, {pipeline_mode = #tpu.pipeline_mode<synchronous>, transform_indices = @transform_10, window_bounds = array<i64: 2, 2>}]} {
    %c0 = arith.constant 0 : index
    %c0_0 = arith.constant 0 : index
    %0 = vector.load %arg1[%c0, %c0_0] : memref<32x512xbf16, #tpu.memory_space<vmem>>, vector<32x512xbf16>
    %c0_1 = arith.constant 0 : index
    %c0_2 = arith.constant 0 : index
    %1 = vector.load %arg2[%c0_1, %c0_2] : memref<512x512xbf16, #tpu.memory_space<vmem>>, vector<512x512xbf16>
    %cst = arith.constant dense<0.000000e+00> : vector<32x512xf32>
    %2 = tpu.matmul %0, %1, %cst {dimension_numbers = #tpu.dot_dimension_numbers<[1], [0], [0], [1], [0, 0, 1, 1], [], []>} : vector<32x512xbf16>, vector<512x512xbf16>, vector<32x512xf32> -> vector<32x512xf32>
    %c0_3 = arith.constant 0 : index
    %c0_4 = arith.constant 0 : index
    %3 = vector.load %arg3[%c0_3, %c0_4] : memref<1x512xf32, #tpu.memory_space<vmem>>, vector<1x512xf32>
    %4 = vector.broadcast %3 : vector<1x512xf32> to vector<32x512xf32>
    %5 = arith.mulf %2, %4 : vector<32x512xf32>
    %c0_5 = arith.constant 0 : index
    %c0_6 = arith.constant 0 : index
    %6 = vector.load %arg4[%c0_5, %c0_6] : memref<1x512xf32, #tpu.memory_space<vmem>>, vector<1x512xf32>
    %7 = vector.broadcast %6 : vector<1x512xf32> to vector<32x512xf32>
    %8 = arith.addf %5, %7 : vector<32x512xf32>
    %9 = vector.extract_strided_slice %8 {offsets = [0, 0], sizes = [8, 512], strides = [1, 1]} : vector<32x512xf32> to vector<8x512xf32>
    %10 = vector.extract_strided_slice %8 {offsets = [8, 0], sizes = [8, 512], strides = [1, 1]} : vector<32x512xf32> to vector<8x512xf32>
    %11 = arith.maximumf %9, %10 : vector<8x512xf32>
    %12 = vector.extract_strided_slice %8 {offsets = [16, 0], sizes = [8, 512], strides = [1, 1]} : vector<32x512xf32> to vector<8x512xf32>
    %13 = vector.extract_strided_slice %8 {offsets = [24, 0], sizes = [8, 512], strides = [1, 1]} : vector<32x512xf32> to vector<8x512xf32>
    %14 = arith.maximumf %12, %13 : vector<8x512xf32>
    %15 = arith.maximumf %11, %14 : vector<8x512xf32>
    %cst_7 = arith.constant 0.000000e+00 : f32
    %16 = vector.broadcast %cst_7 : f32 to vector<8x512xf32>
    %17 = arith.maximumf %15, %16 : vector<8x512xf32>
    %18 = arith.truncf %17 : vector<8x512xf32> to vector<8x512xbf16>
    %19 = vector.extract_strided_slice %18 {offsets = [0, 0], sizes = [2, 512], strides = [1, 1]} : vector<8x512xbf16> to vector<2x512xbf16>
    %c0_8 = arith.constant 0 : index
    %c0_9 = arith.constant 0 : index
    %c0_10 = arith.constant 0 : index
    %20 = vector.load %arg5[%c0_8, %c0_9, %c0_10] : memref<4x512x512xbf16, #tpu.memory_space<vmem>>, vector<1x512x512xbf16>
    %21 = vector.shape_cast %20 : vector<1x512x512xbf16> to vector<512x512xbf16>
    %cst_11 = arith.constant dense<0.000000e+00> : vector<2x512xf32>
    %22 = tpu.matmul %19, %21, %cst_11 {dimension_numbers = #tpu.dot_dimension_numbers<[1], [0], [0], [1], [0, 0, 1, 1], [], []>} : vector<2x512xbf16>, vector<512x512xbf16>, vector<2x512xf32> -> vector<2x512xf32>
    %23 = vector.extract_strided_slice %18 {offsets = [2, 0], sizes = [2, 512], strides = [1, 1]} : vector<8x512xbf16> to vector<2x512xbf16>
    %c1 = arith.constant 1 : index
    %c0_12 = arith.constant 0 : index
    %c0_13 = arith.constant 0 : index
    %24 = vector.load %arg5[%c1, %c0_12, %c0_13] : memref<4x512x512xbf16, #tpu.memory_space<vmem>>, vector<1x512x512xbf16>
    %25 = vector.shape_cast %24 : vector<1x512x512xbf16> to vector<512x512xbf16>
    %cst_14 = arith.constant dense<0.000000e+00> : vector<2x512xf32>
    %26 = tpu.matmul %23, %25, %cst_14 {dimension_numbers = #tpu.dot_dimension_numbers<[1], [0], [0], [1], [0, 0, 1, 1], [], []>} : vector<2x512xbf16>, vector<512x512xbf16>, vector<2x512xf32> -> vector<2x512xf32>
    %27 = arith.addf %22, %26 : vector<2x512xf32>
    %28 = vector.extract_strided_slice %18 {offsets = [4, 0], sizes = [2, 512], strides = [1, 1]} : vector<8x512xbf16> to vector<2x512xbf16>
    %c2 = arith.constant 2 : index
    %c0_15 = arith.constant 0 : index
    %c0_16 = arith.constant 0 : index
    %29 = vector.load %arg5[%c2, %c0_15, %c0_16] : memref<4x512x512xbf16, #tpu.memory_space<vmem>>, vector<1x512x512xbf16>
    %30 = vector.shape_cast %29 : vector<1x512x512xbf16> to vector<512x512xbf16>
    %cst_17 = arith.constant dense<0.000000e+00> : vector<2x512xf32>
    %31 = tpu.matmul %28, %30, %cst_17 {dimension_numbers = #tpu.dot_dimension_numbers<[1], [0], [0], [1], [0, 0, 1, 1], [], []>} : vector<2x512xbf16>, vector<512x512xbf16>, vector<2x512xf32> -> vector<2x512xf32>
    %32 = arith.addf %27, %31 : vector<2x512xf32>
    %33 = vector.extract_strided_slice %18 {offsets = [6, 0], sizes = [2, 512], strides = [1, 1]} : vector<8x512xbf16> to vector<2x512xbf16>
    %c3 = arith.constant 3 : index
    %c0_18 = arith.constant 0 : index
    %c0_19 = arith.constant 0 : index
    %34 = vector.load %arg5[%c3, %c0_18, %c0_19] : memref<4x512x512xbf16, #tpu.memory_space<vmem>>, vector<1x512x512xbf16>
    %35 = vector.shape_cast %34 : vector<1x512x512xbf16> to vector<512x512xbf16>
    %cst_20 = arith.constant dense<0.000000e+00> : vector<2x512xf32>
    %36 = tpu.matmul %33, %35, %cst_20 {dimension_numbers = #tpu.dot_dimension_numbers<[1], [0], [0], [1], [0, 0, 1, 1], [], []>} : vector<2x512xbf16>, vector<512x512xbf16>, vector<2x512xf32> -> vector<2x512xf32>
    %37 = arith.addf %32, %36 : vector<2x512xf32>
    %c0_21 = arith.constant 0 : index
    %c0_22 = arith.constant 0 : index
    %38 = vector.load %arg6[%c0_21, %c0_22] : memref<1x512xf32, #tpu.memory_space<vmem>>, vector<1x512xf32>
    %39 = vector.broadcast %38 : vector<1x512xf32> to vector<2x512xf32>
    %40 = arith.addf %37, %39 : vector<2x512xf32>
    %cst_23 = arith.constant 0.000000e+00 : f32
    %41 = vector.broadcast %cst_23 : f32 to vector<2x512xf32>
    %42 = arith.maximumf %40, %41 : vector<2x512xf32>
    %43 = arith.truncf %42 : vector<2x512xf32> to vector<2x512xbf16>
    %c0_24 = arith.constant 0 : index
    %c0_25 = arith.constant 0 : index
    %44 = vector.load %arg7[%c0_24, %c0_25] : memref<512x128xbf16, #tpu.memory_space<vmem>>, vector<512x128xbf16>
    %cst_26 = arith.constant dense<0.000000e+00> : vector<2x128xf32>
    %45 = tpu.matmul %43, %44, %cst_26 {dimension_numbers = #tpu.dot_dimension_numbers<[1], [0], [0], [1], [0, 0, 1, 1], [], []>} : vector<2x512xbf16>, vector<512x128xbf16>, vector<2x128xf32> -> vector<2x128xf32>
    %c0_27 = arith.constant 0 : index
    %c0_28 = arith.constant 0 : index
    %46 = vector.load %arg8[%c0_27, %c0_28] : memref<1x128xf32, #tpu.memory_space<vmem>>, vector<1x128xf32>
    %47 = vector.broadcast %46 : vector<1x128xf32> to vector<2x128xf32>
    %48 = arith.addf %45, %47 : vector<2x128xf32>
    %cst_29 = arith.constant 0.000000e+00 : f32
    %49 = vector.broadcast %cst_29 : f32 to vector<2x128xf32>
    %50 = arith.maximumf %48, %49 : vector<2x128xf32>
    %51 = arith.truncf %50 : vector<2x128xf32> to vector<2x128xbf16>
    %c0_30 = arith.constant 0 : index
    %c0_31 = arith.constant 0 : index
    %52 = vector.load %arg9[%c0_30, %c0_31] : memref<128x2xbf16, #tpu.memory_space<vmem>>, vector<128x2xbf16>
    %cst_32 = arith.constant dense<0.000000e+00> : vector<2x2xf32>
    %53 = tpu.matmul %51, %52, %cst_32 {dimension_numbers = #tpu.dot_dimension_numbers<[1], [0], [0], [1], [0, 0, 1, 1], [], []>} : vector<2x128xbf16>, vector<128x2xbf16>, vector<2x2xf32> -> vector<2x2xf32>
    %c0_33 = arith.constant 0 : index
    %c0_34 = arith.constant 0 : index
    %54 = vector.load %arg10[%c0_33, %c0_34] : memref<1x2xf32, #tpu.memory_space<vmem>>, vector<1x2xf32>
    %55 = vector.broadcast %54 : vector<1x2xf32> to vector<2x2xf32>
    %56 = arith.addf %53, %55 : vector<2x2xf32>
    %c0_35 = arith.constant 0 : index
    %c0_36 = arith.constant 0 : index
    %57 = vector.load %arg11[%c0_35, %c0_36] : memref<2x2xf32, #tpu.memory_space<vmem>>, vector<2x2xf32>
    tpu.vector_store %arg11[%c0_35, %c0_36], %56 {strides = array<i32>} : memref<2x2xf32, #tpu.memory_space<vmem>>, vector<2x2xf32>,
    return
  }
  func.func @transform_0(%arg0: i32) -> (i32, i32) {
    %c0_i32 = arith.constant 0 : i32
    %c0_i32_0 = arith.constant 0 : i32
    %c0_i32_1 = arith.constant 0 : i32
    return %c0_i32, %c0_i32_0 : i32, i32
  }
  func.func @transform_1(%arg0: i32) -> (i32, i32) {
    %c0_i32 = arith.constant 0 : i32
    %c0_i32_0 = arith.constant 0 : i32
    %c0_i32_1 = arith.constant 0 : i32
    return %c0_i32, %c0_i32_0 : i32, i32
  }
  func.func @transform_2(%arg0: i32) -> (i32, i32) {
    %c0_i32 = arith.constant 0 : i32
    %c0_i32_0 = arith.constant 0 : i32
    %c0_i32_1 = arith.constant 0 : i32
    return %c0_i32, %c0_i32_0 : i32, i32
  }
  func.func @transform_3(%arg0: i32) -> (i32, i32) {
    %c0_i32 = arith.constant 0 : i32
    %c0_i32_0 = arith.constant 0 : i32
    %c0_i32_1 = arith.constant 0 : i32
    return %c0_i32, %c0_i32_0 : i32, i32
  }
  func.func @transform_4(%arg0: i32) -> (i32, i32, i32) {
    %c0_i32 = arith.constant 0 : i32
    %c0_i32_0 = arith.constant 0 : i32
    %c0_i32_1 = arith.constant 0 : i32
    %c0_i32_2 = arith.constant 0 : i32
    return %c0_i32, %c0_i32_0, %c0_i32_1 : i32, i32, i32
  }
  func.func @transform_5(%arg0: i32) -> (i32, i32) {
    %c0_i32 = arith.constant 0 : i32
    %c0_i32_0 = arith.constant 0 : i32
    %c0_i32_1 = arith.constant 0 : i32
    return %c0_i32, %c0_i32_0 : i32, i32
  }
  func.func @transform_6(%arg0: i32) -> (i32, i32) {
    %c0_i32 = arith.constant 0 : i32
    %c0_i32_0 = arith.constant 0 : i32
    %c0_i32_1 = arith.constant 0 : i32
    return %c0_i32, %c0_i32_0 : i32, i32
  }
  func.func @transform_7(%arg0: i32) -> (i32, i32) {
    %c0_i32 = arith.constant 0 : i32
    %c0_i32_0 = arith.constant 0 : i32
    %c0_i32_1 = arith.constant 0 : i32
    return %c0_i32, %c0_i32_0 : i32, i32
  }
  func.func @transform_8(%arg0: i32) -> (i32, i32) {
    %c0_i32 = arith.constant 0 : i32
    %c0_i32_0 = arith.constant 0 : i32
    %c0_i32_1 = arith.constant 0 : i32
    return %c0_i32, %c0_i32_0 : i32, i32
  }
  func.func @transform_9(%arg0: i32) -> (i32, i32) {
    %c0_i32 = arith.constant 0 : i32
    %c0_i32_0 = arith.constant 0 : i32
    %c0_i32_1 = arith.constant 0 : i32
    return %c0_i32, %c0_i32_0 : i32, i32
  }
  func.func @transform_10(%arg0: i32) -> (i32, i32) {
    %c0_i32 = arith.constant 0 : i32
    %c0_i32_0 = arith.constant 0 : i32
    %c0_i32_1 = arith.constant 0 : i32
    return %c0_i32, %c0_i32_0 : i32, i32
  }
}

</mosaic_0001>

<bundles_post_ra>
// kernel: model_forward.5
= control target key start
LH: loop header
LB: loop body
LE: loop exit
PB: predicated region body
PF: predicated region fallthrough
CT: control target
= control target key end

     0   :  { %vm897_vm0 = vcmask 519168   ;;  %s1611_s1 = inlined_call_operand.vmem [shape: bf16[128,64], index: 1, kind: input, shape index: {}]   ;;  %s1612_s0 = inlined_call_operand.vmem [shape: bf16[512,128], index: 0, kind: input, shape index: {}]   ;;  %s1613_s2 = inlined_call_operand.vmem [shape: f32[1,64], index: 2, kind: input, shape index: {}]   ;;  %s1614_s3 = inlined_call_operand.vmem [shape: f32[1,64], index: 3, kind: input, shape index: {}]   ;;  %s1615_s4 = inlined_call_operand.vmem [shape: bf16[128,64], index: 4, kind: output, shape index: {}]  }
   0x1   :  { %v1128_v0 = vld [vmem:[%s1611_s1 + $0x38] sm:$0xff]   ;;  %v1129_v1 = vld [vmem:[%s1611_s1 + $0x30] sm:$0xff]   ;;  %v1130_v2 = vld [vmem:[%s1611_s1 + $0x28] sm:$0xff]  }
   0x2   :  { %1032 = vmatprep.subr.bf16.mxu0 %v1128_v0  ;;  %1112 = vmatprep.subr.bf16.mxu1 %v1128_v0  ;;  %v1131_v3 = vld [vmem:[%s1611_s1 + $0x20] sm:$0xff]   ;;  %v1132_v6 = vld [vmem:[%s1611_s1 + $0x18] sm:$0xff]   ;;  %v1133_v7 = vld [vmem:[%s1611_s1 + $0x10] sm:$0xff]  }
   0x3   :  { %1033 = vmatpush3.bf16.msra.mxu0 %v1128_v0  ;;  %1120 = vmatpush3.bf16.msra.mxu1 %v1128_v0  ;;  %v1136_v4 = vld [vmem:[%s1612_s0] sm:$0xff]   ;;  %v1134_v8 = vld [vmem:[%s1611_s1 + $0x8] sm:$0xff]   ;;  %v1140_v12 = vld [vmem:[%s1612_s0 + $0x10] sm:$0xff]  }
   0x4   :  { %1034 = vmatprep.subr.bf16.mxu0 %v1129_v1  ;;  %1113 = vmatprep.subr.bf16.mxu1 %v1129_v1  ;;  %v1137_v5 = vld [vmem:[%s1612_s0 + $0x80] sm:$0xff]   ;;  %v1138_v10 = vld [vmem:[%s1612_s0 + $0x8] sm:$0xff]   ;;  %v1141_v13 = vld [vmem:[%s1612_s0 + $0x90] sm:$0xff]  }
   0x5   :  { %1048 = vmatprep.mubr.bf16.mxu0 %v1136_v4  ;;  %1080 = vmatprep.mubr.bf16.mxu1 %v1137_v5  ;;  %v1135_v9 = vld [vmem:[%s1611_s1] sm:$0xff]   ;;  %v1139_v11 = vld [vmem:[%s1612_s0 + $0x88] sm:$0xff]   ;;  %v1142_v14 = vld [vmem:[%s1612_s0 + $0x18] sm:$0xff]  }
   0x6   :  { %v1143_v15 = vld [vmem:[%s1612_s0 + $0x98] sm:$0xff]   ;;  %v1144_v16 = vld [vmem:[%s1612_s0 + $0x20] sm:$0xff]   ;;  %v1146_v18 = vld [vmem:[%s1612_s0 + $0x28] sm:$0xff]  }
   0x7   :  { %1035 = vmatpush3.bf16.msra.mxu0 %v1129_v1  ;;  %1121 = vmatpush3.bf16.msra.mxu1 %v1129_v1  ;;  %v1145_v17 = vld [vmem:[%s1612_s0 + $0xa0] sm:$0xff]   ;;  %v1147_v19 = vld [vmem:[%s1612_s0 + $0xa8] sm:$0xff]   ;;  %v1148_v20 = vld [vmem:[%s1612_s0 + $0x30] sm:$0xff]  }
   0x8   :  { %1036 = vmatprep.subr.bf16.mxu0 %v1130_v2  ;;  %1114 = vmatprep.subr.bf16.mxu1 %v1130_v2  ;;  %v1149_v21 = vld [vmem:[%s1612_s0 + $0xb0] sm:$0xff]   ;;  %v1150_v22 = vld [vmem:[%s1612_s0 + $0x38] sm:$0xff]   ;;  %v1152_v24 = vld [vmem:[%s1612_s0 + $0x40] sm:$0xff]  }
   0x9   :  { %v1151_v23 = vld [vmem:[%s1612_s0 + $0xb8] sm:$0xff]   ;;  %v1153_v25 = vld [vmem:[%s1612_s0 + $0xc0] sm:$0xff]   ;;  %v1154_v26 = vld [vmem:[%s1612_s0 + $0x48] sm:$0xff]  }
   0xa   :  { %v1155_v27 = vld [vmem:[%s1612_s0 + $0xc8] sm:$0xff]   ;;  %v1156_v28 = vld [vmem:[%s1612_s0 + $0x50] sm:$0xff]   ;;  %v1158_v30 = vld [vmem:[%s1612_s0 + $0x58] sm:$0xff]  }
   0xb   :  { %1037 = vmatpush3.bf16.msra.mxu0 %v1130_v2  ;;  %1122 = vmatpush3.bf16.msra.mxu1 %v1130_v2  ;;  %v1157_v29 = vld [vmem:[%s1612_s0 + $0xd0] sm:$0xff]   ;;  %v1159_v31 = vld [vmem:[%s1612_s0 + $0xd8] sm:$0xff]   ;;  %v1160_v32 = vld [vmem:[%s1612_s0 + $0x60] sm:$0xff]  }
   0xc   :  { %1038 = vmatprep.subr.bf16.mxu0 %v1131_v3  ;;  %1115 = vmatprep.subr.bf16.mxu1 %v1131_v3  ;;  %v1161_v33 = vld [vmem:[%s1612_s0 + $0xe0] sm:$0xff]   ;;  %v1162_v34 = vld [vmem:[%s1612_s0 + $0x68] sm:$0xff]   ;;  %v1164_v36 = vld [vmem:[%s1612_s0 + $0x70] sm:$0xff]  }
   0xd   :  { %v1163_v35 = vld [vmem:[%s1612_s0 + $0xe8] sm:$0xff]   ;;  %v1165_v37 = vld [vmem:[%s1612_s0 + $0xf0] sm:$0xff]   ;;  %v1166_v38 = vld [vmem:[%s1612_s0 + $0x78] sm:$0xff]  }
   0xe   :  { %v1167_v39 = vld [vmem:[%s1612_s0 + $0xf8] sm:$0xff]   ;;  %v1316_v56 = vld [vmem:[%s1613_s2] ss:$0 sm:$0xff] }
   0xf   :  { %1039 = vmatpush3.bf16.msra.mxu0 %v1131_v3  ;;  %1123 = vmatpush3.bf16.msra.mxu1 %v1131_v3  ;;  %v1325_v1 = vld [vmem:[%s1614_s3] ss:$0 sm:$0xff] }
  0x10   :  { %1040 = vmatprep.subr.bf16.mxu0 %v1132_v6  ;;  %1116 = vmatprep.subr.bf16.mxu1 %v1132_v6 }
  0x13   :  { %1041 = vmatpush3.bf16.msra.mxu0 %v1132_v6  ;;  %1124 = vmatpush3.bf16.msra.mxu1 %v1132_v6 }
  0x14   :  { %1042 = vmatprep.subr.bf16.mxu0 %v1133_v7  ;;  %1117 = vmatprep.subr.bf16.mxu1 %v1133_v7 }
  0x17   :  { %1043 = vmatpush3.bf16.msra.mxu0 %v1133_v7  ;;  %1125 = vmatpush3.bf16.msra.mxu1 %v1133_v7 }
  0x18   :  { %1044 = vmatprep.subr.bf16.mxu0 %v1134_v8  ;;  %1118 = vmatprep.subr.bf16.mxu1 %v1134_v8 }
  0x1b   :  { %1045 = vmatpush3.bf16.msra.mxu0 %v1134_v8  ;;  %1126 = vmatpush3.bf16.msra.mxu1 %v1134_v8 }
  0x1c   :  { %1046 = vmatprep.subr.bf16.mxu0 %v1135_v9  ;;  %1119 = vmatprep.subr.bf16.mxu1 %v1135_v9 }
  0x1f   :  { %1047 = vmatpush3.bf16.msra.mxu0 %v1135_v9  ;;  %1127 = vmatpush3.bf16.msra.mxu1 %v1135_v9 }
  0x22   :  { %1049 = vmatmul.mubr.bf16.vlgmr.msra.gmra.mxu0 %v1138_v10  ;;  %1081 = vmatmul.mubr.bf16.vlgmr.msra.gmra.mxu1 %v1139_v11 }
  0x23   :  { %1052 = vmatprep.mubr.bf16.mxu0 %v1140_v12  ;;  %1084 = vmatprep.mubr.bf16.mxu1 %v1141_v13 }
  0x2a   :  { %1053 = vmatmul.mubr.bf16.gmra.mxu0 %v1142_v14  ;;  %1085 = vmatmul.mubr.bf16.gmra.mxu1 %v1143_v15 }
  0x2b   :  { %1056 = vmatprep.mubr.bf16.mxu0 %v1144_v16  ;;  %1088 = vmatprep.mubr.bf16.mxu1 %v1145_v17 }
  0x32   :  { %1057 = vmatmul.mubr.bf16.gmra.mxu0 %v1146_v18  ;;  %1089 = vmatmul.mubr.bf16.gmra.mxu1 %v1147_v19 }
  0x33   :  { %1060 = vmatprep.mubr.bf16.mxu0 %v1148_v20  ;;  %1092 = vmatprep.mubr.bf16.mxu1 %v1149_v21 }
  0x3a   :  { %1061 = vmatmul.mubr.bf16.gmra.mxu0 %v1150_v22  ;;  %1093 = vmatmul.mubr.bf16.gmra.mxu1 %v1151_v23 }
  0x3b   :  { %1064 = vmatprep.mubr.bf16.mxu0 %v1152_v24  ;;  %1096 = vmatprep.mubr.bf16.mxu1 %v1153_v25 }
  0x42   :  { %1065 = vmatmul.mubr.bf16.gmra.mxu0 %v1154_v26  ;;  %1097 = vmatmul.mubr.bf16.gmra.mxu1 %v1155_v27 }
  0x43   :  { %1068 = vmatprep.mubr.bf16.mxu0 %v1156_v28  ;;  %1100 = vmatprep.mubr.bf16.mxu1 %v1157_v29 }
  0x4a   :  { %1069 = vmatmul.mubr.bf16.gmra.mxu0 %v1158_v30  ;;  %1101 = vmatmul.mubr.bf16.gmra.mxu1 %v1159_v31 }
  0x4b   :  { %1072 = vmatprep.mubr.bf16.mxu0 %v1160_v32  ;;  %1104 = vmatprep.mubr.bf16.mxu1 %v1161_v33 }
  0x52   :  { %1073 = vmatmul.mubr.bf16.gmra.mxu0 %v1162_v34  ;;  %1105 = vmatmul.mubr.bf16.gmra.mxu1 %v1163_v35 }
  0x53   :  { %1076 = vmatprep.mubr.bf16.mxu0 %v1164_v36  ;;  %1108 = vmatprep.mubr.bf16.mxu1 %v1165_v37 }
  0x5a   :  { %1077 = vmatmul.mubr.bf16.gmra.mxu0 %v1166_v38  ;;  %1109 = vmatmul.mubr.bf16.gmra.mxu1 %v1167_v39 }
  0xe2   :  { %v1050_v40 = vpop.f32.mrf.mxu0  ;;  %v1082_v41 = vpop.f32.mrf.mxu1 }
  0xe3   :  { %v636_v61 = vmul.f32 %v1050_v40, %v1316_v56  ;;  %v668_v62 = vmul.f32 %v1082_v41, %v1316_v56 }
  0xe4   :  { %v372_v42 = vpop.f32.mrf.mxu0  ;;  %v500_v43 = vpop.f32.mrf.mxu1 }
  0xe5   :  { %v634_v63 = vmul.f32 %v1316_v56, %v372_v42  ;;  %v666_v0 = vmul.f32 %v1316_v56, %v500_v43  ;;  %v1333_v11 = vadd.f32 %v1325_v1, %v636_v61  ;;  %v1336_v12 = vadd.f32 %v1325_v1, %v668_v62 }
  0xe6   :  { %v1051_v44 = vpop.f32.mrf.mxu0  ;;  %v1083_v45 = vpop.f32.mrf.mxu1 }
  0xe7   :  { %v637_v4 = vmul.f32 %v1051_v44, %v1316_v56  ;;  %v669_v5 = vmul.f32 %v1083_v45, %v1316_v56  ;;  %v1339_v13 = vadd.f32 %v1325_v1, %v634_v63  ;;  %v1342_v14 = vadd.f32 %v1325_v1, %v666_v0 }
  0xe8   :  { %v375_v46 = vpop.f32.mrf.mxu0  ;;  %v503_v47 = vpop.f32.mrf.mxu1 }
  0xe9   :  { %v635_v6 = vmul.f32 %v1316_v56, %v375_v46  ;;  %v667_v7 = vmul.f32 %v1316_v56, %v503_v47  ;;  %v1349_v21 = vadd.f32 %v1325_v1, %v637_v4  ;;  %v1352_v22 = vadd.f32 %v1325_v1, %v669_v5 }
  0xea   :  { %v1054_v48 = vpop.f32.mrf.mxu0  ;;  %v1086_v49 = vpop.f32.mrf.mxu1 }
  0xeb   :  { %v640_v8 = vmul.f32 %v1054_v48, %v1316_v56  ;;  %v672_v15 = vmul.f32 %v1086_v49, %v1316_v56  ;;  %v1357_v25 = vadd.f32 %v1325_v1, %v635_v6  ;;  %v1360_v26 = vadd.f32 %v1325_v1, %v667_v7 }
  0xec   :  { %v388_v50 = vpop.f32.mrf.mxu0  ;;  %v516_v51 = vpop.f32.mrf.mxu1 }
  0xed   :  { %v638_v16 = vmul.f32 %v1316_v56, %v388_v50  ;;  %v670_v17 = vmul.f32 %v1316_v56, %v516_v51  ;;  %v1363_v27 = vadd.f32 %v1325_v1, %v640_v8  ;;  %v1371_v35 = vadd.f32 %v1325_v1, %v672_v15 }
  0xee   :  { %v1055_v52 = vpop.f32.mrf.mxu0  ;;  %v1087_v53 = vpop.f32.mrf.mxu1 }
  0xef   :  { %v641_v18 = vmul.f32 %v1055_v52, %v1316_v56  ;;  %v673_v23 = vmul.f32 %v1087_v53, %v1316_v56  ;;  %v1374_v36 = vadd.f32 %v1325_v1, %v638_v16  ;;  %v1377_v37 = vadd.f32 %v1325_v1, %v670_v17 }
  0xf0   :  { %v391_v54 = vpop.f32.mrf.mxu0  ;;  %v519_v55 = vpop.f32.mrf.mxu1 }
  0xf1   :  { %v639_v24 = vmul.f32 %v1316_v56, %v391_v54  ;;  %v671_v28 = vmul.f32 %v1316_v56, %v519_v55  ;;  %v1380_v38 = vadd.f32 %v1325_v1, %v641_v18  ;;  %v1383_v41 = vadd.f32 %v1325_v1, %v673_v23 }
  0xf2   :  { %v1058_v57 = vpop.f32.mrf.mxu0  ;;  %v1090_v58 = vpop.f32.mrf.mxu1 }
  0xf3   :  { %v644_v31 = vmul.f32 %v1058_v57, %v1316_v56  ;;  %v676_v32 = vmul.f32 %v1090_v58, %v1316_v56  ;;  %v1386_v42 = vadd.f32 %v1325_v1, %v639_v24  ;;  %v1391_v45 = vadd.f32 %v1325_v1, %v671_v28 }
  0xf4   :  { %v404_v59 = vpop.f32.mrf.mxu0  ;;  %v532_v60 = vpop.f32.mrf.mxu1 }
  0xf5   :  { %v642_v33 = vmul.f32 %v1316_v56, %v404_v59  ;;  %v674_v34 = vmul.f32 %v1316_v56, %v532_v60  ;;  %v1397_v51 = vadd.f32 %v1325_v1, %v644_v31  ;;  %v1400_v52 = vadd.f32 %v1325_v1, %v676_v32 }
  0xf6   :  { %v1059_v2 = vpop.f32.mrf.mxu0  ;;  %v1091_v3 = vpop.f32.mrf.mxu1 }
  0xf7   :  { %v645_v43 = vmul.f32 %v1059_v2, %v1316_v56  ;;  %v677_v44 = vmul.f32 %v1091_v3, %v1316_v56  ;;  %v1403_v53 = vadd.f32 %v1325_v1, %v642_v33  ;;  %v1406_v54 = vadd.f32 %v1325_v1, %v674_v34 }
  0xf8   :  { %v407_v9 = vpop.f32.mrf.mxu0  ;;  %v535_v10 = vpop.f32.mrf.mxu1 }
  0xf9   :  { %v643_v46 = vmul.f32 %v1316_v56, %v407_v9  ;;  %v675_v47 = vmul.f32 %v1316_v56, %v535_v10  ;;  %v1413_v62 = vadd.f32 %v1325_v1, %v645_v43  ;;  %v1416_v63 = vadd.f32 %v1325_v1, %v677_v44 }
  0xfa   :  { %v1062_v19 = vpop.f32.mrf.mxu0  ;;  %v1094_v20 = vpop.f32.mrf.mxu1 }
  0xfb   :  { %v648_v48 = vmul.f32 %v1062_v19, %v1316_v56  ;;  %v680_v55 = vmul.f32 %v1094_v20, %v1316_v56  ;;  %v1421_v3 = vadd.f32 %v1325_v1, %v643_v46  ;;  %v1424_v4 = vadd.f32 %v1325_v1, %v675_v47 }
  0xfc   :  { %v420_v29 = vpop.f32.mrf.mxu0  ;;  %v548_v30 = vpop.f32.mrf.mxu1 }
  0xfd   :  { %v646_v57 = vmul.f32 %v1316_v56, %v420_v29  ;;  %v678_v58 = vmul.f32 %v1316_v56, %v548_v30  ;;  %v1427_v5 = vadd.f32 %v1325_v1, %v648_v48  ;;  %v1435_v17 = vadd.f32 %v1325_v1, %v680_v55 }
  0xfe   :  { %v1063_v39 = vpop.f32.mrf.mxu0  ;;  %v1095_v40 = vpop.f32.mrf.mxu1 }
  0xff   :  { %v649_v59 = vmul.f32 %v1063_v39, %v1316_v56  ;;  %v681_v6 = vmul.f32 %v1095_v40, %v1316_v56  ;;  %v1438_v18 = vadd.f32 %v1325_v1, %v646_v57  ;;  %v1441_v19 = vadd.f32 %v1325_v1, %v678_v58 }
 0x100   :  { %v423_v49 = vpop.f32.mrf.mxu0  ;;  %v551_v50 = vpop.f32.mrf.mxu1 }
 0x101   :  { %v1444_v20 = vadd.f32 %v1325_v1, %v649_v59  ;;  %v1451_v32 = vadd.f32 %v1325_v1, %v681_v6  ;;  %v1454_v33 = vmul.f32 %v1316_v56, %v423_v49  ;;  %v1462_v47 = vmul.f32 %v1316_v56, %v551_v50 }
 0x102   :  { %v1066_v60 = vpop.f32.mrf.mxu0  ;;  %v1098_v61 = vpop.f32.mrf.mxu1 }
 0x103   :  { %v652_v0 = vmul.f32 %v1066_v60, %v1316_v56  ;;  %v684_v2 = vmul.f32 %v1098_v61, %v1316_v56 }
 0x104   :  { %v436_v7 = vpop.f32.mrf.mxu0  ;;  %v564_v8 = vpop.f32.mrf.mxu1 }
 0x105   :  { %v723_v9 = vadd.f32 %v1325_v1, %v652_v0  ;;  %v755_v10 = vadd.f32 %v1325_v1, %v684_v2  ;;  %v650_v15 = vmul.f32 %v1316_v56, %v436_v7  ;;  %v682_v16 = vmul.f32 %v1316_v56, %v564_v8 }
 0x106   :  { %v1067_v23 = vpop.f32.mrf.mxu0  ;;  %v1099_v24 = vpop.f32.mrf.mxu1 }
 0x107   :  { %v771_v28 = vmax.f32 %v1333_v11, %v723_v9  ;;  %v787_v29 = vmax.f32 %v1336_v12, %v755_v10  ;;  %v721_v30 = vadd.f32 %v1325_v1, %v650_v15  ;;  %v753_v31 = vadd.f32 %v1325_v1, %v682_v16 }
 0x108   :  { %v653_v34 = vmul.f32 %v1067_v23, %v1316_v56  ;;  %v685_v39 = vmul.f32 %v1099_v24, %v1316_v56  ;;  %v439_v40 = vpop.f32.mrf.mxu0  ;;  %v567_v43 = vpop.f32.mrf.mxu1 }
 0x109   :  { %v803_v44 = vmax.f32 %v771_v28, %v787_v29  ;;  %v769_v11 = vmax.f32 %v1339_v13, %v721_v30  ;;  %v785_v12 = vmax.f32 %v1342_v14, %v753_v31  ;;  %v651_v46 = vmul.f32 %v1316_v56, %v439_v40 }
 0x10a   :  { %v724_v48 = vadd.f32 %v1325_v1, %v653_v34  ;;  %v756_v49 = vadd.f32 %v1325_v1, %v685_v39  ;;  %v683_v55 = vmul.f32 %v1316_v56, %v567_v43  ;;  %v1070_v57 = vpop.f32.mrf.mxu0  ;;  %v1102_v58 = vpop.f32.mrf.mxu1 }
 0x10b   :  { %v819_v59 = vmax.f32 %v803_v44, 0.0  ;;  %v801_v60 = vmax.f32 %v769_v11, %v785_v12  ;;  %v722_v61 = vadd.f32 %v1325_v1, %v651_v46  ;;  %v656_v13 = vmul.f32 %v1070_v57, %v1316_v56 }
 0x10c   :  { %v772_v14 = vmax.f32 %v1349_v21, %v724_v48  ;;  %v788_v0 = vmax.f32 %v1352_v22, %v756_v49  ;;  %v754_v50 = vadd.f32 %v1325_v1, %v683_v55  ;;  %v688_v2 = vmul.f32 %v1102_v58, %v1316_v56  ;;  %v452_v6 = vpop.f32.mrf.mxu0  ;;  %v580_v7 = vpop.f32.mrf.mxu1 }
 0x10d   :  { %v978_v8 = vpack.c.bf16 %v819_v59, %v819_v59  ;;  %v817_v9 = vmax.f32 %v801_v60, 0.0  ;;  %v770_v10 = vmax.f32 %v1357_v25, %v722_v61  ;;  %v727_v15 = vadd.f32 %v1325_v1, %v656_v13 }
 0x10e   :  { %v804_v16 = vmax.f32 %v772_v14, %v788_v0  ;;  %v786_v23 = vmax.f32 %v1360_v26, %v754_v50  ;;  %v759_v24 = vadd.f32 %v1325_v1, %v688_v2  ;;  %v654_v21 = vmul.f32 %v1316_v56, %v452_v6  ;;  %v1071_v22 = vpop.f32.mrf.mxu0  ;;  %v1103_v28 = vpop.f32.mrf.mxu1 }
 0x10f   :  { %900 = vst.msk [vmem:[%s1615_s4 + $0x8] sm:$0xf] %vm897_vm0, %v978_v8  ;;  %v976_v29 = vpack.c.bf16 %v817_v9, %v817_v9  ;;  %v775_v30 = vmax.f32 %v1363_v27, %v727_v15  ;;  %v686_v25 = vmul.f32 %v1316_v56, %v580_v7  ;;  %v657_v31 = vmul.f32 %v1071_v22, %v1316_v56 }
 0x110   :  { %v820_v34 = vmax.f32 %v804_v16, 0.0  ;;  %v802_v26 = vmax.f32 %v770_v10, %v786_v23  ;;  %v791_v39 = vmax.f32 %v1371_v35, %v759_v24  ;;  %v725_v40 = vadd.f32 %v1325_v1, %v654_v21  ;;  %v455_v43 = vpop.f32.mrf.mxu0  ;;  %v583_v44 = vpop.f32.mrf.mxu1 }
 0x111   :  { %898 = vst.msk [vmem:[%s1615_s4] sm:$0xf] %vm897_vm0, %v976_v29  ;;  %v757_v11 = vadd.f32 %v1325_v1, %v686_v25  ;;  %v728_v27 = vadd.f32 %v1325_v1, %v657_v31  ;;  %v689_v12 = vmul.f32 %v1103_v28, %v1316_v56  ;;  %v655_v46 = vmul.f32 %v1316_v56, %v455_v43 }
 0x112   :  { %v979_v48 = vpack.c.bf16 %v820_v34, %v820_v34  ;;  %v818_v49 = vmax.f32 %v802_v26, 0.0  ;;  %v807_v35 = vmax.f32 %v775_v30, %v791_v39  ;;  %v773_v55 = vmax.f32 %v1374_v36, %v725_v40  ;;  %v1074_v57 = vpop.f32.mrf.mxu0  ;;  %v1106_v58 = vpop.f32.mrf.mxu1 }
 0x113   :  { %v789_v59 = vmax.f32 %v1377_v37, %v757_v11  ;;  %v776_v60 = vmax.f32 %v1380_v38, %v728_v27  ;;  %v760_v61 = vadd.f32 %v1325_v1, %v689_v12  ;;  %v726_v13 = vadd.f32 %v1325_v1, %v655_v46 }
 0x114   :  { %901 = vst.msk [vmem:[%s1615_s4 + $0xc] sm:$0xf] %vm897_vm0, %v979_v48  ;;  %v977_v14 = vpack.c.bf16 %v818_v49, %v818_v49  ;;  %v823_v0 = vmax.f32 %v807_v35, 0.0  ;;  %v687_v50 = vmul.f32 %v1316_v56, %v583_v44  ;;  %v660_v36 = vmul.f32 %v1074_v57, %v1316_v56  ;;  %v468_v2 = vpop.f32.mrf.mxu0  ;;  %v596_v6 = vpop.f32.mrf.mxu1 }
 0x115   :  { %v805_v37 = vmax.f32 %v773_v55, %v789_v59  ;;  %v792_v38 = vmax.f32 %v1383_v41, %v760_v61  ;;  %v774_v7 = vmax.f32 %v1386_v42, %v726_v13  ;;  %v692_v8 = vmul.f32 %v1106_v58, %v1316_v56 }
 0x116   :  { %899 = vst.msk [vmem:[%s1615_s4 + $0x4] sm:$0xf] %vm897_vm0, %v977_v14  ;;  %v982_v9 = vpack.c.bf16 %v823_v0, %v823_v0  ;;  %v758_v10 = vadd.f32 %v1325_v1, %v687_v50  ;;  %v731_v15 = vadd.f32 %v1325_v1, %v660_v36  ;;  %v658_v16 = vmul.f32 %v1316_v56, %v468_v2  ;;  %v1075_v23 = vpop.f32.mrf.mxu0  ;;  %v1107_v24 = vpop.f32.mrf.mxu1 }
 0x117   :  { %v821_v21 = vmax.f32 %v805_v37, 0.0  ;;  %v808_v41 = vmax.f32 %v776_v60, %v792_v38  ;;  %v763_v42 = vadd.f32 %v1325_v1, %v692_v8  ;;  %v690_v22 = vmul.f32 %v1316_v56, %v596_v6 }
 0x118   :  { %904 = vst.msk [vmem:[%s1615_s4 + $0x18] sm:$0xf] %vm897_vm0, %v982_v9  ;;  %v790_v28 = vmax.f32 %v1391_v45, %v758_v10  ;;  %v779_v29 = vmax.f32 %v1397_v51, %v731_v15  ;;  %v729_v30 = vadd.f32 %v1325_v1, %v658_v16  ;;  %v661_v25 = vmul.f32 %v1075_v23, %v1316_v56  ;;  %v471_v31 = vpop.f32.mrf.mxu0  ;;  %v599_v34 = vpop.f32.mrf.mxu1 }
 0x119   :  { %v980_v26 = vpack.c.bf16 %v821_v21, %v821_v21  ;;  %v824_v39 = vmax.f32 %v808_v41, 0.0  ;;  %v795_v40 = vmax.f32 %v1400_v52, %v763_v42  ;;  %v761_v43 = vadd.f32 %v1325_v1, %v690_v22 }
 0x11a   :  { %v806_v44 = vmax.f32 %v774_v7, %v790_v28  ;;  %v777_v11 = vmax.f32 %v1403_v53, %v729_v30  ;;  %v732_v27 = vadd.f32 %v1325_v1, %v661_v25  ;;  %v693_v45 = vmul.f32 %v1107_v24, %v1316_v56  ;;  %v1078_v51 = vpop.f32.mrf.mxu0  ;;  %v1110_v12 = vpop.f32.mrf.mxu1 }
 0x11b   :  { %902 = vst.msk [vmem:[%s1615_s4 + $0x10] sm:$0xf] %vm897_vm0, %v980_v26  ;;  %v983_v46 = vpack.c.bf16 %v824_v39, %v824_v39  ;;  %v811_v48 = vmax.f32 %v779_v29, %v795_v40  ;;  %v793_v52 = vmax.f32 %v1406_v54, %v761_v43  ;;  %v659_v49 = vmul.f32 %v1316_v56, %v471_v31 }
 0x11c   :  { %v822_v35 = vmax.f32 %v806_v44, 0.0  ;;  %v780_v53 = vmax.f32 %v1413_v62, %v732_v27  ;;  %v764_v55 = vadd.f32 %v1325_v1, %v693_v45  ;;  %v691_v57 = vmul.f32 %v1316_v56, %v599_v34  ;;  %v484_v58 = vpop.f32.mrf.mxu0  ;;  %v612_v59 = vpop.f32.mrf.mxu1 }
 0x11d   :  { %905 = vst.msk [vmem:[%s1615_s4 + $0x1c] sm:$0xf] %vm897_vm0, %v983_v46  ;;  %v827_v60 = vmax.f32 %v811_v48, 0.0  ;;  %v809_v61 = vmax.f32 %v777_v11, %v793_v52  ;;  %v730_v54 = vadd.f32 %v1325_v1, %v659_v49  ;;  %v664_v13 = vmul.f32 %v1078_v51, %v1316_v56 }
 0x11e   :  { %v981_v14 = vpack.c.bf16 %v822_v35, %v822_v35  ;;  %v796_v62 = vmax.f32 %v1416_v63, %v764_v55  ;;  %v762_v0 = vadd.f32 %v1325_v1, %v691_v57  ;;  %v696_v50 = vmul.f32 %v1110_v12, %v1316_v56  ;;  %v1079_v36 = vpop.f32.mrf.mxu0  ;;  %v1111_v7 = vpop.f32.mrf.mxu1 }
 0x11f   :  { %v986_v2 = vpack.c.bf16 %v827_v60, %v827_v60  ;;  %v825_v6 = vmax.f32 %v809_v61, 0.0  ;;  %v778_v37 = vmax.f32 %v1421_v3, %v730_v54  ;;  %v735_v38 = vadd.f32 %v1325_v1, %v664_v13 }
 0x120   :  { %903 = vst.msk [vmem:[%s1615_s4 + $0x14] sm:$0xf] %vm897_vm0, %v981_v14  ;;  %v812_v8 = vmax.f32 %v780_v53, %v796_v62  ;;  %v794_v63 = vmax.f32 %v1424_v4, %v762_v0  ;;  %v767_v9 = vadd.f32 %v1325_v1, %v696_v50  ;;  %v662_v10 = vmul.f32 %v1316_v56, %v484_v58  ;;  %v487_v15 = vpop.f32.mrf.mxu0  ;;  %v615_v30 = vpop.f32.mrf.mxu1 }
 0x121   :  { %908 = vst.msk [vmem:[%s1615_s4 + $0x28] sm:$0xf] %vm897_vm0, %v986_v2  ;;  %v984_v3 = vpack.c.bf16 %v825_v6, %v825_v6  ;;  %v783_v16 = vmax.f32 %v1427_v5, %v735_v38  ;;  %v694_v23 = vmul.f32 %v1316_v56, %v612_v59  ;;  %v665_v24 = vmul.f32 %v1079_v36, %v1316_v56 }
 0x122   :  { %v828_v21 = vmax.f32 %v812_v8, 0.0  ;;  %v810_v41 = vmax.f32 %v778_v37, %v794_v63  ;;  %v799_v4 = vmax.f32 %v1435_v17, %v767_v9  ;;  %v733_v42 = vadd.f32 %v1325_v1, %v662_v10 }
 0x123   :  { %906 = vst.msk [vmem:[%s1615_s4 + $0x20] sm:$0xf] %vm897_vm0, %v984_v3  ;;  %v765_v22 = vadd.f32 %v1325_v1, %v694_v23  ;;  %v736_v28 = vadd.f32 %v1325_v1, %v665_v24  ;;  %v697_v5 = vmul.f32 %v1111_v7, %v1316_v56  ;;  %v663_v29 = vmul.f32 %v1316_v56, %v487_v15 }
 0x124   :  { %v987_v25 = vpack.c.bf16 %v828_v21, %v828_v21  ;;  %v826_v31 = vmax.f32 %v810_v41, 0.0  ;;  %v815_v34 = vmax.f32 %v783_v16, %v799_v4  ;;  %v781_v17 = vmax.f32 %v1438_v18, %v733_v42 }
 0x125   :  { %v797_v26 = vmax.f32 %v1441_v19, %v765_v22  ;;  %v784_v39 = vmax.f32 %v1444_v20, %v736_v28  ;;  %v768_v40 = vadd.f32 %v1325_v1, %v697_v5  ;;  %v734_v43 = vadd.f32 %v1325_v1, %v663_v29 }
 0x126   :  { %v718_v44 = vadd.f32 %v1325_v1, %v1454_v33  ;;  %909 = vst.msk [vmem:[%s1615_s4 + $0x2c] sm:$0xf] %vm897_vm0, %v987_v25  ;;  %v985_v11 = vpack.c.bf16 %v826_v31, %v826_v31  ;;  %v831_v27 = vmax.f32 %v815_v34, 0.0  ;;  %v695_v18 = vmul.f32 %v1316_v56, %v615_v30 }
 0x127   :  { %v813_v45 = vmax.f32 %v781_v17, %v797_v26  ;;  %v800_v19 = vmax.f32 %v1451_v32, %v768_v40  ;;  %v750_v20 = vadd.f32 %v1325_v1, %v1462_v47 }
 0x128   :  { %907 = vst.msk [vmem:[%s1615_s4 + $0x24] sm:$0xf] %vm897_vm0, %v985_v11  ;;  %v990_v33 = vpack.c.bf16 %v831_v27, %v831_v27  ;;  %v782_v51 = vmax.f32 %v718_v44, %v734_v43  ;;  %v766_v12 = vadd.f32 %v1325_v1, %v695_v18 }
 0x129   :  { %v829_v46 = vmax.f32 %v813_v45, 0.0  ;;  %v816_v48 = vmax.f32 %v784_v39, %v800_v19 }
 0x12a   :  { %912 = vst.msk [vmem:[%s1615_s4 + $0x38] sm:$0xf] %vm897_vm0, %v990_v33  ;;  %v798_v56 = vmax.f32 %v750_v20, %v766_v12 }
 0x12b   :  { %v988_v32 = vpack.c.bf16 %v829_v46, %v829_v46  ;;  %v832_v52 = vmax.f32 %v816_v48, 0.0 }
 0x12c   :  { %v814_v47 = vmax.f32 %v782_v51, %v798_v56 }
 0x12d   :  { %910 = vst.msk [vmem:[%s1615_s4 + $0x30] sm:$0xf] %vm897_vm0, %v988_v32  ;;  %v991_v49 = vpack.c.bf16 %v832_v52, %v832_v52 }
 0x12e   :  { %v830_v35 = vmax.f32 %v814_v47, 0.0 }
 0x12f   :  { %913 = vst.msk [vmem:[%s1615_s4 + $0x3c] sm:$0xf] %vm897_vm0, %v991_v49 }
 0x130   :  { %v989_v1 = vpack.c.bf16 %v830_v35, %v830_v35 }
 0x132   :  { %911 = vst.msk [vmem:[%s1615_s4 + $0x34] sm:$0xf] %vm897_vm0, %v989_v1 }

// kernel: model_forward.4
= control target key start
LH: loop header
LB: loop body
LE: loop exit
PB: predicated region body
PF: predicated region fallthrough
CT: control target
= control target key end

     0   :  { %vm1306_vm0 = vcmask 1045504   ;;  %vm921_vm1 = vcmask 97280   ;;  %vm3405_vm2 = vcmask 257024   ;;  %s6494_s1 = inlined_call_operand.vmem [shape: bf16[12,32], index: 1, kind: input, shape index: {}]   ;;  %s6495_s0 = inlined_call_operand.vmem [shape: bf16[2048,12], index: 0, kind: input, shape index: {}]   ;;  %s6496_s2 = inlined_call_operand.vmem [shape: f32[1,32], index: 2, kind: input, shape index: {}]   ;;  %s6497_s3 = inlined_call_operand.vmem [shape: f32[1,32], index: 3, kind: input, shape index: {}]   ;;  %s6498_s4 = inlined_call_operand.vmem [shape: bf16[512,32], index: 4, kind: output, shape index: {}]  }
   0x1   :  { %v4252_v0 = vld [vmem:[%s6494_s1] sm:$0x3f]   ;;  %v4255_v4 = vld [vmem:[%s6495_s0 + $0x8] sm:$0xff]   ;;  %v4257_v6 = vld [vmem:[%s6495_s0 + $0x10] sm:$0xff]  }
   0x2   :  { %v4253_v1 = vld [vmem:[%s6495_s0] sm:$0xff]   ;;  %4250 = vmatprep.subr.msk.bf16.mxu0 %vm1306_vm0, %v4252_v0  ;;  %4251 = vmatprep.subr.msk.bf16.mxu1 %vm1306_vm0, %v4252_v0  ;;  %v1308_v2 = vsel %vm1306_vm0, %v4252_v0, 0  ;;  %v4256_v5 = vld [vmem:[%s6495_s0 + $0x208] sm:$0xff]   ;;  %v4258_v7 = vld [vmem:[%s6495_s0 + $0x210] sm:$0xff]  }
   0x3   :  { %v4254_v3 = vld [vmem:[%s6495_s0 + $0x200] sm:$0xff]   ;;  %3991 = vmatpush3.bf16.msra.mxu0 %v1308_v2  ;;  %4249 = vmatpush3.bf16.msra.mxu1 %v1308_v2  ;;  %v4259_v8 = vld [vmem:[%s6495_s0 + $0x18] sm:$0xff]   ;;  %v4263_v12 = vld [vmem:[%s6495_s0 + $0x28] sm:$0xff]  }
   0x4   :  { %3992 = vmatprep.mubr.msk.bf16.mxu0 %vm921_vm1, %v4253_v1  ;;  %4120 = vmatprep.mubr.msk.bf16.mxu1 %vm921_vm1, %v4254_v3  ;;  %v4260_v9 = vld [vmem:[%s6495_s0 + $0x218] sm:$0xff]   ;;  %v4261_v10 = vld [vmem:[%s6495_s0 + $0x20] sm:$0xff]   ;;  %v4264_v13 = vld [vmem:[%s6495_s0 + $0x228] sm:$0xff]  }
   0x5   :  { %v4262_v11 = vld [vmem:[%s6495_s0 + $0x220] sm:$0xff]   ;;  %v4265_v14 = vld [vmem:[%s6495_s0 + $0x30] sm:$0xff]   ;;  %v4267_v16 = vld [vmem:[%s6495_s0 + $0x38] sm:$0xff]  }
   0x6   :  { %3993 = vmatmul.mubr.msk.bf16.vlgmr.msra.gmra.mxu0 %vm921_vm1, %v4255_v4  ;;  %4121 = vmatmul.mubr.msk.bf16.vlgmr.msra.gmra.mxu1 %vm921_vm1, %v4256_v5  ;;  %v4266_v15 = vld [vmem:[%s6495_s0 + $0x230] sm:$0xff]   ;;  %v4268_v17 = vld [vmem:[%s6495_s0 + $0x238] sm:$0xff]   ;;  %v4269_v18 = vld [vmem:[%s6495_s0 + $0x40] sm:$0xff]  }
   0x7   :  { %3996 = vmatprep.mubr.msk.bf16.mxu0 %vm921_vm1, %v4257_v6  ;;  %4124 = vmatprep.mubr.msk.bf16.mxu1 %vm921_vm1, %v4258_v7  ;;  %v4270_v19 = vld [vmem:[%s6495_s0 + $0x240] sm:$0xff]   ;;  %v4271_v20 = vld [vmem:[%s6495_s0 + $0x48] sm:$0xff]   ;;  %v4273_v22 = vld [vmem:[%s6495_s0 + $0x50] sm:$0xff]  }
   0x8   :  { %v4272_v21 = vld [vmem:[%s6495_s0 + $0x248] sm:$0xff]   ;;  %v4274_v23 = vld [vmem:[%s6495_s0 + $0x250] sm:$0xff]   ;;  %v4275_v24 = vld [vmem:[%s6495_s0 + $0x58] sm:$0xff]  }
   0x9   :  { %v4276_v25 = vld [vmem:[%s6495_s0 + $0x258] sm:$0xff]   ;;  %v4277_v26 = vld [vmem:[%s6495_s0 + $0x60] sm:$0xff]   ;;  %v4279_v28 = vld [vmem:[%s6495_s0 + $0x68] sm:$0xff]  }
   0xa   :  { %v4278_v27 = vld [vmem:[%s6495_s0 + $0x260] sm:$0xff]   ;;  %v4280_v29 = vld [vmem:[%s6495_s0 + $0x268] sm:$0xff]   ;;  %v4281_v30 = vld [vmem:[%s6495_s0 + $0x70] sm:$0xff]  }
   0xb   :  { %v4282_v31 = vld [vmem:[%s6495_s0 + $0x270] sm:$0xff]   ;;  %v4283_v32 = vld [vmem:[%s6495_s0 + $0x78] sm:$0xff]   ;;  %v4285_v34 = vld [vmem:[%s6495_s0 + $0x80] sm:$0xff]  }
   0xc   :  { %v4284_v33 = vld [vmem:[%s6495_s0 + $0x278] sm:$0xff]   ;;  %v4286_v35 = vld [vmem:[%s6495_s0 + $0x280] sm:$0xff]   ;;  %v4287_v36 = vld [vmem:[%s6495_s0 + $0x88] sm:$0xff]  }
   0xd   :  { %v4288_v37 = vld [vmem:[%s6495_s0 + $0x288] sm:$0xff]   ;;  %v4289_v38 = vld [vmem:[%s6495_s0 + $0x90] sm:$0xff]   ;;  %v4291_v40 = vld [vmem:[%s6495_s0 + $0x98] sm:$0xff]  }
   0xe   :  { %3997 = vmatmul.mubr.msk.bf16.gmra.mxu0 %vm921_vm1, %v4259_v8  ;;  %4125 = vmatmul.mubr.msk.bf16.gmra.mxu1 %vm921_vm1, %v4260_v9  ;;  %v4290_v39 = vld [vmem:[%s6495_s0 + $0x290] sm:$0xff]   ;;  %v4292_v41 = vld [vmem:[%s6495_s0 + $0x298] sm:$0xff]   ;;  %v4293_v42 = vld [vmem:[%s6495_s0 + $0xa0] sm:$0xff]  }
   0xf   :  { %4000 = vmatprep.mubr.msk.bf16.mxu0 %vm921_vm1, %v4261_v10  ;;  %4128 = vmatprep.mubr.msk.bf16.mxu1 %vm921_vm1, %v4262_v11  ;;  %v4294_v43 = vld [vmem:[%s6495_s0 + $0x2a0] sm:$0xff]   ;;  %v4295_v44 = vld [vmem:[%s6495_s0 + $0xa8] sm:$0xff]   ;;  %v4297_v46 = vld [vmem:[%s6495_s0 + $0xb0] sm:$0xff]  }
  0x10   :  { %v4296_v45 = vld [vmem:[%s6495_s0 + $0x2a8] sm:$0xff]   ;;  %v4298_v47 = vld [vmem:[%s6495_s0 + $0x2b0] sm:$0xff]   ;;  %v4299_v48 = vld [vmem:[%s6495_s0 + $0xb8] sm:$0xff]  }
  0x11   :  { %v4300_v49 = vld [vmem:[%s6495_s0 + $0x2b8] sm:$0xff]   ;;  %v4301_v50 = vld [vmem:[%s6495_s0 + $0xc0] sm:$0xff]   ;;  %v4303_v52 = vld [vmem:[%s6495_s0 + $0xc8] sm:$0xff]  }
  0x12   :  { %v4302_v51 = vld [vmem:[%s6495_s0 + $0x2c0] sm:$0xff]   ;;  %v4304_v53 = vld [vmem:[%s6495_s0 + $0x2c8] sm:$0xff]   ;;  %v4305_v54 = vld [vmem:[%s6495_s0 + $0xd0] sm:$0xff]  }
  0x13   :  { %v4306_v55 = vld [vmem:[%s6495_s0 + $0x2d0] sm:$0xff]   ;;  %v4307_v56 = vld [vmem:[%s6495_s0 + $0xd8] sm:$0xff]   ;;  %v4309_v58 = vld [vmem:[%s6495_s0 + $0xe0] sm:$0xff]  }
  0x14   :  { %v4308_v57 = vld [vmem:[%s6495_s0 + $0x2d8] sm:$0xff]   ;;  %v4310_v59 = vld [vmem:[%s6495_s0 + $0x2e0] sm:$0xff]   ;;  %v4311_v60 = vld [vmem:[%s6495_s0 + $0xe8] sm:$0xff]  }
  0x15   :  { %v4312_v61 = vld [vmem:[%s6495_s0 + $0x2e8] sm:$0xff]   ;;  %v4313_v62 = vld [vmem:[%s6495_s0 + $0xf0] sm:$0xff]   ;;  %v4315_v0 = vld [vmem:[%s6495_s0 + $0xf8] sm:$0xff]  }
  0x16   :  { %4001 = vmatmul.mubr.msk.bf16.gmra.mxu0 %vm921_vm1, %v4263_v12  ;;  %4129 = vmatmul.mubr.msk.bf16.gmra.mxu1 %vm921_vm1, %v4264_v13  ;;  %v4314_v63 = vld [vmem:[%s6495_s0 + $0x2f0] sm:$0xff]   ;;  %v4316_v1 = vld [vmem:[%s6495_s0 + $0x2f8] sm:$0xff]   ;;  %v4317_v2 = vld [vmem:[%s6495_s0 + $0x100] sm:$0xff]  }
  0x17   :  { %4004 = vmatprep.mubr.msk.bf16.mxu0 %vm921_vm1, %v4265_v14  ;;  %4132 = vmatprep.mubr.msk.bf16.mxu1 %vm921_vm1, %v4266_v15  ;;  %v4318_v3 = vld [vmem:[%s6495_s0 + $0x300] sm:$0xff]   ;;  %v4319_v4 = vld [vmem:[%s6495_s0 + $0x108] sm:$0xff]   ;;  %v4321_v6 = vld [vmem:[%s6495_s0 + $0x110] sm:$0xff]  }
  0x18   :  { %v4320_v5 = vld [vmem:[%s6495_s0 + $0x308] sm:$0xff]   ;;  %v4322_v7 = vld [vmem:[%s6495_s0 + $0x310] sm:$0xff]   ;;  %v4323_v8 = vld [vmem:[%s6495_s0 + $0x118] sm:$0xff]  }
  0x19   :  { %v4324_v9 = vld [vmem:[%s6495_s0 + $0x318] sm:$0xff]   ;;  %v4325_v10 = vld [vmem:[%s6495_s0 + $0x120] sm:$0xff]   ;;  %v4327_v12 = vld [vmem:[%s6495_s0 + $0x128] sm:$0xff]  }
  0x1a   :  { %v4326_v11 = vld [vmem:[%s6495_s0 + $0x320] sm:$0xff]   ;;  %v4328_v13 = vld [vmem:[%s6495_s0 + $0x328] sm:$0xff]   ;;  %v4329_v14 = vld [vmem:[%s6495_s0 + $0x130] sm:$0xff]  }
  0x1b   :  { %v4330_v15 = vld [vmem:[%s6495_s0 + $0x330] sm:$0xff]  }
  0x1e   :  { %4005 = vmatmul.mubr.msk.bf16.gmra.mxu0 %vm921_vm1, %v4267_v16  ;;  %4133 = vmatmul.mubr.msk.bf16.gmra.mxu1 %vm921_vm1, %v4268_v17  ;;  %v4331_v16 = vld [vmem:[%s6495_s0 + $0x138] sm:$0xff]  }
  0x1f   :  { %4008 = vmatprep.mubr.msk.bf16.mxu0 %vm921_vm1, %v4269_v18  ;;  %4136 = vmatprep.mubr.msk.bf16.mxu1 %vm921_vm1, %v4270_v19  ;;  %v4332_v17 = vld [vmem:[%s6495_s0 + $0x338] sm:$0xff]   ;;  %v4333_v18 = vld [vmem:[%s6495_s0 + $0x140] sm:$0xff]  }
  0x20   :  { %v4334_v19 = vld [vmem:[%s6495_s0 + $0x340] sm:$0xff]  }
  0x26   :  { %4009 = vmatmul.mubr.msk.bf16.gmra.mxu0 %vm921_vm1, %v4271_v20  ;;  %4137 = vmatmul.mubr.msk.bf16.gmra.mxu1 %vm921_vm1, %v4272_v21  ;;  %v4335_v20 = vld [vmem:[%s6495_s0 + $0x148] sm:$0xff]  }
  0x27   :  { %4012 = vmatprep.mubr.msk.bf16.mxu0 %vm921_vm1, %v4273_v22  ;;  %4140 = vmatprep.mubr.msk.bf16.mxu1 %vm921_vm1, %v4274_v23  ;;  %v4336_v21 = vld [vmem:[%s6495_s0 + $0x348] sm:$0xff]   ;;  %v4337_v22 = vld [vmem:[%s6495_s0 + $0x150] sm:$0xff]  }
  0x28   :  { %v4338_v23 = vld [vmem:[%s6495_s0 + $0x350] sm:$0xff]  }
  0x2e   :  { %4013 = vmatmul.mubr.msk.bf16.gmra.mxu0 %vm921_vm1, %v4275_v24  ;;  %4141 = vmatmul.mubr.msk.bf16.gmra.mxu1 %vm921_vm1, %v4276_v25  ;;  %v4339_v24 = vld [vmem:[%s6495_s0 + $0x158] sm:$0xff]  }
  0x2f   :  { %4016 = vmatprep.mubr.msk.bf16.mxu0 %vm921_vm1, %v4277_v26  ;;  %4144 = vmatprep.mubr.msk.bf16.mxu1 %vm921_vm1, %v4278_v27  ;;  %v4340_v25 = vld [vmem:[%s6495_s0 + $0x358] sm:$0xff]   ;;  %v4341_v26 = vld [vmem:[%s6495_s0 + $0x160] sm:$0xff]  }
  0x30   :  { %v4342_v27 = vld [vmem:[%s6495_s0 + $0x360] sm:$0xff]  }
  0x36   :  { %4017 = vmatmul.mubr.msk.bf16.gmra.mxu0 %vm921_vm1, %v4279_v28  ;;  %4145 = vmatmul.mubr.msk.bf16.gmra.mxu1 %vm921_vm1, %v4280_v29  ;;  %v4343_v28 = vld [vmem:[%s6495_s0 + $0x168] sm:$0xff]  }
  0x37   :  { %4020 = vmatprep.mubr.msk.bf16.mxu0 %vm921_vm1, %v4281_v30  ;;  %4148 = vmatprep.mubr.msk.bf16.mxu1 %vm921_vm1, %v4282_v31  ;;  %v4344_v29 = vld [vmem:[%s6495_s0 + $0x368] sm:$0xff]   ;;  %v4345_v30 = vld [vmem:[%s6495_s0 + $0x170] sm:$0xff]  }
  0x38   :  { %v4346_v31 = vld [vmem:[%s6495_s0 + $0x370] sm:$0xff]  }
  0x3e   :  { %4021 = vmatmul.mubr.msk.bf16.gmra.mxu0 %vm921_vm1, %v4283_v32  ;;  %4149 = vmatmul.mubr.msk.bf16.gmra.mxu1 %vm921_vm1, %v4284_v33  ;;  %v4347_v32 = vld [vmem:[%s6495_s0 + $0x178] sm:$0xff]  }
  0x3f   :  { %4024 = vmatprep.mubr.msk.bf16.mxu0 %vm921_vm1, %v4285_v34  ;;  %4152 = vmatprep.mubr.msk.bf16.mxu1 %vm921_vm1, %v4286_v35  ;;  %v4348_v33 = vld [vmem:[%s6495_s0 + $0x378] sm:$0xff]   ;;  %v4349_v34 = vld [vmem:[%s6495_s0 + $0x180] sm:$0xff]  }
  0x40   :  { %v4350_v35 = vld [vmem:[%s6495_s0 + $0x380] sm:$0xff]  }
  0x46   :  { %4025 = vmatmul.mubr.msk.bf16.gmra.mxu0 %vm921_vm1, %v4287_v36  ;;  %4153 = vmatmul.mubr.msk.bf16.gmra.mxu1 %vm921_vm1, %v4288_v37  ;;  %v4351_v36 = vld [vmem:[%s6495_s0 + $0x188] sm:$0xff]  }
  0x47   :  { %4028 = vmatprep.mubr.msk.bf16.mxu0 %vm921_vm1, %v4289_v38  ;;  %4156 = vmatprep.mubr.msk.bf16.mxu1 %vm921_vm1, %v4290_v39  ;;  %v4352_v37 = vld [vmem:[%s6495_s0 + $0x388] sm:$0xff]   ;;  %v4353_v38 = vld [vmem:[%s6495_s0 + $0x190] sm:$0xff]  }
  0x48   :  { %v4354_v39 = vld [vmem:[%s6495_s0 + $0x390] sm:$0xff]  }
  0x4e   :  { %4029 = vmatmul.mubr.msk.bf16.gmra.mxu0 %vm921_vm1, %v4291_v40  ;;  %4157 = vmatmul.mubr.msk.bf16.gmra.mxu1 %vm921_vm1, %v4292_v41 }
  0x4f   :  { %4032 = vmatprep.mubr.msk.bf16.mxu0 %vm921_vm1, %v4293_v42  ;;  %4160 = vmatprep.mubr.msk.bf16.mxu1 %vm921_vm1, %v4294_v43 }
  0x56   :  { %4033 = vmatmul.mubr.msk.bf16.gmra.mxu0 %vm921_vm1, %v4295_v44  ;;  %4161 = vmatmul.mubr.msk.bf16.gmra.mxu1 %vm921_vm1, %v4296_v45 }
  0x57   :  { %4036 = vmatprep.mubr.msk.bf16.mxu0 %vm921_vm1, %v4297_v46  ;;  %4164 = vmatprep.mubr.msk.bf16.mxu1 %vm921_vm1, %v4298_v47  ;;  %v4355_v46 = vld [vmem:[%s6495_s0 + $0x198] sm:$0xff]  }
  0x58   :  { %v4356_v47 = vld [vmem:[%s6495_s0 + $0x398] sm:$0xff]  }
  0x5e   :  { %4037 = vmatmul.mubr.msk.bf16.gmra.mxu0 %vm921_vm1, %v4299_v48  ;;  %4165 = vmatmul.mubr.msk.bf16.gmra.mxu1 %vm921_vm1, %v4300_v49  ;;  %v4357_v48 = vld [vmem:[%s6495_s0 + $0x1a0] sm:$0xff]  }
  0x5f   :  { %4040 = vmatprep.mubr.msk.bf16.mxu0 %vm921_vm1, %v4301_v50  ;;  %4168 = vmatprep.mubr.msk.bf16.mxu1 %vm921_vm1, %v4302_v51  ;;  %v4358_v51 = vld [vmem:[%s6495_s0 + $0x3a0] sm:$0xff]  }
  0x66   :  { %4041 = vmatmul.mubr.msk.bf16.gmra.mxu0 %vm921_vm1, %v4303_v52  ;;  %4169 = vmatmul.mubr.msk.bf16.gmra.mxu1 %vm921_vm1, %v4304_v53 }
  0x67   :  { %4044 = vmatprep.mubr.msk.bf16.mxu0 %vm921_vm1, %v4305_v54  ;;  %4172 = vmatprep.mubr.msk.bf16.mxu1 %vm921_vm1, %v4306_v55 }
  0x6e   :  { %4045 = vmatmul.mubr.msk.bf16.gmra.mxu0 %vm921_vm1, %v4307_v56  ;;  %4173 = vmatmul.mubr.msk.bf16.gmra.mxu1 %vm921_vm1, %v4308_v57 }
  0x6f   :  { %4048 = vmatprep.mubr.msk.bf16.mxu0 %vm921_vm1, %v4309_v58  ;;  %4176 = vmatprep.mubr.msk.bf16.mxu1 %vm921_vm1, %v4310_v59  ;;  %v4359_v58 = vld [vmem:[%s6495_s0 + $0x1a8] sm:$0xff]  }
  0x70   :  { %v4360_v59 = vld [vmem:[%s6495_s0 + $0x3a8] sm:$0xff]  }
  0x76   :  { %4049 = vmatmul.mubr.msk.bf16.gmra.mxu0 %vm921_vm1, %v4311_v60  ;;  %4177 = vmatmul.mubr.msk.bf16.gmra.mxu1 %vm921_vm1, %v4312_v61  ;;  %v4361_v60 = vld [vmem:[%s6495_s0 + $0x1b0] sm:$0xff]  }
  0x77   :  { %4052 = vmatprep.mubr.msk.bf16.mxu0 %vm921_vm1, %v4313_v62  ;;  %4180 = vmatprep.mubr.msk.bf16.mxu1 %vm921_vm1, %v4314_v63  ;;  %v4362_v63 = vld [vmem:[%s6495_s0 + $0x3b0] sm:$0xff]  }
  0x7e   :  { %4053 = vmatmul.mubr.msk.bf16.gmra.mxu0 %vm921_vm1, %v4315_v0  ;;  %4181 = vmatmul.mubr.msk.bf16.gmra.mxu1 %vm921_vm1, %v4316_v1 }
  0x7f   :  { %4056 = vmatprep.mubr.msk.bf16.mxu0 %vm921_vm1, %v4317_v2  ;;  %4184 = vmatprep.mubr.msk.bf16.mxu1 %vm921_vm1, %v4318_v3 }
  0x86   :  { %4057 = vmatmul.mubr.msk.bf16.gmra.mxu0 %vm921_vm1, %v4319_v4  ;;  %4185 = vmatmul.mubr.msk.bf16.gmra.mxu1 %vm921_vm1, %v4320_v5 }
  0x87   :  { %4060 = vmatprep.mubr.msk.bf16.mxu0 %vm921_vm1, %v4321_v6  ;;  %4188 = vmatprep.mubr.msk.bf16.mxu1 %vm921_vm1, %v4322_v7  ;;  %v4363_v6 = vld [vmem:[%s6495_s0 + $0x1b8] sm:$0xff]  }
  0x88   :  { %v4364_v7 = vld [vmem:[%s6495_s0 + $0x3b8] sm:$0xff]  }
  0x8e   :  { %4061 = vmatmul.mubr.msk.bf16.gmra.mxu0 %vm921_vm1, %v4323_v8  ;;  %4189 = vmatmul.mubr.msk.bf16.gmra.mxu1 %vm921_vm1, %v4324_v9  ;;  %v4365_v8 = vld [vmem:[%s6495_s0 + $0x1c0] sm:$0xff]  }
  0x8f   :  { %4064 = vmatprep.mubr.msk.bf16.mxu0 %vm921_vm1, %v4325_v10  ;;  %4192 = vmatprep.mubr.msk.bf16.mxu1 %vm921_vm1, %v4326_v11  ;;  %v4366_v11 = vld [vmem:[%s6495_s0 + $0x3c0] sm:$0xff]  }
  0x96   :  { %4065 = vmatmul.mubr.msk.bf16.gmra.mxu0 %vm921_vm1, %v4327_v12  ;;  %4193 = vmatmul.mubr.msk.bf16.gmra.mxu1 %vm921_vm1, %v4328_v13 }
  0x97   :  { %4068 = vmatprep.mubr.msk.bf16.mxu0 %vm921_vm1, %v4329_v14  ;;  %4196 = vmatprep.mubr.msk.bf16.mxu1 %vm921_vm1, %v4330_v15 }
  0x9e   :  { %4069 = vmatmul.mubr.msk.bf16.gmra.mxu0 %vm921_vm1, %v4331_v16  ;;  %4197 = vmatmul.mubr.msk.bf16.gmra.mxu1 %vm921_vm1, %v4332_v17 }
  0x9f   :  { %4072 = vmatprep.mubr.msk.bf16.mxu0 %vm921_vm1, %v4333_v18  ;;  %4200 = vmatprep.mubr.msk.bf16.mxu1 %vm921_vm1, %v4334_v19  ;;  %v4367_v18 = vld [vmem:[%s6495_s0 + $0x1c8] sm:$0xff]  }
  0xa0   :  { %v4368_v19 = vld [vmem:[%s6495_s0 + $0x3c8] sm:$0xff]  }
  0xa6   :  { %4073 = vmatmul.mubr.msk.bf16.gmra.mxu0 %vm921_vm1, %v4335_v20  ;;  %4201 = vmatmul.mubr.msk.bf16.gmra.mxu1 %vm921_vm1, %v4336_v21  ;;  %v4369_v20 = vld [vmem:[%s6495_s0 + $0x1d0] sm:$0xff]  }
  0xa7   :  { %4076 = vmatprep.mubr.msk.bf16.mxu0 %vm921_vm1, %v4337_v22  ;;  %4204 = vmatprep.mubr.msk.bf16.mxu1 %vm921_vm1, %v4338_v23  ;;  %v4370_v23 = vld [vmem:[%s6495_s0 + $0x3d0] sm:$0xff]  }
  0xae   :  { %4077 = vmatmul.mubr.msk.bf16.gmra.mxu0 %vm921_vm1, %v4339_v24  ;;  %4205 = vmatmul.mubr.msk.bf16.gmra.mxu1 %vm921_vm1, %v4340_v25 }
  0xaf   :  { %4080 = vmatprep.mubr.msk.bf16.mxu0 %vm921_vm1, %v4341_v26  ;;  %4208 = vmatprep.mubr.msk.bf16.mxu1 %vm921_vm1, %v4342_v27 }
  0xb6   :  { %4081 = vmatmul.mubr.msk.bf16.gmra.mxu0 %vm921_vm1, %v4343_v28  ;;  %4209 = vmatmul.mubr.msk.bf16.gmra.mxu1 %vm921_vm1, %v4344_v29 }
  0xb7   :  { %4084 = vmatprep.mubr.msk.bf16.mxu0 %vm921_vm1, %v4345_v30  ;;  %4212 = vmatprep.mubr.msk.bf16.mxu1 %vm921_vm1, %v4346_v31  ;;  %v4371_v30 = vld [vmem:[%s6495_s0 + $0x1d8] sm:$0xff]  }
  0xb8   :  { %v4372_v31 = vld [vmem:[%s6495_s0 + $0x3d8] sm:$0xff]  }
  0xbe   :  { %4085 = vmatmul.mubr.msk.bf16.gmra.mxu0 %vm921_vm1, %v4347_v32  ;;  %4213 = vmatmul.mubr.msk.bf16.gmra.mxu1 %vm921_vm1, %v4348_v33  ;;  %v4373_v32 = vld [vmem:[%s6495_s0 + $0x1e0] sm:$0xff]  }
  0xbf   :  { %4088 = vmatprep.mubr.msk.bf16.mxu0 %vm921_vm1, %v4349_v34  ;;  %4216 = vmatprep.mubr.msk.bf16.mxu1 %vm921_vm1, %v4350_v35  ;;  %v4374_v35 = vld [vmem:[%s6495_s0 + $0x3e0] sm:$0xff]  }
  0xc6   :  { %v4817_v40 = vpop.f32.mrf.mxu0  ;;  %4089 = vmatmul.mubr.msk.bf16.gmra.mxu0 %vm921_vm1, %v4351_v36  ;;  %v4820_v41 = vpop.f32.mrf.mxu1  ;;  %4217 = vmatmul.mubr.msk.bf16.gmra.mxu1 %vm921_vm1, %v4352_v37 }
  0xc7   :  { %4092 = vmatprep.mubr.msk.bf16.mxu0 %vm921_vm1, %v4353_v38  ;;  %4220 = vmatprep.mubr.msk.bf16.mxu1 %vm921_vm1, %v4354_v39 }
  0xc8   :  { %v4825_v42 = vpop.f32.mrf.mxu0  ;;  %v4827_v43 = vpop.f32.mrf.mxu1 }
  0xca   :  { %v4829_v44 = vpop.f32.mrf.mxu0  ;;  %v4831_v45 = vpop.f32.mrf.mxu1 }
  0xcc   :  { %v4842_v49 = vpop.f32.mrf.mxu0  ;;  %v4844_v50 = vpop.f32.mrf.mxu1 }
  0xce   :  { %v4849_v52 = vpop.f32.mrf.mxu0  ;;  %4093 = vmatmul.mubr.msk.bf16.gmra.mxu0 %vm921_vm1, %v4355_v46  ;;  %v4852_v53 = vpop.f32.mrf.mxu1  ;;  %4221 = vmatmul.mubr.msk.bf16.gmra.mxu1 %vm921_vm1, %v4356_v47 }
  0xcf   :  { %4096 = vmatprep.mubr.msk.bf16.mxu0 %vm921_vm1, %v4357_v48  ;;  %4224 = vmatprep.mubr.msk.bf16.mxu1 %vm921_vm1, %v4358_v51  ;;  %v4375_v48 = vld [vmem:[%s6495_s0 + $0x1e8] sm:$0xff]  }
  0xd0   :  { %v4856_v54 = vpop.f32.mrf.mxu0  ;;  %v4858_v55 = vpop.f32.mrf.mxu1  ;;  %v4376_v51 = vld [vmem:[%s6495_s0 + $0x3e8] sm:$0xff]  }
  0xd2   :  { %v4861_v56 = vpop.f32.mrf.mxu0  ;;  %v4863_v57 = vpop.f32.mrf.mxu1 }
  0xd4   :  { %v4874_v61 = vpop.f32.mrf.mxu0  ;;  %v4876_v62 = vpop.f32.mrf.mxu1 }
  0xd6   :  { %v4881_v0 = vpop.f32.mrf.mxu0  ;;  %4097 = vmatmul.mubr.msk.bf16.gmra.mxu0 %vm921_vm1, %v4359_v58  ;;  %v4884_v1 = vpop.f32.mrf.mxu1  ;;  %4225 = vmatmul.mubr.msk.bf16.gmra.mxu1 %vm921_vm1, %v4360_v59  ;;  %v4377_v58 = vld [vmem:[%s6495_s0 + $0x1f0] sm:$0xff]  }
  0xd7   :  { %4100 = vmatprep.mubr.msk.bf16.mxu0 %vm921_vm1, %v4361_v60  ;;  %4228 = vmatprep.mubr.msk.bf16.mxu1 %vm921_vm1, %v4362_v63  ;;  %v4378_v63 = vld [vmem:[%s6495_s0 + $0x3f0] sm:$0xff]  }
  0xd8   :  { %v4888_v2 = vpop.f32.mrf.mxu0  ;;  %v4890_v3 = vpop.f32.mrf.mxu1 }
  0xda   :  { %v4893_v4 = vpop.f32.mrf.mxu0  ;;  %v4895_v5 = vpop.f32.mrf.mxu1 }
  0xdc   :  { %v4906_v9 = vpop.f32.mrf.mxu0  ;;  %v4908_v10 = vpop.f32.mrf.mxu1 }
  0xde   :  { %v4913_v12 = vpop.f32.mrf.mxu0  ;;  %4101 = vmatmul.mubr.msk.bf16.gmra.mxu0 %vm921_vm1, %v4363_v6  ;;  %v4916_v13 = vpop.f32.mrf.mxu1  ;;  %4229 = vmatmul.mubr.msk.bf16.gmra.mxu1 %vm921_vm1, %v4364_v7 }
  0xdf   :  { %4104 = vmatprep.mubr.msk.bf16.mxu0 %vm921_vm1, %v4365_v8  ;;  %4232 = vmatprep.mubr.msk.bf16.mxu1 %vm921_vm1, %v4366_v11 }
  0xe0   :  { %v4920_v14 = vpop.f32.mrf.mxu0  ;;  %v4922_v15 = vpop.f32.mrf.mxu1 }
  0xe2   :  { %v4925_v16 = vpop.f32.mrf.mxu0  ;;  %v4927_v17 = vpop.f32.mrf.mxu1 }
  0xe4   :  { %v4938_v21 = vpop.f32.mrf.mxu0  ;;  %v4940_v22 = vpop.f32.mrf.mxu1 }
  0xe6   :  { %v4945_v24 = vpop.f32.mrf.mxu0  ;;  %4105 = vmatmul.mubr.msk.bf16.gmra.mxu0 %vm921_vm1, %v4367_v18  ;;  %v4948_v25 = vpop.f32.mrf.mxu1  ;;  %4233 = vmatmul.mubr.msk.bf16.gmra.mxu1 %vm921_vm1, %v4368_v19 }
  0xe7   :  { %4108 = vmatprep.mubr.msk.bf16.mxu0 %vm921_vm1, %v4369_v20  ;;  %4236 = vmatprep.mubr.msk.bf16.mxu1 %vm921_vm1, %v4370_v23  ;;  %v4379_v20 = vld [vmem:[%s6495_s0 + $0x1f8] sm:$0xff]  }
  0xe8   :  { %v4952_v26 = vpop.f32.mrf.mxu0  ;;  %v4954_v27 = vpop.f32.mrf.mxu1  ;;  %v4380_v23 = vld [vmem:[%s6495_s0 + $0x3f8] sm:$0xff]  }
  0xea   :  { %v4957_v28 = vpop.f32.mrf.mxu0  ;;  %v4959_v29 = vpop.f32.mrf.mxu1 }
  0xec   :  { %v4970_v33 = vpop.f32.mrf.mxu0  ;;  %v4972_v34 = vpop.f32.mrf.mxu1 }
  0xee   :  { %v4977_v36 = vpop.f32.mrf.mxu0  ;;  %4109 = vmatmul.mubr.msk.bf16.gmra.mxu0 %vm921_vm1, %v4371_v30  ;;  %v4980_v37 = vpop.f32.mrf.mxu1  ;;  %4237 = vmatmul.mubr.msk.bf16.gmra.mxu1 %vm921_vm1, %v4372_v31 }
  0xef   :  { %4112 = vmatprep.mubr.msk.bf16.mxu0 %vm921_vm1, %v4373_v32  ;;  %4240 = vmatprep.mubr.msk.bf16.mxu1 %vm921_vm1, %v4374_v35 }
  0xf0   :  { %v4984_v38 = vpop.f32.mrf.mxu0  ;;  %v4986_v39 = vpop.f32.mrf.mxu1 }
  0xf2   :  { %v4989_v46 = vpop.f32.mrf.mxu0  ;;  %v4991_v47 = vpop.f32.mrf.mxu1 }
  0xf4   :  { %v5002_v59 = vpop.f32.mrf.mxu0  ;;  %v5004_v60 = vpop.f32.mrf.mxu1 }
  0xf6   :  { %v5009_v6 = vpop.f32.mrf.mxu0  ;;  %4113 = vmatmul.mubr.msk.bf16.gmra.mxu0 %vm921_vm1, %v4375_v48  ;;  %v5012_v7 = vpop.f32.mrf.mxu1  ;;  %4241 = vmatmul.mubr.msk.bf16.gmra.mxu1 %vm921_vm1, %v4376_v51 }
  0xf7   :  { %4116 = vmatprep.mubr.msk.bf16.mxu0 %vm921_vm1, %v4377_v58  ;;  %4244 = vmatprep.mubr.msk.bf16.mxu1 %vm921_vm1, %v4378_v63 }
  0xf8   :  { %v5016_v8 = vpop.f32.mrf.mxu0  ;;  %v5018_v11 = vpop.f32.mrf.mxu1 }
  0xfa   :  { %v5021_v18 = vpop.f32.mrf.mxu0  ;;  %v5023_v19 = vpop.f32.mrf.mxu1 }
  0xfb   :  { %6499 = vst [vmem:[#allocation2_spill] sm:$0xff] %v5023_v19 }
  0xfc   :  { %v5031_v30 = vpop.f32.mrf.mxu0  ;;  %v5033_v31 = vpop.f32.mrf.mxu1 }
  0xfd   :  { %6500 = vst [vmem:[#allocation3_spill] sm:$0xff] %v5031_v30 }
  0xfe   :  { %v5035_v32 = vpop.f32.mrf.mxu0  ;;  %4117 = vmatmul.mubr.msk.bf16.gmra.mxu0 %vm921_vm1, %v4379_v20  ;;  %v5038_v35 = vpop.f32.mrf.mxu1  ;;  %4245 = vmatmul.mubr.msk.bf16.gmra.mxu1 %vm921_vm1, %v4380_v23  ;;  %v5056_v20 = vld [vmem:[%s6496_s2] ss:$0 sm:$0xff] }
  0xff   :  { %6501 = vst [vmem:[#allocation4_spill] sm:$0xff] %v5035_v32  ;;  %6502 = vst [vmem:[#allocation5_spill] sm:$0xff] %v5038_v35 }
 0x100   :  { %v5041_v48 = vpop.f32.mrf.mxu0  ;;  %v5043_v51 = vpop.f32.mrf.mxu1 }
 0x101   :  { %6503 = vst [vmem:[#allocation6_spill] sm:$0xff] %v5041_v48  ;;  %6504 = vst [vmem:[#allocation7_spill] sm:$0xff] %v5043_v51 }
 0x102   :  { %v5045_v58 = vpop.f32.mrf.mxu0  ;;  %v5047_v63 = vpop.f32.mrf.mxu1 }
 0x103   :  { %6505 = vst [vmem:[#allocation8_spill] sm:$0xff] %v5045_v58  ;;  %6506 = vst [vmem:[#allocation9_spill] sm:$0xff] %v5047_v63  ;;  %v2376_v63 = vmul.f32 %v4817_v40, %v5056_v20  ;;  %v2502_v58 = vmul.f32 %v5056_v20, %v4827_v43  ;;  %v2377_v40 = vmul.f32 %v4829_v44, %v5056_v20 }
 0x104   :  { %v5049_v19 = vpop.f32.mrf.mxu0  ;;  %v5051_v30 = vpop.f32.mrf.mxu1  ;;  %v2503_v43 = vmul.f32 %v5056_v20, %v4844_v50  ;;  %v2508_v50 = vmul.f32 %v4852_v53, %v5056_v20  ;;  %v2509_v53 = vmul.f32 %v4863_v57, %v5056_v20  ;;  %v2384_v57 = vmul.f32 %v4881_v0, %v5056_v20 }
 0x105   :  { %6507 = vst [vmem:[#allocation10_spill] sm:$0xff] %v5049_v19  ;;  %6508 = vst [vmem:[#allocation11_spill] sm:$0xff] %v5051_v30  ;;  %v2504_v19 = vmul.f32 %v4820_v41, %v5056_v20  ;;  %v2374_v30 = vmul.f32 %v5056_v20, %v4825_v42  ;;  %v2505_v41 = vmul.f32 %v4831_v45, %v5056_v20 }
 0x106   :  { %v5058_v35 = vpop.f32.mrf.mxu0  ;;  %v5060_v23 = vpop.f32.mrf.mxu1  ;;  %v2375_v42 = vmul.f32 %v5056_v20, %v4842_v49 }
 0x107   :  { %6509 = vst [vmem:[#allocation12_spill] sm:$0xff] %v5058_v35  ;;  %6510 = vst [vmem:[#allocation13_spill] sm:$0xff] %v5060_v23  ;;  %v5077_v23 = vld [vmem:[%s6497_s3] ss:$0 sm:$0xff]  ;;  %v2380_v35 = vmul.f32 %v4849_v52, %v5056_v20  ;;  %v2378_v52 = vmul.f32 %v5056_v20, %v4856_v54  ;;  %v2379_v54 = vmul.f32 %v5056_v20, %v4874_v61 }
 0x108   :  { %v5062_v48 = vpop.f32.mrf.mxu0  ;;  %v5064_v51 = vpop.f32.mrf.mxu1  ;;  %v5101_v44 = vadd.f32 %v5077_v23, %v2504_v19  ;;  %v5104_v45 = vadd.f32 %v5077_v23, %v2374_v30  ;;  %v5107_v49 = vadd.f32 %v5077_v23, %v2502_v58  ;;  %v5122_v30 = vadd.f32 %v5077_v23, %v2377_v40 }
 0x109   :  { %6511 = vst [vmem:[#allocation14_spill] sm:$0xff] %v5062_v48  ;;  %6512 = vst [vmem:[#allocation15_spill] sm:$0xff] %v5064_v51  ;;  %v5125_v58 = vadd.f32 %v5077_v23, %v2505_v41  ;;  %v2507_v40 = vmul.f32 %v5056_v20, %v4876_v62  ;;  %v2512_v61 = vmul.f32 %v4884_v1, %v5056_v20 }
 0x10a   :  { %v5079_v48 = vpop.f32.mrf.mxu0  ;;  %v5081_v51 = vpop.f32.mrf.mxu1  ;;  %6516 = vst [vmem:[#allocation19_spill] sm:$0xff] %v5101_v44  ;;  %6517 = vst [vmem:[#allocation20_spill] sm:$0xff] %v5107_v49  ;;  %v5138_v49 = vadd.f32 %v5077_v23, %v2380_v35  ;;  %v2510_v35 = vmul.f32 %v5056_v20, %v4890_v3  ;;  %v5158_v62 = vadd.f32 %v5077_v23, %v2378_v52 }
 0x10b   :  { %6513 = vst [vmem:[#allocation16_spill] sm:$0xff] %v5079_v48  ;;  %6514 = vst [vmem:[#allocation17_spill] sm:$0xff] %v5081_v51  ;;  %v5098_v51 = vadd.f32 %v5077_v23, %v2376_v63  ;;  %v2381_v63 = vmul.f32 %v4861_v56, %v5056_v20  ;;  %v5135_v56 = vadd.f32 %v5077_v23, %v2503_v43 }
 0x10c   :  { %v5093_v32 = vpop.f32.mrf.mxu0  ;;  %v5095_v48 = vpop.f32.mrf.mxu1  ;;  %6518 = vst [vmem:[#allocation21_spill] sm:$0xff] %v5125_v58  ;;  %6520 = vst [vmem:[#allocation23_spill] sm:$0xff] %v5138_v49  ;;  %v5155_v43 = vadd.f32 %v5077_v23, %v2508_v50  ;;  %v5174_v3 = vadd.f32 %v5077_v23, %v2379_v54  ;;  %v2385_v50 = vmul.f32 %v4893_v4, %v5056_v20 }
 0x10d   :  { %6515 = vst [vmem:[#allocation18_spill] sm:$0xff] %v5095_v48  ;;  %v2506_v48 = vmul.f32 %v5056_v20, %v4858_v55  ;;  %v5132_v55 = vadd.f32 %v5077_v23, %v2375_v42  ;;  %6519 = vst [vmem:[#allocation22_spill] sm:$0xff] %v5135_v56  ;;  %v2382_v42 = vmul.f32 %v5056_v20, %v4888_v2 }
 0x10e   :  { %v5117_v19 = vpop.f32.mrf.mxu0  ;;  %v5119_v44 = vpop.f32.mrf.mxu1  ;;  %v5164_v0 = vadd.f32 %v5077_v23, %v2381_v63  ;;  %v5171_v2 = vadd.f32 %v5077_v23, %v2509_v53  ;;  %6522 = vst [vmem:[#allocation25_spill] sm:$0xff] %v5174_v3  ;;  %v5181_v52 = vadd.f32 %v5077_v23, %v2507_v40  ;;  %v2383_v63 = vmul.f32 %v5056_v20, %v4906_v9 }
 0x10f   :  { %v5161_v49 = vadd.f32 %v5077_v23, %v2506_v48  ;;  %v2513_v48 = vmul.f32 %v4895_v5, %v5056_v20  ;;  %v2388_v53 = vmul.f32 %v4913_v12, %v5056_v20  ;;  %v5194_v4 = vadd.f32 %v5077_v23, %v2384_v57 }
 0x110   :  { %v5142_v41 = vpop.f32.mrf.mxu0  ;;  %v5144_v58 = vpop.f32.mrf.mxu1  ;;  %6521 = vst [vmem:[#allocation24_spill] sm:$0xff] %v5164_v0  ;;  %6523 = vst [vmem:[#allocation26_spill] sm:$0xff] %v5181_v52  ;;  %v2511_v0 = vmul.f32 %v5056_v20, %v4908_v10  ;;  %v5197_v5 = vadd.f32 %v5077_v23, %v2512_v61  ;;  %v5200_v40 = vadd.f32 %v5077_v23, %v2382_v42 }
 0x111   :  { %v5203_v9 = vadd.f32 %v5077_v23, %v2510_v35  ;;  %v2516_v10 = vmul.f32 %v4916_v13, %v5056_v20  ;;  %v2386_v12 = vmul.f32 %v5056_v20, %v4920_v14  ;;  %v2514_v52 = vmul.f32 %v5056_v20, %v4922_v15 }
 0x112   :  { %v5166_v56 = vpop.f32.mrf.mxu0  ;;  %v5168_v1 = vpop.f32.mrf.mxu1  ;;  %6524 = vst [vmem:[#allocation27_spill] sm:$0xff] %v5197_v5  ;;  %v2389_v57 = vmul.f32 %v4925_v16, %v5056_v20  ;;  %v5218_v42 = vadd.f32 %v5077_v23, %v2385_v50  ;;  %v5221_v35 = vadd.f32 %v5077_v23, %v2513_v48  ;;  %v2517_v13 = vmul.f32 %v4927_v17, %v5056_v20 }
 0x113   :  { %6525 = vst [vmem:[#allocation28_spill] sm:$0xff] %v5203_v9  ;;  %v2387_v14 = vmul.f32 %v5056_v20, %v4938_v21  ;;  %v5228_v15 = vadd.f32 %v5077_v23, %v2383_v63  ;;  %v5231_v16 = vadd.f32 %v5077_v23, %v2511_v0  ;;  %v5234_v9 = vadd.f32 %v5077_v23, %v2388_v53 }
 0x114   :  { %v5189_v54 = vpop.f32.mrf.mxu0  ;;  %v5191_v3 = vpop.f32.mrf.mxu1  ;;  %6526 = vst [vmem:[#allocation29_spill] sm:$0xff] %v5221_v35  ;;  %v2515_v50 = vmul.f32 %v5056_v20, %v4940_v22  ;;  %v2392_v17 = vmul.f32 %v4945_v24, %v5056_v20  ;;  %v2520_v21 = vmul.f32 %v4948_v25, %v5056_v20  ;;  %v2390_v0 = vmul.f32 %v5056_v20, %v4952_v26 }
 0x115   :  { %6527 = vst [vmem:[#allocation30_spill] sm:$0xff] %v5231_v16  ;;  %6528 = vst [vmem:[#allocation31_spill] sm:$0xff] %v5234_v9  ;;  %v2518_v63 = vmul.f32 %v5056_v20, %v4954_v27  ;;  %v5251_v53 = vadd.f32 %v5077_v23, %v2516_v10  ;;  %v5254_v22 = vadd.f32 %v5077_v23, %v2386_v12 }
 0x116   :  { %v5213_v61 = vpop.f32.mrf.mxu0  ;;  %v5215_v5 = vpop.f32.mrf.mxu1  ;;  %v5257_v9 = vadd.f32 %v5077_v23, %v2514_v52  ;;  %v5260_v24 = vadd.f32 %v5077_v23, %v2389_v57  ;;  %v5267_v26 = vadd.f32 %v5077_v23, %v2517_v13  ;;  %v5270_v27 = vadd.f32 %v5077_v23, %v2387_v14 }
 0x117   :  { %v2393_v10 = vmul.f32 %v4957_v28, %v5056_v20  ;;  %v2521_v52 = vmul.f32 %v4959_v29, %v5056_v20  ;;  %v5277_v12 = vadd.f32 %v5077_v23, %v2515_v50  ;;  %v2391_v57 = vmul.f32 %v5056_v20, %v4970_v33 }
 0x118   :  { %v5238_v48 = vpop.f32.mrf.mxu0  ;;  %v5240_v35 = vpop.f32.mrf.mxu1  ;;  %6529 = vst [vmem:[#allocation32_spill] sm:$0xff] %v5257_v9  ;;  %6530 = vst [vmem:[#allocation33_spill] sm:$0xff] %v5260_v24  ;;  %v2519_v24 = vmul.f32 %v5056_v20, %v4972_v34  ;;  %v2396_v13 = vmul.f32 %v4977_v36, %v5056_v20  ;;  %v5290_v28 = vadd.f32 %v5077_v23, %v2392_v17 }
 0x119   :  { %6531 = vst [vmem:[#allocation34_spill] sm:$0xff] %v5267_v26  ;;  %6532 = vst [vmem:[#allocation35_spill] sm:$0xff] %v5270_v27  ;;  %v5293_v29 = vadd.f32 %v5077_v23, %v2520_v21  ;;  %v5296_v50 = vadd.f32 %v5077_v23, %v2390_v0  ;;  %v5299_v33 = vadd.f32 %v5077_v23, %v2518_v63 }
 0x11a   :  { %v5262_v16 = vpop.f32.mrf.mxu0  ;;  %v5264_v25 = vpop.f32.mrf.mxu1  ;;  %6533 = vst [vmem:[#allocation36_spill] sm:$0xff] %v5277_v12  ;;  %6534 = vst [vmem:[#allocation37_spill] sm:$0xff] %v5290_v28  ;;  %v2524_v34 = vmul.f32 %v4980_v37, %v5056_v20  ;;  %v2394_v36 = vmul.f32 %v5056_v20, %v4984_v38  ;;  %v2522_v12 = vmul.f32 %v5056_v20, %v4986_v39 }
 0x11b   :  { %6535 = vst [vmem:[#allocation38_spill] sm:$0xff] %v5293_v29  ;;  %6536 = vst [vmem:[#allocation39_spill] sm:$0xff] %v5296_v50  ;;  %v2397_v17 = vmul.f32 %v4989_v46, %v5056_v20  ;;  %v5314_v0 = vadd.f32 %v5077_v23, %v2393_v10  ;;  %v5317_v63 = vadd.f32 %v5077_v23, %v2521_v52 }
 0x11c   :  { %v5285_v14 = vpop.f32.mrf.mxu0  ;;  %v5287_v27 = vpop.f32.mrf.mxu1  ;;  %6537 = vst [vmem:[#allocation40_spill] sm:$0xff] %v5299_v33  ;;  %v2525_v37 = vmul.f32 %v4991_v47, %v5056_v20  ;;  %v2395_v38 = vmul.f32 %v5056_v20, %v5002_v59  ;;  %v5324_v39 = vadd.f32 %v5077_v23, %v2391_v57  ;;  %v5327_v46 = vadd.f32 %v5077_v23, %v2519_v24 }
 0x11d   :  { %6538 = vst [vmem:[#allocation41_spill] sm:$0xff] %v5314_v0  ;;  %6539 = vst [vmem:[#allocation42_spill] sm:$0xff] %v5317_v63  ;;  %v5330_v33 = vadd.f32 %v5077_v23, %v2396_v13  ;;  %v2523_v10 = vmul.f32 %v5056_v20, %v5004_v60  ;;  %v2400_v47 = vmul.f32 %v5009_v6, %v5056_v20 }
 0x11e   :  { %v5309_v21 = vpop.f32.mrf.mxu0  ;;  %v5311_v29 = vpop.f32.mrf.mxu1  ;;  %6540 = vst [vmem:[#allocation43_spill] sm:$0xff] %v5324_v39  ;;  %6541 = vst [vmem:[#allocation44_spill] sm:$0xff] %v5327_v46  ;;  %v2528_v59 = vmul.f32 %v5012_v7, %v5056_v20  ;;  %v2398_v24 = vmul.f32 %v5056_v20, %v5016_v8  ;;  %v2526_v57 = vmul.f32 %v5056_v20, %v5018_v11  ;;  %v6559_v39 = vld [vmem:[#allocation7_spill] sm:$0xff] }
 0x11f   :  { %6542 = vst [vmem:[#allocation45_spill] sm:$0xff] %v5330_v33  ;;  %v5347_v13 = vadd.f32 %v5077_v23, %v2524_v34  ;;  %v5350_v60 = vadd.f32 %v5077_v23, %v2394_v36  ;;  %v5353_v33 = vadd.f32 %v5077_v23, %v2522_v12  ;;  %v5356_v6 = vadd.f32 %v5077_v23, %v2397_v17  ;;  %v6549_v36 = vld [vmem:[#allocation2_spill] sm:$0xff]  ;;  %v6551_v17 = vld [vmem:[#allocation3_spill] sm:$0xff] }
 0x120   :  { %v5334_v52 = vpop.f32.mrf.mxu0  ;;  %v5336_v63 = vpop.f32.mrf.mxu1  ;;  %v5363_v8 = vadd.f32 %v5077_v23, %v2525_v37  ;;  %v5366_v11 = vadd.f32 %v5077_v23, %v2395_v38  ;;  %v2401_v34 = vmul.f32 %v5021_v18, %v5056_v20  ;;  %v2529_v12 = vmul.f32 %v6549_v36, %v5056_v20  ;;  %v6552_v37 = vld [vmem:[#allocation4_spill] sm:$0xff] }
 0x121   :  { %6543 = vst [vmem:[#allocation46_spill] sm:$0xff] %v5347_v13  ;;  %6544 = vst [vmem:[#allocation47_spill] sm:$0xff] %v5350_v60  ;;  %v2527_v60 = vmul.f32 %v5056_v20, %v5033_v31  ;;  %v5386_v18 = vadd.f32 %v5077_v23, %v2400_v47  ;;  %v5389_v36 = vadd.f32 %v5077_v23, %v2528_v59  ;;  %v6557_v31 = vld [vmem:[#allocation5_spill] sm:$0xff]  ;;  %v6560_v47 = vld [vmem:[#allocation8_spill] sm:$0xff] }
 0x122   :  { %6545 = vst [vmem:[#allocation48_spill] sm:$0xff] %v5353_v33  ;;  %6546 = vst [vmem:[#allocation49_spill] sm:$0xff] %v5356_v6  ;;  %v5358_v46 = vpop.f32.mrf.mxu0  ;;  %v5360_v7 = vpop.f32.mrf.mxu1  ;;  %v5373_v33 = vadd.f32 %v5077_v23, %v2523_v10  ;;  %v2399_v6 = vmul.f32 %v5056_v20, %v6551_v17  ;;  %v5392_v10 = vadd.f32 %v5077_v23, %v2398_v24 }
 0x123   :  { %6547 = vst [vmem:[#allocation50_spill] sm:$0xff] %v5363_v8  ;;  %6548 = vst [vmem:[#allocation51_spill] sm:$0xff] %v5366_v11  ;;  %v2404_v8 = vmul.f32 %v6552_v37, %v5056_v20  ;;  %v5395_v17 = vadd.f32 %v5077_v23, %v2526_v57  ;;  %v6558_v37 = vld [vmem:[#allocation6_spill] sm:$0xff]  ;;  %v2530_v0 = vmul.f32 %v5056_v20, %v6559_v39 }
 0x124   :  { %6550 = vst [vmem:[#allocation2_spill] sm:$0xff] %v5373_v33  ;;  %v5381_v38 = vpop.f32.mrf.mxu0  ;;  %v5383_v11 = vpop.f32.mrf.mxu1  ;;  %6553 = vst [vmem:[#allocation3_spill] sm:$0xff] %v5386_v18  ;;  %v2532_v33 = vmul.f32 %v6557_v31, %v5056_v20  ;;  %v2402_v13 = vmul.f32 %v5056_v20, %v6558_v37  ;;  %v2405_v18 = vmul.f32 %v6560_v47, %v5056_v20  ;;  %v6563_v31 = vld [vmem:[#allocation9_spill] sm:$0xff]  ;;  %v6564_v37 = vld [vmem:[#allocation10_spill] sm:$0xff] }
 0x125   :  { %6554 = vst [vmem:[#allocation4_spill] sm:$0xff] %v5389_v36  ;;  %6555 = vst [vmem:[#allocation52_spill] sm:$0xff] %v5392_v10  ;;  %v5410_v24 = vadd.f32 %v5077_v23, %v2401_v34  ;;  %v5413_v57 = vadd.f32 %v5077_v23, %v2529_v12  ;;  %v2403_v10 = vmul.f32 %v5056_v20, %v6564_v37  ;;  %v6568_v34 = vld [vmem:[#allocation11_spill] sm:$0xff]  ;;  %v6570_v37 = vld [vmem:[#allocation13_spill] sm:$0xff] }
 0x126   :  { %6556 = vst [vmem:[#allocation53_spill] sm:$0xff] %v5395_v17  ;;  %v5405_v59 = vpop.f32.mrf.mxu0  ;;  %v5407_v36 = vpop.f32.mrf.mxu1  ;;  %v2533_v17 = vmul.f32 %v6563_v31, %v5056_v20  ;;  %v5420_v39 = vadd.f32 %v5077_v23, %v2399_v6  ;;  %v5423_v47 = vadd.f32 %v5077_v23, %v2527_v60  ;;  %v5426_v50 = vadd.f32 %v5077_v23, %v2404_v8  ;;  %v6569_v31 = vld [vmem:[#allocation12_spill] sm:$0xff] }
 0x127   :  { %6561 = vst [vmem:[#allocation5_spill] sm:$0xff] %v5410_v24  ;;  %6562 = vst [vmem:[#allocation6_spill] sm:$0xff] %v5413_v57  ;;  %v2531_v24 = vmul.f32 %v5056_v20, %v6568_v34  ;;  %v2408_v28 = vmul.f32 %v6569_v31, %v5056_v20  ;;  %v2536_v6 = vmul.f32 %v6570_v37, %v5056_v20 }
 0x128   :  { %6565 = vst [vmem:[#allocation7_spill] sm:$0xff] %v5420_v39  ;;  %6566 = vst [vmem:[#allocation8_spill] sm:$0xff] %v5423_v47  ;;  %v5430_v12 = vpop.f32.mrf.mxu0  ;;  %v5432_v57 = vpop.f32.mrf.mxu1  ;;  %v6571_v39 = vld [vmem:[#allocation14_spill] sm:$0xff]  ;;  %v6572_v47 = vld [vmem:[#allocation15_spill] sm:$0xff]  ;;  %v5446_v34 = vadd.f32 %v5077_v23, %v2402_v13  ;;  %v5449_v26 = vadd.f32 %v5077_v23, %v2530_v0  ;;  %v5452_v31 = vadd.f32 %v5077_v23, %v2405_v18 }
 0x129   :  { %6567 = vst [vmem:[#allocation9_spill] sm:$0xff] %v5426_v50  ;;  %v2406_v60 = vmul.f32 %v5056_v20, %v6571_v39  ;;  %v2534_v8 = vmul.f32 %v5056_v20, %v6572_v47  ;;  %v5443_v50 = vadd.f32 %v5077_v23, %v2532_v33  ;;  %v5459_v39 = vadd.f32 %v5077_v23, %v2533_v17  ;;  %v6578_v33 = vld [vmem:[#allocation16_spill] sm:$0xff] }
 0x12a   :  { %6574 = vst [vmem:[#allocation11_spill] sm:$0xff] %v5446_v34  ;;  %6575 = vst [vmem:[#allocation12_spill] sm:$0xff] %v5449_v26  ;;  %v5454_v9 = vpop.f32.mrf.mxu0  ;;  %v5456_v37 = vpop.f32.mrf.mxu1  ;;  %v5462_v47 = vadd.f32 %v5077_v23, %v2403_v10  ;;  %v2409_v13 = vmul.f32 %v6578_v33, %v5056_v20  ;;  %v6579_v34 = vld [vmem:[#allocation17_spill] sm:$0xff]  ;;  %v5469_v26 = vadd.f32 %v5077_v23, %v2531_v24 }
 0x12b   :  { %6573 = vst [vmem:[#allocation10_spill] sm:$0xff] %v5443_v50  ;;  %6576 = vst [vmem:[#allocation13_spill] sm:$0xff] %v5452_v31  ;;  %v2537_v0 = vmul.f32 %v6579_v34, %v5056_v20  ;;  %v2407_v18 = vmul.f32 %v5056_v20, %v5093_v32  ;;  %v6581_v31 = vld [vmem:[#allocation18_spill] sm:$0xff]  ;;  %v2412_v17 = vmul.f32 %v5117_v19, %v5056_v20 }
 0x12c   :  { %6577 = vst [vmem:[#allocation14_spill] sm:$0xff] %v5462_v47  ;;  %6580 = vst [vmem:[#allocation15_spill] sm:$0xff] %v5469_v26  ;;  %v2535_v50 = vmul.f32 %v5056_v20, %v6581_v31  ;;  %v5477_v10 = vpop.f32.mrf.mxu0  ;;  %v5479_v47 = vpop.f32.mrf.mxu1  ;;  %v5482_v33 = vadd.f32 %v5077_v23, %v2408_v28  ;;  %v5485_v34 = vadd.f32 %v5077_v23, %v2536_v6 }
 0x12d   :  { %v5488_v24 = vadd.f32 %v5077_v23, %v2406_v60  ;;  %v5491_v32 = vadd.f32 %v5077_v23, %v2534_v8  ;;  %v2540_v31 = vmul.f32 %v5119_v44, %v5056_v20  ;;  %v2410_v19 = vmul.f32 %v5056_v20, %v5142_v41 }
 0x12e   :  { %6582 = vst [vmem:[#allocation16_spill] sm:$0xff] %v5485_v34  ;;  %v2538_v26 = vmul.f32 %v5056_v20, %v5144_v58  ;;  %v2413_v28 = vmul.f32 %v5166_v56, %v5056_v20  ;;  %v5501_v6 = vpop.f32.mrf.mxu0  ;;  %v5503_v34 = vpop.f32.mrf.mxu1  ;;  %v5506_v60 = vadd.f32 %v5077_v23, %v2409_v13  ;;  %v5509_v8 = vadd.f32 %v5077_v23, %v2537_v0 }
 0x12f   :  { %6583 = vst [vmem:[#allocation17_spill] sm:$0xff] %v5491_v32  ;;  %v2541_v44 = vmul.f32 %v5168_v1, %v5056_v20  ;;  %v2411_v41 = vmul.f32 %v5056_v20, %v5189_v54  ;;  %v5516_v58 = vadd.f32 %v5077_v23, %v2407_v18  ;;  %v5519_v56 = vadd.f32 %v5077_v23, %v2535_v50 }
 0x130   :  { %6584 = vst [vmem:[#allocation18_spill] sm:$0xff] %v5509_v8  ;;  %v5522_v32 = vadd.f32 %v5077_v23, %v2412_v17  ;;  %v2539_v13 = vmul.f32 %v5056_v20, %v5191_v3  ;;  %v5526_v0 = vpop.f32.mrf.mxu0  ;;  %v5528_v8 = vpop.f32.mrf.mxu1  ;;  %v2416_v1 = vmul.f32 %v5213_v61, %v5056_v20  ;;  %v2544_v54 = vmul.f32 %v5215_v5, %v5056_v20 }
 0x131   :  { %6585 = vst [vmem:[#allocation54_spill] sm:$0xff] %v5519_v56  ;;  %v2414_v50 = vmul.f32 %v5056_v20, %v5238_v48  ;;  %v2542_v18 = vmul.f32 %v5056_v20, %v5240_v35  ;;  %v5539_v17 = vadd.f32 %v5077_v23, %v2540_v31  ;;  %v5542_v3 = vadd.f32 %v5077_v23, %v2410_v19 }
 0x132   :  { %6586 = vst [vmem:[#allocation55_spill] sm:$0xff] %v5522_v32  ;;  %v5545_v32 = vadd.f32 %v5077_v23, %v2538_v26  ;;  %v5548_v61 = vadd.f32 %v5077_v23, %v2413_v28  ;;  %v4047_v56 = vpop.f32.mrf.mxu0  ;;  %v5550_v5 = vpop.f32.mrf.mxu1  ;;  %v5553_v48 = vadd.f32 %v5077_v23, %v2541_v44  ;;  %v5556_v35 = vadd.f32 %v5077_v23, %v2411_v41 }
 0x133   :  { %v2417_v31 = vmul.f32 %v5262_v16, %v5056_v20  ;;  %v2545_v19 = vmul.f32 %v5264_v25, %v5056_v20  ;;  %v5563_v26 = vadd.f32 %v5077_v23, %v2539_v13  ;;  %v2415_v28 = vmul.f32 %v5056_v20, %v5285_v14 }
 0x134   :  { %6587 = vst [vmem:[#allocation56_spill] sm:$0xff] %v5548_v61  ;;  %6588 = vst [vmem:[#allocation57_spill] sm:$0xff] %v5553_v48  ;;  %v2543_v61 = vmul.f32 %v5056_v20, %v5287_v27  ;;  %v2420_v44 = vmul.f32 %v5309_v21, %v5056_v20  ;;  %v1555_v41 = vpop.f32.mrf.mxu0  ;;  %v5572_v48 = vadd.f32 %v5077_v23, %v2416_v1 }
 0x135   :  { %6589 = vst [vmem:[#allocation58_spill] sm:$0xff] %v5556_v35  ;;  %v2067_v35 = vpop.f32.mrf.mxu1  ;;  %v5575_v16 = vadd.f32 %v5077_v23, %v2544_v54  ;;  %v5578_v25 = vadd.f32 %v5077_v23, %v2414_v50  ;;  %v5581_v13 = vadd.f32 %v5077_v23, %v2542_v18  ;;  %v2548_v27 = vmul.f32 %v5311_v29, %v5056_v20 }
 0x136   :  { %v2418_v14 = vmul.f32 %v5056_v20, %v5334_v52  ;;  %v2546_v21 = vmul.f32 %v5056_v20, %v5336_v63  ;;  %v2421_v1 = vmul.f32 %v5358_v46, %v5056_v20  ;;  %v4050_v54 = vpop.f32.mrf.mxu0  ;;  %v5592_v50 = vadd.f32 %v5077_v23, %v2417_v31 }
 0x137   :  { %6590 = vst [vmem:[#allocation59_spill] sm:$0xff] %v5575_v16  ;;  %6591 = vst [vmem:[#allocation60_spill] sm:$0xff] %v5581_v13  ;;  %v4178_v16 = vpop.f32.mrf.mxu1  ;;  %v5595_v18 = vadd.f32 %v5077_v23, %v2545_v19  ;;  %v2549_v29 = vmul.f32 %v5360_v7, %v5056_v20  ;;  %v2419_v52 = vmul.f32 %v5056_v20, %v5381_v38 }
 0x138   :  { %v5602_v13 = vadd.f32 %v5077_v23, %v2415_v28  ;;  %v5605_v63 = vadd.f32 %v5077_v23, %v2543_v61  ;;  %v5608_v46 = vadd.f32 %v5077_v23, %v2420_v44  ;;  %v2547_v31 = vmul.f32 %v5056_v20, %v5383_v11  ;;  %v1568_v19 = vpop.f32.mrf.mxu0 }
 0x139   :  { %6592 = vst [vmem:[#allocation61_spill] sm:$0xff] %v5595_v18  ;;  %v2080_v18 = vpop.f32.mrf.mxu1  ;;  %v2424_v7 = vmul.f32 %v5405_v59, %v5056_v20  ;;  %v2552_v38 = vmul.f32 %v5407_v36, %v5056_v20  ;;  %v2422_v28 = vmul.f32 %v5056_v20, %v5430_v12  ;;  %v2550_v61 = vmul.f32 %v5056_v20, %v5432_v57 }
 0x13a   :  { %6593 = vst [vmem:[#allocation62_spill] sm:$0xff] %v5602_v13  ;;  %6594 = vst [vmem:[#allocation63_spill] sm:$0xff] %v5605_v63  ;;  %v5621_v44 = vadd.f32 %v5077_v23, %v2548_v27  ;;  %v5627_v11 = vadd.f32 %v5077_v23, %v2546_v21  ;;  %v5630_v59 = vadd.f32 %v5077_v23, %v2421_v1  ;;  %v4051_v63 = vpop.f32.mrf.mxu0 }
 0x13b   :  { %6595 = vst [vmem:[#allocation64_spill] sm:$0xff] %v5608_v46  ;;  %v5624_v46 = vadd.f32 %v5077_v23, %v2418_v14  ;;  %v4179_v36 = vpop.f32.mrf.mxu1  ;;  %v5633_v13 = vadd.f32 %v5077_v23, %v2549_v29  ;;  %v5636_v12 = vadd.f32 %v5077_v23, %v2419_v52  ;;  %v2425_v57 = vmul.f32 %v5454_v9, %v5056_v20 }
 0x13c   :  { %v2553_v27 = vmul.f32 %v5456_v37, %v5056_v20  ;;  %v5643_v14 = vadd.f32 %v5077_v23, %v2547_v31  ;;  %v2423_v21 = vmul.f32 %v5056_v20, %v5477_v10  ;;  %v2551_v1 = vmul.f32 %v5056_v20, %v5479_v47  ;;  %v1571_v52 = vpop.f32.mrf.mxu0 }
 0x13d   :  { %6596 = vst [vmem:[#allocation65_spill] sm:$0xff] %v5633_v13  ;;  %6597 = vst [vmem:[#allocation66_spill] sm:$0xff] %v5636_v12  ;;  %v2428_v29 = vmul.f32 %v5501_v6, %v5056_v20  ;;  %v2083_v12 = vpop.f32.mrf.mxu1  ;;  %v5652_v13 = vadd.f32 %v5077_v23, %v2424_v7  ;;  %v5655_v9 = vadd.f32 %v5077_v23, %v2552_v38 }
 0x13e   :  { %v5658_v37 = vadd.f32 %v5077_v23, %v2422_v28  ;;  %v5661_v31 = vadd.f32 %v5077_v23, %v2550_v61  ;;  %v2556_v47 = vmul.f32 %v5503_v34, %v5056_v20  ;;  %v2426_v10 = vmul.f32 %v5056_v20, %v5526_v0 }
 0x13f   :  { %6598 = vst [vmem:[#allocation67_spill] sm:$0xff] %v5652_v13  ;;  %6599 = vst [vmem:[#allocation68_spill] sm:$0xff] %v5655_v9  ;;  %v2554_v6 = vmul.f32 %v5056_v20, %v5528_v8  ;;  %v2429_v7 = vmul.f32 %v4047_v56, %v5056_v20  ;;  %v4054_v13 = vpop.f32.mrf.mxu0  ;;  %v4182_v38 = vpop.f32.mrf.mxu1  ;;  %v5671_v9 = vadd.f32 %v5077_v23, %v2425_v57 }
 0x140   :  { %6600 = vst [vmem:[#allocation69_spill] sm:$0xff] %v5661_v31  ;;  %v5674_v28 = vadd.f32 %v5077_v23, %v2553_v27  ;;  %v2557_v61 = vmul.f32 %v5550_v5, %v5056_v20  ;;  %v2427_v34 = vmul.f32 %v5056_v20, %v1555_v41  ;;  %v5680_v0 = vadd.f32 %v5077_v23, %v2423_v21 }
 0x141   :  { %6601 = vst [vmem:[#allocation70_spill] sm:$0xff] %v5671_v9  ;;  %v5683_v8 = vadd.f32 %v5077_v23, %v2551_v1  ;;  %v5686_v56 = vadd.f32 %v5077_v23, %v2428_v29  ;;  %v2555_v57 = vmul.f32 %v5056_v20, %v2067_v35  ;;  %v1584_v9 = vpop.f32.mrf.mxu0  ;;  %v2096_v31 = vpop.f32.mrf.mxu1  ;;  %v2432_v27 = vmul.f32 %v4050_v54, %v5056_v20 }
 0x142   :  { %6602 = vst [vmem:[#allocation71_spill] sm:$0xff] %v5674_v28  ;;  %v2560_v28 = vmul.f32 %v4178_v16, %v5056_v20  ;;  %v2430_v5 = vmul.f32 %v5056_v20, %v1568_v19  ;;  %v2558_v41 = vmul.f32 %v5056_v20, %v2080_v18  ;;  %v5694_v21 = vadd.f32 %v5077_v23, %v2556_v47 }
 0x143   :  { %6603 = vst [vmem:[#allocation72_spill] sm:$0xff] %v5686_v56  ;;  %v5697_v1 = vadd.f32 %v5077_v23, %v2426_v10  ;;  %v5700_v29 = vadd.f32 %v5077_v23, %v2554_v6  ;;  %v5703_v35 = vadd.f32 %v5077_v23, %v2429_v7  ;;  %v4055_v56 = vpop.f32.mrf.mxu0  ;;  %v4183_v54 = vpop.f32.mrf.mxu1  ;;  %v5706_v16 = vadd.f32 %v5077_v23, %v2557_v61 }
 0x144   :  { %v5709_v19 = vadd.f32 %v5077_v23, %v2427_v34  ;;  %v2433_v18 = vmul.f32 %v4051_v63, %v5056_v20  ;;  %v2561_v47 = vmul.f32 %v4179_v36, %v5056_v20  ;;  %v5714_v10 = vadd.f32 %v5077_v23, %v2555_v57 }
 0x145   :  { %6604 = vst [vmem:[#allocation73_spill] sm:$0xff] %v5697_v1  ;;  %6605 = vst [vmem:[#allocation74_spill] sm:$0xff] %v5700_v29  ;;  %v2431_v6 = vmul.f32 %v5056_v20, %v1571_v52  ;;  %v2559_v7 = vmul.f32 %v5056_v20, %v2083_v12  ;;  %v1587_v29 = vpop.f32.mrf.mxu0  ;;  %v2099_v1 = vpop.f32.mrf.mxu1  ;;  %v5720_v61 = vadd.f32 %v5077_v23, %v2432_v27 }
 0x146   :  { %6606 = vst [vmem:[#allocation75_spill] sm:$0xff] %v5703_v35  ;;  %6607 = vst [vmem:[#allocation76_spill] sm:$0xff] %v5714_v10  ;;  %v2436_v35 = vmul.f32 %v4054_v13, %v5056_v20  ;;  %v5723_v34 = vadd.f32 %v5077_v23, %v2560_v28  ;;  %v5726_v63 = vadd.f32 %v5077_v23, %v2430_v5 }
 0x147   :  { %6608 = vst [vmem:[#allocation77_spill] sm:$0xff] %v5720_v61  ;;  %v5729_v36 = vadd.f32 %v5077_v23, %v2558_v41  ;;  %v2564_v52 = vmul.f32 %v4182_v38, %v5056_v20  ;;  %v2434_v12 = vmul.f32 %v5056_v20, %v1584_v9  ;;  %v2562_v13 = vmul.f32 %v5056_v20, %v2096_v31  ;;  %v4058_v10 = vpop.f32.mrf.mxu0  ;;  %v4186_v27 = vpop.f32.mrf.mxu1 }
 0x148   :  { %v2437_v57 = vmul.f32 %v4055_v56, %v5056_v20  ;;  %v5736_v61 = vadd.f32 %v5077_v23, %v2433_v18  ;;  %v5739_v28 = vadd.f32 %v5077_v23, %v2561_v47  ;;  %v2440_v5 = vmul.f32 %v4058_v10, %v5056_v20 }
 0x149   :  { %v2568_v41 = vmul.f32 %v4186_v27, %v5056_v20  ;;  %v5744_v38 = vadd.f32 %v5077_v23, %v2431_v6  ;;  %v5747_v9 = vadd.f32 %v5077_v23, %v2559_v7  ;;  %v5750_v31 = vadd.f32 %v5077_v23, %v2436_v35  ;;  %v1600_v18 = vpop.f32.mrf.mxu0 }
 0x14a   :  { %6609 = vst [vmem:[#allocation78_spill] sm:$0xff] %v5736_v61  ;;  %v2565_v56 = vmul.f32 %v4183_v54, %v5056_v20  ;;  %v2112_v61 = vpop.f32.mrf.mxu1  ;;  %v2703_v47 = vadd.f32 %v5077_v23, %v2440_v5  ;;  %v2438_v27 = vmul.f32 %v5056_v20, %v1600_v18  ;;  %v5761_v7 = vadd.f32 %v5077_v23, %v2434_v12 }
 0x14b   :  { %6610 = vst [vmem:[#allocation79_spill] sm:$0xff] %v5744_v38  ;;  %6611 = vst [vmem:[#allocation80_spill] sm:$0xff] %v5747_v9  ;;  %v2831_v10 = vadd.f32 %v5077_v23, %v2568_v41  ;;  %v2566_v6 = vmul.f32 %v5056_v20, %v2112_v61  ;;  %v5758_v38 = vadd.f32 %v5077_v23, %v2564_v52  ;;  %v6617_v9 = vld [vmem:[#allocation19_spill] sm:$0xff] }
 0x14c   :  { %6612 = vst [vmem:[#allocation81_spill] sm:$0xff] %v5750_v31  ;;  %6614 = vst [vmem:[#allocation83_spill] sm:$0xff] %v5761_v7  ;;  %v5764_v35 = vadd.f32 %v5077_v23, %v2562_v13  ;;  %v5767_v54 = vadd.f32 %v5077_v23, %v2437_v57  ;;  %v4059_v31 = vpop.f32.mrf.mxu0  ;;  %v4187_v5 = vpop.f32.mrf.mxu1  ;;  %v2895_v41 = vmax.f32 %v5098_v51, %v2703_v47 }
 0x14d   :  { %6613 = vst [vmem:[#allocation82_spill] sm:$0xff] %v5758_v38  ;;  %v2959_v18 = vmax.f32 %v6617_v9, %v2831_v10  ;;  %v2701_v61 = vadd.f32 %v5077_v23, %v2438_v27  ;;  %v2829_v52 = vadd.f32 %v5077_v23, %v2566_v6  ;;  %v5774_v38 = vadd.f32 %v5077_v23, %v2565_v56  ;;  %v6620_v9 = vld [vmem:[#allocation20_spill] sm:$0xff] }
 0x14e   :  { %6615 = vst [vmem:[#allocation84_spill] sm:$0xff] %v5764_v35  ;;  %6616 = vst [vmem:[#allocation85_spill] sm:$0xff] %v5767_v54  ;;  %v5777_v12 = vmul.f32 %v5056_v20, %v1587_v29  ;;  %v2441_v13 = vmul.f32 %v4059_v31, %v5056_v20  ;;  %v2569_v57 = vmul.f32 %v4187_v5, %v5056_v20  ;;  %v1603_v54 = vpop.f32.mrf.mxu0  ;;  %v2115_v35 = vpop.f32.mrf.mxu1 }
 0x14f   :  { %6618 = vst [vmem:[#allocation19_spill] sm:$0xff] %v5774_v38  ;;  %v3023_v7 = vmax.f32 %v2895_v41, %v2959_v18  ;;  %v2893_v51 = vmax.f32 %v5104_v45, %v2701_v61  ;;  %v2957_v47 = vmax.f32 %v6620_v9, %v2829_v52  ;;  %v2439_v10 = vmul.f32 %v5056_v20, %v1603_v54  ;;  %v6622_v54 = vld [vmem:[#allocation21_spill] sm:$0xff] }
 0x150   :  { %6619 = vst [vmem:[#allocation86_spill] sm:$0xff] %v5777_v12  ;;  %v5785_v27 = vmul.f32 %v5056_v20, %v2099_v1  ;;  %v2704_v56 = vadd.f32 %v5077_v23, %v2441_v13  ;;  %v2832_v29 = vadd.f32 %v5077_v23, %v2569_v57  ;;  %v2567_v31 = vmul.f32 %v5056_v20, %v2115_v35  ;;  %v4062_v6 = vpop.f32.mrf.mxu0  ;;  %v4190_v5 = vpop.f32.mrf.mxu1 }
 0x151   :  { %v3087_v38 = vmax.f32 %v3023_v7, 0.0  ;;  %v3021_v12 = vmax.f32 %v2893_v51, %v2957_v47  ;;  %v2702_v41 = vadd.f32 %v5077_v23, %v2439_v10  ;;  %v2444_v45 = vmul.f32 %v4062_v6, %v5056_v20  ;;  %v6623_v47 = vld [vmem:[#allocation22_spill] sm:$0xff] }
 0x152   :  { %6621 = vst [vmem:[#allocation20_spill] sm:$0xff] %v5785_v27  ;;  %v2896_v18 = vmax.f32 %v5122_v30, %v2704_v56  ;;  %v2960_v61 = vmax.f32 %v6622_v54, %v2832_v29  ;;  %v2830_v1 = vadd.f32 %v5077_v23, %v2567_v31  ;;  %v2572_v52 = vmul.f32 %v4190_v5, %v5056_v20  ;;  %v1616_v13 = vpop.f32.mrf.mxu0  ;;  %v2128_v57 = vpop.f32.mrf.mxu1 }
 0x153   :  { %v3799_v9 = vpack.c.bf16 %v3087_v38, %v3087_v38  ;;  %v3085_v35 = vmax.f32 %v3021_v12, 0.0  ;;  %v2894_v27 = vmax.f32 %v5132_v55, %v2702_v41  ;;  %v2707_v7 = vadd.f32 %v5077_v23, %v2444_v45  ;;  %v6624_v12 = vld [vmem:[#allocation23_spill] sm:$0xff] }
 0x154   :  { %v3024_v51 = vmax.f32 %v2896_v18, %v2960_v61  ;;  %v2958_v10 = vmax.f32 %v6623_v47, %v2830_v1  ;;  %v2835_v6 = vadd.f32 %v5077_v23, %v2572_v52  ;;  %v2442_v30 = vmul.f32 %v5056_v20, %v1616_v13  ;;  %v4063_v56 = vpop.f32.mrf.mxu0  ;;  %v4191_v29 = vpop.f32.mrf.mxu1 }
 0x155   :  { %3408 = vst.msk [vmem:[%s6498_s4 + $0x8] sm:$0xf] %vm3405_vm2, %v3799_v9  ;;  %v3797_v38 = vpack.c.bf16 %v3085_v35, %v3085_v35  ;;  %v2899_v31 = vmax.f32 %v6624_v12, %v2707_v7  ;;  %v2570_v55 = vmul.f32 %v5056_v20, %v2128_v57  ;;  %v2445_v5 = vmul.f32 %v4063_v56, %v5056_v20 }
 0x156   :  { %v3088_v41 = vmax.f32 %v3024_v51, 0.0  ;;  %v3022_v45 = vmax.f32 %v2894_v27, %v2958_v10  ;;  %v2963_v18 = vmax.f32 %v5155_v43, %v2835_v6  ;;  %v2705_v54 = vadd.f32 %v5077_v23, %v2442_v30  ;;  %v1619_v61 = vpop.f32.mrf.mxu0  ;;  %v2131_v1 = vpop.f32.mrf.mxu1  ;;  %v6625_v6 = vld [vmem:[#allocation24_spill] sm:$0xff] }
 0x157   :  { %3406 = vst.msk [vmem:[%s6498_s4] sm:$0xf] %vm3405_vm2, %v3797_v38  ;;  %v2833_v52 = vadd.f32 %v5077_v23, %v2570_v55  ;;  %v2708_v13 = vadd.f32 %v5077_v23, %v2445_v5  ;;  %v2573_v57 = vmul.f32 %v4191_v29, %v5056_v20  ;;  %v2443_v9 = vmul.f32 %v5056_v20, %v1619_v61 }
 0x158   :  { %v3800_v27 = vpack.c.bf16 %v3088_v41, %v3088_v41  ;;  %v3086_v35 = vmax.f32 %v3022_v45, 0.0  ;;  %v3027_v43 = vmax.f32 %v2899_v31, %v2963_v18  ;;  %v2897_v7 = vmax.f32 %v5158_v62, %v2705_v54  ;;  %v4066_v51 = vpop.f32.mrf.mxu0  ;;  %v4194_v47 = vpop.f32.mrf.mxu1  ;;  %v6626_v45 = vld [vmem:[#allocation25_spill] sm:$0xff] }
 0x159   :  { %v2961_v10 = vmax.f32 %v5161_v49, %v2833_v52  ;;  %v2900_v30 = vmax.f32 %v6625_v6, %v2708_v13  ;;  %v2836_v56 = vadd.f32 %v5077_v23, %v2573_v57  ;;  %v2706_v38 = vadd.f32 %v5077_v23, %v2443_v9 }
 0x15a   :  { %3409 = vst.msk [vmem:[%s6498_s4 + $0xc] sm:$0xf] %vm3405_vm2, %v3800_v27  ;;  %v3798_v29 = vpack.c.bf16 %v3086_v35, %v3086_v35  ;;  %v3091_v12 = vmax.f32 %v3027_v43, 0.0  ;;  %v2571_v31 = vmul.f32 %v5056_v20, %v2131_v1  ;;  %v2448_v62 = vmul.f32 %v4066_v51, %v5056_v20  ;;  %v1632_v55 = vpop.f32.mrf.mxu0  ;;  %v2144_v5 = vpop.f32.mrf.mxu1 }
 0x15b   :  { %v3025_v49 = vmax.f32 %v2897_v7, %v2961_v10  ;;  %v2964_v41 = vmax.f32 %v5171_v2, %v2836_v56  ;;  %v2898_v18 = vmax.f32 %v6626_v45, %v2706_v38  ;;  %v2576_v54 = vmul.f32 %v4194_v47, %v5056_v20  ;;  %v6627_v7 = vld [vmem:[#allocation26_spill] sm:$0xff] }
 0x15c   :  { %3407 = vst.msk [vmem:[%s6498_s4 + $0x4] sm:$0xf] %vm3405_vm2, %v3798_v29  ;;  %v3803_v61 = vpack.c.bf16 %v3091_v12, %v3091_v12  ;;  %v2834_v52 = vadd.f32 %v5077_v23, %v2571_v31  ;;  %v2711_v1 = vadd.f32 %v5077_v23, %v2448_v62  ;;  %v2446_v13 = vmul.f32 %v5056_v20, %v1632_v55  ;;  %v4067_v57 = vpop.f32.mrf.mxu0  ;;  %v4195_v9 = vpop.f32.mrf.mxu1  ;;  %v6628_v12 = vld [vmem:[#allocation27_spill] sm:$0xff] }
 0x15d   :  { %v3089_v27 = vmax.f32 %v3025_v49, 0.0  ;;  %v3028_v2 = vmax.f32 %v2900_v30, %v2964_v41  ;;  %v2839_v35 = vadd.f32 %v5077_v23, %v2576_v54  ;;  %v2574_v43 = vmul.f32 %v5056_v20, %v2144_v5 }
 0x15e   :  { %3412 = vst.msk [vmem:[%s6498_s4 + $0x18] sm:$0xf] %vm3405_vm2, %v3803_v61  ;;  %v2962_v51 = vmax.f32 %v6627_v7, %v2834_v52  ;;  %v2903_v47 = vmax.f32 %v5194_v4, %v2711_v1  ;;  %v2709_v10 = vadd.f32 %v5077_v23, %v2446_v13  ;;  %v2449_v6 = vmul.f32 %v4067_v57, %v5056_v20  ;;  %v1635_v56 = vpop.f32.mrf.mxu0  ;;  %v2147_v38 = vpop.f32.mrf.mxu1  ;;  %v6629_v52 = vld [vmem:[#allocation28_spill] sm:$0xff] }
 0x15f   :  { %v3801_v30 = vpack.c.bf16 %v3089_v27, %v3089_v27  ;;  %v3092_v29 = vmax.f32 %v3028_v2, 0.0  ;;  %v2967_v31 = vmax.f32 %v6628_v12, %v2839_v35  ;;  %v2837_v62 = vadd.f32 %v5077_v23, %v2574_v43 }
 0x160   :  { %v3026_v55 = vmax.f32 %v2898_v18, %v2962_v51  ;;  %v2901_v5 = vmax.f32 %v5200_v40, %v2709_v10  ;;  %v2712_v49 = vadd.f32 %v5077_v23, %v2449_v6  ;;  %v2577_v41 = vmul.f32 %v4195_v9, %v5056_v20  ;;  %v4070_v4 = vpop.f32.mrf.mxu0  ;;  %v4198_v45 = vpop.f32.mrf.mxu1  ;;  %v6630_v10 = vld [vmem:[#allocation29_spill] sm:$0xff] }
 0x161   :  { %3410 = vst.msk [vmem:[%s6498_s4 + $0x10] sm:$0xf] %vm3405_vm2, %v3801_v30  ;;  %v3804_v54 = vpack.c.bf16 %v3092_v29, %v3092_v29  ;;  %v3031_v61 = vmax.f32 %v2903_v47, %v2967_v31  ;;  %v2965_v1 = vmax.f32 %v6629_v52, %v2837_v62  ;;  %v2447_v13 = vmul.f32 %v5056_v20, %v1635_v56 }
 0x162   :  { %v3090_v18 = vmax.f32 %v3026_v55, 0.0  ;;  %v2904_v40 = vmax.f32 %v5218_v42, %v2712_v49  ;;  %v2840_v57 = vadd.f32 %v5077_v23, %v2577_v41  ;;  %v2575_v9 = vmul.f32 %v5056_v20, %v2147_v38  ;;  %v1648_v27 = vpop.f32.mrf.mxu0  ;;  %v2160_v2 = vpop.f32.mrf.mxu1 }
 0x163   :  { %3413 = vst.msk [vmem:[%s6498_s4 + $0x1c] sm:$0xf] %vm3405_vm2, %v3804_v54  ;;  %v3095_v35 = vmax.f32 %v3031_v61, 0.0  ;;  %v3029_v43 = vmax.f32 %v2901_v5, %v2965_v1  ;;  %v2710_v7 = vadd.f32 %v5077_v23, %v2447_v13  ;;  %v2452_v51 = vmul.f32 %v4070_v4, %v5056_v20  ;;  %v6631_v5 = vld [vmem:[#allocation30_spill] sm:$0xff]  ;;  %v6632_v61 = vld [vmem:[#allocation31_spill] sm:$0xff] }
 0x164   :  { %v3802_v47 = vpack.c.bf16 %v3090_v18, %v3090_v18  ;;  %v2968_v42 = vmax.f32 %v6630_v10, %v2840_v57  ;;  %v2838_v6 = vadd.f32 %v5077_v23, %v2575_v9  ;;  %v2580_v56 = vmul.f32 %v4198_v45, %v5056_v20  ;;  %v4071_v38 = vpop.f32.mrf.mxu0  ;;  %v4199_v30 = vpop.f32.mrf.mxu1 }
 0x165   :  { %v3807_v29 = vpack.c.bf16 %v3095_v35, %v3095_v35  ;;  %v3093_v12 = vmax.f32 %v3029_v43, 0.0  ;;  %v2902_v31 = vmax.f32 %v5228_v15, %v2710_v7  ;;  %v2715_v62 = vadd.f32 %v5077_v23, %v2452_v51 }
 0x166   :  { %3411 = vst.msk [vmem:[%s6498_s4 + $0x14] sm:$0xf] %vm3405_vm2, %v3802_v47  ;;  %v3032_v55 = vmax.f32 %v2904_v40, %v2968_v42  ;;  %v2966_v49 = vmax.f32 %v6631_v5, %v2838_v6  ;;  %v2843_v41 = vadd.f32 %v5077_v23, %v2580_v56  ;;  %v2450_v4 = vmul.f32 %v5056_v20, %v1648_v27  ;;  %v1651_v45 = vpop.f32.mrf.mxu0  ;;  %v2163_v54 = vpop.f32.mrf.mxu1 }
 0x167   :  { %3416 = vst.msk [vmem:[%s6498_s4 + $0x28] sm:$0xf] %vm3405_vm2, %v3807_v29  ;;  %v3805_v15 = vpack.c.bf16 %v3093_v12, %v3093_v12  ;;  %v2907_v52 = vmax.f32 %v6632_v61, %v2715_v62  ;;  %v2578_v1 = vmul.f32 %v5056_v20, %v2160_v2  ;;  %v2453_v13 = vmul.f32 %v4071_v38, %v5056_v20  ;;  %v6633_v38 = vld [vmem:[#allocation32_spill] sm:$0xff]  ;;  %v6634_v12 = vld [vmem:[#allocation33_spill] sm:$0xff] }
 0x168   :  { %v3096_v18 = vmax.f32 %v3032_v55, 0.0  ;;  %v3030_v40 = vmax.f32 %v2902_v31, %v2966_v49  ;;  %v2971_v57 = vmax.f32 %v5251_v53, %v2843_v41  ;;  %v2713_v9 = vadd.f32 %v5077_v23, %v2450_v4  ;;  %v4074_v27 = vpop.f32.mrf.mxu0  ;;  %v4202_v35 = vpop.f32.mrf.mxu1 }
 0x169   :  { %3414 = vst.msk [vmem:[%s6498_s4 + $0x20] sm:$0xf] %vm3405_vm2, %v3805_v15  ;;  %v2841_v43 = vadd.f32 %v5077_v23, %v2578_v1  ;;  %v2716_v7 = vadd.f32 %v5077_v23, %v2453_v13  ;;  %v2581_v2 = vmul.f32 %v4199_v30, %v5056_v20  ;;  %v2451_v51 = vmul.f32 %v5056_v20, %v1651_v45  ;;  %v6635_v15 = vld [vmem:[#allocation34_spill] sm:$0xff] }
 0x16a   :  { %v3808_v47 = vpack.c.bf16 %v3096_v18, %v3096_v18  ;;  %v3094_v10 = vmax.f32 %v3030_v40, 0.0  ;;  %v3035_v53 = vmax.f32 %v2907_v52, %v2971_v57  ;;  %v2905_v42 = vmax.f32 %v5254_v22, %v2713_v9  ;;  %v1664_v6 = vpop.f32.mrf.mxu0  ;;  %v2176_v56 = vpop.f32.mrf.mxu1  ;;  %v6636_v52 = vld [vmem:[#allocation35_spill] sm:$0xff] }
 0x16b   :  { %v2969_v29 = vmax.f32 %v6633_v38, %v2841_v43  ;;  %v2908_v31 = vmax.f32 %v6634_v12, %v2716_v7  ;;  %v2844_v62 = vadd.f32 %v5077_v23, %v2581_v2  ;;  %v2714_v55 = vadd.f32 %v5077_v23, %v2451_v51 }
 0x16c   :  { %3417 = vst.msk [vmem:[%s6498_s4 + $0x2c] sm:$0xf] %vm3405_vm2, %v3808_v47  ;;  %v3806_v30 = vpack.c.bf16 %v3094_v10, %v3094_v10  ;;  %v3099_v5 = vmax.f32 %v3035_v53, 0.0  ;;  %v2579_v49 = vmul.f32 %v5056_v20, %v2163_v54  ;;  %v2456_v22 = vmul.f32 %v4074_v27, %v5056_v20  ;;  %v4075_v41 = vpop.f32.mrf.mxu0  ;;  %v4203_v4 = vpop.f32.mrf.mxu1  ;;  %v6637_v47 = vld [vmem:[#allocation36_spill] sm:$0xff]  ;;  %v6638_v10 = vld [vmem:[#allocation37_spill] sm:$0xff] }
 0x16d   :  { %v3033_v45 = vmax.f32 %v2905_v42, %v2969_v29  ;;  %v2972_v61 = vmax.f32 %v6635_v15, %v2844_v62  ;;  %v2906_v1 = vmax.f32 %v6636_v52, %v2714_v55  ;;  %v2584_v13 = vmul.f32 %v4202_v35, %v5056_v20  ;;  %v5923_v35 = vld [vmem:[%s6496_s2] ss:$0 sm:$0xff] }
 0x16e   :  { %3415 = vst.msk [vmem:[%s6498_s4 + $0x24] sm:$0xf] %vm3405_vm2, %v3806_v30  ;;  %v3811_v18 = vpack.c.bf16 %v3099_v5, %v3099_v5  ;;  %v2842_v40 = vadd.f32 %v5077_v23, %v2579_v49  ;;  %v2719_v54 = vadd.f32 %v5077_v23, %v2456_v22  ;;  %v2454_v57 = vmul.f32 %v5056_v20, %v1664_v6  ;;  %v1667_v9 = vpop.f32.mrf.mxu0  ;;  %v2179_v27 = vpop.f32.mrf.mxu1  ;;  %v6639_v62 = vld [vmem:[#allocation38_spill] sm:$0xff]  ;;  %v6640_v49 = vld [vmem:[#allocation39_spill] sm:$0xff] }
 0x16f   :  { %v3097_v43 = vmax.f32 %v3033_v45, 0.0  ;;  %v3036_v7 = vmax.f32 %v2908_v31, %v2972_v61  ;;  %v2847_v2 = vadd.f32 %v5077_v23, %v2584_v13  ;;  %v2582_v51 = vmul.f32 %v5923_v35, %v2176_v56  ;;  %v5938_v56 = vld [vmem:[%s6497_s3] ss:$0 sm:$0xff]  ;;  %v6641_v13 = vld [vmem:[#allocation40_spill] sm:$0xff] }
 0x170   :  { %3420 = vst.msk [vmem:[%s6498_s4 + $0x38] sm:$0xf] %vm3405_vm2, %v3811_v18  ;;  %v2970_v20 = vmax.f32 %v6637_v47, %v2842_v40  ;;  %v2911_v53 = vmax.f32 %v6638_v10, %v2719_v54  ;;  %v2717_v42 = vadd.f32 %v5077_v23, %v2454_v57  ;;  %v2457_v6 = vmul.f32 %v5923_v35, %v4075_v41  ;;  %v4078_v38 = vpop.f32.mrf.mxu0  ;;  %v4206_v29 = vpop.f32.mrf.mxu1  ;;  %v6642_v54 = vld [vmem:[#allocation41_spill] sm:$0xff] }
 0x171   :  { %v3809_v12 = vpack.c.bf16 %v3097_v43, %v3097_v43  ;;  %v3100_v31 = vmax.f32 %v3036_v7, 0.0  ;;  %v2975_v55 = vmax.f32 %v6639_v62, %v2847_v2  ;;  %v2845_v30 = vadd.f32 %v5938_v56, %v2582_v51 }
 0x172   :  { %v3034_v5 = vmax.f32 %v2906_v1, %v2970_v20  ;;  %v2909_v22 = vmax.f32 %v6640_v49, %v2717_v42  ;;  %v2720_v23 = vadd.f32 %v5938_v56, %v2457_v6  ;;  %v2585_v41 = vmul.f32 %v5923_v35, %v4203_v4  ;;  %v1680_v45 = vpop.f32.mrf.mxu0  ;;  %v2192_v15 = vpop.f32.mrf.mxu1 }
 0x173   :  { %3418 = vst.msk [vmem:[%s6498_s4 + $0x30] sm:$0xf] %vm3405_vm2, %v3809_v12  ;;  %v3812_v61 = vpack.c.bf16 %v3100_v31, %v3100_v31  ;;  %v3039_v52 = vmax.f32 %v2911_v53, %v2975_v55  ;;  %v2973_v18 = vmax.f32 %v6641_v13, %v2845_v30  ;;  %v2455_v40 = vmul.f32 %v5923_v35, %v1667_v9  ;;  %v6643_v53 = vld [vmem:[#allocation42_spill] sm:$0xff]  ;;  %v6644_v30 = vld [vmem:[#allocation43_spill] sm:$0xff] }
 0x174   :  { %v3098_v1 = vmax.f32 %v3034_v5, 0.0  ;;  %v2912_v57 = vmax.f32 %v6642_v54, %v2720_v23  ;;  %v2848_v43 = vadd.f32 %v5938_v56, %v2585_v41  ;;  %v2583_v4 = vmul.f32 %v5923_v35, %v2179_v27  ;;  %v4079_v7 = vpop.f32.mrf.mxu0  ;;  %v4207_v2 = vpop.f32.mrf.mxu1 }
 0x175   :  { %3421 = vst.msk [vmem:[%s6498_s4 + $0x3c] sm:$0xf] %vm3405_vm2, %v3812_v61  ;;  %v3103_v51 = vmax.f32 %v3039_v52, 0.0  ;;  %v3037_v47 = vmax.f32 %v2909_v22, %v2973_v18  ;;  %v2718_v20 = vadd.f32 %v5938_v56, %v2455_v40  ;;  %v2460_v9 = vmul.f32 %v5923_v35, %v4078_v38  ;;  %v6645_v22 = vld [vmem:[#allocation44_spill] sm:$0xff]  ;;  %v6646_v18 = vld [vmem:[#allocation45_spill] sm:$0xff] }
 0x176   :  { %v3810_v10 = vpack.c.bf16 %v3098_v1, %v3098_v1  ;;  %v2976_v42 = vmax.f32 %v6643_v53, %v2848_v43  ;;  %v2846_v6 = vadd.f32 %v5938_v56, %v2583_v4  ;;  %v2588_v27 = vmul.f32 %v5923_v35, %v4206_v29  ;;  %v1683_v12 = vpop.f32.mrf.mxu0  ;;  %v2195_v31 = vpop.f32.mrf.mxu1  ;;  %v6647_v4 = vld [vmem:[#allocation46_spill] sm:$0xff] }
 0x177   :  { %v3815_v62 = vpack.c.bf16 %v3103_v51, %v3103_v51  ;;  %v3101_v55 = vmax.f32 %v3037_v47, 0.0  ;;  %v2910_v5 = vmax.f32 %v6644_v30, %v2718_v20  ;;  %v2723_v49 = vadd.f32 %v5938_v56, %v2460_v9 }
 0x178   :  { %3419 = vst.msk [vmem:[%s6498_s4 + $0x34] sm:$0xf] %vm3405_vm2, %v3810_v10  ;;  %v3040_v38 = vmax.f32 %v2912_v57, %v2976_v42  ;;  %v2974_v23 = vmax.f32 %v6645_v22, %v2846_v6  ;;  %v2851_v41 = vadd.f32 %v5938_v56, %v2588_v27  ;;  %v2458_v29 = vmul.f32 %v5923_v35, %v1680_v45  ;;  %v4082_v61 = vpop.f32.mrf.mxu0  ;;  %v4210_v52 = vpop.f32.mrf.mxu1  ;;  %v6648_v27 = vld [vmem:[#allocation47_spill] sm:$0xff] }
 0x179   :  { %3424 = vst.msk [vmem:[%s6498_s4 + $0x48] sm:$0xf] %vm3405_vm2, %v3815_v62  ;;  %v3813_v13 = vpack.c.bf16 %v3101_v55, %v3101_v55  ;;  %v2915_v40 = vmax.f32 %v6646_v18, %v2723_v49  ;;  %v2586_v1 = vmul.f32 %v5923_v35, %v2192_v15  ;;  %v2461_v54 = vmul.f32 %v5923_v35, %v4079_v7 }
 0x17a   :  { %v3104_v57 = vmax.f32 %v3040_v38, 0.0  ;;  %v3038_v43 = vmax.f32 %v2910_v5, %v2974_v23  ;;  %v2979_v51 = vmax.f32 %v6647_v4, %v2851_v41  ;;  %v2721_v45 = vadd.f32 %v5938_v56, %v2458_v29  ;;  %v1696_v47 = vpop.f32.mrf.mxu0  ;;  %v2208_v20 = vpop.f32.mrf.mxu1  ;;  %v6649_v5 = vld [vmem:[#allocation48_spill] sm:$0xff]  ;;  %v6650_v38 = vld [vmem:[#allocation49_spill] sm:$0xff] }
 0x17b   :  { %3422 = vst.msk [vmem:[%s6498_s4 + $0x40] sm:$0xf] %vm3405_vm2, %v3813_v13  ;;  %v2849_v9 = vadd.f32 %v5938_v56, %v2586_v1  ;;  %v2724_v10 = vadd.f32 %v5938_v56, %v2461_v54  ;;  %v2589_v15 = vmul.f32 %v5923_v35, %v4207_v2  ;;  %v2459_v7 = vmul.f32 %v5923_v35, %v1683_v12  ;;  %v6651_v54 = vld [vmem:[#allocation50_spill] sm:$0xff] }
 0x17c   :  { %v3816_v53 = vpack.c.bf16 %v3104_v57, %v3104_v57  ;;  %v3102_v42 = vmax.f32 %v3038_v43, 0.0  ;;  %v3043_v6 = vmax.f32 %v2915_v40, %v2979_v51  ;;  %v2913_v62 = vmax.f32 %v6648_v27, %v2721_v45  ;;  %v4083_v55 = vpop.f32.mrf.mxu0  ;;  %v4211_v30 = vpop.f32.mrf.mxu1  ;;  %v6652_v43 = vld [vmem:[#allocation51_spill] sm:$0xff] }
 0x17d   :  { %v2977_v49 = vmax.f32 %v6649_v5, %v2849_v9  ;;  %v2916_v22 = vmax.f32 %v6650_v38, %v2724_v10  ;;  %v2852_v23 = vadd.f32 %v5938_v56, %v2589_v15  ;;  %v2722_v41 = vadd.f32 %v5938_v56, %v2459_v7 }
 0x17e   :  { %3425 = vst.msk [vmem:[%s6498_s4 + $0x4c] sm:$0xf] %vm3405_vm2, %v3816_v53  ;;  %v3814_v2 = vpack.c.bf16 %v3102_v42, %v3102_v42  ;;  %v3107_v12 = vmax.f32 %v3043_v6, 0.0  ;;  %v2587_v29 = vmul.f32 %v5923_v35, %v2195_v31  ;;  %v2464_v13 = vmul.f32 %v5923_v35, %v4082_v61  ;;  %v1699_v18 = vpop.f32.mrf.mxu0  ;;  %v2211_v40 = vpop.f32.mrf.mxu1  ;;  %v6653_v6 = vld [vmem:[#allocation2_spill] sm:$0xff] }
 0x17f   :  { %v3041_v1 = vmax.f32 %v2913_v62, %v2977_v49  ;;  %v2980_v57 = vmax.f32 %v6651_v54, %v2852_v23  ;;  %v2914_v4 = vmax.f32 %v6652_v43, %v2722_v41  ;;  %v2592_v51 = vmul.f32 %v5923_v35, %v4210_v52  ;;  %v6654_v62 = vld [vmem:[#allocation3_spill] sm:$0xff] }
 0x180   :  { %3423 = vst.msk [vmem:[%s6498_s4 + $0x44] sm:$0xf] %vm3405_vm2, %v3814_v2  ;;  %v3819_v45 = vpack.c.bf16 %v3107_v12, %v3107_v12  ;;  %v2850_v9 = vadd.f32 %v5938_v56, %v2587_v29  ;;  %v2727_v31 = vadd.f32 %v5938_v56, %v2464_v13  ;;  %v2462_v61 = vmul.f32 %v5923_v35, %v1696_v47  ;;  %v4086_v10 = vpop.f32.mrf.mxu0  ;;  %v4214_v15 = vpop.f32.mrf.mxu1  ;;  %v6655_v2 = vld [vmem:[#allocation4_spill] sm:$0xff] }
 0x181   :  { %v3105_v7 = vmax.f32 %v3041_v1, 0.0  ;;  %v3044_v53 = vmax.f32 %v2916_v22, %v2980_v57  ;;  %v2855_v42 = vadd.f32 %v5938_v56, %v2592_v51  ;;  %v2590_v52 = vmul.f32 %v5923_v35, %v2208_v20  ;;  %v6656_v13 = vld [vmem:[#allocation52_spill] sm:$0xff] }
 0x182   :  { %3428 = vst.msk [vmem:[%s6498_s4 + $0x58] sm:$0xf] %vm3405_vm2, %v3819_v45  ;;  %v2978_v27 = vmax.f32 %v6653_v6, %v2850_v9  ;;  %v2919_v5 = vmax.f32 %v6654_v62, %v2727_v31  ;;  %v2725_v49 = vadd.f32 %v5938_v56, %v2462_v61  ;;  %v2465_v47 = vmul.f32 %v5923_v35, %v4083_v55  ;;  %v1712_v38 = vpop.f32.mrf.mxu0  ;;  %v2224_v23 = vpop.f32.mrf.mxu1  ;;  %v6657_v9 = vld [vmem:[#allocation53_spill] sm:$0xff] }
 0x183   :  { %v3817_v22 = vpack.c.bf16 %v3105_v7, %v3105_v7  ;;  %v3108_v41 = vmax.f32 %v3044_v53, 0.0  ;;  %v2983_v12 = vmax.f32 %v6655_v2, %v2855_v42  ;;  %v2853_v20 = vadd.f32 %v5938_v56, %v2590_v52  ;;  %v6658_v7 = vld [vmem:[#allocation5_spill] sm:$0xff] }
 0x184   :  { %v3042_v29 = vmax.f32 %v2914_v4, %v2978_v27  ;;  %v2917_v1 = vmax.f32 %v6656_v13, %v2725_v49  ;;  %v2728_v54 = vadd.f32 %v5938_v56, %v2465_v47  ;;  %v2593_v57 = vmul.f32 %v5923_v35, %v4211_v30  ;;  %v4087_v43 = vpop.f32.mrf.mxu0  ;;  %v4215_v51 = vpop.f32.mrf.mxu1  ;;  %v6659_v47 = vld [vmem:[#allocation6_spill] sm:$0xff]  ;;  %v6660_v13 = vld [vmem:[#allocation7_spill] sm:$0xff] }
 0x185   :  { %3426 = vst.msk [vmem:[%s6498_s4 + $0x50] sm:$0xf] %vm3405_vm2, %v3817_v22  ;;  %v3820_v55 = vpack.c.bf16 %v3108_v41, %v3108_v41  ;;  %v3047_v45 = vmax.f32 %v2919_v5, %v2983_v12  ;;  %v2981_v31 = vmax.f32 %v6657_v9, %v2853_v20  ;;  %v2463_v61 = vmul.f32 %v5923_v35, %v1699_v18 }
 0x186   :  { %v3106_v4 = vmax.f32 %v3042_v29, 0.0  ;;  %v2920_v53 = vmax.f32 %v6658_v7, %v2728_v54  ;;  %v2856_v42 = vadd.f32 %v5938_v56, %v2593_v57  ;;  %v2591_v30 = vmul.f32 %v5923_v35, %v2211_v40  ;;  %v1715_v52 = vpop.f32.mrf.mxu0  ;;  %v2227_v6 = vpop.f32.mrf.mxu1 }
 0x187   :  { %3429 = vst.msk [vmem:[%s6498_s4 + $0x5c] sm:$0xf] %vm3405_vm2, %v3820_v55  ;;  %v3111_v27 = vmax.f32 %v3047_v45, 0.0  ;;  %v3045_v62 = vmax.f32 %v2917_v1, %v2981_v31  ;;  %v2726_v5 = vadd.f32 %v5938_v56, %v2463_v61  ;;  %v2468_v18 = vmul.f32 %v5923_v35, %v4086_v10  ;;  %v6661_v1 = vld [vmem:[#allocation8_spill] sm:$0xff] }
 0x188   :  { %v3818_v49 = vpack.c.bf16 %v3106_v4, %v3106_v4  ;;  %v2984_v22 = vmax.f32 %v6659_v47, %v2856_v42  ;;  %v2854_v41 = vadd.f32 %v5938_v56, %v2591_v30  ;;  %v2596_v40 = vmul.f32 %v5923_v35, %v4214_v15  ;;  %v4090_v2 = vpop.f32.mrf.mxu0  ;;  %v4218_v12 = vpop.f32.mrf.mxu1  ;;  %v6662_v4 = vld [vmem:[#allocation9_spill] sm:$0xff] }
 0x189   :  { %v3823_v20 = vpack.c.bf16 %v3111_v27, %v3111_v27  ;;  %v3109_v29 = vmax.f32 %v3045_v62, 0.0  ;;  %v2918_v54 = vmax.f32 %v6660_v13, %v2726_v5  ;;  %v2731_v57 = vadd.f32 %v5938_v56, %v2468_v18  ;;  %v6663_v62 = vld [vmem:[#allocation10_spill] sm:$0xff] }
 0x18a   :  { %3427 = vst.msk [vmem:[%s6498_s4 + $0x54] sm:$0xf] %vm3405_vm2, %v3818_v49  ;;  %v3048_v10 = vmax.f32 %v2920_v53, %v2984_v22  ;;  %v2982_v55 = vmax.f32 %v6661_v1, %v2854_v41  ;;  %v2859_v45 = vadd.f32 %v5938_v56, %v2596_v40  ;;  %v2466_v15 = vmul.f32 %v5923_v35, %v1712_v38  ;;  %v1728_v9 = vpop.f32.mrf.mxu0  ;;  %v2240_v31 = vpop.f32.mrf.mxu1 }
 0x18b   :  { %3432 = vst.msk [vmem:[%s6498_s4 + $0x68] sm:$0xf] %vm3405_vm2, %v3823_v20  ;;  %v3821_v61 = vpack.c.bf16 %v3109_v29, %v3109_v29  ;;  %v2923_v7 = vmax.f32 %v6662_v4, %v2731_v57  ;;  %v2594_v42 = vmul.f32 %v5923_v35, %v2224_v23  ;;  %v2469_v53 = vmul.f32 %v5923_v35, %v4087_v43  ;;  %v6664_v29 = vld [vmem:[#allocation11_spill] sm:$0xff] }
 0x18c   :  { %v3112_v30 = vmax.f32 %v3048_v10, 0.0  ;;  %v3046_v27 = vmax.f32 %v2918_v54, %v2982_v55  ;;  %v2987_v5 = vmax.f32 %v6663_v62, %v2859_v45  ;;  %v2729_v38 = vadd.f32 %v5938_v56, %v2466_v15  ;;  %v4091_v18 = vpop.f32.mrf.mxu0  ;;  %v4219_v49 = vpop.f32.mrf.mxu1  ;;  %v6665_v10 = vld [vmem:[#allocation12_spill] sm:$0xff]  ;;  %v6666_v55 = vld [vmem:[#allocation13_spill] sm:$0xff]  ;;  %v6667_v62 = vld [vmem:[#allocation14_spill] sm:$0xff] }
 0x18d   :  { %3430 = vst.msk [vmem:[%s6498_s4 + $0x60] sm:$0xf] %vm3405_vm2, %v3821_v61  ;;  %v2857_v47 = vadd.f32 %v5938_v56, %v2594_v42  ;;  %v2732_v22 = vadd.f32 %v5938_v56, %v2469_v53  ;;  %v2597_v23 = vmul.f32 %v5923_v35, %v4215_v51  ;;  %v2467_v43 = vmul.f32 %v5923_v35, %v1715_v52 }
 0x18e   :  { %v3824_v41 = vpack.c.bf16 %v3112_v30, %v3112_v30  ;;  %v3110_v40 = vmax.f32 %v3046_v27, 0.0  ;;  %v3051_v20 = vmax.f32 %v2923_v7, %v2987_v5  ;;  %v2921_v13 = vmax.f32 %v6664_v29, %v2729_v38  ;;  %v1731_v54 = vpop.f32.mrf.mxu0  ;;  %v2243_v57 = vpop.f32.mrf.mxu1 }
 0x18f   :  { %v2985_v1 = vmax.f32 %v6665_v10, %v2857_v47  ;;  %v2924_v45 = vmax.f32 %v6666_v55, %v2732_v22  ;;  %v2860_v15 = vadd.f32 %v5938_v56, %v2597_v23  ;;  %v2730_v61 = vadd.f32 %v5938_v56, %v2467_v43 }
 0x190   :  { %3433 = vst.msk [vmem:[%s6498_s4 + $0x6c] sm:$0xf] %vm3405_vm2, %v3824_v41  ;;  %v3822_v51 = vpack.c.bf16 %v3110_v40, %v3110_v40  ;;  %v3115_v52 = vmax.f32 %v3051_v20, 0.0  ;;  %v2595_v4 = vmul.f32 %v5923_v35, %v2227_v6  ;;  %v2472_v7 = vmul.f32 %v5923_v35, %v4090_v2  ;;  %v4094_v42 = vpop.f32.mrf.mxu0  ;;  %v4222_v53 = vpop.f32.mrf.mxu1  ;;  %v6668_v20 = vld [vmem:[#allocation15_spill] sm:$0xff] }
 0x191   :  { %v3049_v30 = vmax.f32 %v2921_v13, %v2985_v1  ;;  %v2988_v27 = vmax.f32 %v5459_v39, %v2860_v15  ;;  %v2922_v5 = vmax.f32 %v6667_v62, %v2730_v61  ;;  %v2600_v38 = vmul.f32 %v5923_v35, %v4218_v12  ;;  %v6669_v61 = vld [vmem:[#allocation16_spill] sm:$0xff] }
 0x192   :  { %3431 = vst.msk [vmem:[%s6498_s4 + $0x64] sm:$0xf] %vm3405_vm2, %v3822_v51  ;;  %v3827_v47 = vpack.c.bf16 %v3115_v52, %v3115_v52  ;;  %v2858_v22 = vadd.f32 %v5938_v56, %v2595_v4  ;;  %v2735_v6 = vadd.f32 %v5938_v56, %v2472_v7  ;;  %v2470_v2 = vmul.f32 %v5923_v35, %v1728_v9  ;;  %v1744_v23 = vpop.f32.mrf.mxu0  ;;  %v2256_v43 = vpop.f32.mrf.mxu1 }
 0x193   :  { %v3113_v41 = vmax.f32 %v3049_v30, 0.0  ;;  %v3052_v39 = vmax.f32 %v2924_v45, %v2988_v27  ;;  %v2863_v40 = vadd.f32 %v5938_v56, %v2600_v38  ;;  %v2598_v12 = vmul.f32 %v5923_v35, %v2240_v31  ;;  %v6670_v38 = vld [vmem:[#allocation17_spill] sm:$0xff] }
 0x194   :  { %3436 = vst.msk [vmem:[%s6498_s4 + $0x78] sm:$0xf] %vm3405_vm2, %v3827_v47  ;;  %v2986_v29 = vmax.f32 %v6668_v20, %v2858_v22  ;;  %v2927_v13 = vmax.f32 %v5482_v33, %v2735_v6  ;;  %v2733_v10 = vadd.f32 %v5938_v56, %v2470_v2  ;;  %v2473_v9 = vmul.f32 %v5923_v35, %v4091_v18  ;;  %v4095_v1 = vpop.f32.mrf.mxu0  ;;  %v4223_v55 = vpop.f32.mrf.mxu1 }
 0x195   :  { %v3825_v45 = vpack.c.bf16 %v3113_v41, %v3113_v41  ;;  %v3116_v15 = vmax.f32 %v3052_v39, 0.0  ;;  %v2991_v51 = vmax.f32 %v6669_v61, %v2863_v40  ;;  %v2861_v31 = vadd.f32 %v5938_v56, %v2598_v12 }
 0x196   :  { %v3050_v52 = vmax.f32 %v2922_v5, %v2986_v29  ;;  %v2925_v4 = vmax.f32 %v5488_v24, %v2733_v10  ;;  %v2736_v7 = vadd.f32 %v5938_v56, %v2473_v9  ;;  %v2601_v30 = vmul.f32 %v5923_v35, %v4219_v49  ;;  %v1747_v33 = vpop.f32.mrf.mxu0  ;;  %v6104_v27 = vpop.f32.mrf.mxu1  ;;  %v6671_v29 = vld [vmem:[#allocation18_spill] sm:$0xff] }
 0x197   :  { %3434 = vst.msk [vmem:[%s6498_s4 + $0x70] sm:$0xf] %vm3405_vm2, %v3825_v45  ;;  %v3828_v18 = vpack.c.bf16 %v3116_v15, %v3116_v15  ;;  %v3055_v62 = vmax.f32 %v2927_v13, %v2991_v51  ;;  %v2989_v47 = vmax.f32 %v6670_v38, %v2861_v31  ;;  %v2471_v5 = vmul.f32 %v5923_v35, %v1731_v54  ;;  %v6672_v31 = vld [vmem:[#allocation54_spill] sm:$0xff] }
 0x198   :  { %v3114_v22 = vmax.f32 %v3050_v52, 0.0  ;;  %v2928_v24 = vmax.f32 %v5506_v60, %v2736_v7  ;;  %v2864_v6 = vadd.f32 %v5938_v56, %v2601_v30  ;;  %v2599_v49 = vmul.f32 %v5923_v35, %v2243_v57  ;;  %v4098_v2 = vpop.f32.mrf.mxu0  ;;  %v4226_v41 = vpop.f32.mrf.mxu1 }
 0x199   :  { %3437 = vst.msk [vmem:[%s6498_s4 + $0x7c] sm:$0xf] %vm3405_vm2, %v3828_v18  ;;  %v3119_v39 = vmax.f32 %v3055_v62, 0.0  ;;  %v3053_v40 = vmax.f32 %v2925_v4, %v2989_v47  ;;  %v2734_v12 = vadd.f32 %v5938_v56, %v2471_v5  ;;  %v2476_v54 = vmul.f32 %v5923_v35, %v4094_v42  ;;  %v6673_v18 = vld [vmem:[#allocation55_spill] sm:$0xff] }
 0x19a   :  { %v3826_v20 = vpack.c.bf16 %v3114_v22, %v3114_v22  ;;  %v2992_v60 = vmax.f32 %v6671_v29, %v2864_v6  ;;  %v2862_v13 = vadd.f32 %v5938_v56, %v2599_v49  ;;  %v2604_v57 = vmul.f32 %v5923_v35, %v4222_v53  ;;  %v1760_v10 = vpop.f32.mrf.mxu0  ;;  %v2272_v9 = vpop.f32.mrf.mxu1 }
 0x19b   :  { %v3831_v45 = vpack.c.bf16 %v3119_v39, %v3119_v39  ;;  %v3117_v15 = vmax.f32 %v3053_v40, 0.0  ;;  %v2926_v61 = vmax.f32 %v5516_v58, %v2734_v12  ;;  %v2739_v51 = vadd.f32 %v5938_v56, %v2476_v54 }
 0x19c   :  { %3435 = vst.msk [vmem:[%s6498_s4 + $0x74] sm:$0xf] %vm3405_vm2, %v3826_v20  ;;  %v3056_v42 = vmax.f32 %v2928_v24, %v2992_v60  ;;  %v2990_v52 = vmax.f32 %v6672_v31, %v2862_v13  ;;  %v2867_v4 = vadd.f32 %v5938_v56, %v2604_v57  ;;  %v2474_v53 = vmul.f32 %v5923_v35, %v1744_v23  ;;  %v4099_v7 = vpop.f32.mrf.mxu0  ;;  %v6133_v30 = vpop.f32.mrf.mxu1  ;;  %v6674_v57 = vld [vmem:[#allocation56_spill] sm:$0xff] }
 0x19d   :  { %3440 = vst.msk [vmem:[%s6498_s4 + $0x88] sm:$0xf] %vm3405_vm2, %v3831_v45  ;;  %v3829_v58 = vpack.c.bf16 %v3117_v15, %v3117_v15  ;;  %v2931_v62 = vmax.f32 %v6673_v18, %v2739_v51  ;;  %v2602_v38 = vmul.f32 %v5923_v35, %v2256_v43  ;;  %v2477_v47 = vmul.f32 %v5923_v35, %v4095_v1 }
 0x19e   :  { %v3120_v5 = vmax.f32 %v3056_v42, 0.0  ;;  %v3054_v22 = vmax.f32 %v2926_v61, %v2990_v52  ;;  %v2995_v24 = vmax.f32 %v5539_v17, %v2867_v4  ;;  %v2737_v23 = vadd.f32 %v5938_v56, %v2474_v53  ;;  %v1763_v6 = vpop.f32.mrf.mxu0  ;;  %v6144_v49 = vpop.f32.mrf.mxu1  ;;  %v6675_v52 = vld [vmem:[#allocation57_spill] sm:$0xff]  ;;  %v6676_v53 = vld [vmem:[#allocation58_spill] sm:$0xff] }
 0x19f   :  { %3438 = vst.msk [vmem:[%s6498_s4 + $0x80] sm:$0xf] %vm3405_vm2, %v3829_v58  ;;  %v2865_v39 = vadd.f32 %v5938_v56, %v2602_v38  ;;  %v2740_v43 = vadd.f32 %v5938_v56, %v2477_v47  ;;  %v2605_v1 = vmul.f32 %v5923_v35, %v4223_v55  ;;  %v2475_v40 = vmul.f32 %v5923_v35, %v1747_v33 }
 0x1a0   :  { %v3832_v12 = vpack.c.bf16 %v3120_v5, %v3120_v5  ;;  %v3118_v17 = vmax.f32 %v3054_v22, 0.0  ;;  %v3059_v54 = vmax.f32 %v2931_v62, %v2995_v24  ;;  %v2929_v20 = vmax.f32 %v5542_v3, %v2737_v23  ;;  %v4102_v29 = vpop.f32.mrf.mxu0  ;;  %v6155_v60 = vpop.f32.mrf.mxu1 }
 0x1a1   :  { %v2993_v13 = vmax.f32 %v5545_v32, %v2865_v39  ;;  %v2932_v45 = vmax.f32 %v6674_v57, %v2740_v43  ;;  %v2868_v15 = vadd.f32 %v5938_v56, %v2605_v1  ;;  %v2738_v61 = vadd.f32 %v5938_v56, %v2475_v40 }
 0x1a2   :  { %3441 = vst.msk [vmem:[%s6498_s4 + $0x8c] sm:$0xf] %vm3405_vm2, %v3832_v12  ;;  %v3830_v55 = vpack.c.bf16 %v3118_v17, %v3118_v17  ;;  %v3123_v33 = vmax.f32 %v3059_v54, 0.0  ;;  %v2603_v3 = vmul.f32 %v5923_v35, %v6104_v27  ;;  %v2480_v51 = vmul.f32 %v5923_v35, %v4098_v2  ;;  %v6168_v42 = vpop.f32.mrf.mxu0  ;;  %v6170_v32 = vpop.f32.mrf.mxu1 }
 0x1a3   :  { %v3057_v31 = vmax.f32 %v2929_v20, %v2993_v13  ;;  %v2996_v4 = vmax.f32 %v6675_v52, %v2868_v15  ;;  %v2930_v58 = vmax.f32 %v6676_v53, %v2738_v61  ;;  %v2608_v18 = vmul.f32 %v5923_v35, %v4226_v41  ;;  %v6677_v20 = vld [vmem:[#allocation59_spill] sm:$0xff] }
 0x1a4   :  { %3439 = vst.msk [vmem:[%s6498_s4 + $0x84] sm:$0xf] %vm3405_vm2, %v3830_v55  ;;  %v3835_v62 = vpack.c.bf16 %v3123_v33, %v3123_v33  ;;  %v2866_v27 = vadd.f32 %v5938_v56, %v2603_v3  ;;  %v2743_v2 = vadd.f32 %v5938_v56, %v2480_v51  ;;  %v2478_v38 = vmul.f32 %v5923_v35, %v1760_v10  ;;  %v4103_v47 = vpop.f32.mrf.mxu0  ;;  %v6182_v5 = vpop.f32.mrf.mxu1  ;;  %v6678_v33 = vld [vmem:[#allocation60_spill] sm:$0xff] }
 0x1a5   :  { %v3121_v22 = vmax.f32 %v3057_v31, 0.0  ;;  %v3060_v24 = vmax.f32 %v2932_v45, %v2996_v4  ;;  %v2871_v23 = vadd.f32 %v5938_v56, %v2608_v18  ;;  %v2606_v41 = vmul.f32 %v5923_v35, %v2272_v9 }
 0x1a6   :  { %3444 = vst.msk [vmem:[%s6498_s4 + $0x98] sm:$0xf] %vm3405_vm2, %v3835_v62  ;;  %v2994_v39 = vmax.f32 %v5563_v26, %v2866_v27  ;;  %v2935_v43 = vmax.f32 %v5572_v48, %v2743_v2  ;;  %v2741_v10 = vadd.f32 %v5938_v56, %v2478_v38  ;;  %v2481_v1 = vmul.f32 %v5923_v35, %v4099_v7  ;;  %v1779_v40 = vpop.f32.mrf.mxu0  ;;  %v6194_v12 = vpop.f32.mrf.mxu1  ;;  %v6679_v27 = vld [vmem:[#allocation61_spill] sm:$0xff] }
 0x1a7   :  { %v3833_v17 = vpack.c.bf16 %v3121_v22, %v3121_v22  ;;  %v3124_v54 = vmax.f32 %v3060_v24, 0.0  ;;  %v2999_v9 = vmax.f32 %v6677_v20, %v2871_v23  ;;  %v2869_v13 = vadd.f32 %v5938_v56, %v2606_v41 }
 0x1a8   :  { %v3058_v57 = vmax.f32 %v2930_v58, %v2994_v39  ;;  %v2933_v45 = vmax.f32 %v5578_v25, %v2741_v10  ;;  %v2744_v26 = vadd.f32 %v5938_v56, %v2481_v1  ;;  %v2609_v48 = vmul.f32 %v5923_v35, %v6133_v30  ;;  %v6202_v15 = vpop.f32.mrf.mxu0  ;;  %v6204_v7 = vpop.f32.mrf.mxu1  ;;  %v6680_v39 = vld [vmem:[#allocation62_spill] sm:$0xff]  ;;  %v6681_v1 = vld [vmem:[#allocation63_spill] sm:$0xff] }
 0x1a9   :  { %3442 = vst.msk [vmem:[%s6498_s4 + $0x90] sm:$0xf] %vm3405_vm2, %v3833_v17  ;;  %v3836_v61 = vpack.c.bf16 %v3124_v54, %v3124_v54  ;;  %v3063_v55 = vmax.f32 %v2935_v43, %v2999_v9  ;;  %v2997_v3 = vmax.f32 %v6678_v33, %v2869_v13  ;;  %v2479_v25 = vmul.f32 %v5923_v35, %v1763_v6 }
 0x1aa   :  { %v3122_v51 = vmax.f32 %v3058_v57, 0.0  ;;  %v2936_v31 = vmax.f32 %v5592_v50, %v2744_v26  ;;  %v2872_v30 = vadd.f32 %v5938_v56, %v2609_v48  ;;  %v2607_v52 = vmul.f32 %v5923_v35, %v6144_v49  ;;  %v6216_v4 = vpop.f32.mrf.mxu0  ;;  %v6218_v53 = vpop.f32.mrf.mxu1  ;;  %v6682_v57 = vld [vmem:[#allocation64_spill] sm:$0xff] }
 0x1ab   :  { %3445 = vst.msk [vmem:[%s6498_s4 + $0x9c] sm:$0xf] %vm3405_vm2, %v3836_v61  ;;  %v3127_v58 = vmax.f32 %v3063_v55, 0.0  ;;  %v3061_v18 = vmax.f32 %v2933_v45, %v2997_v3  ;;  %v2742_v6 = vadd.f32 %v5938_v56, %v2479_v25  ;;  %v2484_v50 = vmul.f32 %v5923_v35, %v4102_v29 }
 0x1ac   :  { %v3834_v62 = vpack.c.bf16 %v3122_v51, %v3122_v51  ;;  %v3000_v2 = vmax.f32 %v6679_v27, %v2872_v30  ;;  %v2870_v49 = vadd.f32 %v5938_v56, %v2607_v52  ;;  %v2612_v38 = vmul.f32 %v5923_v35, %v6155_v60  ;;  %v6230_v22 = vpop.f32.mrf.mxu0  ;;  %v6232_v24 = vpop.f32.mrf.mxu1 }
 0x1ad   :  { %v3839_v23 = vpack.c.bf16 %v3127_v58, %v3127_v58  ;;  %v3125_v41 = vmax.f32 %v3061_v18, 0.0  ;;  %v2934_v43 = vmax.f32 %v6680_v39, %v2742_v6  ;;  %v2747_v10 = vadd.f32 %v5938_v56, %v2484_v50  ;;  %v6684_v39 = vld [vmem:[#allocation66_spill] sm:$0xff] }
 0x1ae   :  { %3443 = vst.msk [vmem:[%s6498_s4 + $0x94] sm:$0xf] %vm3405_vm2, %v3834_v62  ;;  %v3064_v29 = vmax.f32 %v2936_v31, %v3000_v2  ;;  %v2998_v17 = vmax.f32 %v6681_v1, %v2870_v49  ;;  %v2875_v60 = vadd.f32 %v5938_v56, %v2612_v38  ;;  %v2482_v54 = vmul.f32 %v5923_v35, %v6168_v42  ;;  %v6244_v20 = vpop.f32.mrf.mxu0  ;;  %v6246_v9 = vpop.f32.mrf.mxu1 }
 0x1af   :  { %3448 = vst.msk [vmem:[%s6498_s4 + $0xa8] sm:$0xf] %vm3405_vm2, %v3839_v23  ;;  %v3837_v13 = vpack.c.bf16 %v3125_v41, %v3125_v41  ;;  %v2939_v45 = vmax.f32 %v6682_v57, %v2747_v10  ;;  %v2610_v26 = vmul.f32 %v5923_v35, %v6170_v32  ;;  %v2485_v48 = vmul.f32 %v5923_v35, %v4103_v47  ;;  %v6683_v23 = vld [vmem:[#allocation65_spill] sm:$0xff] }
 0x1b0   :  { %v3128_v61 = vmax.f32 %v3064_v29, 0.0  ;;  %v3062_v55 = vmax.f32 %v2934_v43, %v2998_v17  ;;  %v3003_v42 = vmax.f32 %v5621_v44, %v2875_v60  ;;  %v2745_v33 = vadd.f32 %v5938_v56, %v2482_v54  ;;  %v6258_v3 = vpop.f32.mrf.mxu0  ;;  %v6260_v25 = vpop.f32.mrf.mxu1 }
 0x1b1   :  { %3446 = vst.msk [vmem:[%s6498_s4 + $0xa0] sm:$0xf] %vm3405_vm2, %v3837_v13  ;;  %v2873_v51 = vadd.f32 %v5938_v56, %v2610_v26  ;;  %v2748_v32 = vadd.f32 %v5938_v56, %v2485_v48  ;;  %v2613_v47 = vmul.f32 %v5923_v35, %v6182_v5  ;;  %v2483_v44 = vmul.f32 %v5923_v35, %v1779_v40  ;;  %v6685_v26 = vld [vmem:[#allocation67_spill] sm:$0xff] }
 0x1b2   :  { %v3840_v31 = vpack.c.bf16 %v3128_v61, %v3128_v61  ;;  %v3126_v30 = vmax.f32 %v3062_v55, 0.0  ;;  %v3067_v52 = vmax.f32 %v2939_v45, %v3003_v42  ;;  %v2937_v58 = vmax.f32 %v5624_v46, %v2745_v33  ;;  %v6272_v18 = vpop.f32.mrf.mxu0  ;;  %v6274_v6 = vpop.f32.mrf.mxu1 }
 0x1b3   :  { %v3001_v50 = vmax.f32 %v5627_v11, %v2873_v51  ;;  %v2940_v62 = vmax.f32 %v5630_v59, %v2748_v32  ;;  %v2876_v27 = vadd.f32 %v5938_v56, %v2613_v47  ;;  %v2746_v2 = vadd.f32 %v5938_v56, %v2483_v44  ;;  %v6686_v51 = vld [vmem:[#allocation68_spill] sm:$0xff] }
 0x1b4   :  { %3449 = vst.msk [vmem:[%s6498_s4 + $0xac] sm:$0xf] %vm3405_vm2, %v3840_v31  ;;  %v3838_v5 = vpack.c.bf16 %v3126_v30, %v3126_v30  ;;  %v3131_v40 = vmax.f32 %v3067_v52, 0.0  ;;  %v2611_v46 = vmul.f32 %v5923_v35, %v6194_v12  ;;  %v2488_v49 = vmul.f32 %v5923_v35, %v6202_v15  ;;  %v6288_v11 = vpop.f32.mrf.mxu0  ;;  %v6290_v59 = vpop.f32.mrf.mxu1 }
 0x1b5   :  { %v3065_v38 = vmax.f32 %v2937_v58, %v3001_v50  ;;  %v3004_v41 = vmax.f32 %v6683_v23, %v2876_v27  ;;  %v2938_v43 = vmax.f32 %v6684_v39, %v2746_v2  ;;  %v2616_v10 = vmul.f32 %v5923_v35, %v6204_v7  ;;  %v6687_v50 = vld [vmem:[#allocation69_spill] sm:$0xff]  ;;  %v6688_v2 = vld [vmem:[#allocation70_spill] sm:$0xff]  ;;  %v6689_v39 = vld [vmem:[#allocation71_spill] sm:$0xff] }
 0x1b6   :  { %3447 = vst.msk [vmem:[%s6498_s4 + $0xa4] sm:$0xf] %vm3405_vm2, %v3838_v5  ;;  %v3843_v12 = vpack.c.bf16 %v3131_v40, %v3131_v40  ;;  %v2874_v15 = vadd.f32 %v5938_v56, %v2611_v46  ;;  %v2751_v29 = vadd.f32 %v5938_v56, %v2488_v49  ;;  %v2486_v1 = vmul.f32 %v5923_v35, %v6216_v4  ;;  %v6304_v17 = vpop.f32.mrf.mxu0  ;;  %v6306_v60 = vpop.f32.mrf.mxu1 }
 0x1b7   :  { %v3129_v54 = vmax.f32 %v3065_v38, 0.0  ;;  %v3068_v13 = vmax.f32 %v2940_v62, %v3004_v41  ;;  %v2879_v7 = vadd.f32 %v5938_v56, %v2616_v10  ;;  %v2614_v57 = vmul.f32 %v5923_v35, %v6218_v53 }
 0x1b8   :  { %3452 = vst.msk [vmem:[%s6498_s4 + $0xb8] sm:$0xf] %vm3405_vm2, %v3843_v12  ;;  %v3002_v45 = vmax.f32 %v5643_v14, %v2874_v15  ;;  %v2943_v4 = vmax.f32 %v6685_v26, %v2751_v29  ;;  %v2749_v48 = vadd.f32 %v5938_v56, %v2486_v1  ;;  %v2489_v61 = vmul.f32 %v5923_v35, %v6230_v22  ;;  %v6320_v55 = vpop.f32.mrf.mxu0  ;;  %v6324_v47 = vpop.f32.mrf.mxu1 }
 0x1b9   :  { %v3841_v42 = vpack.c.bf16 %v3129_v54, %v3129_v54  ;;  %v3132_v33 = vmax.f32 %v3068_v13, 0.0  ;;  %v3007_v53 = vmax.f32 %v6686_v51, %v2879_v7  ;;  %v2877_v32 = vadd.f32 %v5938_v56, %v2614_v57  ;;  %v6690_v57 = vld [vmem:[#allocation72_spill] sm:$0xff] }
 0x1ba   :  { %v3066_v44 = vmax.f32 %v2938_v43, %v3002_v45  ;;  %v2941_v14 = vmax.f32 %v5658_v37, %v2749_v48  ;;  %v2752_v31 = vadd.f32 %v5938_v56, %v2489_v61  ;;  %v2617_v30 = vmul.f32 %v5923_v35, %v6232_v24  ;;  %v6330_v52 = vpop.f32.mrf.mxu0  ;;  %v2336_v23 = vpop.f32.mrf.mxu1 }
 0x1bb   :  { %3450 = vst.msk [vmem:[%s6498_s4 + $0xb0] sm:$0xf] %vm3405_vm2, %v3841_v42  ;;  %v3844_v22 = vpack.c.bf16 %v3132_v33, %v3132_v33  ;;  %v3071_v58 = vmax.f32 %v2943_v4, %v3007_v53  ;;  %v3005_v62 = vmax.f32 %v6687_v50, %v2877_v32  ;;  %v2487_v27 = vmul.f32 %v5923_v35, %v6244_v20 }
 0x1bc   :  { %v3130_v37 = vmax.f32 %v3066_v44, 0.0  ;;  %v2944_v5 = vmax.f32 %v6688_v2, %v2752_v31  ;;  %v2880_v40 = vadd.f32 %v5938_v56, %v2617_v30  ;;  %v2615_v24 = vmul.f32 %v5923_v35, %v6246_v9  ;;  %v4115_v12 = vpop.f32.mrf.mxu0  ;;  %v6692_v30 = vld [vmem:[#allocation74_spill] sm:$0xff] }
 0x1bd   :  { %3453 = vst.msk [vmem:[%s6498_s4 + $0xbc] sm:$0xf] %vm3405_vm2, %v3844_v22  ;;  %v3135_v46 = vmax.f32 %v3071_v58, 0.0  ;;  %v3069_v49 = vmax.f32 %v2941_v14, %v3005_v62  ;;  %v2750_v38 = vadd.f32 %v5938_v56, %v2487_v27  ;;  %v2492_v20 = vmul.f32 %v5923_v35, %v6258_v3  ;;  %v6691_v14 = vld [vmem:[#allocation73_spill] sm:$0xff]  ;;  %v6693_v58 = vld [vmem:[#allocation75_spill] sm:$0xff] }
 0x1be   :  { %v3842_v41 = vpack.c.bf16 %v3130_v37, %v3130_v37  ;;  %v3008_v43 = vmax.f32 %v6689_v39, %v2880_v40  ;;  %v2878_v10 = vadd.f32 %v5938_v56, %v2615_v24  ;;  %v2620_v9 = vmul.f32 %v5923_v35, %v6260_v25  ;;  %v1827_v33 = vpop.f32.mrf.mxu0 }
 0x1bf   :  { %v3847_v15 = vpack.c.bf16 %v3135_v46, %v3135_v46  ;;  %v3133_v29 = vmax.f32 %v3069_v49, 0.0  ;;  %v2942_v1 = vmax.f32 %v5680_v0, %v2750_v38  ;;  %v2755_v54 = vadd.f32 %v5938_v56, %v2492_v20 }
 0x1c0   :  { %3451 = vst.msk [vmem:[%s6498_s4 + $0xb4] sm:$0xf] %vm3405_vm2, %v3842_v41  ;;  %v3072_v3 = vmax.f32 %v2944_v5, %v3008_v43  ;;  %v3006_v13 = vmax.f32 %v5683_v8, %v2878_v10  ;;  %v2883_v7 = vadd.f32 %v5938_v56, %v2620_v9  ;;  %v2490_v25 = vmul.f32 %v5923_v35, %v6272_v18  ;;  %v4243_v8 = vpop.f32.mrf.mxu1  ;;  %v4118_v40 = vpop.f32.mrf.mxu0  ;;  %v6694_v10 = vld [vmem:[#allocation76_spill] sm:$0xff] }
 0x1c1   :  { %3456 = vst.msk [vmem:[%s6498_s4 + $0xc8] sm:$0xf] %vm3405_vm2, %v3847_v15  ;;  %v3845_v0 = vpack.c.bf16 %v3133_v29, %v3133_v29  ;;  %v2947_v45 = vmax.f32 %v6690_v57, %v2755_v54  ;;  %v2618_v26 = vmul.f32 %v5923_v35, %v6274_v6  ;;  %v2493_v4 = vmul.f32 %v5923_v35, %v6288_v11  ;;  %v6695_v15 = vld [vmem:[#allocation77_spill] sm:$0xff] }
 0x1c2   :  { %v3136_v48 = vmax.f32 %v3072_v3, 0.0  ;;  %v3070_v61 = vmax.f32 %v2942_v1, %v3006_v13  ;;  %v3011_v42 = vmax.f32 %v5694_v21, %v2883_v7  ;;  %v2753_v18 = vadd.f32 %v5938_v56, %v2490_v25  ;;  %v2339_v37 = vpop.f32.mrf.mxu1  ;;  %v1840_v54 = vpop.f32.mrf.mxu0 }
 0x1c3   :  { %3454 = vst.msk [vmem:[%s6498_s4 + $0xc0] sm:$0xf] %vm3405_vm2, %v3845_v0  ;;  %v2881_v51 = vadd.f32 %v5938_v56, %v2618_v26  ;;  %v2756_v6 = vadd.f32 %v5938_v56, %v2493_v4  ;;  %v2621_v11 = vmul.f32 %v5923_v35, %v6290_v59  ;;  %v2491_v53 = vmul.f32 %v5923_v35, %v6304_v17 }
 0x1c4   :  { %v3848_v32 = vpack.c.bf16 %v3136_v48, %v3136_v48  ;;  %v3134_v21 = vmax.f32 %v3070_v61, 0.0  ;;  %v3075_v44 = vmax.f32 %v2947_v45, %v3011_v42  ;;  %v2945_v31 = vmax.f32 %v6691_v14, %v2753_v18  ;;  %v6696_v42 = vld [vmem:[#allocation78_spill] sm:$0xff] }
 0x1c5   :  { %v3009_v22 = vmax.f32 %v6692_v30, %v2881_v51  ;;  %v2948_v50 = vmax.f32 %v6693_v58, %v2756_v6  ;;  %v2884_v62 = vadd.f32 %v5938_v56, %v2621_v11  ;;  %v2754_v27 = vadd.f32 %v5938_v56, %v2491_v53  ;;  %v6697_v30 = vld [vmem:[#allocation79_spill] sm:$0xff] }
 0x1c6   :  { %3457 = vst.msk [vmem:[%s6498_s4 + $0xcc] sm:$0xf] %vm3405_vm2, %v3848_v32  ;;  %v3846_v59 = vpack.c.bf16 %v3134_v21, %v3134_v21  ;;  %v3139_v17 = vmax.f32 %v3075_v44, 0.0  ;;  %v2619_v2 = vmul.f32 %v5923_v35, %v6306_v60  ;;  %v2496_v5 = vmul.f32 %v5923_v35, %v6320_v55 }
 0x1c7   :  { %v3073_v24 = vmax.f32 %v2945_v31, %v3009_v22  ;;  %v3012_v46 = vmax.f32 %v5706_v16, %v2884_v62  ;;  %v2946_v49 = vmax.f32 %v5709_v19, %v2754_v27  ;;  %v2624_v38 = vmul.f32 %v5923_v35, %v6324_v47  ;;  %v4246_v47 = vpop.f32.mrf.mxu1  ;;  %v6698_v27 = vld [vmem:[#allocation80_spill] sm:$0xff] }
 0x1c8   :  { %3455 = vst.msk [vmem:[%s6498_s4 + $0xc4] sm:$0xf] %vm3405_vm2, %v3846_v59  ;;  %v3851_v20 = vpack.c.bf16 %v3139_v17, %v3139_v17  ;;  %v2882_v60 = vadd.f32 %v5938_v56, %v2619_v2  ;;  %v2759_v41 = vadd.f32 %v5938_v56, %v2496_v5  ;;  %v2494_v55 = vmul.f32 %v5923_v35, %v6330_v52  ;;  %v6699_v5 = vld [vmem:[#allocation81_spill] sm:$0xff] }
 0x1c9   :  { %v3137_v39 = vmax.f32 %v3073_v24, 0.0  ;;  %v3076_v16 = vmax.f32 %v2948_v50, %v3012_v46  ;;  %v2887_v19 = vadd.f32 %v5938_v56, %v2624_v38  ;;  %v2622_v43 = vmul.f32 %v5923_v35, %v2336_v23  ;;  %v2352_v48 = vpop.f32.mrf.mxu1 }
 0x1ca   :  { %3460 = vst.msk [vmem:[%s6498_s4 + $0xd8] sm:$0xf] %vm3405_vm2, %v3851_v20  ;;  %v3010_v9 = vmax.f32 %v6694_v10, %v2882_v60  ;;  %v2951_v29 = vmax.f32 %v6695_v15, %v2759_v41  ;;  %v2757_v1 = vadd.f32 %v5938_v56, %v2494_v55  ;;  %v2497_v52 = vmul.f32 %v5923_v35, %v4115_v12  ;;  %v6700_v20 = vld [vmem:[#allocation82_spill] sm:$0xff]  ;;  %v6701_v15 = vld [vmem:[#allocation83_spill] sm:$0xff] }
 0x1cb   :  { %v3849_v3 = vpack.c.bf16 %v3137_v39, %v3137_v39  ;;  %v3140_v13 = vmax.f32 %v3076_v16, 0.0  ;;  %v3015_v7 = vmax.f32 %v5723_v34, %v2887_v19  ;;  %v2885_v23 = vadd.f32 %v5938_v56, %v2622_v43  ;;  %v4247_v50 = vpop.f32.mrf.mxu1 }
 0x1cc   :  { %v3074_v25 = vmax.f32 %v2946_v49, %v3010_v9  ;;  %v2949_v0 = vmax.f32 %v5726_v63, %v2757_v1  ;;  %v2760_v57 = vadd.f32 %v5938_v56, %v2497_v52  ;;  %v2625_v45 = vmul.f32 %v5923_v35, %v4243_v8  ;;  %v4119_v8 = vpop.f32.mrf.mxu0  ;;  %v6702_v1 = vld [vmem:[#allocation84_spill] sm:$0xff] }
 0x1cd   :  { %3458 = vst.msk [vmem:[%s6498_s4 + $0xd0] sm:$0xf] %vm3405_vm2, %v3849_v3  ;;  %v3852_v12 = vpack.c.bf16 %v3140_v13, %v3140_v13  ;;  %v3079_v26 = vmax.f32 %v2951_v29, %v3015_v7  ;;  %v3013_v4 = vmax.f32 %v5729_v36, %v2885_v23  ;;  %v2495_v34 = vmul.f32 %v5923_v35, %v1827_v33  ;;  %v4383_v33 = vld [vmem:[%s6496_s2] ss:$0 sm:$0xff]  ;;  %v2355_v43 = vpop.f32.mrf.mxu1 }
 0x1ce   :  { %v3138_v61 = vmax.f32 %v3074_v25, 0.0  ;;  %v2952_v18 = vmax.f32 %v6696_v42, %v2760_v57  ;;  %v2888_v63 = vadd.f32 %v5938_v56, %v2625_v45  ;;  %v2623_v51 = vmul.f32 %v5923_v35, %v2339_v37  ;;  %v1843_v2 = vpop.f32.mrf.mxu0  ;;  %v6704_v23 = vld [vmem:[#allocation86_spill] sm:$0xff] }
 0x1cf   :  { %3461 = vst.msk [vmem:[%s6498_s4 + $0xdc] sm:$0xf] %vm3405_vm2, %v3852_v12  ;;  %v3143_v6 = vmax.f32 %v3079_v26, 0.0  ;;  %v3077_v11 = vmax.f32 %v2949_v0, %v3013_v4  ;;  %v2758_v36 = vadd.f32 %v5938_v56, %v2495_v34  ;;  %v2500_v53 = vmul.f32 %v4383_v33, %v4118_v40  ;;  %v6705_v26 = vld [vmem:[#allocation19_spill] sm:$0xff]  ;;  %v6706_v34 = vld [vmem:[#allocation20_spill] sm:$0xff] }
 0x1d0   :  { %v3850_v32 = vpack.c.bf16 %v3138_v61, %v3138_v61  ;;  %v3016_v21 = vmax.f32 %v5739_v28, %v2888_v63  ;;  %v2886_v35 = vadd.f32 %v5938_v56, %v2623_v51  ;;  %v2628_v44 = vmul.f32 %v4383_v33, %v4246_v47  ;;  %v4384_v28 = vld [vmem:[%s6497_s3] ss:$0 sm:$0xff] }
 0x1d1   :  { %v3855_v14 = vpack.c.bf16 %v3143_v6, %v3143_v6  ;;  %v3141_v31 = vmax.f32 %v3077_v11, 0.0  ;;  %v2950_v22 = vmax.f32 %v6697_v30, %v2758_v36  ;;  %v2763_v58 = vadd.f32 %v5938_v56, %v2500_v53 }
 0x1d2   :  { %3459 = vst.msk [vmem:[%s6498_s4 + $0xd4] sm:$0xf] %vm3405_vm2, %v3850_v32  ;;  %v3080_v62 = vmax.f32 %v2952_v18, %v3016_v21  ;;  %v3014_v37 = vmax.f32 %v6698_v27, %v2886_v35  ;;  %v2891_v59 = vadd.f32 %v4384_v28, %v2628_v44  ;;  %v2498_v17 = vmul.f32 %v4383_v33, %v1840_v54  ;;  %v6703_v54 = vld [vmem:[#allocation85_spill] sm:$0xff] }
 0x1d3   :  { %3464 = vst.msk [vmem:[%s6498_s4 + $0xe8] sm:$0xf] %vm3405_vm2, %v3855_v14  ;;  %v3853_v56 = vpack.c.bf16 %v3141_v31, %v3141_v31  ;;  %v2955_v40 = vmax.f32 %v6699_v5, %v2763_v58  ;;  %v2626_v24 = vmul.f32 %v4383_v33, %v2352_v48  ;;  %v2501_v46 = vmul.f32 %v4383_v33, %v4119_v8 }
 0x1d4   :  { %v3144_v49 = vmax.f32 %v3080_v62, 0.0  ;;  %v3078_v38 = vmax.f32 %v2950_v22, %v3014_v37  ;;  %v3019_v60 = vmax.f32 %v6700_v20, %v2891_v59  ;;  %v2761_v41 = vadd.f32 %v4384_v28, %v2498_v17 }
 0x1d5   :  { %3462 = vst.msk [vmem:[%s6498_s4 + $0xe0] sm:$0xf] %vm3405_vm2, %v3853_v56  ;;  %v2889_v55 = vadd.f32 %v4384_v28, %v2626_v24  ;;  %v2764_v39 = vadd.f32 %v4384_v28, %v2501_v46  ;;  %v2629_v16 = vmul.f32 %v4383_v33, %v4247_v50  ;;  %v2499_v19 = vmul.f32 %v4383_v33, %v1843_v2 }
 0x1d6   :  { %v3856_v47 = vpack.c.bf16 %v3144_v49, %v3144_v49  ;;  %v3142_v10 = vmax.f32 %v3078_v38, 0.0  ;;  %v3083_v9 = vmax.f32 %v2955_v40, %v3019_v60  ;;  %v2953_v29 = vmax.f32 %v6701_v15, %v2761_v41 }
 0x1d7   :  { %v3017_v52 = vmax.f32 %v6702_v1, %v2889_v55  ;;  %v2956_v3 = vmax.f32 %v6703_v54, %v2764_v39  ;;  %v2892_v13 = vadd.f32 %v4384_v28, %v2629_v16  ;;  %v2762_v7 = vadd.f32 %v4384_v28, %v2499_v19 }
 0x1d8   :  { %v2698_v25 = vadd.f32 %v4384_v28, %v6704_v23  ;;  %3465 = vst.msk [vmem:[%s6498_s4 + $0xec] sm:$0xf] %vm3405_vm2, %v3856_v47  ;;  %v3854_v0 = vpack.c.bf16 %v3142_v10, %v3142_v10  ;;  %v3147_v57 = vmax.f32 %v3083_v9, 0.0  ;;  %v2627_v45 = vmul.f32 %v4383_v33, %v2355_v43 }
 0x1d9   :  { %v3081_v12 = vmax.f32 %v2953_v29, %v3017_v52  ;;  %v3020_v4 = vmax.f32 %v6705_v26, %v2892_v13  ;;  %v2826_v48 = vadd.f32 %v4384_v28, %v6706_v34 }
 0x1da   :  { %3463 = vst.msk [vmem:[%s6498_s4 + $0xe4] sm:$0xf] %vm3405_vm2, %v3854_v0  ;;  %v3859_v61 = vpack.c.bf16 %v3147_v57, %v3147_v57  ;;  %v2954_v42 = vmax.f32 %v2698_v25, %v2762_v7  ;;  %v2890_v18 = vadd.f32 %v4384_v28, %v2627_v45 }
 0x1db   :  { %v3145_v63 = vmax.f32 %v3081_v12, 0.0  ;;  %v3084_v51 = vmax.f32 %v2956_v3, %v3020_v4 }
 0x1dc   :  { %3468 = vst.msk [vmem:[%s6498_s4 + $0xf8] sm:$0xf] %vm3405_vm2, %v3859_v61  ;;  %v3018_v8 = vmax.f32 %v2826_v48, %v2890_v18 }
 0x1dd   :  { %v3857_v6 = vpack.c.bf16 %v3145_v63, %v3145_v63  ;;  %v3148_v11 = vmax.f32 %v3084_v51, 0.0 }
 0x1de   :  { %v3082_v36 = vmax.f32 %v2954_v42, %v3018_v8 }
 0x1df   :  { %3466 = vst.msk [vmem:[%s6498_s4 + $0xf0] sm:$0xf] %vm3405_vm2, %v3857_v6  ;;  %v3860_v33 = vpack.c.bf16 %v3148_v11, %v3148_v11 }
 0x1e0   :  { %v3146_v53 = vmax.f32 %v3082_v36, 0.0 }
 0x1e1   :  { %3469 = vst.msk [vmem:[%s6498_s4 + $0xfc] sm:$0xf] %vm3405_vm2, %v3860_v33 }
 0x1e2   :  { %v3858_v32 = vpack.c.bf16 %v3146_v53, %v3146_v53 }
 0x1e4   :  { %3467 = vst.msk [vmem:[%s6498_s4 + $0xf4] sm:$0xf] %vm3405_vm2, %v3858_v32 }

// kernel: model_forward.6
= control target key start
LH: loop header
LB: loop body
LE: loop exit
PB: predicated region body
PF: predicated region fallthrough
CT: control target
= control target key end

     0   :  { %s767_s1 = inlined_call_operand.vmem [shape: bf16[256,128], index: 1, kind: input, shape index: {}]   ;;  %s768_s0 = inlined_call_operand.vmem [shape: bf16[128,256], index: 0, kind: input, shape index: {}]   ;;  %s769_s2 = inlined_call_operand.vmem [shape: f32[1,128], index: 2, kind: input, shape index: {}]   ;;  %s770_s3 = inlined_call_operand.vmem [shape: f32[1,128], index: 3, kind: input, shape index: {}]   ;;  %s771_s4 = inlined_call_operand.vmem [shape: bf16[32,128], index: 4, kind: output, shape index: {}]  }
   0x1   :  { %v558_v0 = vld [vmem:[%s767_s1 + $0x78] sm:$0xff]   ;;  %v560_v2 = vld [vmem:[%s767_s1 + $0x70] sm:$0xff]   ;;  %v562_v4 = vld [vmem:[%s767_s1 + $0x68] sm:$0xff]  }
   0x2   :  { %v559_v1 = vld [vmem:[%s767_s1 + $0x38] sm:$0xff]   ;;  %478 = vmatprep.subr.bf16.mxu0 %v558_v0  ;;  %542 = vmatprep.subr.bf16.mxu1 %v558_v0  ;;  %v561_v3 = vld [vmem:[%s767_s1 + $0x30] sm:$0xff]   ;;  %v563_v5 = vld [vmem:[%s767_s1 + $0x28] sm:$0xff]  }
   0x3   :  { %479 = vmatpush3.bf16.msra.mxu0 %v559_v1  ;;  %550 = vmatpush3.bf16.msra.mxu1 %v559_v1  ;;  %v564_v6 = vld [vmem:[%s767_s1 + $0x60] sm:$0xff]   ;;  %v566_v8 = vld [vmem:[%s767_s1 + $0x58] sm:$0xff]   ;;  %v568_v10 = vld [vmem:[%s767_s1 + $0x50] sm:$0xff]  }
   0x4   :  { %480 = vmatprep.subr.bf16.mxu0 %v560_v2  ;;  %543 = vmatprep.subr.bf16.mxu1 %v560_v2  ;;  %v565_v7 = vld [vmem:[%s767_s1 + $0x20] sm:$0xff]   ;;  %v567_v9 = vld [vmem:[%s767_s1 + $0x18] sm:$0xff]   ;;  %v569_v13 = vld [vmem:[%s767_s1 + $0x10] sm:$0xff]  }
   0x5   :  { %v576_v11 = vld [vmem:[%s768_s0 + $0x4] ss:$8 sps:$4 sm:$0xff]   ;;  %v574_v18 = vld [vmem:[%s768_s0] ss:$8 sps:$4 sm:$0xff]   ;;  %v580_v20 = vld [vmem:[%s768_s0 + $0x14] ss:$8 sps:$4 sm:$0xff]  }
   0x6   :  { %v579_v12 = vld [vmem:[%s768_s0 + $0x44] ss:$8 sps:$4 sm:$0xff]   ;;  %274 = vmatprep.mubr.bf16.mxu0 %v576_v11  ;;  %v577_v19 = vld [vmem:[%s768_s0 + $0x40] ss:$8 sps:$4 sm:$0xff]   ;;  %v582_v21 = vld [vmem:[%s768_s0 + $0x54] ss:$8 sps:$4 sm:$0xff]  }
   0x7   :  { %481 = vmatpush3.bf16.msra.mxu0 %v561_v3  ;;  %551 = vmatpush3.bf16.msra.mxu1 %v561_v3  ;;  %v570_v14 = vld [vmem:[%s767_s1 + $0x48] sm:$0xff]   ;;  %v572_v16 = vld [vmem:[%s767_s1 + $0x40] sm:$0xff]   ;;  %v584_v22 = vld [vmem:[%s768_s0 + $0x10] ss:$8 sps:$4 sm:$0xff]  }
   0x8   :  { %482 = vmatprep.subr.bf16.mxu0 %v562_v4  ;;  %544 = vmatprep.subr.bf16.mxu1 %v562_v4  ;;  %v571_v15 = vld [vmem:[%s767_s1 + $0x8] sm:$0xff]   ;;  %v573_v17 = vld [vmem:[%s767_s1] sm:$0xff]   ;;  %v585_v23 = vld [vmem:[%s768_s0 + $0x50] ss:$8 sps:$4 sm:$0xff]  }
   0x9   :  { %306 = vmatprep.mubr.bf16.mxu1 %v579_v12  ;;  %v586_v24 = vld [vmem:[%s768_s0 + $0x24] ss:$8 sps:$4 sm:$0xff]   ;;  %v590_v26 = vld [vmem:[%s768_s0 + $0x20] ss:$8 sps:$4 sm:$0xff]   ;;  %v592_v28 = vld [vmem:[%s768_s0 + $0x34] ss:$8 sps:$4 sm:$0xff]  }
   0xa   :  { %v588_v25 = vld [vmem:[%s768_s0 + $0x64] ss:$8 sps:$4 sm:$0xff]   ;;  %v591_v27 = vld [vmem:[%s768_s0 + $0x60] ss:$8 sps:$4 sm:$0xff]   ;;  %v594_v29 = vld [vmem:[%s768_s0 + $0x74] ss:$8 sps:$4 sm:$0xff]  }
   0xb   :  { %483 = vmatpush3.bf16.msra.mxu0 %v563_v5  ;;  %552 = vmatpush3.bf16.msra.mxu1 %v563_v5  ;;  %v596_v30 = vld [vmem:[%s768_s0 + $0x30] ss:$8 sps:$4 sm:$0xff]   ;;  %v722_v47 = vld [vmem:[%s769_s2] ss:$0 sm:$0xff] }
   0xc   :  { %484 = vmatprep.subr.bf16.mxu0 %v564_v6  ;;  %545 = vmatprep.subr.bf16.mxu1 %v564_v6  ;;  %v597_v31 = vld [vmem:[%s768_s0 + $0x70] ss:$8 sps:$4 sm:$0xff]   ;;  %v728_v54 = vld [vmem:[%s770_s3] ss:$0 sm:$0xff] }
   0xf   :  { %485 = vmatpush3.bf16.msra.mxu0 %v565_v7  ;;  %553 = vmatpush3.bf16.msra.mxu1 %v565_v7 }
  0x10   :  { %486 = vmatprep.subr.bf16.mxu0 %v566_v8  ;;  %546 = vmatprep.subr.bf16.mxu1 %v566_v8 }
  0x13   :  { %487 = vmatpush3.bf16.msra.mxu0 %v567_v9  ;;  %554 = vmatpush3.bf16.msra.mxu1 %v567_v9 }
  0x14   :  { %488 = vmatprep.subr.bf16.mxu0 %v568_v10  ;;  %547 = vmatprep.subr.bf16.mxu1 %v568_v10 }
  0x17   :  { %489 = vmatpush3.bf16.msra.mxu0 %v569_v13  ;;  %555 = vmatpush3.bf16.msra.mxu1 %v569_v13 }
  0x18   :  { %490 = vmatprep.subr.bf16.mxu0 %v570_v14  ;;  %548 = vmatprep.subr.bf16.mxu1 %v570_v14 }
  0x1b   :  { %491 = vmatpush3.bf16.msra.mxu0 %v571_v15  ;;  %556 = vmatpush3.bf16.msra.mxu1 %v571_v15 }
  0x1c   :  { %492 = vmatprep.subr.bf16.mxu0 %v572_v16  ;;  %549 = vmatprep.subr.bf16.mxu1 %v572_v16 }
  0x1f   :  { %493 = vmatpush3.bf16.msra.mxu0 %v573_v17  ;;  %557 = vmatpush3.bf16.msra.mxu1 %v573_v17 }
  0x22   :  { %275 = vmatmul.mubr.bf16.vlgmr.msra.gmra.mxu0 %v574_v18  ;;  %307 = vmatmul.mubr.bf16.vlgmr.msra.gmra.mxu1 %v577_v19 }
  0x23   :  { %282 = vmatprep.mubr.bf16.mxu0 %v580_v20  ;;  %314 = vmatprep.mubr.bf16.mxu1 %v582_v21 }
  0x2a   :  { %283 = vmatmul.mubr.bf16.gmra.mxu0 %v584_v22  ;;  %315 = vmatmul.mubr.bf16.gmra.mxu1 %v585_v23 }
  0x2b   :  { %290 = vmatprep.mubr.bf16.mxu0 %v586_v24  ;;  %322 = vmatprep.mubr.bf16.mxu1 %v588_v25 }
  0x32   :  { %291 = vmatmul.mubr.bf16.gmra.mxu0 %v590_v26  ;;  %323 = vmatmul.mubr.bf16.gmra.mxu1 %v591_v27 }
  0x33   :  { %298 = vmatprep.mubr.bf16.mxu0 %v592_v28  ;;  %330 = vmatprep.mubr.bf16.mxu1 %v594_v29 }
  0x3a   :  { %299 = vmatmul.mubr.bf16.gmra.mxu0 %v596_v30  ;;  %331 = vmatmul.mubr.bf16.gmra.mxu1 %v597_v31 }
  0xe2   :  { %v494_v32 = vpop.f32.mrf.mxu0  ;;  %v518_v33 = vpop.f32.mrf.mxu1 }
  0xe4   :  { %v495_v34 = vpop.f32.mrf.mxu0  ;;  %v519_v35 = vpop.f32.mrf.mxu1 }
  0xe5   :  { %v496_v46 = vadd.f32 %v495_v34, %v494_v32  ;;  %v520_v48 = vadd.f32 %v519_v35, %v518_v33 }
  0xe6   :  { %v497_v36 = vpop.f32.mrf.mxu0  ;;  %v521_v37 = vpop.f32.mrf.mxu1 }
  0xe7   :  { %v346_v53 = vmul.f32 %v496_v46, %v722_v47  ;;  %v354_v55 = vmul.f32 %v520_v48, %v722_v47 }
  0xe8   :  { %v498_v38 = vpop.f32.mrf.mxu0  ;;  %v522_v39 = vpop.f32.mrf.mxu1 }
  0xe9   :  { %v499_v56 = vadd.f32 %v498_v38, %v497_v36  ;;  %v523_v57 = vadd.f32 %v522_v39, %v521_v37  ;;  %v369_v0 = vadd.f32 %v728_v54, %v346_v53  ;;  %v377_v3 = vadd.f32 %v728_v54, %v354_v55 }
  0xea   :  { %v500_v40 = vpop.f32.mrf.mxu0  ;;  %v524_v41 = vpop.f32.mrf.mxu1 }
  0xeb   :  { %v347_v4 = vmul.f32 %v499_v56, %v722_v47  ;;  %v355_v5 = vmul.f32 %v523_v57, %v722_v47 }
  0xec   :  { %v501_v42 = vpop.f32.mrf.mxu0  ;;  %v525_v43 = vpop.f32.mrf.mxu1 }
  0xed   :  { %v502_v6 = vadd.f32 %v501_v42, %v500_v40  ;;  %v526_v13 = vadd.f32 %v525_v43, %v524_v41  ;;  %v370_v20 = vadd.f32 %v728_v54, %v347_v4  ;;  %v378_v26 = vadd.f32 %v728_v54, %v355_v5 }
  0xee   :  { %v503_v44 = vpop.f32.mrf.mxu0  ;;  %v527_v45 = vpop.f32.mrf.mxu1 }
  0xef   :  { %v348_v21 = vmul.f32 %v502_v6, %v722_v47  ;;  %v356_v30 = vmul.f32 %v526_v13, %v722_v47 }
  0xf0   :  { %v504_v49 = vpop.f32.mrf.mxu0  ;;  %v528_v50 = vpop.f32.mrf.mxu1 }
  0xf1   :  { %v505_v22 = vadd.f32 %v504_v49, %v503_v44  ;;  %v529_v23 = vadd.f32 %v528_v50, %v527_v45  ;;  %v371_v38 = vadd.f32 %v728_v54, %v348_v21  ;;  %v379_v49 = vadd.f32 %v728_v54, %v356_v30 }
  0xf2   :  { %v506_v51 = vpop.f32.mrf.mxu0  ;;  %v530_v52 = vpop.f32.mrf.mxu1 }
  0xf3   :  { %v349_v39 = vmul.f32 %v505_v22, %v722_v47  ;;  %v357_v40 = vmul.f32 %v529_v23, %v722_v47 }
  0xf4   :  { %v507_v58 = vpop.f32.mrf.mxu0  ;;  %v531_v59 = vpop.f32.mrf.mxu1 }
  0xf5   :  { %v508_v60 = vadd.f32 %v507_v58, %v506_v51  ;;  %v532_v61 = vadd.f32 %v531_v59, %v530_v52  ;;  %v372_v57 = vadd.f32 %v728_v54, %v349_v39  ;;  %v380_v59 = vadd.f32 %v728_v54, %v357_v40 }
  0xf6   :  { %v509_v62 = vpop.f32.mrf.mxu0  ;;  %v533_v63 = vpop.f32.mrf.mxu1 }
  0xf7   :  { %v350_v1 = vmul.f32 %v508_v60, %v722_v47  ;;  %v358_v2 = vmul.f32 %v532_v61, %v722_v47 }
  0xf8   :  { %v510_v7 = vpop.f32.mrf.mxu0  ;;  %v534_v8 = vpop.f32.mrf.mxu1 }
  0xf9   :  { %v373_v9 = vadd.f32 %v728_v54, %v350_v1  ;;  %v381_v10 = vadd.f32 %v728_v54, %v358_v2  ;;  %v511_v11 = vadd.f32 %v510_v7, %v509_v62  ;;  %v535_v12 = vadd.f32 %v534_v8, %v533_v63 }
  0xfa   :  { %v512_v14 = vpop.f32.mrf.mxu0  ;;  %v536_v15 = vpop.f32.mrf.mxu1 }
  0xfb   :  { %v385_v16 = vmax.f32 %v369_v0, %v373_v9  ;;  %v389_v17 = vmax.f32 %v377_v3, %v381_v10  ;;  %v351_v18 = vmul.f32 %v511_v11, %v722_v47  ;;  %v359_v19 = vmul.f32 %v535_v12, %v722_v47 }
  0xfc   :  { %v513_v24 = vpop.f32.mrf.mxu0  ;;  %v537_v25 = vpop.f32.mrf.mxu1 }
  0xfd   :  { %v374_v27 = vadd.f32 %v728_v54, %v351_v18  ;;  %v382_v28 = vadd.f32 %v728_v54, %v359_v19  ;;  %v514_v29 = vadd.f32 %v513_v24, %v512_v14  ;;  %v393_v31 = vmax.f32 %v385_v16, %v389_v17 }
  0xfe   :  { %v538_v32 = vadd.f32 %v537_v25, %v536_v15  ;;  %v515_v33 = vpop.f32.mrf.mxu0  ;;  %v539_v34 = vpop.f32.mrf.mxu1 }
  0xff   :  { %v386_v35 = vmax.f32 %v370_v20, %v374_v27  ;;  %v390_v36 = vmax.f32 %v378_v26, %v382_v28  ;;  %v352_v37 = vmul.f32 %v514_v29, %v722_v47  ;;  %v397_v50 = vmax.f32 %v393_v31, 0.0 }
 0x100   :  { %v360_v41 = vmul.f32 %v538_v32, %v722_v47  ;;  %v516_v42 = vpop.f32.mrf.mxu0  ;;  %v540_v43 = vpop.f32.mrf.mxu1 }
 0x101   :  { %v394_v44 = vmax.f32 %v386_v35, %v390_v36  ;;  %v375_v45 = vadd.f32 %v728_v54, %v352_v37  ;;  %v517_v46 = vadd.f32 %v516_v42, %v515_v33  ;;  %v541_v48 = vadd.f32 %v540_v43, %v539_v34 }
 0x102   :  { %v383_v51 = vadd.f32 %v728_v54, %v360_v41 }
 0x103   :  { %v398_v52 = vmax.f32 %v394_v44, 0.0  ;;  %v387_v53 = vmax.f32 %v371_v38, %v375_v45  ;;  %v353_v55 = vmul.f32 %v517_v46, %v722_v47  ;;  %v361_v56 = vmul.f32 %v541_v48, %v722_v47 }
 0x104   :  { %v391_v58 = vmax.f32 %v379_v49, %v383_v51 }
 0x105   :  { %v470_v60 = vpack.c.bf16 %v398_v52, %v397_v50  ;;  %v376_v61 = vadd.f32 %v728_v54, %v353_v55  ;;  %v384_v62 = vadd.f32 %v728_v54, %v361_v56 }
 0x106   :  { %v395_v63 = vmax.f32 %v387_v53, %v391_v58 }
 0x107   :  { %471 = vst [vmem:[%s771_s4] sm:$0xff] %v470_v60   ;;  %v388_v0 = vmax.f32 %v372_v57, %v376_v61  ;;  %v392_v1 = vmax.f32 %v380_v59, %v384_v62 }
 0x108   :  { %v399_v3 = vmax.f32 %v395_v63, 0.0 }
 0x109   :  { %v396_v2 = vmax.f32 %v388_v0, %v392_v1 }
 0x10b   :  { %v400_v47 = vmax.f32 %v396_v2, 0.0 }
 0x10d   :  { %v475_v4 = vpack.c.bf16 %v400_v47, %v399_v3 }
 0x10f   :  { %477 = vst [vmem:[%s771_s4 + $0x8] sm:$0xff] %v475_v4  }

// kernel: model_forward.7
= control target key start
LH: loop header
LB: loop body
LE: loop exit
PB: predicated region body
PF: predicated region fallthrough
CT: control target
= control target key end

     0   :  { %s9956_s0 = inlined_call_operand.vmem [shape: bf16[32,512], index: 0, kind: input, shape index: {}]   ;;  %s9957_s1 = inlined_call_operand.vmem [shape: bf16[512,512], index: 1, kind: input, shape index: {}]   ;;  %s9958_s2 = inlined_call_operand.vmem [shape: f32[1,512], index: 2, kind: input, shape index: {}]   ;;  %s9959_s3 = inlined_call_operand.vmem [shape: f32[1,512], index: 3, kind: input, shape index: {}]   ;;  %s9960_s4 = inlined_call_operand.vmem [shape: bf16[4,512,512], index: 4, kind: input, shape index: {}]   ;;  %s9961_s5 = inlined_call_operand.vmem [shape: f32[1,512], index: 5, kind: input, shape index: {}]   ;;  %s9962_s6 = inlined_call_operand.vmem [shape: bf16[512,128], index: 6, kind: input, shape index: {}]   ;;  %s9963_s7 = inlined_call_operand.vmem [shape: f32[1,128], index: 7, kind: input, shape index: {}]   ;;  %s9964_s8 = inlined_call_operand.vmem [shape: bf16[128,2], index: 8, kind: input, shape index: {}]   ;;  %s9965_s9 = inlined_call_operand.vmem [shape: f32[1,2], index: 9, kind: input, shape index: {}]   ;;  %s9966_s10 = inlined_call_operand.hbm [shape: f32[2,2], index: 10, kind: output, shape index: {}]  }
   0x1   :  { %v6584_v0 = vld [vmem:[%s9957_s1 + $0xe4] ss:$16 sps:$4 sm:$0xff]   ;;  %v6588_v2 = vld [vmem:[%s9957_s1 + $0xe0] ss:$16 sps:$4 sm:$0xff]   ;;  %v7834_v51 = vld [vmem:[%s9956_s0 + $0xc] ss:$16 sps:$4 sm:$0xff]  }
   0x2   :  { %v6586_v1 = vld [vmem:[%s9957_s1 + $0x2e4] ss:$16 sps:$4 sm:$0xff]   ;;  %853 = vmatprep.subr.bf16.mxu0 %v6584_v0  ;;  %v6589_v3 = vld [vmem:[%s9957_s1 + $0x2e0] ss:$16 sps:$4 sm:$0xff]   ;;  %938 = vmatprep.mubr.bf16.mxu1 %v7834_v51 }
   0x3   :  { %906 = vmatprep.subr.bf16.mxu1 %v6586_v1  ;;  %v6590_v4 = vld [vmem:[%s9957_s1 + $0xc4] ss:$16 sps:$4 sm:$0xff]   ;;  %854 = vmatpush1.bf16.msra.mxu0 %v6588_v2  ;;  %v6594_v6 = vld [vmem:[%s9957_s1 + $0xc0] ss:$16 sps:$4 sm:$0xff]   ;;  %v6688_v2 = vld [vmem:[%s9957_s1 + $0xec] ss:$16 sps:$4 sm:$0xff]  }
   0x4   :  { %907 = vmatpush1.bf16.msra.mxu1 %v6589_v3  ;;  %v6592_v5 = vld [vmem:[%s9957_s1 + $0x2c4] ss:$16 sps:$4 sm:$0xff]   ;;  %855 = vmatprep.subr.bf16.mxu0 %v6590_v4  ;;  %v6595_v7 = vld [vmem:[%s9957_s1 + $0x2c0] ss:$16 sps:$4 sm:$0xff]   ;;  %v6691_v3 = vld [vmem:[%s9957_s1 + $0x2ec] ss:$16 sps:$4 sm:$0xff]  }
   0x5   :  { %908 = vmatprep.subr.bf16.mxu1 %v6592_v5  ;;  %v6596_v8 = vld [vmem:[%s9957_s1 + $0xa4] ss:$16 sps:$4 sm:$0xff]   ;;  %v6600_v10 = vld [vmem:[%s9957_s1 + $0xa0] ss:$16 sps:$4 sm:$0xff]   ;;  %v7894_v5 = vld [vmem:[%s9956_s0 + $0x8] ss:$16 sps:$4 sm:$0xff]  }
   0x6   :  { %v6598_v9 = vld [vmem:[%s9957_s1 + $0x2a4] ss:$16 sps:$4 sm:$0xff]   ;;  %v6601_v11 = vld [vmem:[%s9957_s1 + $0x2a0] ss:$16 sps:$4 sm:$0xff]  }
   0x7   :  { %856 = vmatpush1.bf16.msra.mxu0 %v6594_v6  ;;  %v6602_v12 = vld [vmem:[%s9957_s1 + $0x84] ss:$16 sps:$4 sm:$0xff]   ;;  %v6606_v14 = vld [vmem:[%s9957_s1 + $0x80] ss:$16 sps:$4 sm:$0xff]   ;;  %v6686_v6 = vld [vmem:[%s9957_s1 + $0xe8] ss:$16 sps:$4 sm:$0xff]  }
   0x8   :  { %909 = vmatpush1.bf16.msra.mxu1 %v6595_v7  ;;  %857 = vmatprep.subr.bf16.mxu0 %v6596_v8  ;;  %v6604_v13 = vld [vmem:[%s9957_s1 + $0x284] ss:$16 sps:$4 sm:$0xff]   ;;  %v6607_v15 = vld [vmem:[%s9957_s1 + $0x280] ss:$16 sps:$4 sm:$0xff]   ;;  %v6689_v7 = vld [vmem:[%s9957_s1 + $0x2e8] ss:$16 sps:$4 sm:$0xff]  }
   0x9   :  { %910 = vmatprep.subr.bf16.mxu1 %v6598_v9  ;;  %v6608_v16 = vld [vmem:[%s9957_s1 + $0x64] ss:$16 sps:$4 sm:$0xff]   ;;  %v6612_v18 = vld [vmem:[%s9957_s1 + $0x60] ss:$16 sps:$4 sm:$0xff]   ;;  %v6694_v8 = vld [vmem:[%s9957_s1 + $0xcc] ss:$16 sps:$4 sm:$0xff]  }
   0xa   :  { %v6610_v17 = vld [vmem:[%s9957_s1 + $0x264] ss:$16 sps:$4 sm:$0xff]   ;;  %v6613_v19 = vld [vmem:[%s9957_s1 + $0x260] ss:$16 sps:$4 sm:$0xff]   ;;  %v6697_v9 = vld [vmem:[%s9957_s1 + $0x2cc] ss:$16 sps:$4 sm:$0xff]  }
   0xb   :  { %858 = vmatpush1.bf16.msra.mxu0 %v6600_v10  ;;  %v6614_v20 = vld [vmem:[%s9957_s1 + $0x44] ss:$16 sps:$4 sm:$0xff]   ;;  %v6618_v22 = vld [vmem:[%s9957_s1 + $0x40] ss:$16 sps:$4 sm:$0xff]  }
   0xc   :  { %911 = vmatpush1.bf16.msra.mxu1 %v6601_v11  ;;  %859 = vmatprep.subr.bf16.mxu0 %v6602_v12  ;;  %v6616_v21 = vld [vmem:[%s9957_s1 + $0x244] ss:$16 sps:$4 sm:$0xff]   ;;  %v6619_v23 = vld [vmem:[%s9957_s1 + $0x240] ss:$16 sps:$4 sm:$0xff]   ;;  %v7916_v11 = vld [vmem:[%s9956_s0 + $0x2c] ss:$16 sps:$4 sm:$0xff]  }
   0xd   :  { %912 = vmatprep.subr.bf16.mxu1 %v6604_v13  ;;  %v6620_v24 = vld [vmem:[%s9957_s1 + $0x24] ss:$16 sps:$4 sm:$0xff]   ;;  %v6624_v26 = vld [vmem:[%s9957_s1 + $0x20] ss:$16 sps:$4 sm:$0xff]   ;;  %v6692_v12 = vld [vmem:[%s9957_s1 + $0xc8] ss:$16 sps:$4 sm:$0xff]  }
   0xe   :  { %v6622_v25 = vld [vmem:[%s9957_s1 + $0x224] ss:$16 sps:$4 sm:$0xff]   ;;  %v6625_v27 = vld [vmem:[%s9957_s1 + $0x220] ss:$16 sps:$4 sm:$0xff]   ;;  %v6695_v13 = vld [vmem:[%s9957_s1 + $0x2c8] ss:$16 sps:$4 sm:$0xff]  }
   0xf   :  { %860 = vmatpush1.bf16.msra.mxu0 %v6606_v14  ;;  %v6626_v28 = vld [vmem:[%s9957_s1 + $0x4] ss:$16 sps:$4 sm:$0xff]   ;;  %v6630_v30 = vld [vmem:[%s9957_s1] ss:$16 sps:$4 sm:$0xff]   ;;  %v6706_v14 = vld [vmem:[%s9957_s1 + $0xac] ss:$16 sps:$4 sm:$0xff]  }
  0x10   :  { %913 = vmatpush1.bf16.msra.mxu1 %v6607_v15  ;;  %861 = vmatprep.subr.bf16.mxu0 %v6608_v16  ;;  %v6628_v29 = vld [vmem:[%s9957_s1 + $0x204] ss:$16 sps:$4 sm:$0xff]   ;;  %v6631_v31 = vld [vmem:[%s9957_s1 + $0x200] ss:$16 sps:$4 sm:$0xff]   ;;  %v6709_v15 = vld [vmem:[%s9957_s1 + $0x2ac] ss:$16 sps:$4 sm:$0xff]  }
  0x11   :  { %914 = vmatprep.subr.bf16.mxu1 %v6610_v17  ;;  %v6632_v32 = vld [vmem:[%s9957_s1 + $0x1e4] ss:$16 sps:$4 sm:$0xff]   ;;  %v6636_v34 = vld [vmem:[%s9957_s1 + $0x1e0] ss:$16 sps:$4 sm:$0xff]   ;;  %v7942_v17 = vld [vmem:[%s9956_s0 + $0x28] ss:$16 sps:$4 sm:$0xff]  }
  0x12   :  { %v6634_v33 = vld [vmem:[%s9957_s1 + $0x3e4] ss:$16 sps:$4 sm:$0xff]   ;;  %v6637_v35 = vld [vmem:[%s9957_s1 + $0x3e0] ss:$16 sps:$4 sm:$0xff]  }
  0x13   :  { %862 = vmatpush1.bf16.msra.mxu0 %v6612_v18  ;;  %v6638_v36 = vld [vmem:[%s9957_s1 + $0x1c4] ss:$16 sps:$4 sm:$0xff]   ;;  %v6642_v38 = vld [vmem:[%s9957_s1 + $0x1c0] ss:$16 sps:$4 sm:$0xff]   ;;  %v6704_v18 = vld [vmem:[%s9957_s1 + $0xa8] ss:$16 sps:$4 sm:$0xff]  }
  0x14   :  { %915 = vmatpush1.bf16.msra.mxu1 %v6613_v19  ;;  %863 = vmatprep.subr.bf16.mxu0 %v6614_v20  ;;  %v6640_v37 = vld [vmem:[%s9957_s1 + $0x3c4] ss:$16 sps:$4 sm:$0xff]   ;;  %v6643_v39 = vld [vmem:[%s9957_s1 + $0x3c0] ss:$16 sps:$4 sm:$0xff]   ;;  %v6707_v19 = vld [vmem:[%s9957_s1 + $0x2a8] ss:$16 sps:$4 sm:$0xff]  }
  0x15   :  { %916 = vmatprep.subr.bf16.mxu1 %v6616_v21  ;;  %v6644_v40 = vld [vmem:[%s9957_s1 + $0x1a4] ss:$16 sps:$4 sm:$0xff]   ;;  %v6648_v42 = vld [vmem:[%s9957_s1 + $0x1a0] ss:$16 sps:$4 sm:$0xff]   ;;  %v6712_v20 = vld [vmem:[%s9957_s1 + $0x8c] ss:$16 sps:$4 sm:$0xff]  }
  0x16   :  { %v6646_v41 = vld [vmem:[%s9957_s1 + $0x3a4] ss:$16 sps:$4 sm:$0xff]   ;;  %v6649_v43 = vld [vmem:[%s9957_s1 + $0x3a0] ss:$16 sps:$4 sm:$0xff]   ;;  %v6715_v21 = vld [vmem:[%s9957_s1 + $0x28c] ss:$16 sps:$4 sm:$0xff]  }
  0x17   :  { %864 = vmatpush1.bf16.msra.mxu0 %v6618_v22  ;;  %v6650_v44 = vld [vmem:[%s9957_s1 + $0x184] ss:$16 sps:$4 sm:$0xff]   ;;  %v6654_v46 = vld [vmem:[%s9957_s1 + $0x180] ss:$16 sps:$4 sm:$0xff]   ;;  %v6710_v22 = vld [vmem:[%s9957_s1 + $0x88] ss:$16 sps:$4 sm:$0xff]  }
  0x18   :  { %917 = vmatpush1.bf16.msra.mxu1 %v6619_v23  ;;  %865 = vmatprep.subr.bf16.mxu0 %v6620_v24  ;;  %v6652_v45 = vld [vmem:[%s9957_s1 + $0x384] ss:$16 sps:$4 sm:$0xff]   ;;  %v6655_v47 = vld [vmem:[%s9957_s1 + $0x380] ss:$16 sps:$4 sm:$0xff]   ;;  %v6713_v23 = vld [vmem:[%s9957_s1 + $0x288] ss:$16 sps:$4 sm:$0xff]  }
  0x19   :  { %918 = vmatprep.subr.bf16.mxu1 %v6622_v25  ;;  %v6656_v48 = vld [vmem:[%s9957_s1 + $0x164] ss:$16 sps:$4 sm:$0xff]   ;;  %v6660_v52 = vld [vmem:[%s9957_s1 + $0x160] ss:$16 sps:$4 sm:$0xff]   ;;  %v6718_v24 = vld [vmem:[%s9957_s1 + $0x6c] ss:$16 sps:$4 sm:$0xff]  }
  0x1a   :  { %v7826_v49 = vld [vmem:[%s9956_s0 + $0x4] ss:$16 sps:$4 sm:$0xff]   ;;  %v6661_v53 = vld [vmem:[%s9957_s1 + $0x360] ss:$16 sps:$4 sm:$0xff]   ;;  %v6721_v25 = vld [vmem:[%s9957_s1 + $0x26c] ss:$16 sps:$4 sm:$0xff]  }
  0x1b   :  { %866 = vmatpush1.bf16.msra.mxu0 %v6624_v26  ;;  %v6658_v50 = vld [vmem:[%s9957_s1 + $0x364] ss:$16 sps:$4 sm:$0xff]   ;;  %885 = vmatprep.mubr.bf16.mxu0 %v7826_v49  ;;  %v6666_v56 = vld [vmem:[%s9957_s1 + $0x140] ss:$16 sps:$4 sm:$0xff]   ;;  %v6716_v26 = vld [vmem:[%s9957_s1 + $0x68] ss:$16 sps:$4 sm:$0xff]  }
  0x1c   :  { %919 = vmatpush1.bf16.msra.mxu1 %v6625_v27  ;;  %867 = vmatprep.subr.bf16.mxu0 %v6626_v28  ;;  %v6662_v54 = vld [vmem:[%s9957_s1 + $0x144] ss:$16 sps:$4 sm:$0xff]   ;;  %v6667_v57 = vld [vmem:[%s9957_s1 + $0x340] ss:$16 sps:$4 sm:$0xff]   ;;  %v6719_v27 = vld [vmem:[%s9957_s1 + $0x268] ss:$16 sps:$4 sm:$0xff]  }
  0x1d   :  { %920 = vmatprep.subr.bf16.mxu1 %v6628_v29  ;;  %v6664_v55 = vld [vmem:[%s9957_s1 + $0x344] ss:$16 sps:$4 sm:$0xff]   ;;  %v6672_v60 = vld [vmem:[%s9957_s1 + $0x120] ss:$16 sps:$4 sm:$0xff]   ;;  %v6724_v28 = vld [vmem:[%s9957_s1 + $0x4c] ss:$16 sps:$4 sm:$0xff]  }
  0x1e   :  { %v6668_v58 = vld [vmem:[%s9957_s1 + $0x124] ss:$16 sps:$4 sm:$0xff]   ;;  %v6673_v61 = vld [vmem:[%s9957_s1 + $0x320] ss:$16 sps:$4 sm:$0xff]   ;;  %v6727_v29 = vld [vmem:[%s9957_s1 + $0x24c] ss:$16 sps:$4 sm:$0xff]  }
  0x1f   :  { %868 = vmatpush1.bf16.msra.mxu0 %v6630_v30  ;;  %v6670_v59 = vld [vmem:[%s9957_s1 + $0x324] ss:$16 sps:$4 sm:$0xff]   ;;  %v6678_v0 = vld [vmem:[%s9957_s1 + $0x100] ss:$16 sps:$4 sm:$0xff]   ;;  %v6722_v30 = vld [vmem:[%s9957_s1 + $0x48] ss:$16 sps:$4 sm:$0xff]  }
  0x20   :  { %921 = vmatpush1.bf16.msra.mxu1 %v6631_v31  ;;  %869 = vmatprep.subr.bf16.mxu0 %v6632_v32  ;;  %v6674_v62 = vld [vmem:[%s9957_s1 + $0x104] ss:$16 sps:$4 sm:$0xff]   ;;  %v6679_v1 = vld [vmem:[%s9957_s1 + $0x300] ss:$16 sps:$4 sm:$0xff]   ;;  %v6725_v31 = vld [vmem:[%s9957_s1 + $0x248] ss:$16 sps:$4 sm:$0xff]  }
  0x21   :  { %922 = vmatprep.subr.bf16.mxu1 %v6634_v33  ;;  %v6676_v63 = vld [vmem:[%s9957_s1 + $0x304] ss:$16 sps:$4 sm:$0xff]   ;;  %v7889_v4 = vld [vmem:[%s9956_s0] ss:$16 sps:$4 sm:$0xff]   ;;  %v6730_v32 = vld [vmem:[%s9957_s1 + $0x2c] ss:$16 sps:$4 sm:$0xff]  }
  0x22   :  { %v7911_v10 = vld [vmem:[%s9956_s0 + $0x24] ss:$16 sps:$4 sm:$0xff]   ;;  %v7937_v16 = vld [vmem:[%s9956_s0 + $0x20] ss:$16 sps:$4 sm:$0xff]   ;;  %v6733_v33 = vld [vmem:[%s9957_s1 + $0x22c] ss:$16 sps:$4 sm:$0xff]  }
  0x23   :  { %870 = vmatpush2.bf16.msra.mxu0 %v6636_v34  ;;  %v6728_v34 = vld [vmem:[%s9957_s1 + $0x28] ss:$16 sps:$4 sm:$0xff]  }
  0x24   :  { %923 = vmatpush2.bf16.msra.mxu1 %v6637_v35  ;;  %871 = vmatprep.subr.bf16.mxu0 %v6638_v36  ;;  %v6731_v35 = vld [vmem:[%s9957_s1 + $0x228] ss:$16 sps:$4 sm:$0xff]   ;;  %v6736_v36 = vld [vmem:[%s9957_s1 + $0xc] ss:$16 sps:$4 sm:$0xff]  }
  0x25   :  { %924 = vmatprep.subr.bf16.mxu1 %v6640_v37  ;;  %v6739_v37 = vld [vmem:[%s9957_s1 + $0x20c] ss:$16 sps:$4 sm:$0xff]  }
  0x27   :  { %872 = vmatpush2.bf16.msra.mxu0 %v6642_v38  ;;  %v6734_v38 = vld [vmem:[%s9957_s1 + $0x8] ss:$16 sps:$4 sm:$0xff]  }
  0x28   :  { %925 = vmatpush2.bf16.msra.mxu1 %v6643_v39  ;;  %873 = vmatprep.subr.bf16.mxu0 %v6644_v40  ;;  %v6737_v39 = vld [vmem:[%s9957_s1 + $0x208] ss:$16 sps:$4 sm:$0xff]   ;;  %v6742_v40 = vld [vmem:[%s9957_s1 + $0x1ec] ss:$16 sps:$4 sm:$0xff]  }
  0x29   :  { %926 = vmatprep.subr.bf16.mxu1 %v6646_v41  ;;  %v6745_v41 = vld [vmem:[%s9957_s1 + $0x3ec] ss:$16 sps:$4 sm:$0xff]  }
  0x2b   :  { %874 = vmatpush2.bf16.msra.mxu0 %v6648_v42  ;;  %v6740_v42 = vld [vmem:[%s9957_s1 + $0x1e8] ss:$16 sps:$4 sm:$0xff]  }
  0x2c   :  { %927 = vmatpush2.bf16.msra.mxu1 %v6649_v43  ;;  %875 = vmatprep.subr.bf16.mxu0 %v6650_v44  ;;  %v6743_v43 = vld [vmem:[%s9957_s1 + $0x3e8] ss:$16 sps:$4 sm:$0xff]   ;;  %v6748_v44 = vld [vmem:[%s9957_s1 + $0x1cc] ss:$16 sps:$4 sm:$0xff]  }
  0x2d   :  { %928 = vmatprep.subr.bf16.mxu1 %v6652_v45  ;;  %v6751_v45 = vld [vmem:[%s9957_s1 + $0x3cc] ss:$16 sps:$4 sm:$0xff]  }
  0x2f   :  { %876 = vmatpush2.bf16.msra.mxu0 %v6654_v46  ;;  %v6746_v46 = vld [vmem:[%s9957_s1 + $0x1c8] ss:$16 sps:$4 sm:$0xff]  }
  0x30   :  { %929 = vmatpush2.bf16.msra.mxu1 %v6655_v47  ;;  %877 = vmatprep.subr.bf16.mxu0 %v6656_v48  ;;  %v6749_v47 = vld [vmem:[%s9957_s1 + $0x3c8] ss:$16 sps:$4 sm:$0xff]   ;;  %v6754_v48 = vld [vmem:[%s9957_s1 + $0x1ac] ss:$16 sps:$4 sm:$0xff]  }
  0x31   :  { %930 = vmatprep.subr.bf16.mxu1 %v6658_v50  ;;  %v6752_v50 = vld [vmem:[%s9957_s1 + $0x1a8] ss:$16 sps:$4 sm:$0xff]  }
  0x33   :  { %878 = vmatpush2.bf16.msra.mxu0 %v6660_v52  ;;  %v6760_v52 = vld [vmem:[%s9957_s1 + $0x18c] ss:$16 sps:$4 sm:$0xff]  }
  0x34   :  { %931 = vmatpush2.bf16.msra.mxu1 %v6661_v53  ;;  %879 = vmatprep.subr.bf16.mxu0 %v6662_v54  ;;  %v6763_v53 = vld [vmem:[%s9957_s1 + $0x38c] ss:$16 sps:$4 sm:$0xff]   ;;  %v6758_v54 = vld [vmem:[%s9957_s1 + $0x188] ss:$16 sps:$4 sm:$0xff]  }
  0x35   :  { %932 = vmatprep.subr.bf16.mxu1 %v6664_v55  ;;  %v6761_v55 = vld [vmem:[%s9957_s1 + $0x388] ss:$16 sps:$4 sm:$0xff]  }
  0x37   :  { %880 = vmatpush2.bf16.msra.mxu0 %v6666_v56  ;;  %v6766_v56 = vld [vmem:[%s9957_s1 + $0x16c] ss:$16 sps:$4 sm:$0xff]  }
  0x38   :  { %933 = vmatpush2.bf16.msra.mxu1 %v6667_v57  ;;  %881 = vmatprep.subr.bf16.mxu0 %v6668_v58  ;;  %v6769_v57 = vld [vmem:[%s9957_s1 + $0x36c] ss:$16 sps:$4 sm:$0xff]   ;;  %v6764_v58 = vld [vmem:[%s9957_s1 + $0x168] ss:$16 sps:$4 sm:$0xff]  }
  0x39   :  { %934 = vmatprep.subr.bf16.mxu1 %v6670_v59  ;;  %v6767_v59 = vld [vmem:[%s9957_s1 + $0x368] ss:$16 sps:$4 sm:$0xff]  }
  0x3b   :  { %882 = vmatpush2.bf16.msra.mxu0 %v6672_v60  ;;  %v6772_v60 = vld [vmem:[%s9957_s1 + $0x14c] ss:$16 sps:$4 sm:$0xff]  }
  0x3c   :  { %935 = vmatpush2.bf16.msra.mxu1 %v6673_v61  ;;  %883 = vmatprep.subr.bf16.mxu0 %v6674_v62  ;;  %v6775_v61 = vld [vmem:[%s9957_s1 + $0x34c] ss:$16 sps:$4 sm:$0xff]   ;;  %v6770_v62 = vld [vmem:[%s9957_s1 + $0x148] ss:$16 sps:$4 sm:$0xff]  }
  0x3d   :  { %936 = vmatprep.subr.bf16.mxu1 %v6676_v63  ;;  %v6773_v63 = vld [vmem:[%s9957_s1 + $0x348] ss:$16 sps:$4 sm:$0xff]  }
  0x3f   :  { %884 = vmatpush2.bf16.msra.mxu0 %v6678_v0  ;;  %v6778_v0 = vld [vmem:[%s9957_s1 + $0x12c] ss:$16 sps:$4 sm:$0xff]  }
  0x40   :  { %937 = vmatpush2.bf16.msra.mxu1 %v6679_v1  ;;  %959 = vmatprep.subr.bf16.mxu0 %v6688_v2  ;;  %v6781_v1 = vld [vmem:[%s9957_s1 + $0x32c] ss:$16 sps:$4 sm:$0xff]   ;;  %v6776_v2 = vld [vmem:[%s9957_s1 + $0x128] ss:$16 sps:$4 sm:$0xff]  }
  0x41   :  { %1012 = vmatprep.subr.bf16.mxu1 %v6691_v3  ;;  %v6779_v3 = vld [vmem:[%s9957_s1 + $0x328] ss:$16 sps:$4 sm:$0xff]  }
  0x42   :  { %886 = vmatmul.mubr.bf16.vlgmr.msra.gmra.mxu0 %v7889_v4 }
  0x43   :  { %939 = vmatmul.mubr.bf16.vlgmr.msra.gmra.mxu1 %v7894_v5  ;;  %960 = vmatpush1.bf16.msra.mxu0 %v6686_v6  ;;  %v6784_v6 = vld [vmem:[%s9957_s1 + $0x10c] ss:$16 sps:$4 sm:$0xff]  }
  0x44   :  { %1013 = vmatpush1.bf16.msra.mxu1 %v6689_v7  ;;  %961 = vmatprep.subr.bf16.mxu0 %v6694_v8  ;;  %v6787_v7 = vld [vmem:[%s9957_s1 + $0x30c] ss:$16 sps:$4 sm:$0xff]   ;;  %v6782_v8 = vld [vmem:[%s9957_s1 + $0x108] ss:$16 sps:$4 sm:$0xff]  }
  0x45   :  { %1014 = vmatprep.subr.bf16.mxu1 %v6697_v9  ;;  %895 = vmatprep.mubr.bf16.mxu0 %v7911_v10  ;;  %v6785_v9 = vld [vmem:[%s9957_s1 + $0x308] ss:$16 sps:$4 sm:$0xff]  }
  0x46   :  { %948 = vmatprep.mubr.bf16.mxu1 %v7916_v11 }
  0x47   :  { %962 = vmatpush1.bf16.msra.mxu0 %v6692_v12  ;;  %v6790_v12 = vld [vmem:[%s9960_s4 + $0x4e4] ss:$16 sps:$4 sm:$0xff]  }
  0x48   :  { %1015 = vmatpush1.bf16.msra.mxu1 %v6695_v13  ;;  %963 = vmatprep.subr.bf16.mxu0 %v6706_v14  ;;  %v6788_v13 = vld [vmem:[%s9960_s4 + $0x4e0] ss:$16 sps:$4 sm:$0xff]   ;;  %v6793_v14 = vld [vmem:[%s9960_s4 + $0x4c4] ss:$16 sps:$4 sm:$0xff]  }
  0x49   :  { %1016 = vmatprep.subr.bf16.mxu1 %v6709_v15  ;;  %v6791_v15 = vld [vmem:[%s9960_s4 + $0x4c0] ss:$16 sps:$4 sm:$0xff]  }
  0x4a   :  { %896 = vmatmul.mubr.bf16.gmra.mxu0 %v7937_v16 }
  0x4b   :  { %949 = vmatmul.mubr.bf16.gmra.mxu1 %v7942_v17  ;;  %964 = vmatpush1.bf16.msra.mxu0 %v6704_v18  ;;  %v6796_v18 = vld [vmem:[%s9960_s4 + $0x4a4] ss:$16 sps:$4 sm:$0xff]  }
  0x4c   :  { %1017 = vmatpush1.bf16.msra.mxu1 %v6707_v19  ;;  %965 = vmatprep.subr.bf16.mxu0 %v6712_v20  ;;  %v6800_v19 = vld [vmem:[%s9960_s4 + $0x460] ss:$16 sps:$4 sm:$0xff]   ;;  %v6808_v20 = vld [vmem:[%s9960_s4 + $0x424] ss:$16 sps:$4 sm:$0xff]  }
  0x4d   :  { %1018 = vmatprep.subr.bf16.mxu1 %v6715_v21  ;;  %991 = vmatprep.mubr.bf16.mxu0 %v7826_v49  ;;  %v6757_v49 = vld [vmem:[%s9957_s1 + $0x3ac] ss:$16 sps:$4 sm:$0xff]   ;;  %v6806_v21 = vld [vmem:[%s9960_s4 + $0x420] ss:$16 sps:$4 sm:$0xff]  }
  0x4e   :  { %1044 = vmatprep.mubr.bf16.mxu1 %v7834_v51  ;;  %v6755_v51 = vld [vmem:[%s9957_s1 + $0x3a8] ss:$16 sps:$4 sm:$0xff]  }
  0x4f   :  { %966 = vmatpush1.bf16.msra.mxu0 %v6710_v22  ;;  %v6811_v22 = vld [vmem:[%s9960_s4 + $0x404] ss:$16 sps:$4 sm:$0xff]  }
  0x50   :  { %1019 = vmatpush1.bf16.msra.mxu1 %v6713_v23  ;;  %967 = vmatprep.subr.bf16.mxu0 %v6718_v24  ;;  %v6809_v23 = vld [vmem:[%s9960_s4 + $0x400] ss:$16 sps:$4 sm:$0xff]   ;;  %v6814_v24 = vld [vmem:[%s9960_s4 + $0x5e4] ss:$16 sps:$4 sm:$0xff]  }
  0x51   :  { %1020 = vmatprep.subr.bf16.mxu1 %v6721_v25  ;;  %v6812_v25 = vld [vmem:[%s9960_s4 + $0x5e0] ss:$16 sps:$4 sm:$0xff]  }
  0x53   :  { %968 = vmatpush1.bf16.msra.mxu0 %v6716_v26  ;;  %v6838_v26 = vld [vmem:[%s9960_s4 + $0x6e4] ss:$16 sps:$4 sm:$0xff]  }
  0x54   :  { %1021 = vmatpush1.bf16.msra.mxu1 %v6719_v27  ;;  %969 = vmatprep.subr.bf16.mxu0 %v6724_v28  ;;  %v6817_v27 = vld [vmem:[%s9960_s4 + $0x5c4] ss:$16 sps:$4 sm:$0xff]   ;;  %v6836_v28 = vld [vmem:[%s9960_s4 + $0x6e0] ss:$16 sps:$4 sm:$0xff]  }
  0x55   :  { %1022 = vmatprep.subr.bf16.mxu1 %v6727_v29  ;;  %v6815_v29 = vld [vmem:[%s9960_s4 + $0x5c0] ss:$16 sps:$4 sm:$0xff]  }
  0x57   :  { %970 = vmatpush1.bf16.msra.mxu0 %v6722_v30  ;;  %v6842_v30 = vld [vmem:[%s9960_s4 + $0x6c0] ss:$16 sps:$4 sm:$0xff]  }
  0x58   :  { %1023 = vmatpush1.bf16.msra.mxu1 %v6725_v31  ;;  %971 = vmatprep.subr.bf16.mxu0 %v6730_v32  ;;  %v6844_v31 = vld [vmem:[%s9960_s4 + $0x6c4] ss:$16 sps:$4 sm:$0xff]  }
  0x59   :  { %1024 = vmatprep.subr.bf16.mxu1 %v6733_v33  ;;  %v6820_v32 = vld [vmem:[%s9960_s4 + $0x5a4] ss:$16 sps:$4 sm:$0xff]   ;;  %v6818_v33 = vld [vmem:[%s9960_s4 + $0x5a0] ss:$16 sps:$4 sm:$0xff]  }
  0x5b   :  { %972 = vmatpush1.bf16.msra.mxu0 %v6728_v34  ;;  %v6848_v34 = vld [vmem:[%s9960_s4 + $0x6a0] ss:$16 sps:$4 sm:$0xff]  }
  0x5c   :  { %1025 = vmatpush1.bf16.msra.mxu1 %v6731_v35  ;;  %973 = vmatprep.subr.bf16.mxu0 %v6736_v36  ;;  %v6850_v35 = vld [vmem:[%s9960_s4 + $0x6a4] ss:$16 sps:$4 sm:$0xff]  }
  0x5d   :  { %1026 = vmatprep.subr.bf16.mxu1 %v6739_v37  ;;  %v6823_v36 = vld [vmem:[%s9960_s4 + $0x584] ss:$16 sps:$4 sm:$0xff]   ;;  %v6821_v37 = vld [vmem:[%s9960_s4 + $0x580] ss:$16 sps:$4 sm:$0xff]  }
  0x5f   :  { %974 = vmatpush1.bf16.msra.mxu0 %v6734_v38  ;;  %v6854_v38 = vld [vmem:[%s9960_s4 + $0x680] ss:$16 sps:$4 sm:$0xff]  }
  0x60   :  { %1027 = vmatpush1.bf16.msra.mxu1 %v6737_v39  ;;  %975 = vmatprep.subr.bf16.mxu0 %v6742_v40  ;;  %v6856_v39 = vld [vmem:[%s9960_s4 + $0x684] ss:$16 sps:$4 sm:$0xff]  }
  0x61   :  { %1028 = vmatprep.subr.bf16.mxu1 %v6745_v41  ;;  %v6826_v40 = vld [vmem:[%s9960_s4 + $0x564] ss:$16 sps:$4 sm:$0xff]   ;;  %v6824_v41 = vld [vmem:[%s9960_s4 + $0x560] ss:$16 sps:$4 sm:$0xff]  }
  0x63   :  { %976 = vmatpush2.bf16.msra.mxu0 %v6740_v42  ;;  %v6860_v42 = vld [vmem:[%s9960_s4 + $0x660] ss:$16 sps:$4 sm:$0xff]  }
  0x64   :  { %1029 = vmatpush2.bf16.msra.mxu1 %v6743_v43  ;;  %977 = vmatprep.subr.bf16.mxu0 %v6748_v44  ;;  %v6862_v43 = vld [vmem:[%s9960_s4 + $0x664] ss:$16 sps:$4 sm:$0xff]  }
  0x65   :  { %1030 = vmatprep.subr.bf16.mxu1 %v6751_v45  ;;  %v6829_v44 = vld [vmem:[%s9960_s4 + $0x544] ss:$16 sps:$4 sm:$0xff]   ;;  %v6827_v45 = vld [vmem:[%s9960_s4 + $0x540] ss:$16 sps:$4 sm:$0xff]  }
  0x67   :  { %978 = vmatpush2.bf16.msra.mxu0 %v6746_v46  ;;  %v6866_v46 = vld [vmem:[%s9960_s4 + $0x640] ss:$16 sps:$4 sm:$0xff]  }
  0x68   :  { %1031 = vmatpush2.bf16.msra.mxu1 %v6749_v47  ;;  %979 = vmatprep.subr.bf16.mxu0 %v6754_v48  ;;  %v6868_v47 = vld [vmem:[%s9960_s4 + $0x644] ss:$16 sps:$4 sm:$0xff]  }
  0x69   :  { %1032 = vmatprep.subr.bf16.mxu1 %v6757_v49  ;;  %v6832_v48 = vld [vmem:[%s9960_s4 + $0x524] ss:$16 sps:$4 sm:$0xff]   ;;  %v6830_v49 = vld [vmem:[%s9960_s4 + $0x520] ss:$16 sps:$4 sm:$0xff]  }
  0x6b   :  { %980 = vmatpush2.bf16.msra.mxu0 %v6752_v50  ;;  %v6872_v50 = vld [vmem:[%s9960_s4 + $0x620] ss:$16 sps:$4 sm:$0xff]  }
  0x6c   :  { %1033 = vmatpush2.bf16.msra.mxu1 %v6755_v51  ;;  %981 = vmatprep.subr.bf16.mxu0 %v6760_v52  ;;  %v6874_v51 = vld [vmem:[%s9960_s4 + $0x624] ss:$16 sps:$4 sm:$0xff]  }
  0x6d   :  { %1034 = vmatprep.subr.bf16.mxu1 %v6763_v53  ;;  %v6835_v52 = vld [vmem:[%s9960_s4 + $0x504] ss:$16 sps:$4 sm:$0xff]   ;;  %v6833_v53 = vld [vmem:[%s9960_s4 + $0x500] ss:$16 sps:$4 sm:$0xff]  }
  0x6f   :  { %982 = vmatpush2.bf16.msra.mxu0 %v6758_v54  ;;  %v6878_v54 = vld [vmem:[%s9960_s4 + $0x600] ss:$16 sps:$4 sm:$0xff]  }
  0x70   :  { %1035 = vmatpush2.bf16.msra.mxu1 %v6761_v55  ;;  %983 = vmatprep.subr.bf16.mxu0 %v6766_v56  ;;  %v6880_v55 = vld [vmem:[%s9960_s4 + $0x604] ss:$16 sps:$4 sm:$0xff]   ;;  %v6841_v56 = vld [vmem:[%s9960_s4 + $0x4ec] ss:$16 sps:$4 sm:$0xff]  }
  0x71   :  { %1036 = vmatprep.subr.bf16.mxu1 %v6769_v57  ;;  %v6884_v57 = vld [vmem:[%s9960_s4 + $0x7e0] ss:$16 sps:$4 sm:$0xff]  }
  0x73   :  { %984 = vmatpush2.bf16.msra.mxu0 %v6764_v58  ;;  %v6886_v58 = vld [vmem:[%s9960_s4 + $0x7e4] ss:$16 sps:$4 sm:$0xff]  }
  0x74   :  { %1037 = vmatpush2.bf16.msra.mxu1 %v6767_v59  ;;  %985 = vmatprep.subr.bf16.mxu0 %v6772_v60  ;;  %v6892_v59 = vld [vmem:[%s9960_s4 + $0x7c4] ss:$16 sps:$4 sm:$0xff]   ;;  %v6890_v60 = vld [vmem:[%s9960_s4 + $0x7c0] ss:$16 sps:$4 sm:$0xff]  }
  0x75   :  { %1038 = vmatprep.subr.bf16.mxu1 %v6775_v61  ;;  %v6898_v61 = vld [vmem:[%s9960_s4 + $0x7a4] ss:$16 sps:$4 sm:$0xff]  }
  0x77   :  { %986 = vmatpush2.bf16.msra.mxu0 %v6770_v62  ;;  %v6896_v62 = vld [vmem:[%s9960_s4 + $0x7a0] ss:$16 sps:$4 sm:$0xff]  }
  0x78   :  { %1039 = vmatpush2.bf16.msra.mxu1 %v6773_v63  ;;  %987 = vmatprep.subr.bf16.mxu0 %v6778_v0  ;;  %v6904_v63 = vld [vmem:[%s9960_s4 + $0x784] ss:$16 sps:$4 sm:$0xff]   ;;  %v6902_v0 = vld [vmem:[%s9960_s4 + $0x780] ss:$16 sps:$4 sm:$0xff]  }
  0x79   :  { %1040 = vmatprep.subr.bf16.mxu1 %v6781_v1  ;;  %v6910_v1 = vld [vmem:[%s9960_s4 + $0x764] ss:$16 sps:$4 sm:$0xff]  }
  0x7b   :  { %988 = vmatpush2.bf16.msra.mxu0 %v6776_v2  ;;  %v6908_v2 = vld [vmem:[%s9960_s4 + $0x760] ss:$16 sps:$4 sm:$0xff]  }
  0x7c   :  { %1041 = vmatpush2.bf16.msra.mxu1 %v6779_v3  ;;  %989 = vmatprep.subr.bf16.mxu0 %v6784_v6  ;;  %v6916_v3 = vld [vmem:[%s9960_s4 + $0x744] ss:$16 sps:$4 sm:$0xff]   ;;  %v6914_v6 = vld [vmem:[%s9960_s4 + $0x740] ss:$16 sps:$4 sm:$0xff]  }
  0x7d   :  { %1042 = vmatprep.subr.bf16.mxu1 %v6787_v7  ;;  %v6922_v7 = vld [vmem:[%s9960_s4 + $0x724] ss:$16 sps:$4 sm:$0xff]  }
  0x7f   :  { %990 = vmatpush2.bf16.msra.mxu0 %v6782_v8  ;;  %v6920_v8 = vld [vmem:[%s9960_s4 + $0x720] ss:$16 sps:$4 sm:$0xff]  }
  0x80   :  { %1043 = vmatpush2.bf16.msra.mxu1 %v6785_v9  ;;  %2070 = vmatprep.subr.bf16.mxu0 %v6790_v12  ;;  %v6928_v9 = vld [vmem:[%s9960_s4 + $0x704] ss:$16 sps:$4 sm:$0xff]   ;;  %v6926_v12 = vld [vmem:[%s9960_s4 + $0x700] ss:$16 sps:$4 sm:$0xff]  }
  0x81   :  { %2111 = vmatprep.subr.bf16.mxu1 %v6838_v26 }
  0x82   :  { %992 = vmatmul.mubr.bf16.vlgmr.msra.gmra.mxu0 %v7889_v4  ;;  %v6794_v4 = vld [vmem:[%s9960_s4 + $0x4a0] ss:$16 sps:$4 sm:$0xff]  }
  0x83   :  { %1045 = vmatmul.mubr.bf16.vlgmr.msra.gmra.mxu1 %v7894_v5  ;;  %1001 = vmatprep.mubr.bf16.mxu0 %v7911_v10  ;;  %v6799_v5 = vld [vmem:[%s9960_s4 + $0x484] ss:$16 sps:$4 sm:$0xff]   ;;  %v6797_v10 = vld [vmem:[%s9960_s4 + $0x480] ss:$16 sps:$4 sm:$0xff]  }
  0x84   :  { %1054 = vmatprep.mubr.bf16.mxu1 %v7916_v11  ;;  %2071 = vmatpush1.bf16.msra.mxu0 %v6788_v13  ;;  %v6802_v11 = vld [vmem:[%s9960_s4 + $0x464] ss:$16 sps:$4 sm:$0xff]   ;;  %v6934_v13 = vld [vmem:[%s9960_s4 + $0x6ec] ss:$16 sps:$4 sm:$0xff]  }
  0x85   :  { %2072 = vmatprep.subr.bf16.mxu0 %v6793_v14  ;;  %2112 = vmatpush1.bf16.msra.mxu1 %v6836_v28  ;;  %v1067_v14 = vlaneseq  ;;  %v8332_v28 = vld [vmem:[%s9959_s3] sm:$0xf] }
  0x86   :  { %2113 = vmatprep.subr.bf16.mxu1 %v6844_v31 }
  0x88   :  { %2073 = vmatpush1.bf16.msra.mxu0 %v6791_v15 }
  0x89   :  { %2074 = vmatprep.subr.bf16.mxu0 %v6796_v18  ;;  %2114 = vmatpush1.bf16.msra.mxu1 %v6842_v30 }
  0x8a   :  { %1002 = vmatmul.mubr.bf16.gmra.mxu0 %v7937_v16  ;;  %v6805_v16 = vld [vmem:[%s9960_s4 + $0x444] ss:$16 sps:$4 sm:$0xff]   ;;  %2115 = vmatprep.subr.bf16.mxu1 %v6850_v35 }
  0x8b   :  { %1055 = vmatmul.mubr.bf16.gmra.mxu1 %v7942_v17  ;;  %v6803_v17 = vld [vmem:[%s9960_s4 + $0x440] ss:$16 sps:$4 sm:$0xff]  }
  0x8c   :  { %2075 = vmatpush1.bf16.msra.mxu0 %v6794_v4  ;;  %v8314_v4 = vshrl.u32 %v1067_v14, 7  ;;  %v6845_v14 = vld [vmem:[%s9960_s4 + $0x4c8] ss:$16 sps:$4 sm:$0xff]  }
  0x8d   :  { %2076 = vmatprep.subr.bf16.mxu0 %v6799_v5  ;;  %2116 = vmatpush1.bf16.msra.mxu1 %v6848_v34 }
  0x8e   :  { %2117 = vmatprep.subr.bf16.mxu1 %v6856_v39 }
  0x90   :  { %2077 = vmatpush1.bf16.msra.mxu0 %v6797_v10 }
  0x91   :  { %2078 = vmatprep.subr.bf16.mxu0 %v6802_v11  ;;  %2118 = vmatpush1.bf16.msra.mxu1 %v6854_v38  ;;  %v8317_v11 = vsub.s32 0, %v8314_v4 }
  0x92   :  { %2119 = vmatprep.subr.bf16.mxu1 %v6862_v43 }
  0x93   :  { %v1108_v39 = vrot.slane %v8332_v28, %v8317_v11 }
  0x94   :  { %2079 = vmatpush1.bf16.msra.mxu0 %v6800_v19 }
  0x95   :  { %2080 = vmatprep.subr.bf16.mxu0 %v6805_v16  ;;  %2120 = vmatpush1.bf16.msra.mxu1 %v6860_v42 }
  0x96   :  { %2121 = vmatprep.subr.bf16.mxu1 %v6868_v47 }
  0x98   :  { %2081 = vmatpush1.bf16.msra.mxu0 %v6803_v17  ;;  %v8322_v17 = vld [vmem:[%s9958_s2] sm:$0xf] }
  0x99   :  { %2082 = vmatprep.subr.bf16.mxu0 %v6808_v20  ;;  %2122 = vmatpush1.bf16.msra.mxu1 %v6866_v46  ;;  %v8325_v20 = vsub.s32 1, %v8314_v4 }
  0x9a   :  { %2123 = vmatprep.subr.bf16.mxu1 %v6874_v51 }
  0x9b   :  { %v1112_v46 = vrot.slane %v8332_v28, %v8325_v20 }
  0x9c   :  { %2083 = vmatpush1.bf16.msra.mxu0 %v6806_v21 }
  0x9d   :  { %2084 = vmatprep.subr.bf16.mxu0 %v6811_v22  ;;  %2124 = vmatpush1.bf16.msra.mxu1 %v6872_v50 }
  0x9e   :  { %2125 = vmatprep.subr.bf16.mxu1 %v6880_v55 }
  0xa0   :  { %2085 = vmatpush1.bf16.msra.mxu0 %v6809_v23 }
  0xa1   :  { %2086 = vmatprep.subr.bf16.mxu0 %v6814_v24  ;;  %2126 = vmatpush1.bf16.msra.mxu1 %v6878_v54 }
  0xa2   :  { %2127 = vmatprep.subr.bf16.mxu1 %v6886_v58 }
  0xa4   :  { %2087 = vmatpush2.bf16.msra.mxu0 %v6812_v25  ;;  %v1070_v25 = vrot.slane %v8322_v17, %v8317_v11 }
  0xa5   :  { %2088 = vmatprep.subr.bf16.mxu0 %v6817_v27  ;;  %2128 = vmatpush2.bf16.msra.mxu1 %v6884_v57 }
  0xa6   :  { %2129 = vmatprep.subr.bf16.mxu1 %v6892_v59 }
  0xa8   :  { %2089 = vmatpush2.bf16.msra.mxu0 %v6815_v29 }
  0xa9   :  { %2090 = vmatprep.subr.bf16.mxu0 %v6820_v32  ;;  %2130 = vmatpush2.bf16.msra.mxu1 %v6890_v60  ;;  %v1074_v32 = vrot.slane %v8322_v17, %v8325_v20 }
  0xaa   :  { %2131 = vmatprep.subr.bf16.mxu1 %v6898_v61 }
  0xac   :  { %2091 = vmatpush2.bf16.msra.mxu0 %v6818_v33 }
  0xad   :  { %2092 = vmatprep.subr.bf16.mxu0 %v6823_v36  ;;  %2132 = vmatpush2.bf16.msra.mxu1 %v6896_v62 }
  0xae   :  { %2133 = vmatprep.subr.bf16.mxu1 %v6904_v63 }
  0xb0   :  { %2093 = vmatpush2.bf16.msra.mxu0 %v6821_v37 }
  0xb1   :  { %2094 = vmatprep.subr.bf16.mxu0 %v6826_v40  ;;  %2134 = vmatpush2.bf16.msra.mxu1 %v6902_v0 }
  0xb2   :  { %2135 = vmatprep.subr.bf16.mxu1 %v6910_v1 }
  0xb4   :  { %2095 = vmatpush2.bf16.msra.mxu0 %v6824_v41 }
  0xb5   :  { %2096 = vmatprep.subr.bf16.mxu0 %v6829_v44  ;;  %2136 = vmatpush2.bf16.msra.mxu1 %v6908_v2 }
  0xb6   :  { %2137 = vmatprep.subr.bf16.mxu1 %v6916_v3 }
  0xb8   :  { %2097 = vmatpush2.bf16.msra.mxu0 %v6827_v45 }
  0xb9   :  { %2098 = vmatprep.subr.bf16.mxu0 %v6832_v48  ;;  %2138 = vmatpush2.bf16.msra.mxu1 %v6914_v6 }
  0xba   :  { %2139 = vmatprep.subr.bf16.mxu1 %v6922_v7 }
  0xbc   :  { %2099 = vmatpush2.bf16.msra.mxu0 %v6830_v49 }
  0xbd   :  { %2100 = vmatprep.subr.bf16.mxu0 %v6835_v52  ;;  %2140 = vmatpush2.bf16.msra.mxu1 %v6920_v8  ;;  %v6839_v8 = vld [vmem:[%s9960_s4 + $0x4e8] ss:$16 sps:$4 sm:$0xff]  }
  0xbe   :  { %2141 = vmatprep.subr.bf16.mxu1 %v6928_v9  ;;  %v6847_v9 = vld [vmem:[%s9960_s4 + $0x4cc] ss:$16 sps:$4 sm:$0xff]  }
  0xc0   :  { %2101 = vmatpush2.bf16.msra.mxu0 %v6833_v53 }
  0xc1   :  { %2152 = vmatprep.subr.bf16.mxu0 %v6841_v56  ;;  %2142 = vmatpush2.bf16.msra.mxu1 %v6926_v12 }
  0xc2   :  { %2193 = vmatprep.subr.bf16.mxu1 %v6934_v13 }
 0x102   :  { %v887_v15 = vpop.f32.mrf.mxu0 }
 0x103   :  { %v940_v18 = vpop.f32.mrf.mxu1 }
 0x104   :  { %v889_v5 = vpop.f32.mrf.mxu0  ;;  %v941_v24 = vadd.f32 %v940_v18, %v887_v15  ;;  %v6853_v15 = vld [vmem:[%s9960_s4 + $0x4ac] ss:$16 sps:$4 sm:$0xff]   ;;  %v6851_v18 = vld [vmem:[%s9960_s4 + $0x4a8] ss:$16 sps:$4 sm:$0xff]  }
 0x105   :  { %v942_v10 = vpop.f32.mrf.mxu1 }
 0x106   :  { %v891_v19 = vpop.f32.mrf.mxu0  ;;  %v943_v31 = vadd.f32 %v942_v10, %v889_v5  ;;  %v1087_v38 = vmul.f32 %v1070_v25, %v941_v24  ;;  %v6859_v5 = vld [vmem:[%s9960_s4 + $0x48c] ss:$16 sps:$4 sm:$0xff]   ;;  %v6857_v10 = vld [vmem:[%s9960_s4 + $0x488] ss:$16 sps:$4 sm:$0xff]  }
 0x107   :  { %v944_v16 = vpop.f32.mrf.mxu1  ;;  %v6875_v24 = vld [vmem:[%s9960_s4 + $0x428] ss:$16 sps:$4 sm:$0xff]  }
 0x108   :  { %v893_v21 = vpop.f32.mrf.mxu0  ;;  %v945_v23 = vadd.f32 %v944_v16, %v891_v19  ;;  %v1088_v45 = vmul.f32 %v1074_v32, %v943_v31  ;;  %v1125_v53 = vadd.f32 %v1108_v39, %v1087_v38  ;;  %v6865_v19 = vld [vmem:[%s9960_s4 + $0x46c] ss:$16 sps:$4 sm:$0xff]   ;;  %v6863_v16 = vld [vmem:[%s9960_s4 + $0x468] ss:$16 sps:$4 sm:$0xff]   ;;  %v8412_v38 = vsub.s32 2, %v8314_v4 }
 0x109   :  { %v946_v22 = vpop.f32.mrf.mxu1  ;;  %v6893_v31 = vld [vmem:[%s9960_s4 + $0x5c8] ss:$16 sps:$4 sm:$0xff]  }
 0x10a   :  { %v897_v26 = vpop.f32.mrf.mxu0  ;;  %v947_v29 = vadd.f32 %v946_v22, %v893_v21  ;;  %v1091_v35 = vmul.f32 %v1070_v25, %v945_v23  ;;  %v1126_v58 = vadd.f32 %v1112_v46, %v1088_v45  ;;  %v6871_v21 = vld [vmem:[%s9960_s4 + $0x44c] ss:$16 sps:$4 sm:$0xff]   ;;  %v6869_v22 = vld [vmem:[%s9960_s4 + $0x448] ss:$16 sps:$4 sm:$0xff]  }
 0x10b   :  { %v950_v27 = vpop.f32.mrf.mxu1  ;;  %v6877_v23 = vld [vmem:[%s9960_s4 + $0x42c] ss:$16 sps:$4 sm:$0xff]  }
 0x10c   :  { %v951_v30 = vadd.f32 %v950_v27, %v897_v26  ;;  %v899_v33 = vpop.f32.mrf.mxu0  ;;  %v1092_v42 = vmul.f32 %v1074_v32, %v947_v29  ;;  %v1129_v49 = vadd.f32 %v1108_v39, %v1091_v35  ;;  %v6881_v26 = vld [vmem:[%s9960_s4 + $0x408] ss:$16 sps:$4 sm:$0xff]   ;;  %v6889_v27 = vld [vmem:[%s9960_s4 + $0x5ec] ss:$16 sps:$4 sm:$0xff]  }
 0x10d   :  { %v952_v34 = vpop.f32.mrf.mxu1  ;;  %v6887_v29 = vld [vmem:[%s9960_s4 + $0x5e8] ss:$16 sps:$4 sm:$0xff]  }
 0x10e   :  { %v1095_v36 = vmul.f32 %v1070_v25, %v951_v30  ;;  %v953_v37 = vadd.f32 %v952_v34, %v899_v33  ;;  %v901_v40 = vpop.f32.mrf.mxu0  ;;  %v1130_v54 = vadd.f32 %v1112_v46, %v1092_v42  ;;  %v1141_v59 = vmax.f32 %v1125_v53, %v1129_v49  ;;  %v6895_v30 = vld [vmem:[%s9960_s4 + $0x5cc] ss:$16 sps:$4 sm:$0xff]  }
 0x10f   :  { %v954_v41 = vpop.f32.mrf.mxu1 }
 0x110   :  { %v1096_v43 = vmul.f32 %v1074_v32, %v953_v37  ;;  %v955_v44 = vadd.f32 %v954_v41, %v901_v40  ;;  %v903_v47 = vpop.f32.mrf.mxu0  ;;  %v1133_v50 = vadd.f32 %v1108_v39, %v1095_v36  ;;  %v1142_v62 = vmax.f32 %v1126_v58, %v1130_v54  ;;  %v6901_v36 = vld [vmem:[%s9960_s4 + $0x5ac] ss:$16 sps:$4 sm:$0xff]   ;;  %v6899_v37 = vld [vmem:[%s9960_s4 + $0x5a8] ss:$16 sps:$4 sm:$0xff]  }
 0x111   :  { %v956_v48 = vpop.f32.mrf.mxu1  ;;  %v8415_v41 = vsub.s32 3, %v8314_v4 }
 0x112   :  { %v1099_v51 = vmul.f32 %v1070_v25, %v955_v44  ;;  %v957_v52 = vadd.f32 %v956_v48, %v903_v47  ;;  %v1134_v55 = vadd.f32 %v1112_v46, %v1096_v43  ;;  %v6883_v25 = vld [vmem:[%s9960_s4 + $0x40c] ss:$16 sps:$4 sm:$0xff]   ;;  %v1078_v48 = vrot.slane %v8322_v17, %v8412_v38 }
 0x113   :  { %v6907_v44 = vld [vmem:[%s9960_s4 + $0x58c] ss:$16 sps:$4 sm:$0xff]   ;;  %v1082_v53 = vrot.slane %v8322_v17, %v8415_v41 }
 0x114   :  { %v1137_v56 = vadd.f32 %v1108_v39, %v1099_v51  ;;  %v1100_v57 = vmul.f32 %v1074_v32, %v957_v52 }
 0x116   :  { %v1145_v60 = vmax.f32 %v1133_v50, %v1137_v56  ;;  %v1138_v61 = vadd.f32 %v1112_v46, %v1100_v57  ;;  %v6905_v46 = vld [vmem:[%s9960_s4 + $0x588] ss:$16 sps:$4 sm:$0xff]   ;;  %v6913_v56 = vld [vmem:[%s9960_s4 + $0x56c] ss:$16 sps:$4 sm:$0xff]  }
 0x118   :  { %v1149_v63 = vmax.f32 %v1141_v59, %v1145_v60  ;;  %v1146_v0 = vmax.f32 %v1134_v55, %v1138_v61  ;;  %v6911_v59 = vld [vmem:[%s9960_s4 + $0x568] ss:$16 sps:$4 sm:$0xff]   ;;  %v1116_v61 = vrot.slane %v8332_v28, %v8412_v38 }
 0x11a   :  { %v1153_v1 = vmax.f32 %v1149_v63, 0.0  ;;  %v1150_v2 = vmax.f32 %v1142_v62, %v1146_v0 }
 0x11c   :  { %v1154_v3 = vmax.f32 %v1150_v2, 0.0  ;;  %v8340_v6 = vpack.c.bf16 %v1153_v1, %v1153_v1 }
 0x11e   :  { %v8342_v7 = vpack.c.bf16 %v1154_v3, %v1154_v3  ;;  %v1422_v13 = vrot.slane %v8340_v6, 1  ;;  %v1120_v3 = vrot.slane %v8332_v28, %v8415_v41 }
 0x120   :  { %v1423_v12 = vrot.slane %v8342_v7, 1 }
 0x122   :  { %2102 = vmatprep.mubr.bf16.mxu0 %v1423_v12 }
 0x123   :  { %2103 = vmatmul.mubr.bf16.vlgmr.msra.gmra.mxu0 %v1422_v13 }
 0x124   :  { %2153 = vmatpush1.bf16.msra.mxu0 %v6839_v8  ;;  %2184 = vmatprep.mubr.bf16.mxu0 %v1423_v12  ;;  %v6919_v12 = vld [vmem:[%s9960_s4 + $0x54c] ss:$16 sps:$4 sm:$0xff]  }
 0x125   :  { %2154 = vmatprep.subr.bf16.mxu0 %v6847_v9 }
 0x128   :  { %2155 = vmatpush1.bf16.msra.mxu0 %v6845_v14 }
 0x129   :  { %2156 = vmatprep.subr.bf16.mxu0 %v6853_v15 }
 0x12c   :  { %2157 = vmatpush1.bf16.msra.mxu0 %v6851_v18 }
 0x12d   :  { %2158 = vmatprep.subr.bf16.mxu0 %v6859_v5 }
 0x130   :  { %2159 = vmatpush1.bf16.msra.mxu0 %v6857_v10  ;;  %v6917_v10 = vld [vmem:[%s9960_s4 + $0x548] ss:$16 sps:$4 sm:$0xff]  }
 0x131   :  { %2160 = vmatprep.subr.bf16.mxu0 %v6865_v19 }
 0x134   :  { %2161 = vmatpush1.bf16.msra.mxu0 %v6863_v16 }
 0x135   :  { %2162 = vmatprep.subr.bf16.mxu0 %v6871_v21 }
 0x138   :  { %2163 = vmatpush1.bf16.msra.mxu0 %v6869_v22 }
 0x139   :  { %2164 = vmatprep.subr.bf16.mxu0 %v6877_v23 }
 0x13c   :  { %2165 = vmatpush1.bf16.msra.mxu0 %v6875_v24  ;;  %v6925_v24 = vld [vmem:[%s9960_s4 + $0x52c] ss:$16 sps:$4 sm:$0xff]  }
 0x13d   :  { %2166 = vmatprep.subr.bf16.mxu0 %v6883_v25 }
 0x140   :  { %2167 = vmatpush1.bf16.msra.mxu0 %v6881_v26 }
 0x141   :  { %2168 = vmatprep.subr.bf16.mxu0 %v6889_v27 }
 0x142   :  { %v993_v32 = vpop.f32.mrf.mxu0 }
 0x143   :  { %v1046_v33 = vpop.f32.mrf.mxu1 }
 0x144   :  { %2169 = vmatpush2.bf16.msra.mxu0 %v6887_v29  ;;  %v995_v34 = vpop.f32.mrf.mxu0  ;;  %v1047_v47 = vadd.f32 %v1046_v33, %v993_v32 }
 0x145   :  { %v1048_v35 = vpop.f32.mrf.mxu1  ;;  %2170 = vmatprep.subr.bf16.mxu0 %v6895_v30  ;;  %v6923_v30 = vld [vmem:[%s9960_s4 + $0x528] ss:$16 sps:$4 sm:$0xff]  }
 0x146   :  { %v997_v39 = vpop.f32.mrf.mxu0  ;;  %v1049_v52 = vadd.f32 %v1048_v35, %v995_v34  ;;  %v1089_v60 = vmul.f32 %v1078_v48, %v1047_v47  ;;  %v6931_v34 = vld [vmem:[%s9960_s4 + $0x50c] ss:$16 sps:$4 sm:$0xff]  }
 0x147   :  { %v1050_v40 = vpop.f32.mrf.mxu1 }
 0x148   :  { %2171 = vmatpush2.bf16.msra.mxu0 %v6893_v31  ;;  %v999_v42 = vpop.f32.mrf.mxu0  ;;  %v1051_v45 = vadd.f32 %v1050_v40, %v997_v39  ;;  %v1090_v2 = vmul.f32 %v1082_v53, %v1049_v52  ;;  %v1127_v19 = vadd.f32 %v1116_v61, %v1089_v60  ;;  %v6949_v52 = vld [vmem:[%s9960_s4 + $0xa4] ss:$16 sps:$4 sm:$0xff]   ;;  %v6956_v60 = vld [vmem:[%s9960_s4 + $0x668] ss:$16 sps:$4 sm:$0xff]  }
 0x149   :  { %v1052_v43 = vpop.f32.mrf.mxu1  ;;  %2172 = vmatprep.subr.bf16.mxu0 %v6901_v36 }
 0x14a   :  { %v1003_v49 = vpop.f32.mrf.mxu0  ;;  %v1053_v4 = vadd.f32 %v1052_v43, %v999_v42  ;;  %v1093_v57 = vmul.f32 %v1078_v48, %v1051_v45  ;;  %v1128_v23 = vadd.f32 %v1120_v3, %v1090_v2  ;;  %v6937_v42 = vld [vmem:[%s9960_s4 + $0xe4] ss:$16 sps:$4 sm:$0xff]   ;;  %v6935_v45 = vld [vmem:[%s9960_s4 + $0xe0] ss:$16 sps:$4 sm:$0xff]  }
 0x14b   :  { %v1056_v50 = vpop.f32.mrf.mxu1 }
 0x14c   :  { %v1057_v51 = vadd.f32 %v1056_v50, %v1003_v49  ;;  %2173 = vmatpush2.bf16.msra.mxu0 %v6899_v37  ;;  %v1005_v54 = vpop.f32.mrf.mxu0  ;;  %v1094_v17 = vmul.f32 %v1082_v53, %v1053_v4  ;;  %v1131_v14 = vadd.f32 %v1116_v61, %v1093_v57  ;;  %v6929_v37 = vld [vmem:[%s9960_s4 + $0x508] ss:$16 sps:$4 sm:$0xff]   ;;  %v6941_v50 = vld [vmem:[%s9960_s4 + $0xc0] ss:$16 sps:$4 sm:$0xff]   ;;  %v6943_v4 = vld [vmem:[%s9960_s4 + $0xc4] ss:$16 sps:$4 sm:$0xff]  }
 0x14d   :  { %v1058_v55 = vpop.f32.mrf.mxu1  ;;  %2174 = vmatprep.subr.bf16.mxu0 %v6907_v44  ;;  %v6932_v44 = vld [vmem:[%s9960_s4 + $0x6e8] ss:$16 sps:$4 sm:$0xff]   ;;  %v6953_v57 = vld [vmem:[%s9960_s4 + $0x80] ss:$16 sps:$4 sm:$0xff]  }
 0x14e   :  { %v1059_v58 = vadd.f32 %v1058_v55, %v1005_v54  ;;  %v1007_v62 = vpop.f32.mrf.mxu0  ;;  %v1097_v0 = vmul.f32 %v1078_v48, %v1057_v51  ;;  %v1132_v16 = vadd.f32 %v1120_v3, %v1094_v17  ;;  %v1143_v25 = vmax.f32 %v1127_v19, %v1131_v14  ;;  %v6938_v49 = vld [vmem:[%s9960_s4 + $0x6c8] ss:$16 sps:$4 sm:$0xff]   ;;  %v6946_v51 = vld [vmem:[%s9960_s4 + $0x6ac] ss:$16 sps:$4 sm:$0xff]   ;;  %v6955_v55 = vld [vmem:[%s9960_s4 + $0x84] ss:$16 sps:$4 sm:$0xff]  }
 0x14f   :  { %v1060_v63 = vpop.f32.mrf.mxu1  ;;  %v6952_v54 = vld [vmem:[%s9960_s4 + $0x68c] ss:$16 sps:$4 sm:$0xff]   ;;  %v6962_v17 = vld [vmem:[%s9960_s4 + $0x648] ss:$16 sps:$4 sm:$0xff]  }
 0x150   :  { %v1061_v1 = vadd.f32 %v1060_v63, %v1007_v62  ;;  %2175 = vmatpush2.bf16.msra.mxu0 %v6905_v46  ;;  %v1009_v8 = vpop.f32.mrf.mxu0  ;;  %v1098_v15 = vmul.f32 %v1082_v53, %v1059_v58  ;;  %v1135_v21 = vadd.f32 %v1116_v61, %v1097_v0  ;;  %v1144_v31 = vmax.f32 %v1128_v23, %v1132_v16  ;;  %v6958_v58 = vld [vmem:[%s9960_s4 + $0x66c] ss:$16 sps:$4 sm:$0xff]   ;;  %v6967_v63 = vld [vmem:[%s9960_s4 + $0x44] ss:$16 sps:$4 sm:$0xff]   ;;  %v6965_v0 = vld [vmem:[%s9960_s4 + $0x40] ss:$16 sps:$4 sm:$0xff]  }
 0x151   :  { %v1062_v9 = vpop.f32.mrf.mxu1  ;;  %2176 = vmatprep.subr.bf16.mxu0 %v6913_v56  ;;  %v6950_v56 = vld [vmem:[%s9960_s4 + $0x688] ss:$16 sps:$4 sm:$0xff]   ;;  %v6964_v62 = vld [vmem:[%s9960_s4 + $0x64c] ss:$16 sps:$4 sm:$0xff]  }
 0x152   :  { %v1101_v18 = vmul.f32 %v1078_v48, %v1061_v1  ;;  %v1063_v5 = vadd.f32 %v1062_v9, %v1009_v8  ;;  %v1136_v26 = vadd.f32 %v1120_v3, %v1098_v15  ;;  %v6940_v48 = vld [vmem:[%s9960_s4 + $0x6cc] ss:$16 sps:$4 sm:$0xff]  }
 0x154   :  { %v1139_v22 = vadd.f32 %v1116_v61, %v1101_v18  ;;  %v1102_v28 = vmul.f32 %v1082_v53, %v1063_v5  ;;  %2177 = vmatpush2.bf16.msra.mxu0 %v6911_v59  ;;  %v6947_v53 = vld [vmem:[%s9960_s4 + $0xa0] ss:$16 sps:$4 sm:$0xff]   ;;  %v6961_v59 = vld [vmem:[%s9960_s4 + $0x64] ss:$16 sps:$4 sm:$0xff]  }
 0x155   :  { %2178 = vmatprep.subr.bf16.mxu0 %v6919_v12  ;;  %v6959_v61 = vld [vmem:[%s9960_s4 + $0x60] ss:$16 sps:$4 sm:$0xff]  }
 0x156   :  { %v1147_v27 = vmax.f32 %v1135_v21, %v1139_v22  ;;  %v1140_v29 = vadd.f32 %v1120_v3, %v1102_v28 }
 0x158   :  { %v1151_v32 = vmax.f32 %v1143_v25, %v1147_v27  ;;  %v1148_v33 = vmax.f32 %v1136_v26, %v1140_v29  ;;  %2179 = vmatpush2.bf16.msra.mxu0 %v6917_v10 }
 0x159   :  { %2180 = vmatprep.subr.bf16.mxu0 %v6925_v24 }
 0x15a   :  { %v1155_v35 = vmax.f32 %v1151_v32, 0.0  ;;  %v1152_v36 = vmax.f32 %v1144_v31, %v1148_v33 }
 0x15c   :  { %v8455_v39 = vpack.c.bf16 %v1155_v35, %v1155_v35  ;;  %v1156_v40 = vmax.f32 %v1152_v36, 0.0  ;;  %2181 = vmatpush2.bf16.msra.mxu0 %v6923_v30 }
 0x15d   :  { %2182 = vmatprep.subr.bf16.mxu0 %v6931_v34 }
 0x15e   :  { %v8460_v43 = vpack.c.bf16 %v1156_v40, %v1156_v40  ;;  %v1424_v47 = vrot.slane %v8455_v39, 1 }
 0x160   :  { %2183 = vmatpush2.bf16.msra.mxu0 %v6929_v37  ;;  %v1425_v46 = vrot.slane %v8460_v43, 1 }
 0x161   :  { %2874 = vmatprep.subr.bf16.mxu0 %v6937_v42 }
 0x162   :  { %2143 = vmatprep.mubr.bf16.mxu1 %v1425_v46 }
 0x163   :  { %2185 = vmatmul.mubr.bf16.vlgmr.msra.gmra.mxu0 %v1422_v13  ;;  %2144 = vmatmul.mubr.bf16.vlgmr.msra.gmra.mxu1 %v1424_v47  ;;  %v6944_v13 = vld [vmem:[%s9960_s4 + $0x6a8] ss:$16 sps:$4 sm:$0xff]  }
 0x164   :  { %2194 = vmatpush1.bf16.msra.mxu1 %v6932_v44  ;;  %2875 = vmatpush1.bf16.msra.mxu0 %v6935_v45 }
 0x165   :  { %2906 = vmatprep.mubr.bf16.mxu0 %v8342_v7  ;;  %2225 = vmatprep.mubr.bf16.mxu1 %v1425_v46 }
 0x166   :  { %2195 = vmatprep.subr.bf16.mxu1 %v6940_v48  ;;  %2876 = vmatprep.subr.bf16.mxu0 %v6943_v4 }
 0x168   :  { %2196 = vmatpush1.bf16.msra.mxu1 %v6938_v49  ;;  %2877 = vmatpush1.bf16.msra.mxu0 %v6941_v50 }
 0x169   :  { %2197 = vmatprep.subr.bf16.mxu1 %v6946_v51  ;;  %2878 = vmatprep.subr.bf16.mxu0 %v6949_v52 }
 0x16c   :  { %2198 = vmatpush1.bf16.msra.mxu1 %v6944_v13  ;;  %2879 = vmatpush1.bf16.msra.mxu0 %v6947_v53 }
 0x16d   :  { %2199 = vmatprep.subr.bf16.mxu1 %v6952_v54  ;;  %2880 = vmatprep.subr.bf16.mxu0 %v6955_v55 }
 0x170   :  { %2200 = vmatpush1.bf16.msra.mxu1 %v6950_v56  ;;  %2881 = vmatpush1.bf16.msra.mxu0 %v6953_v57 }
 0x171   :  { %2201 = vmatprep.subr.bf16.mxu1 %v6958_v58  ;;  %2882 = vmatprep.subr.bf16.mxu0 %v6961_v59 }
 0x174   :  { %2202 = vmatpush1.bf16.msra.mxu1 %v6956_v60  ;;  %2883 = vmatpush1.bf16.msra.mxu0 %v6959_v61 }
 0x175   :  { %15 = vsyncpa [#allocation3], 0  ;;  %2203 = vmatprep.subr.bf16.mxu1 %v6964_v62  ;;  %2884 = vmatprep.subr.bf16.mxu0 %v6967_v63  ;;  %v6970_v1 = vld [vmem:[%s9960_s4 + $0x62c] ss:$16 sps:$4 sm:$0xff]   ;;  %v6973_v2 = vld [vmem:[%s9960_s4 + $0x24] ss:$16 sps:$4 sm:$0xff]  }
 0x176   :  { %v6968_v3 = vld [vmem:[%s9960_s4 + $0x628] ss:$16 sps:$4 sm:$0xff]   ;;  %v6971_v8 = vld [vmem:[%s9960_s4 + $0x20] ss:$16 sps:$4 sm:$0xff]   ;;  %v6976_v9 = vld [vmem:[%s9960_s4 + $0x60c] ss:$16 sps:$4 sm:$0xff]  }
 0x177   :  { %v6979_v12 = vld [vmem:[%s9960_s4 + $0x4] ss:$16 sps:$4 sm:$0xff]   ;;  %v6974_v14 = vld [vmem:[%s9960_s4 + $0x608] ss:$16 sps:$4 sm:$0xff]   ;;  %v6977_v15 = vld [vmem:[%s9960_s4] ss:$16 sps:$4 sm:$0xff]  }
 0x178   :  { %2204 = vmatpush1.bf16.msra.mxu1 %v6962_v17  ;;  %2885 = vmatpush1.bf16.msra.mxu0 %v6965_v0  ;;  %v6982_v18 = vld [vmem:[%s9960_s4 + $0x7ec] ss:$16 sps:$4 sm:$0xff]   ;;  %v6985_v5 = vld [vmem:[%s9960_s4 + $0x1e4] ss:$16 sps:$4 sm:$0xff]   ;;  %v6980_v10 = vld [vmem:[%s9960_s4 + $0x7e8] ss:$16 sps:$4 sm:$0xff]  }
 0x179   :  { %2205 = vmatprep.subr.bf16.mxu1 %v6970_v1  ;;  %2886 = vmatprep.subr.bf16.mxu0 %v6973_v2  ;;  %v6983_v19 = vld [vmem:[%s9960_s4 + $0x1e0] ss:$16 sps:$4 sm:$0xff]   ;;  %v6988_v16 = vld [vmem:[%s9960_s4 + $0x7cc] ss:$16 sps:$4 sm:$0xff]   ;;  %v6991_v21 = vld [vmem:[%s9960_s4 + $0x1c4] ss:$16 sps:$4 sm:$0xff]  }
 0x17a   :  { %v6986_v22 = vld [vmem:[%s9960_s4 + $0x7c8] ss:$16 sps:$4 sm:$0xff]   ;;  %v6989_v28 = vld [vmem:[%s9960_s4 + $0x1c0] ss:$16 sps:$4 sm:$0xff]   ;;  %v6994_v23 = vld [vmem:[%s9960_s4 + $0x7ac] ss:$16 sps:$4 sm:$0xff]  }
 0x17b   :  { %v6997_v24 = vld [vmem:[%s9960_s4 + $0x1a4] ss:$16 sps:$4 sm:$0xff]   ;;  %v6992_v25 = vld [vmem:[%s9960_s4 + $0x7a8] ss:$16 sps:$4 sm:$0xff]   ;;  %v6995_v26 = vld [vmem:[%s9960_s4 + $0x1a0] ss:$16 sps:$4 sm:$0xff]  }
 0x17c   :  { %2206 = vmatpush1.bf16.msra.mxu1 %v6968_v3  ;;  %2887 = vmatpush1.bf16.msra.mxu0 %v6971_v8  ;;  %v7000_v27 = vld [vmem:[%s9960_s4 + $0x78c] ss:$16 sps:$4 sm:$0xff]   ;;  %v7003_v29 = vld [vmem:[%s9960_s4 + $0x184] ss:$16 sps:$4 sm:$0xff]   ;;  %v6998_v30 = vld [vmem:[%s9960_s4 + $0x788] ss:$16 sps:$4 sm:$0xff]  }
 0x17d   :  { %2207 = vmatprep.subr.bf16.mxu1 %v6976_v9  ;;  %2888 = vmatprep.subr.bf16.mxu0 %v6979_v12  ;;  %v7001_v31 = vld [vmem:[%s9960_s4 + $0x180] ss:$16 sps:$4 sm:$0xff]   ;;  %v7006_v32 = vld [vmem:[%s9960_s4 + $0x76c] ss:$16 sps:$4 sm:$0xff]   ;;  %v7009_v33 = vld [vmem:[%s9960_s4 + $0x164] ss:$16 sps:$4 sm:$0xff]  }
 0x17e   :  { %v7004_v34 = vld [vmem:[%s9960_s4 + $0x768] ss:$16 sps:$4 sm:$0xff]   ;;  %v7007_v35 = vld [vmem:[%s9960_s4 + $0x160] ss:$16 sps:$4 sm:$0xff]   ;;  %v7012_v36 = vld [vmem:[%s9960_s4 + $0x74c] ss:$16 sps:$4 sm:$0xff]  }
 0x17f   :  { %v7015_v37 = vld [vmem:[%s9960_s4 + $0x144] ss:$16 sps:$4 sm:$0xff]   ;;  %v7010_v40 = vld [vmem:[%s9960_s4 + $0x748] ss:$16 sps:$4 sm:$0xff]   ;;  %v7013_v42 = vld [vmem:[%s9960_s4 + $0x140] ss:$16 sps:$4 sm:$0xff]  }
 0x180   :  { %2208 = vmatpush1.bf16.msra.mxu1 %v6974_v14  ;;  %2889 = vmatpush1.bf16.msra.mxu0 %v6977_v15  ;;  %v7018_v44 = vld [vmem:[%s9960_s4 + $0x72c] ss:$16 sps:$4 sm:$0xff]   ;;  %v7021_v45 = vld [vmem:[%s9960_s4 + $0x124] ss:$16 sps:$4 sm:$0xff]   ;;  %v7016_v46 = vld [vmem:[%s9960_s4 + $0x728] ss:$16 sps:$4 sm:$0xff]  }
 0x181   :  { %2209 = vmatprep.subr.bf16.mxu1 %v6982_v18  ;;  %2890 = vmatprep.subr.bf16.mxu0 %v6985_v5  ;;  %v7019_v48 = vld [vmem:[%s9960_s4 + $0x120] ss:$16 sps:$4 sm:$0xff]   ;;  %v7024_v49 = vld [vmem:[%s9960_s4 + $0x70c] ss:$16 sps:$4 sm:$0xff]   ;;  %v7027_v50 = vld [vmem:[%s9960_s4 + $0x104] ss:$16 sps:$4 sm:$0xff]  }
 0x182   :  { %v7022_v4 = vld [vmem:[%s9960_s4 + $0x708] ss:$16 sps:$4 sm:$0xff]   ;;  %v7025_v51 = vld [vmem:[%s9960_s4 + $0x100] ss:$16 sps:$4 sm:$0xff]   ;;  %v7030_v52 = vld [vmem:[%s9960_s4 + $0x2e4] ss:$16 sps:$4 sm:$0xff]  }
 0x183   :  { %v7033_v13 = vld [vmem:[%s9960_s4 + $0xec] ss:$16 sps:$4 sm:$0xff]   ;;  %v7028_v53 = vld [vmem:[%s9960_s4 + $0x2e0] ss:$16 sps:$4 sm:$0xff]   ;;  %v7031_v54 = vld [vmem:[%s9960_s4 + $0xe8] ss:$16 sps:$4 sm:$0xff]  }
 0x184   :  { %2210 = vmatpush2.bf16.msra.mxu1 %v6980_v10  ;;  %2891 = vmatpush2.bf16.msra.mxu0 %v6983_v19  ;;  %v7036_v55 = vld [vmem:[%s9960_s4 + $0x2c4] ss:$16 sps:$4 sm:$0xff]   ;;  %v7039_v56 = vld [vmem:[%s9960_s4 + $0xcc] ss:$16 sps:$4 sm:$0xff]   ;;  %v7034_v57 = vld [vmem:[%s9960_s4 + $0x2c0] ss:$16 sps:$4 sm:$0xff]  }
 0x185   :  { %2211 = vmatprep.subr.bf16.mxu1 %v6988_v16  ;;  %2892 = vmatprep.subr.bf16.mxu0 %v6991_v21  ;;  %v7037_v58 = vld [vmem:[%s9960_s4 + $0xc8] ss:$16 sps:$4 sm:$0xff]   ;;  %v7045_v59 = vld [vmem:[%s9960_s4 + $0xac] ss:$16 sps:$4 sm:$0xff]   ;;  %v7040_v60 = vld [vmem:[%s9960_s4 + $0x2a0] ss:$16 sps:$4 sm:$0xff]  }
 0x186   :  { %v7043_v61 = vld [vmem:[%s9960_s4 + $0xa8] ss:$16 sps:$4 sm:$0xff]   ;;  %v7048_v62 = vld [vmem:[%s9960_s4 + $0x284] ss:$16 sps:$4 sm:$0xff]   ;;  %v7051_v63 = vld [vmem:[%s9960_s4 + $0x8c] ss:$16 sps:$4 sm:$0xff]  }
 0x187   :  { %v7046_v17 = vld [vmem:[%s9960_s4 + $0x280] ss:$16 sps:$4 sm:$0xff]   ;;  %v7049_v0 = vld [vmem:[%s9960_s4 + $0x88] ss:$16 sps:$4 sm:$0xff]   ;;  %v7054_v1 = vld [vmem:[%s9960_s4 + $0x264] ss:$16 sps:$4 sm:$0xff]  }
 0x188   :  { %2212 = vmatpush2.bf16.msra.mxu1 %v6986_v22  ;;  %2893 = vmatpush2.bf16.msra.mxu0 %v6989_v28  ;;  %v7057_v2 = vld [vmem:[%s9960_s4 + $0x6c] ss:$16 sps:$4 sm:$0xff]   ;;  %v7052_v3 = vld [vmem:[%s9960_s4 + $0x260] ss:$16 sps:$4 sm:$0xff]   ;;  %v7055_v8 = vld [vmem:[%s9960_s4 + $0x68] ss:$16 sps:$4 sm:$0xff]  }
 0x189   :  { %2213 = vmatprep.subr.bf16.mxu1 %v6994_v23  ;;  %2894 = vmatprep.subr.bf16.mxu0 %v6997_v24  ;;  %v7060_v9 = vld [vmem:[%s9960_s4 + $0x244] ss:$16 sps:$4 sm:$0xff]   ;;  %v7063_v12 = vld [vmem:[%s9960_s4 + $0x4c] ss:$16 sps:$4 sm:$0xff]   ;;  %v7058_v14 = vld [vmem:[%s9960_s4 + $0x240] ss:$16 sps:$4 sm:$0xff]  }
 0x18a   :  { %v7061_v15 = vld [vmem:[%s9960_s4 + $0x48] ss:$16 sps:$4 sm:$0xff]   ;;  %v7066_v18 = vld [vmem:[%s9960_s4 + $0x224] ss:$16 sps:$4 sm:$0xff]   ;;  %v7069_v5 = vld [vmem:[%s9960_s4 + $0x2c] ss:$16 sps:$4 sm:$0xff]  }
 0x18b   :  { %v7064_v10 = vld [vmem:[%s9960_s4 + $0x220] ss:$16 sps:$4 sm:$0xff]   ;;  %v7067_v19 = vld [vmem:[%s9960_s4 + $0x28] ss:$16 sps:$4 sm:$0xff]   ;;  %v7072_v16 = vld [vmem:[%s9960_s4 + $0x204] ss:$16 sps:$4 sm:$0xff]  }
 0x18c   :  { %2214 = vmatpush2.bf16.msra.mxu1 %v6992_v25  ;;  %2895 = vmatpush2.bf16.msra.mxu0 %v6995_v26  ;;  %v7075_v21 = vld [vmem:[%s9960_s4 + $0xc] ss:$16 sps:$4 sm:$0xff]   ;;  %v7070_v22 = vld [vmem:[%s9960_s4 + $0x200] ss:$16 sps:$4 sm:$0xff]   ;;  %v7073_v28 = vld [vmem:[%s9960_s4 + $0x8] ss:$16 sps:$4 sm:$0xff]  }
 0x18d   :  { %2215 = vmatprep.subr.bf16.mxu1 %v7000_v27  ;;  %2896 = vmatprep.subr.bf16.mxu0 %v7003_v29  ;;  %v7078_v23 = vld [vmem:[%s9960_s4 + $0x3e4] ss:$16 sps:$4 sm:$0xff]   ;;  %v7081_v24 = vld [vmem:[%s9960_s4 + $0x1ec] ss:$16 sps:$4 sm:$0xff]   ;;  %v7076_v25 = vld [vmem:[%s9960_s4 + $0x3e0] ss:$16 sps:$4 sm:$0xff]  }
 0x18e   :  { %v7079_v26 = vld [vmem:[%s9960_s4 + $0x1e8] ss:$16 sps:$4 sm:$0xff]   ;;  %v7084_v27 = vld [vmem:[%s9960_s4 + $0x3c4] ss:$16 sps:$4 sm:$0xff]   ;;  %v7087_v29 = vld [vmem:[%s9960_s4 + $0x1cc] ss:$16 sps:$4 sm:$0xff]  }
 0x18f   :  { %vm7619_vm0 = vmmov 0   ;;  %s7620_s12 = smov [#allocation2]   ;;  %vm5418_vm1 = vcmask 9216  }
 0x190   :  { %2216 = vmatpush2.bf16.msra.mxu1 %v6998_v30  ;;  %2897 = vmatpush2.bf16.msra.mxu0 %v7001_v31  ;;  %v7082_v30 = vld [vmem:[%s9960_s4 + $0x3c0] ss:$16 sps:$4 sm:$0xff]   ;;  %v7085_v31 = vld [vmem:[%s9960_s4 + $0x1c8] ss:$16 sps:$4 sm:$0xff]   ;;  %s5426_s13 = sshll.u32 %s7620_s12, 4  ;;  %s5427_s13 = int_to_ptr.vmem [resolvable:$true] %s5426_s13 }
 0x191   :  { %2217 = vmatprep.subr.bf16.mxu1 %v7006_v32  ;;  %2898 = vmatprep.subr.bf16.mxu0 %v7009_v33  ;;  %v7090_v32 = vld [vmem:[%s9960_s4 + $0x3a4] ss:$16 sps:$4 sm:$0xff]   ;;  %v7093_v33 = vld [vmem:[%s9960_s4 + $0x1ac] ss:$16 sps:$4 sm:$0xff]   ;;  %p7601_p1 = scmp.lt.s32.totalorder %s5427_s13, %s5427_s13 }
 0x194   :  { %2218 = vmatpush2.bf16.msra.mxu1 %v7004_v34  ;;  %2899 = vmatpush2.bf16.msra.mxu0 %v7007_v35  ;;  %v7088_v34 = vld [vmem:[%s9960_s4 + $0x3a0] ss:$16 sps:$4 sm:$0xff]   ;;  %v7091_v35 = vld [vmem:[%s9960_s4 + $0x1a8] ss:$16 sps:$4 sm:$0xff]  }
 0x195   :  { %2219 = vmatprep.subr.bf16.mxu1 %v7012_v36  ;;  %2900 = vmatprep.subr.bf16.mxu0 %v7015_v37  ;;  %v7096_v36 = vld [vmem:[%s9960_s4 + $0x384] ss:$16 sps:$4 sm:$0xff]   ;;  %v7099_v37 = vld [vmem:[%s9960_s4 + $0x18c] ss:$16 sps:$4 sm:$0xff]  }
 0x198   :  { %2220 = vmatpush2.bf16.msra.mxu1 %v7010_v40  ;;  %2901 = vmatpush2.bf16.msra.mxu0 %v7013_v42  ;;  %v7094_v40 = vld [vmem:[%s9960_s4 + $0x380] ss:$16 sps:$4 sm:$0xff]   ;;  %v7097_v42 = vld [vmem:[%s9960_s4 + $0x188] ss:$16 sps:$4 sm:$0xff]  }
 0x199   :  { %2221 = vmatprep.subr.bf16.mxu1 %v7018_v44  ;;  %2902 = vmatprep.subr.bf16.mxu0 %v7021_v45  ;;  %v7102_v44 = vld [vmem:[%s9960_s4 + $0x364] ss:$16 sps:$4 sm:$0xff]   ;;  %v7105_v45 = vld [vmem:[%s9960_s4 + $0x16c] ss:$16 sps:$4 sm:$0xff]  }
 0x19c   :  { %2222 = vmatpush2.bf16.msra.mxu1 %v7016_v46  ;;  %2903 = vmatpush2.bf16.msra.mxu0 %v7019_v48  ;;  %v7100_v46 = vld [vmem:[%s9960_s4 + $0x360] ss:$16 sps:$4 sm:$0xff]   ;;  %v7103_v48 = vld [vmem:[%s9960_s4 + $0x168] ss:$16 sps:$4 sm:$0xff]  }
 0x19d   :  { %2223 = vmatprep.subr.bf16.mxu1 %v7024_v49  ;;  %2904 = vmatprep.subr.bf16.mxu0 %v7027_v50  ;;  %v7108_v49 = vld [vmem:[%s9960_s4 + $0x344] ss:$16 sps:$4 sm:$0xff]   ;;  %v7111_v50 = vld [vmem:[%s9960_s4 + $0x14c] ss:$16 sps:$4 sm:$0xff]  }
 0x1a0   :  { %2224 = vmatpush2.bf16.msra.mxu1 %v7022_v4  ;;  %2905 = vmatpush2.bf16.msra.mxu0 %v7025_v51  ;;  %v7106_v4 = vld [vmem:[%s9960_s4 + $0x340] ss:$16 sps:$4 sm:$0xff]   ;;  %v7109_v51 = vld [vmem:[%s9960_s4 + $0x148] ss:$16 sps:$4 sm:$0xff]  }
 0x1a1   :  { %2915 = vmatprep.subr.bf16.mxu1 %v7030_v52  ;;  %2956 = vmatprep.subr.bf16.mxu0 %v7033_v13  ;;  %v7114_v52 = vld [vmem:[%s9960_s4 + $0x324] ss:$16 sps:$4 sm:$0xff]   ;;  %v7117_v13 = vld [vmem:[%s9960_s4 + $0x12c] ss:$16 sps:$4 sm:$0xff]  }
 0x1a3   :  { %2226 = vmatmul.mubr.bf16.vlgmr.msra.gmra.mxu1 %v1424_v47  ;;  %2907 = vmatmul.mubr.bf16.vlgmr.msra.gmra.mxu0 %v8340_v6  ;;  %v7042_v47 = vld [vmem:[%s9960_s4 + $0x2a4] ss:$16 sps:$4 sm:$0xff]  }
 0x1a4   :  { %2916 = vmatpush1.bf16.msra.mxu1 %v7028_v53  ;;  %2947 = vmatprep.mubr.bf16.mxu1 %v8460_v43  ;;  %v7112_v53 = vld [vmem:[%s9960_s4 + $0x320] ss:$16 sps:$4 sm:$0xff]  }
 0x1a5   :  { %2957 = vmatpush1.bf16.msra.mxu0 %v7031_v54  ;;  %2988 = vmatprep.mubr.bf16.mxu0 %v8342_v7  ;;  %v7115_v54 = vld [vmem:[%s9960_s4 + $0x128] ss:$16 sps:$4 sm:$0xff]  }
 0x1a6   :  { %2917 = vmatprep.subr.bf16.mxu1 %v7036_v55  ;;  %2958 = vmatprep.subr.bf16.mxu0 %v7039_v56  ;;  %v7120_v55 = vld [vmem:[%s9960_s4 + $0x304] ss:$16 sps:$4 sm:$0xff]   ;;  %v7123_v56 = vld [vmem:[%s9960_s4 + $0x10c] ss:$16 sps:$4 sm:$0xff]  }
 0x1a8   :  { %2918 = vmatpush1.bf16.msra.mxu1 %v7034_v57  ;;  %v7118_v57 = vld [vmem:[%s9960_s4 + $0x300] ss:$16 sps:$4 sm:$0xff]  }
 0x1a9   :  { %2959 = vmatpush1.bf16.msra.mxu0 %v7037_v58  ;;  %2919 = vmatprep.subr.bf16.mxu1 %v7042_v47  ;;  %v7121_v58 = vld [vmem:[%s9960_s4 + $0x108] ss:$16 sps:$4 sm:$0xff]   ;;  %v7126_v47 = vld [vmem:[%s9960_s4 + $0x2ec] ss:$16 sps:$4 sm:$0xff]  }
 0x1aa   :  { %2960 = vmatprep.subr.bf16.mxu0 %v7045_v59  ;;  %v7129_v59 = vld [vmem:[%s9960_s4 + $0x8e4] ss:$16 sps:$4 sm:$0xff]  }
 0x1ac   :  { %2920 = vmatpush1.bf16.msra.mxu1 %v7040_v60  ;;  %v7124_v60 = vld [vmem:[%s9960_s4 + $0x2e8] ss:$16 sps:$4 sm:$0xff]  }
 0x1ad   :  { %2961 = vmatpush1.bf16.msra.mxu0 %v7043_v61  ;;  %2921 = vmatprep.subr.bf16.mxu1 %v7048_v62  ;;  %v7127_v61 = vld [vmem:[%s9960_s4 + $0x8e0] ss:$16 sps:$4 sm:$0xff]   ;;  %v7132_v62 = vld [vmem:[%s9960_s4 + $0x2cc] ss:$16 sps:$4 sm:$0xff]  }
 0x1ae   :  { %2962 = vmatprep.subr.bf16.mxu0 %v7051_v63 }
 0x1b0   :  { %2922 = vmatpush1.bf16.msra.mxu1 %v7046_v17  ;;  %v7135_v17 = vld [vmem:[%s9960_s4 + $0x8c4] ss:$16 sps:$4 sm:$0xff]  }
 0x1b1   :  { %2963 = vmatpush1.bf16.msra.mxu0 %v7049_v0  ;;  %2923 = vmatprep.subr.bf16.mxu1 %v7054_v1  ;;  %v3168_v0 = vrot.slane %v8342_v7, 2  ;;  %v7130_v1 = vld [vmem:[%s9960_s4 + $0x2c8] ss:$16 sps:$4 sm:$0xff]  }
 0x1b2   :  { %2964 = vmatprep.subr.bf16.mxu0 %v7057_v2 }
 0x1b4   :  { %2924 = vmatpush1.bf16.msra.mxu1 %v7052_v3  ;;  %v7133_v3 = vld [vmem:[%s9960_s4 + $0x8c0] ss:$16 sps:$4 sm:$0xff]  }
 0x1b5   :  { %2965 = vmatpush1.bf16.msra.mxu0 %v7055_v8  ;;  %2925 = vmatprep.subr.bf16.mxu1 %v7060_v9  ;;  %v7138_v8 = vld [vmem:[%s9960_s4 + $0x2ac] ss:$16 sps:$4 sm:$0xff]   ;;  %v7141_v9 = vld [vmem:[%s9960_s4 + $0x8a4] ss:$16 sps:$4 sm:$0xff]  }
 0x1b6   :  { %2966 = vmatprep.subr.bf16.mxu0 %v7063_v12 }
 0x1b8   :  { %2926 = vmatpush1.bf16.msra.mxu1 %v7058_v14  ;;  %v7136_v14 = vld [vmem:[%s9960_s4 + $0x2a8] ss:$16 sps:$4 sm:$0xff]  }
 0x1b9   :  { %2967 = vmatpush1.bf16.msra.mxu0 %v7061_v15  ;;  %2927 = vmatprep.subr.bf16.mxu1 %v7066_v18  ;;  %v7139_v18 = vld [vmem:[%s9960_s4 + $0x8a0] ss:$16 sps:$4 sm:$0xff]  }
 0x1ba   :  { %2968 = vmatprep.subr.bf16.mxu0 %v7069_v5  ;;  %v7144_v5 = vld [vmem:[%s9960_s4 + $0x28c] ss:$16 sps:$4 sm:$0xff]  }
 0x1bc   :  { %2928 = vmatpush1.bf16.msra.mxu1 %v7064_v10  ;;  %v7147_v10 = vld [vmem:[%s9960_s4 + $0x884] ss:$16 sps:$4 sm:$0xff]  }
 0x1bd   :  { %2969 = vmatpush1.bf16.msra.mxu0 %v7067_v19  ;;  %2929 = vmatprep.subr.bf16.mxu1 %v7072_v16  ;;  %v7142_v19 = vld [vmem:[%s9960_s4 + $0x288] ss:$16 sps:$4 sm:$0xff]   ;;  %v7145_v16 = vld [vmem:[%s9960_s4 + $0x880] ss:$16 sps:$4 sm:$0xff]  }
 0x1be   :  { %2970 = vmatprep.subr.bf16.mxu0 %v7075_v21  ;;  %v7150_v21 = vld [vmem:[%s9960_s4 + $0x26c] ss:$16 sps:$4 sm:$0xff]  }
 0x1c0   :  { %2930 = vmatpush1.bf16.msra.mxu1 %v7070_v22  ;;  %v7153_v22 = vld [vmem:[%s9960_s4 + $0x864] ss:$16 sps:$4 sm:$0xff]  }
 0x1c1   :  { %2971 = vmatpush1.bf16.msra.mxu0 %v7073_v28  ;;  %2931 = vmatprep.subr.bf16.mxu1 %v7078_v23  ;;  %v7148_v28 = vld [vmem:[%s9960_s4 + $0x268] ss:$16 sps:$4 sm:$0xff]   ;;  %v7151_v23 = vld [vmem:[%s9960_s4 + $0x860] ss:$16 sps:$4 sm:$0xff]  }
 0x1c2   :  { %2972 = vmatprep.subr.bf16.mxu0 %v7081_v24  ;;  %v7156_v24 = vld [vmem:[%s9960_s4 + $0x24c] ss:$16 sps:$4 sm:$0xff]  }
 0x1c4   :  { %2932 = vmatpush2.bf16.msra.mxu1 %v7076_v25  ;;  %v7159_v25 = vld [vmem:[%s9960_s4 + $0x844] ss:$16 sps:$4 sm:$0xff]  }
 0x1c5   :  { %2973 = vmatpush2.bf16.msra.mxu0 %v7079_v26  ;;  %2933 = vmatprep.subr.bf16.mxu1 %v7084_v27  ;;  %v7154_v26 = vld [vmem:[%s9960_s4 + $0x248] ss:$16 sps:$4 sm:$0xff]   ;;  %v7157_v27 = vld [vmem:[%s9960_s4 + $0x840] ss:$16 sps:$4 sm:$0xff]  }
 0x1c6   :  { %2974 = vmatprep.subr.bf16.mxu0 %v7087_v29  ;;  %v7162_v29 = vld [vmem:[%s9960_s4 + $0x22c] ss:$16 sps:$4 sm:$0xff]  }
 0x1c8   :  { %2934 = vmatpush2.bf16.msra.mxu1 %v7082_v30  ;;  %v7165_v30 = vld [vmem:[%s9960_s4 + $0x824] ss:$16 sps:$4 sm:$0xff]  }
 0x1c9   :  { %2975 = vmatpush2.bf16.msra.mxu0 %v7085_v31  ;;  %2935 = vmatprep.subr.bf16.mxu1 %v7090_v32  ;;  %v7160_v31 = vld [vmem:[%s9960_s4 + $0x228] ss:$16 sps:$4 sm:$0xff]   ;;  %v7163_v32 = vld [vmem:[%s9960_s4 + $0x820] ss:$16 sps:$4 sm:$0xff]  }
 0x1ca   :  { %2976 = vmatprep.subr.bf16.mxu0 %v7093_v33  ;;  %v7168_v33 = vld [vmem:[%s9960_s4 + $0x20c] ss:$16 sps:$4 sm:$0xff]  }
 0x1cc   :  { %2936 = vmatpush2.bf16.msra.mxu1 %v7088_v34  ;;  %v7171_v34 = vld [vmem:[%s9960_s4 + $0x804] ss:$16 sps:$4 sm:$0xff]  }
 0x1cd   :  { %2977 = vmatpush2.bf16.msra.mxu0 %v7091_v35  ;;  %2937 = vmatprep.subr.bf16.mxu1 %v7096_v36  ;;  %v7166_v35 = vld [vmem:[%s9960_s4 + $0x208] ss:$16 sps:$4 sm:$0xff]   ;;  %v7169_v36 = vld [vmem:[%s9960_s4 + $0x800] ss:$16 sps:$4 sm:$0xff]  }
 0x1ce   :  { %2978 = vmatprep.subr.bf16.mxu0 %v7099_v37  ;;  %v7174_v37 = vld [vmem:[%s9960_s4 + $0x3ec] ss:$16 sps:$4 sm:$0xff]  }
 0x1d0   :  { %2938 = vmatpush2.bf16.msra.mxu1 %v7094_v40  ;;  %v7177_v40 = vld [vmem:[%s9960_s4 + $0x9e4] ss:$16 sps:$4 sm:$0xff]  }
 0x1d1   :  { %2979 = vmatpush2.bf16.msra.mxu0 %v7097_v42  ;;  %2939 = vmatprep.subr.bf16.mxu1 %v7102_v44  ;;  %v7172_v42 = vld [vmem:[%s9960_s4 + $0x3e8] ss:$16 sps:$4 sm:$0xff]   ;;  %v7175_v44 = vld [vmem:[%s9960_s4 + $0x9e0] ss:$16 sps:$4 sm:$0xff]  }
 0x1d2   :  { %2980 = vmatprep.subr.bf16.mxu0 %v7105_v45  ;;  %v7180_v45 = vld [vmem:[%s9960_s4 + $0x3cc] ss:$16 sps:$4 sm:$0xff]  }
 0x1d4   :  { %2940 = vmatpush2.bf16.msra.mxu1 %v7100_v46  ;;  %v7183_v46 = vld [vmem:[%s9960_s4 + $0x9c4] ss:$16 sps:$4 sm:$0xff]  }
 0x1d5   :  { %2981 = vmatpush2.bf16.msra.mxu0 %v7103_v48  ;;  %2941 = vmatprep.subr.bf16.mxu1 %v7108_v49  ;;  %v7178_v48 = vld [vmem:[%s9960_s4 + $0x3c8] ss:$16 sps:$4 sm:$0xff]   ;;  %v7181_v49 = vld [vmem:[%s9960_s4 + $0x9c0] ss:$16 sps:$4 sm:$0xff]  }
 0x1d6   :  { %2982 = vmatprep.subr.bf16.mxu0 %v7111_v50  ;;  %v7186_v50 = vld [vmem:[%s9960_s4 + $0x3ac] ss:$16 sps:$4 sm:$0xff]  }
 0x1d8   :  { %2942 = vmatpush2.bf16.msra.mxu1 %v7106_v4  ;;  %v7189_v4 = vld [vmem:[%s9960_s4 + $0x9a4] ss:$16 sps:$4 sm:$0xff]  }
 0x1d9   :  { %2983 = vmatpush2.bf16.msra.mxu0 %v7109_v51  ;;  %2943 = vmatprep.subr.bf16.mxu1 %v7114_v52  ;;  %v7184_v51 = vld [vmem:[%s9960_s4 + $0x3a8] ss:$16 sps:$4 sm:$0xff]   ;;  %v7187_v52 = vld [vmem:[%s9960_s4 + $0x9a0] ss:$16 sps:$4 sm:$0xff]  }
 0x1da   :  { %2984 = vmatprep.subr.bf16.mxu0 %v7117_v13  ;;  %v7192_v13 = vld [vmem:[%s9960_s4 + $0x38c] ss:$16 sps:$4 sm:$0xff]  }
 0x1dc   :  { %2944 = vmatpush2.bf16.msra.mxu1 %v7112_v53  ;;  %v7195_v53 = vld [vmem:[%s9960_s4 + $0x984] ss:$16 sps:$4 sm:$0xff]  }
 0x1dd   :  { %2985 = vmatpush2.bf16.msra.mxu0 %v7115_v54  ;;  %2945 = vmatprep.subr.bf16.mxu1 %v7120_v55  ;;  %v7190_v54 = vld [vmem:[%s9960_s4 + $0x388] ss:$16 sps:$4 sm:$0xff]   ;;  %v7193_v55 = vld [vmem:[%s9960_s4 + $0x980] ss:$16 sps:$4 sm:$0xff]  }
 0x1de   :  { %2986 = vmatprep.subr.bf16.mxu0 %v7123_v56  ;;  %v7198_v56 = vld [vmem:[%s9960_s4 + $0x36c] ss:$16 sps:$4 sm:$0xff]  }
 0x1e0   :  { %2946 = vmatpush2.bf16.msra.mxu1 %v7118_v57  ;;  %v7201_v57 = vld [vmem:[%s9960_s4 + $0x964] ss:$16 sps:$4 sm:$0xff]  }
 0x1e1   :  { %2987 = vmatpush2.bf16.msra.mxu0 %v7121_v58  ;;  %2997 = vmatprep.subr.bf16.mxu1 %v7126_v47  ;;  %v7196_v58 = vld [vmem:[%s9960_s4 + $0x368] ss:$16 sps:$4 sm:$0xff]   ;;  %v7199_v47 = vld [vmem:[%s9960_s4 + $0x960] ss:$16 sps:$4 sm:$0xff]  }
 0x1e2   :  { %3815 = vmatprep.subr.bf16.mxu0 %v7129_v59  ;;  %v7204_v59 = vld [vmem:[%s9960_s4 + $0x34c] ss:$16 sps:$4 sm:$0xff]  }
 0x1e3   :  { %2948 = vmatmul.mubr.bf16.vlgmr.msra.gmra.mxu1 %v8455_v39  ;;  %v8868_v63 = vpop.f32.mrf.mxu0 }
 0x1e4   :  { %2989 = vmatmul.mubr.bf16.vlgmr.msra.gmra.mxu0 %v8340_v6  ;;  %2998 = vmatpush1.bf16.msra.mxu1 %v7124_v60  ;;  %v7207_v60 = vld [vmem:[%s9960_s4 + $0x944] ss:$16 sps:$4 sm:$0xff]  }
 0x1e5   :  { %3029 = vmatprep.mubr.bf16.mxu1 %v8460_v43  ;;  %3816 = vmatpush1.bf16.msra.mxu0 %v7127_v61  ;;  %v8879_v2 = vpop.f32.mrf.mxu0  ;;  %v7202_v61 = vld [vmem:[%s9960_s4 + $0x348] ss:$16 sps:$4 sm:$0xff]  }
 0x1e6   :  { %3847 = vmatprep.mubr.bf16.mxu0 %v3168_v0  ;;  %2999 = vmatprep.subr.bf16.mxu1 %v7132_v62  ;;  %v7205_v62 = vld [vmem:[%s9960_s4 + $0x940] ss:$16 sps:$4 sm:$0xff]  }
 0x1e7   :  { %3817 = vmatprep.subr.bf16.mxu0 %v7135_v17  ;;  %v2108_v12 = vpop.f32.mrf.mxu0  ;;  %v7210_v17 = vld [vmem:[%s9960_s4 + $0x32c] ss:$16 sps:$4 sm:$0xff]  }
 0x1e8   :  { %3000 = vmatpush1.bf16.msra.mxu1 %v7130_v1  ;;  %v7213_v1 = vld [vmem:[%s9960_s4 + $0x924] ss:$16 sps:$4 sm:$0xff]  }
 0x1e9   :  { %3818 = vmatpush1.bf16.msra.mxu0 %v7133_v3  ;;  %v2109_v15 = vpop.f32.mrf.mxu0  ;;  %3001 = vmatprep.subr.bf16.mxu1 %v7138_v8  ;;  %v7208_v3 = vld [vmem:[%s9960_s4 + $0x328] ss:$16 sps:$4 sm:$0xff]   ;;  %v7211_v8 = vld [vmem:[%s9960_s4 + $0x920] ss:$16 sps:$4 sm:$0xff]   ;;  %v7219_v12 = vld [vmem:[%s9960_s4 + $0x904] ss:$16 sps:$4 sm:$0xff]  }
 0x1ea   :  { %3819 = vmatprep.subr.bf16.mxu0 %v7141_v9  ;;  %v7216_v9 = vld [vmem:[%s9960_s4 + $0x30c] ss:$16 sps:$4 sm:$0xff]   ;;  %v7217_v15 = vld [vmem:[%s9960_s4 + $0x900] ss:$16 sps:$4 sm:$0xff]  }
 0x1ec   :  { %3002 = vmatpush1.bf16.msra.mxu1 %v7136_v14  ;;  %v7214_v14 = vld [vmem:[%s9960_s4 + $0x308] ss:$16 sps:$4 sm:$0xff]  }
 0x1ed   :  { %3820 = vmatpush1.bf16.msra.mxu0 %v7139_v18  ;;  %3003 = vmatprep.subr.bf16.mxu1 %v7144_v5  ;;  %v7222_v18 = vld [vmem:[%s9960_s4 + $0xae4] ss:$16 sps:$4 sm:$0xff]   ;;  %v7225_v5 = vld [vmem:[%s9960_s4 + $0x8ec] ss:$16 sps:$4 sm:$0xff]  }
 0x1ee   :  { %3821 = vmatprep.subr.bf16.mxu0 %v7147_v10  ;;  %v7220_v10 = vld [vmem:[%s9960_s4 + $0xae0] ss:$16 sps:$4 sm:$0xff]  }
 0x1f0   :  { %3004 = vmatpush1.bf16.msra.mxu1 %v7142_v19  ;;  %v7223_v19 = vld [vmem:[%s9960_s4 + $0x8e8] ss:$16 sps:$4 sm:$0xff]  }
 0x1f1   :  { %3822 = vmatpush1.bf16.msra.mxu0 %v7145_v16  ;;  %3005 = vmatprep.subr.bf16.mxu1 %v7150_v21  ;;  %v3167_v16 = vrot.slane %v8340_v6, 2  ;;  %v7228_v21 = vld [vmem:[%s9960_s4 + $0xac4] ss:$16 sps:$4 sm:$0xff]  }
 0x1f2   :  { %3823 = vmatprep.subr.bf16.mxu0 %v7153_v22 }
 0x1f4   :  { %3006 = vmatpush1.bf16.msra.mxu1 %v7148_v28 }
 0x1f5   :  { %3824 = vmatpush1.bf16.msra.mxu0 %v7151_v23  ;;  %3007 = vmatprep.subr.bf16.mxu1 %v7156_v24  ;;  %v3170_v23 = vrot.slane %v8460_v43, 2  ;;  %v7231_v24 = vld [vmem:[%s9960_s4 + $0x8cc] ss:$16 sps:$4 sm:$0xff]  }
 0x1f6   :  { %3825 = vmatprep.subr.bf16.mxu0 %v7159_v25 }
 0x1f8   :  { %3008 = vmatpush1.bf16.msra.mxu1 %v7154_v26  ;;  %v7226_v26 = vld [vmem:[%s9960_s4 + $0xac0] ss:$16 sps:$4 sm:$0xff]  }
 0x1f9   :  { %3826 = vmatpush1.bf16.msra.mxu0 %v7157_v27  ;;  %3009 = vmatprep.subr.bf16.mxu1 %v7162_v29 }
 0x1fa   :  { %3827 = vmatprep.subr.bf16.mxu0 %v7165_v30  ;;  %v7229_v30 = vld [vmem:[%s9960_s4 + $0x8c8] ss:$16 sps:$4 sm:$0xff]  }
 0x1fc   :  { %3010 = vmatpush1.bf16.msra.mxu1 %v7160_v31 }
 0x1fd   :  { %3828 = vmatpush1.bf16.msra.mxu0 %v7163_v32  ;;  %3011 = vmatprep.subr.bf16.mxu1 %v7168_v33  ;;  %v7237_v32 = vld [vmem:[%s9960_s4 + $0x8ac] ss:$16 sps:$4 sm:$0xff]  }
 0x1fe   :  { %3829 = vmatprep.subr.bf16.mxu0 %v7171_v34 }
 0x200   :  { %3012 = vmatpush1.bf16.msra.mxu1 %v7166_v35  ;;  %v7232_v35 = vld [vmem:[%s9960_s4 + $0xaa0] ss:$16 sps:$4 sm:$0xff]  }
 0x201   :  { %3830 = vmatpush1.bf16.msra.mxu0 %v7169_v36  ;;  %3013 = vmatprep.subr.bf16.mxu1 %v7174_v37 }
 0x202   :  { %3831 = vmatprep.subr.bf16.mxu0 %v7177_v40  ;;  %v7243_v40 = vld [vmem:[%s9960_s4 + $0x88c] ss:$16 sps:$4 sm:$0xff]  }
 0x204   :  { %3014 = vmatpush2.bf16.msra.mxu1 %v7172_v42  ;;  %v7238_v42 = vld [vmem:[%s9960_s4 + $0xa80] ss:$16 sps:$4 sm:$0xff]  }
 0x205   :  { %3832 = vmatpush2.bf16.msra.mxu0 %v7175_v44  ;;  %3015 = vmatprep.subr.bf16.mxu1 %v7180_v45  ;;  %v7241_v44 = vld [vmem:[%s9960_s4 + $0x888] ss:$16 sps:$4 sm:$0xff]   ;;  %v7246_v45 = vld [vmem:[%s9960_s4 + $0xa64] ss:$16 sps:$4 sm:$0xff]  }
 0x206   :  { %3833 = vmatprep.subr.bf16.mxu0 %v7183_v46  ;;  %v7249_v46 = vld [vmem:[%s9960_s4 + $0x86c] ss:$16 sps:$4 sm:$0xff]  }
 0x208   :  { %3016 = vmatpush2.bf16.msra.mxu1 %v7178_v48  ;;  %v7244_v48 = vld [vmem:[%s9960_s4 + $0xa60] ss:$16 sps:$4 sm:$0xff]  }
 0x209   :  { %3834 = vmatpush2.bf16.msra.mxu0 %v7181_v49  ;;  %3017 = vmatprep.subr.bf16.mxu1 %v7186_v50  ;;  %v7247_v49 = vld [vmem:[%s9960_s4 + $0x868] ss:$16 sps:$4 sm:$0xff]   ;;  %v7252_v50 = vld [vmem:[%s9960_s4 + $0xa44] ss:$16 sps:$4 sm:$0xff]  }
 0x20a   :  { %3835 = vmatprep.subr.bf16.mxu0 %v7189_v4  ;;  %v7255_v4 = vld [vmem:[%s9960_s4 + $0x84c] ss:$16 sps:$4 sm:$0xff]  }
 0x20c   :  { %3018 = vmatpush2.bf16.msra.mxu1 %v7184_v51  ;;  %v7250_v51 = vld [vmem:[%s9960_s4 + $0xa40] ss:$16 sps:$4 sm:$0xff]  }
 0x20d   :  { %3836 = vmatpush2.bf16.msra.mxu0 %v7187_v52  ;;  %3019 = vmatprep.subr.bf16.mxu1 %v7192_v13  ;;  %v7253_v52 = vld [vmem:[%s9960_s4 + $0x848] ss:$16 sps:$4 sm:$0xff]   ;;  %v7258_v13 = vld [vmem:[%s9960_s4 + $0xa24] ss:$16 sps:$4 sm:$0xff]  }
 0x20e   :  { %3837 = vmatprep.subr.bf16.mxu0 %v7195_v53  ;;  %v7261_v53 = vld [vmem:[%s9960_s4 + $0x82c] ss:$16 sps:$4 sm:$0xff]  }
 0x210   :  { %3020 = vmatpush2.bf16.msra.mxu1 %v7190_v54  ;;  %v7256_v54 = vld [vmem:[%s9960_s4 + $0xa20] ss:$16 sps:$4 sm:$0xff]  }
 0x211   :  { %3838 = vmatpush2.bf16.msra.mxu0 %v7193_v55  ;;  %3021 = vmatprep.subr.bf16.mxu1 %v7198_v56  ;;  %v7259_v55 = vld [vmem:[%s9960_s4 + $0x828] ss:$16 sps:$4 sm:$0xff]   ;;  %v7264_v56 = vld [vmem:[%s9960_s4 + $0xa04] ss:$16 sps:$4 sm:$0xff]  }
 0x212   :  { %3839 = vmatprep.subr.bf16.mxu0 %v7201_v57  ;;  %v7267_v57 = vld [vmem:[%s9960_s4 + $0x80c] ss:$16 sps:$4 sm:$0xff]  }
 0x214   :  { %3022 = vmatpush2.bf16.msra.mxu1 %v7196_v58  ;;  %v7262_v58 = vld [vmem:[%s9960_s4 + $0xa00] ss:$16 sps:$4 sm:$0xff]  }
 0x215   :  { %3840 = vmatpush2.bf16.msra.mxu0 %v7199_v47  ;;  %3023 = vmatprep.subr.bf16.mxu1 %v7204_v59  ;;  %v7265_v47 = vld [vmem:[%s9960_s4 + $0x808] ss:$16 sps:$4 sm:$0xff]   ;;  %v7270_v59 = vld [vmem:[%s9960_s4 + $0xbe4] ss:$16 sps:$4 sm:$0xff]  }
 0x216   :  { %3841 = vmatprep.subr.bf16.mxu0 %v7207_v60  ;;  %v7273_v60 = vld [vmem:[%s9960_s4 + $0x9ec] ss:$16 sps:$4 sm:$0xff]  }
 0x218   :  { %3024 = vmatpush2.bf16.msra.mxu1 %v7202_v61  ;;  %v7268_v61 = vld [vmem:[%s9960_s4 + $0xbe0] ss:$16 sps:$4 sm:$0xff]  }
 0x219   :  { %3842 = vmatpush2.bf16.msra.mxu0 %v7205_v62  ;;  %3025 = vmatprep.subr.bf16.mxu1 %v7210_v17  ;;  %v7271_v62 = vld [vmem:[%s9960_s4 + $0x9e8] ss:$16 sps:$4 sm:$0xff]   ;;  %v7276_v17 = vld [vmem:[%s9960_s4 + $0xbc4] ss:$16 sps:$4 sm:$0xff]  }
 0x21a   :  { %3843 = vmatprep.subr.bf16.mxu0 %v7213_v1  ;;  %v7279_v1 = vld [vmem:[%s9960_s4 + $0x9cc] ss:$16 sps:$4 sm:$0xff]  }
 0x21c   :  { %3026 = vmatpush2.bf16.msra.mxu1 %v7208_v3  ;;  %v7274_v3 = vld [vmem:[%s9960_s4 + $0xbc0] ss:$16 sps:$4 sm:$0xff]  }
 0x21d   :  { %3844 = vmatpush2.bf16.msra.mxu0 %v7211_v8  ;;  %3027 = vmatprep.subr.bf16.mxu1 %v7216_v9  ;;  %v7277_v8 = vld [vmem:[%s9960_s4 + $0x9c8] ss:$16 sps:$4 sm:$0xff]   ;;  %v7282_v9 = vld [vmem:[%s9960_s4 + $0xba4] ss:$16 sps:$4 sm:$0xff]  }
 0x21e   :  { %3845 = vmatprep.subr.bf16.mxu0 %v7219_v12  ;;  %v7285_v12 = vld [vmem:[%s9960_s4 + $0x9ac] ss:$16 sps:$4 sm:$0xff]  }
 0x220   :  { %3028 = vmatpush2.bf16.msra.mxu1 %v7214_v14  ;;  %v7280_v14 = vld [vmem:[%s9960_s4 + $0xba0] ss:$16 sps:$4 sm:$0xff]  }
 0x221   :  { %3846 = vmatpush2.bf16.msra.mxu0 %v7217_v15  ;;  %3856 = vmatprep.subr.bf16.mxu1 %v7222_v18  ;;  %v7283_v15 = vld [vmem:[%s9960_s4 + $0x9a8] ss:$16 sps:$4 sm:$0xff]   ;;  %v7288_v18 = vld [vmem:[%s9960_s4 + $0xb84] ss:$16 sps:$4 sm:$0xff]  }
 0x222   :  { %3897 = vmatprep.subr.bf16.mxu0 %v7225_v5  ;;  %v7291_v5 = vld [vmem:[%s9960_s4 + $0x98c] ss:$16 sps:$4 sm:$0xff]  }
 0x223   :  { %v9070_v22 = vpop.f32.mrf.mxu0  ;;  %3030 = vmatmul.mubr.bf16.vlgmr.msra.gmra.mxu1 %v8455_v39  ;;  %v2145_v28 = vpop.f32.mrf.mxu1 }
 0x224   :  { %3848 = vmatmul.mubr.bf16.vlgmr.msra.gmra.mxu0 %v3167_v16  ;;  %v9080_v25 = vadd.f32 %v2145_v28, %v8868_v63  ;;  %3857 = vmatpush1.bf16.msra.mxu1 %v7220_v10  ;;  %v7234_v63 = vld [vmem:[%s9960_s4 + $0xaa4] ss:$16 sps:$4 sm:$0xff]   ;;  %v7286_v10 = vld [vmem:[%s9960_s4 + $0xb80] ss:$16 sps:$4 sm:$0xff]   ;;  %v7297_v28 = vld [vmem:[%s9960_s4 + $0x96c] ss:$16 sps:$4 sm:$0xff]  }
 0x225   :  { %3888 = vmatprep.mubr.bf16.mxu1 %v3170_v23  ;;  %3898 = vmatpush1.bf16.msra.mxu0 %v7223_v19  ;;  %v9087_v27 = vpop.f32.mrf.mxu0  ;;  %v2147_v29 = vpop.f32.mrf.mxu1  ;;  %v7289_v19 = vld [vmem:[%s9960_s4 + $0x988] ss:$16 sps:$4 sm:$0xff]  }
 0x226   :  { %3929 = vmatprep.mubr.bf16.mxu0 %v3168_v0  ;;  %v9098_v31 = vadd.f32 %v2147_v29, %v8879_v2  ;;  %3858 = vmatprep.subr.bf16.mxu1 %v7228_v21  ;;  %v7235_v0 = vld [vmem:[%s9960_s4 + $0x8a8] ss:$16 sps:$4 sm:$0xff]   ;;  %v7240_v2 = vld [vmem:[%s9960_s4 + $0xa84] ss:$16 sps:$4 sm:$0xff]  }
 0x227   :  { %v2190_v33 = vpop.f32.mrf.mxu0  ;;  %3899 = vmatprep.subr.bf16.mxu0 %v7231_v24  ;;  %v2149_v34 = vpop.f32.mrf.mxu1  ;;  %v7294_v21 = vld [vmem:[%s9960_s4 + $0xb64] ss:$16 sps:$4 sm:$0xff]   ;;  %v7292_v24 = vld [vmem:[%s9960_s4 + $0xb60] ss:$16 sps:$4 sm:$0xff]  }
 0x228   :  { %3859 = vmatpush1.bf16.msra.mxu1 %v7226_v26  ;;  %v7295_v26 = vld [vmem:[%s9960_s4 + $0x968] ss:$16 sps:$4 sm:$0xff]   ;;  %v7300_v29 = vld [vmem:[%s9960_s4 + $0xb44] ss:$16 sps:$4 sm:$0xff]   ;;  %v7309_v34 = vld [vmem:[%s9960_s4 + $0x92c] ss:$16 sps:$4 sm:$0xff]  }
 0x229   :  { %3900 = vmatpush1.bf16.msra.mxu0 %v7229_v30  ;;  %v2191_v36 = vpop.f32.mrf.mxu0  ;;  %v2150_v37 = vpop.f32.mrf.mxu1  ;;  %3860 = vmatprep.subr.bf16.mxu1 %v7234_v63  ;;  %v7303_v30 = vld [vmem:[%s9960_s4 + $0x94c] ss:$16 sps:$4 sm:$0xff]   ;;  %v7298_v63 = vld [vmem:[%s9960_s4 + $0xb40] ss:$16 sps:$4 sm:$0xff]   ;;  %v7306_v33 = vld [vmem:[%s9960_s4 + $0xb24] ss:$16 sps:$4 sm:$0xff]  }
 0x22a   :  { %3901 = vmatprep.subr.bf16.mxu0 %v7237_v32  ;;  %v7301_v32 = vld [vmem:[%s9960_s4 + $0x948] ss:$16 sps:$4 sm:$0xff]   ;;  %v7312_v37 = vld [vmem:[%s9960_s4 + $0xb04] ss:$16 sps:$4 sm:$0xff]  }
 0x22b   :  { %v7307_v36 = vld [vmem:[%s9960_s4 + $0x928] ss:$16 sps:$4 sm:$0xff]  }
 0x22c   :  { %3861 = vmatpush1.bf16.msra.mxu1 %v7232_v35  ;;  %v7304_v35 = vld [vmem:[%s9960_s4 + $0xb20] ss:$16 sps:$4 sm:$0xff]  }
 0x22d   :  { %3902 = vmatpush1.bf16.msra.mxu0 %v7235_v0  ;;  %3862 = vmatprep.subr.bf16.mxu1 %v7240_v2  ;;  %v7315_v0 = vld [vmem:[%s9960_s4 + $0x90c] ss:$16 sps:$4 sm:$0xff]   ;;  %v7310_v2 = vld [vmem:[%s9960_s4 + $0xb00] ss:$16 sps:$4 sm:$0xff]  }
 0x22e   :  { %3903 = vmatprep.subr.bf16.mxu0 %v7243_v40  ;;  %v7313_v40 = vld [vmem:[%s9960_s4 + $0x908] ss:$16 sps:$4 sm:$0xff]  }
 0x230   :  { %3863 = vmatpush1.bf16.msra.mxu1 %v7238_v42  ;;  %v7318_v42 = vld [vmem:[%s9960_s4 + $0xaec] ss:$16 sps:$4 sm:$0xff]  }
 0x231   :  { %3904 = vmatpush1.bf16.msra.mxu0 %v7241_v44  ;;  %3864 = vmatprep.subr.bf16.mxu1 %v7246_v45  ;;  %v7321_v44 = vld [vmem:[%s9960_s4 + $0xce4] ss:$16 sps:$4 sm:$0xff]   ;;  %v7316_v45 = vld [vmem:[%s9960_s4 + $0xae8] ss:$16 sps:$4 sm:$0xff]  }
 0x232   :  { %3905 = vmatprep.subr.bf16.mxu0 %v7249_v46  ;;  %v3169_v46 = vrot.slane %v8455_v39, 2 }
 0x234   :  { %3865 = vmatpush1.bf16.msra.mxu1 %v7244_v48  ;;  %v7319_v48 = vld [vmem:[%s9960_s4 + $0xce0] ss:$16 sps:$4 sm:$0xff]  }
 0x235   :  { %3906 = vmatpush1.bf16.msra.mxu0 %v7247_v49  ;;  %3866 = vmatprep.subr.bf16.mxu1 %v7252_v50  ;;  %v7324_v49 = vld [vmem:[%s9960_s4 + $0xacc] ss:$16 sps:$4 sm:$0xff]  }
 0x236   :  { %3907 = vmatprep.subr.bf16.mxu0 %v7255_v4 }
 0x238   :  { %3867 = vmatpush1.bf16.msra.mxu1 %v7250_v51  ;;  %v7327_v51 = vld [vmem:[%s9960_s4 + $0xcc4] ss:$16 sps:$4 sm:$0xff]  }
 0x239   :  { %3908 = vmatpush1.bf16.msra.mxu0 %v7253_v52  ;;  %3868 = vmatprep.subr.bf16.mxu1 %v7258_v13 }
 0x23a   :  { %3909 = vmatprep.subr.bf16.mxu0 %v7261_v53  ;;  %v4113_v53 = vrot.slane %v8342_v7, 3  ;;  %v7424_v7 = vld [vmem:[%s9960_s4 + $0xea0] ss:$16 sps:$4 sm:$0xff]  }
 0x23c   :  { %3869 = vmatpush1.bf16.msra.mxu1 %v7256_v54  ;;  %v7322_v54 = vld [vmem:[%s9960_s4 + $0xac8] ss:$16 sps:$4 sm:$0xff]  }
 0x23d   :  { %3910 = vmatpush1.bf16.msra.mxu0 %v7259_v55  ;;  %3870 = vmatprep.subr.bf16.mxu1 %v7264_v56 }
 0x23e   :  { %3911 = vmatprep.subr.bf16.mxu0 %v7267_v57 }
 0x240   :  { %3871 = vmatpush1.bf16.msra.mxu1 %v7262_v58 }
 0x241   :  { %3912 = vmatpush1.bf16.msra.mxu0 %v7265_v47  ;;  %3872 = vmatprep.subr.bf16.mxu1 %v7270_v59  ;;  %v7328_v59 = vld [vmem:[%s9960_s4 + $0xaa8] ss:$16 sps:$4 sm:$0xff]  }
 0x242   :  { %3913 = vmatprep.subr.bf16.mxu0 %v7273_v60 }
 0x244   :  { %3873 = vmatpush2.bf16.msra.mxu1 %v7268_v61  ;;  %v7336_v61 = vld [vmem:[%s9960_s4 + $0xa8c] ss:$16 sps:$4 sm:$0xff]  }
 0x245   :  { %3914 = vmatpush2.bf16.msra.mxu0 %v7271_v62  ;;  %3874 = vmatprep.subr.bf16.mxu1 %v7276_v17  ;;  %v7339_v62 = vld [vmem:[%s9960_s4 + $0xc84] ss:$16 sps:$4 sm:$0xff]   ;;  %v7334_v17 = vld [vmem:[%s9960_s4 + $0xa88] ss:$16 sps:$4 sm:$0xff]  }
 0x246   :  { %3915 = vmatprep.subr.bf16.mxu0 %v7279_v1  ;;  %v7337_v1 = vld [vmem:[%s9960_s4 + $0xc80] ss:$16 sps:$4 sm:$0xff]  }
 0x248   :  { %3875 = vmatpush2.bf16.msra.mxu1 %v7274_v3  ;;  %v7342_v3 = vld [vmem:[%s9960_s4 + $0xa6c] ss:$16 sps:$4 sm:$0xff]  }
 0x249   :  { %3916 = vmatpush2.bf16.msra.mxu0 %v7277_v8  ;;  %3876 = vmatprep.subr.bf16.mxu1 %v7282_v9  ;;  %v7345_v8 = vld [vmem:[%s9960_s4 + $0xc64] ss:$16 sps:$4 sm:$0xff]   ;;  %v7340_v9 = vld [vmem:[%s9960_s4 + $0xa68] ss:$16 sps:$4 sm:$0xff]  }
 0x24a   :  { %3917 = vmatprep.subr.bf16.mxu0 %v7285_v12  ;;  %v7343_v12 = vld [vmem:[%s9960_s4 + $0xc60] ss:$16 sps:$4 sm:$0xff]  }
 0x24c   :  { %3877 = vmatpush2.bf16.msra.mxu1 %v7280_v14  ;;  %v7348_v14 = vld [vmem:[%s9960_s4 + $0xa4c] ss:$16 sps:$4 sm:$0xff]  }
 0x24d   :  { %3918 = vmatpush2.bf16.msra.mxu0 %v7283_v15  ;;  %3878 = vmatprep.subr.bf16.mxu1 %v7288_v18  ;;  %v7351_v15 = vld [vmem:[%s9960_s4 + $0xc44] ss:$16 sps:$4 sm:$0xff]   ;;  %v7346_v18 = vld [vmem:[%s9960_s4 + $0xa48] ss:$16 sps:$4 sm:$0xff]  }
 0x24e   :  { %3919 = vmatprep.subr.bf16.mxu0 %v7291_v5  ;;  %v7349_v5 = vld [vmem:[%s9960_s4 + $0xc40] ss:$16 sps:$4 sm:$0xff]  }
 0x250   :  { %3879 = vmatpush2.bf16.msra.mxu1 %v7286_v10  ;;  %v7354_v10 = vld [vmem:[%s9960_s4 + $0xa2c] ss:$16 sps:$4 sm:$0xff]  }
 0x251   :  { %3920 = vmatpush2.bf16.msra.mxu0 %v7289_v19  ;;  %3880 = vmatprep.subr.bf16.mxu1 %v7294_v21  ;;  %v7357_v19 = vld [vmem:[%s9960_s4 + $0xc24] ss:$16 sps:$4 sm:$0xff]   ;;  %v7352_v21 = vld [vmem:[%s9960_s4 + $0xa28] ss:$16 sps:$4 sm:$0xff]  }
 0x252   :  { %3921 = vmatprep.subr.bf16.mxu0 %v7297_v28  ;;  %v7355_v28 = vld [vmem:[%s9960_s4 + $0xc20] ss:$16 sps:$4 sm:$0xff]  }
 0x254   :  { %3881 = vmatpush2.bf16.msra.mxu1 %v7292_v24  ;;  %v7360_v24 = vld [vmem:[%s9960_s4 + $0xa0c] ss:$16 sps:$4 sm:$0xff]  }
 0x255   :  { %3922 = vmatpush2.bf16.msra.mxu0 %v7295_v26  ;;  %3882 = vmatprep.subr.bf16.mxu1 %v7300_v29  ;;  %v7363_v26 = vld [vmem:[%s9960_s4 + $0xc04] ss:$16 sps:$4 sm:$0xff]   ;;  %v7358_v29 = vld [vmem:[%s9960_s4 + $0xa08] ss:$16 sps:$4 sm:$0xff]  }
 0x256   :  { %3923 = vmatprep.subr.bf16.mxu0 %v7303_v30  ;;  %v7361_v30 = vld [vmem:[%s9960_s4 + $0xc00] ss:$16 sps:$4 sm:$0xff]  }
 0x258   :  { %3883 = vmatpush2.bf16.msra.mxu1 %v7298_v63  ;;  %v7366_v63 = vld [vmem:[%s9960_s4 + $0xbec] ss:$16 sps:$4 sm:$0xff]  }
 0x259   :  { %3924 = vmatpush2.bf16.msra.mxu0 %v7301_v32  ;;  %3884 = vmatprep.subr.bf16.mxu1 %v7306_v33  ;;  %v7369_v32 = vld [vmem:[%s9960_s4 + $0xde4] ss:$16 sps:$4 sm:$0xff]   ;;  %v7364_v33 = vld [vmem:[%s9960_s4 + $0xbe8] ss:$16 sps:$4 sm:$0xff]  }
 0x25a   :  { %3925 = vmatprep.subr.bf16.mxu0 %v7309_v34  ;;  %v7367_v34 = vld [vmem:[%s9960_s4 + $0xde0] ss:$16 sps:$4 sm:$0xff]  }
 0x25c   :  { %3885 = vmatpush2.bf16.msra.mxu1 %v7304_v35  ;;  %v7372_v35 = vld [vmem:[%s9960_s4 + $0xbcc] ss:$16 sps:$4 sm:$0xff]  }
 0x25d   :  { %3926 = vmatpush2.bf16.msra.mxu0 %v7307_v36  ;;  %3886 = vmatprep.subr.bf16.mxu1 %v7312_v37  ;;  %v7375_v36 = vld [vmem:[%s9960_s4 + $0xdc4] ss:$16 sps:$4 sm:$0xff]   ;;  %v7370_v37 = vld [vmem:[%s9960_s4 + $0xbc8] ss:$16 sps:$4 sm:$0xff]  }
 0x25e   :  { %3927 = vmatprep.subr.bf16.mxu0 %v7315_v0  ;;  %v7373_v0 = vld [vmem:[%s9960_s4 + $0xdc0] ss:$16 sps:$4 sm:$0xff]  }
 0x260   :  { %3887 = vmatpush2.bf16.msra.mxu1 %v7310_v2  ;;  %v7378_v2 = vld [vmem:[%s9960_s4 + $0xbac] ss:$16 sps:$4 sm:$0xff]  }
 0x261   :  { %3928 = vmatpush2.bf16.msra.mxu0 %v7313_v40  ;;  %3938 = vmatprep.subr.bf16.mxu1 %v7318_v42  ;;  %v7381_v40 = vld [vmem:[%s9960_s4 + $0xda4] ss:$16 sps:$4 sm:$0xff]   ;;  %v7376_v42 = vld [vmem:[%s9960_s4 + $0xba8] ss:$16 sps:$4 sm:$0xff]  }
 0x262   :  { %4760 = vmatprep.subr.bf16.mxu0 %v7321_v44  ;;  %v7379_v44 = vld [vmem:[%s9960_s4 + $0xda0] ss:$16 sps:$4 sm:$0xff]  }
 0x263   :  { %v2227_v50 = vpop.f32.mrf.mxu1  ;;  %v2908_v4 = vpop.f32.mrf.mxu0  ;;  %3889 = vmatmul.mubr.bf16.vlgmr.msra.gmra.mxu1 %v3169_v46 }
 0x264   :  { %v9287_v52 = vadd.f32 %v2227_v50, %v9070_v22  ;;  %v9290_v13 = vadd.f32 %v2908_v4, %v9080_v25  ;;  %3930 = vmatmul.mubr.bf16.vlgmr.msra.gmra.mxu0 %v3167_v16  ;;  %3939 = vmatpush1.bf16.msra.mxu1 %v7316_v45  ;;  %v7325_v25 = vld [vmem:[%s9960_s4 + $0xcc0] ss:$16 sps:$4 sm:$0xff]   ;;  %v7330_v16 = vld [vmem:[%s9960_s4 + $0xaac] ss:$16 sps:$4 sm:$0xff]  }
 0x265   :  { %3970 = vmatprep.mubr.bf16.mxu1 %v3170_v23  ;;  %4761 = vmatpush1.bf16.msra.mxu0 %v7319_v48  ;;  %v2229_v55 = vpop.f32.mrf.mxu1  ;;  %v2910_v22 = vpop.f32.mrf.mxu0  ;;  %v7333_v23 = vld [vmem:[%s9960_s4 + $0xca4] ss:$16 sps:$4 sm:$0xff]   ;;  %v7384_v45 = vld [vmem:[%s9960_s4 + $0xb8c] ss:$16 sps:$4 sm:$0xff]   ;;  %v7385_v50 = vld [vmem:[%s9960_s4 + $0xd80] ss:$16 sps:$4 sm:$0xff]  }
 0x266   :  { %4792 = vmatprep.mubr.bf16.mxu0 %v4113_v53  ;;  %v9309_v56 = vadd.f32 %v2229_v55, %v9087_v27  ;;  %v9312_v57 = vadd.f32 %v2910_v22, %v9098_v31  ;;  %3940 = vmatprep.subr.bf16.mxu1 %v7324_v49  ;;  %v7331_v31 = vld [vmem:[%s9960_s4 + $0xca0] ss:$16 sps:$4 sm:$0xff]   ;;  %v7387_v48 = vld [vmem:[%s9960_s4 + $0xd84] ss:$16 sps:$4 sm:$0xff]   ;;  %v7382_v49 = vld [vmem:[%s9960_s4 + $0xb88] ss:$16 sps:$4 sm:$0xff]  }
 0x267   :  { %v2231_v58 = vpop.f32.mrf.mxu1  ;;  %v2912_v47 = vpop.f32.mrf.mxu0  ;;  %4762 = vmatprep.subr.bf16.mxu0 %v7327_v51  ;;  %v7390_v4 = vld [vmem:[%s9960_s4 + $0xb6c] ss:$16 sps:$4 sm:$0xff]   ;;  %v7393_v51 = vld [vmem:[%s9960_s4 + $0xd64] ss:$16 sps:$4 sm:$0xff]   ;;  %v7391_v55 = vld [vmem:[%s9960_s4 + $0xd60] ss:$16 sps:$4 sm:$0xff]  }
 0x268   :  { %3941 = vmatpush1.bf16.msra.mxu1 %v7322_v54  ;;  %v7388_v54 = vld [vmem:[%s9960_s4 + $0xb68] ss:$16 sps:$4 sm:$0xff]   ;;  %v7396_v22 = vld [vmem:[%s9960_s4 + $0xb4c] ss:$16 sps:$4 sm:$0xff]   ;;  %v7405_v47 = vld [vmem:[%s9960_s4 + $0xd24] ss:$16 sps:$4 sm:$0xff]  }
 0x269   :  { %4763 = vmatpush1.bf16.msra.mxu0 %v7325_v25  ;;  %v2232_v60 = vpop.f32.mrf.mxu1  ;;  %v2913_v27 = vpop.f32.mrf.mxu0  ;;  %3942 = vmatprep.subr.bf16.mxu1 %v7330_v16  ;;  %v7399_v25 = vld [vmem:[%s9960_s4 + $0xd44] ss:$16 sps:$4 sm:$0xff]   ;;  %v7394_v16 = vld [vmem:[%s9960_s4 + $0xb48] ss:$16 sps:$4 sm:$0xff]   ;;  %v7402_v58 = vld [vmem:[%s9960_s4 + $0xb2c] ss:$16 sps:$4 sm:$0xff]  }
 0x26a   :  { %4764 = vmatprep.subr.bf16.mxu0 %v7333_v23  ;;  %v7397_v23 = vld [vmem:[%s9960_s4 + $0xd40] ss:$16 sps:$4 sm:$0xff]   ;;  %v7408_v27 = vld [vmem:[%s9960_s4 + $0xb0c] ss:$16 sps:$4 sm:$0xff]  }
 0x26b   :  { %v7403_v60 = vld [vmem:[%s9960_s4 + $0xd20] ss:$16 sps:$4 sm:$0xff]  }
 0x26c   :  { %3943 = vmatpush1.bf16.msra.mxu1 %v7328_v59  ;;  %v7400_v59 = vld [vmem:[%s9960_s4 + $0xb28] ss:$16 sps:$4 sm:$0xff]  }
 0x26d   :  { %4765 = vmatpush1.bf16.msra.mxu0 %v7331_v31  ;;  %3944 = vmatprep.subr.bf16.mxu1 %v7336_v61  ;;  %v7411_v31 = vld [vmem:[%s9960_s4 + $0xd04] ss:$16 sps:$4 sm:$0xff]   ;;  %v7406_v61 = vld [vmem:[%s9960_s4 + $0xb08] ss:$16 sps:$4 sm:$0xff]  }
 0x26e   :  { %4766 = vmatprep.subr.bf16.mxu0 %v7339_v62  ;;  %v7409_v62 = vld [vmem:[%s9960_s4 + $0xd00] ss:$16 sps:$4 sm:$0xff]  }
 0x270   :  { %3945 = vmatpush1.bf16.msra.mxu1 %v7334_v17  ;;  %v7414_v17 = vld [vmem:[%s9960_s4 + $0xee4] ss:$16 sps:$4 sm:$0xff]  }
 0x271   :  { %4767 = vmatpush1.bf16.msra.mxu0 %v7337_v1  ;;  %3946 = vmatprep.subr.bf16.mxu1 %v7342_v3  ;;  %v7417_v1 = vld [vmem:[%s9960_s4 + $0xcec] ss:$16 sps:$4 sm:$0xff]   ;;  %v7412_v3 = vld [vmem:[%s9960_s4 + $0xee0] ss:$16 sps:$4 sm:$0xff]  }
 0x272   :  { %4768 = vmatprep.subr.bf16.mxu0 %v7345_v8  ;;  %v7415_v8 = vld [vmem:[%s9960_s4 + $0xce8] ss:$16 sps:$4 sm:$0xff]  }
 0x274   :  { %3947 = vmatpush1.bf16.msra.mxu1 %v7340_v9  ;;  %v4112_v9 = vrot.slane %v8340_v6, 3 }
 0x275   :  { %4769 = vmatpush1.bf16.msra.mxu0 %v7343_v12  ;;  %3948 = vmatprep.subr.bf16.mxu1 %v7348_v14  ;;  %v7420_v12 = vld [vmem:[%s9960_s4 + $0xec4] ss:$16 sps:$4 sm:$0xff]  }
 0x276   :  { %4770 = vmatprep.subr.bf16.mxu0 %v7351_v15  ;;  %v4115_v15 = vrot.slane %v8460_v43, 3 }
 0x278   :  { %3949 = vmatpush1.bf16.msra.mxu1 %v7346_v18  ;;  %v7423_v18 = vld [vmem:[%s9960_s4 + $0xccc] ss:$16 sps:$4 sm:$0xff]  }
 0x279   :  { %4771 = vmatpush1.bf16.msra.mxu0 %v7349_v5  ;;  %3950 = vmatprep.subr.bf16.mxu1 %v7354_v10 }
 0x27a   :  { %4772 = vmatprep.subr.bf16.mxu0 %v7357_v19  ;;  %v7418_v19 = vld [vmem:[%s9960_s4 + $0xec0] ss:$16 sps:$4 sm:$0xff]  }
 0x27c   :  { %3951 = vmatpush1.bf16.msra.mxu1 %v7352_v21 }
 0x27d   :  { %4773 = vmatpush1.bf16.msra.mxu0 %v7355_v28  ;;  %3952 = vmatprep.subr.bf16.mxu1 %v7360_v24  ;;  %v7426_v28 = vld [vmem:[%s9960_s4 + $0xea4] ss:$16 sps:$4 sm:$0xff]  }
 0x27e   :  { %4774 = vmatprep.subr.bf16.mxu0 %v7363_v26  ;;  %v7429_v26 = vld [vmem:[%s9960_s4 + $0xcac] ss:$16 sps:$4 sm:$0xff]  }
 0x280   :  { %3953 = vmatpush1.bf16.msra.mxu1 %v7358_v29 }
 0x281   :  { %4775 = vmatpush1.bf16.msra.mxu0 %v7361_v30  ;;  %3954 = vmatprep.subr.bf16.mxu1 %v7366_v63 }
 0x282   :  { %4776 = vmatprep.subr.bf16.mxu0 %v7369_v32 }
 0x284   :  { %3955 = vmatpush2.bf16.msra.mxu1 %v7364_v33  ;;  %v7435_v33 = vld [vmem:[%s9960_s4 + $0xc8c] ss:$16 sps:$4 sm:$0xff]  }
 0x285   :  { %4777 = vmatpush2.bf16.msra.mxu0 %v7367_v34  ;;  %3956 = vmatprep.subr.bf16.mxu1 %v7372_v35  ;;  %v7430_v34 = vld [vmem:[%s9960_s4 + $0xe80] ss:$16 sps:$4 sm:$0xff]   ;;  %v7433_v35 = vld [vmem:[%s9960_s4 + $0xc88] ss:$16 sps:$4 sm:$0xff]  }
 0x286   :  { %4778 = vmatprep.subr.bf16.mxu0 %v7375_v36  ;;  %v7438_v36 = vld [vmem:[%s9960_s4 + $0xe64] ss:$16 sps:$4 sm:$0xff]  }
 0x288   :  { %3957 = vmatpush2.bf16.msra.mxu1 %v7370_v37  ;;  %v7441_v37 = vld [vmem:[%s9960_s4 + $0xc6c] ss:$16 sps:$4 sm:$0xff]  }
 0x289   :  { %4779 = vmatpush2.bf16.msra.mxu0 %v7373_v0  ;;  %3958 = vmatprep.subr.bf16.mxu1 %v7378_v2  ;;  %v7436_v0 = vld [vmem:[%s9960_s4 + $0xe60] ss:$16 sps:$4 sm:$0xff]   ;;  %v7439_v2 = vld [vmem:[%s9960_s4 + $0xc68] ss:$16 sps:$4 sm:$0xff]  }
 0x28a   :  { %4780 = vmatprep.subr.bf16.mxu0 %v7381_v40  ;;  %v7444_v40 = vld [vmem:[%s9960_s4 + $0xe44] ss:$16 sps:$4 sm:$0xff]  }
 0x28c   :  { %3959 = vmatpush2.bf16.msra.mxu1 %v7376_v42  ;;  %v7447_v42 = vld [vmem:[%s9960_s4 + $0xc4c] ss:$16 sps:$4 sm:$0xff]  }
 0x28d   :  { %4781 = vmatpush2.bf16.msra.mxu0 %v7379_v44  ;;  %3960 = vmatprep.subr.bf16.mxu1 %v7384_v45  ;;  %v7442_v44 = vld [vmem:[%s9960_s4 + $0xe40] ss:$16 sps:$4 sm:$0xff]   ;;  %v7445_v45 = vld [vmem:[%s9960_s4 + $0xc48] ss:$16 sps:$4 sm:$0xff]  }
 0x28e   :  { %4782 = vmatprep.subr.bf16.mxu0 %v7387_v48  ;;  %v7450_v48 = vld [vmem:[%s9960_s4 + $0xe24] ss:$16 sps:$4 sm:$0xff]  }
 0x290   :  { %3961 = vmatpush2.bf16.msra.mxu1 %v7382_v49  ;;  %v7453_v49 = vld [vmem:[%s9960_s4 + $0xc2c] ss:$16 sps:$4 sm:$0xff]  }
 0x291   :  { %4783 = vmatpush2.bf16.msra.mxu0 %v7385_v50  ;;  %3962 = vmatprep.subr.bf16.mxu1 %v7390_v4  ;;  %v7448_v50 = vld [vmem:[%s9960_s4 + $0xe20] ss:$16 sps:$4 sm:$0xff]   ;;  %v7451_v4 = vld [vmem:[%s9960_s4 + $0xc28] ss:$16 sps:$4 sm:$0xff]  }
 0x292   :  { %4784 = vmatprep.subr.bf16.mxu0 %v7393_v51  ;;  %v7456_v51 = vld [vmem:[%s9960_s4 + $0xe04] ss:$16 sps:$4 sm:$0xff]  }
 0x294   :  { %3963 = vmatpush2.bf16.msra.mxu1 %v7388_v54  ;;  %v7459_v54 = vld [vmem:[%s9960_s4 + $0xc0c] ss:$16 sps:$4 sm:$0xff]  }
 0x295   :  { %4785 = vmatpush2.bf16.msra.mxu0 %v7391_v55  ;;  %3964 = vmatprep.subr.bf16.mxu1 %v7396_v22  ;;  %v7454_v55 = vld [vmem:[%s9960_s4 + $0xe00] ss:$16 sps:$4 sm:$0xff]   ;;  %v7457_v22 = vld [vmem:[%s9960_s4 + $0xc08] ss:$16 sps:$4 sm:$0xff]  }
 0x296   :  { %4786 = vmatprep.subr.bf16.mxu0 %v7399_v25  ;;  %v7462_v25 = vld [vmem:[%s9960_s4 + $0xfe4] ss:$16 sps:$4 sm:$0xff]  }
 0x298   :  { %3965 = vmatpush2.bf16.msra.mxu1 %v7394_v16  ;;  %v7465_v16 = vld [vmem:[%s9960_s4 + $0xdec] ss:$16 sps:$4 sm:$0xff]  }
 0x299   :  { %4787 = vmatpush2.bf16.msra.mxu0 %v7397_v23  ;;  %3966 = vmatprep.subr.bf16.mxu1 %v7402_v58  ;;  %v7460_v23 = vld [vmem:[%s9960_s4 + $0xfe0] ss:$16 sps:$4 sm:$0xff]   ;;  %v7463_v58 = vld [vmem:[%s9960_s4 + $0xde8] ss:$16 sps:$4 sm:$0xff]  }
 0x29a   :  { %4788 = vmatprep.subr.bf16.mxu0 %v7405_v47  ;;  %v7468_v47 = vld [vmem:[%s9960_s4 + $0xfc4] ss:$16 sps:$4 sm:$0xff]  }
 0x29c   :  { %3967 = vmatpush2.bf16.msra.mxu1 %v7400_v59  ;;  %v7471_v59 = vld [vmem:[%s9960_s4 + $0xdcc] ss:$16 sps:$4 sm:$0xff]  }
 0x29d   :  { %4789 = vmatpush2.bf16.msra.mxu0 %v7403_v60  ;;  %3968 = vmatprep.subr.bf16.mxu1 %v7408_v27  ;;  %v7466_v60 = vld [vmem:[%s9960_s4 + $0xfc0] ss:$16 sps:$4 sm:$0xff]   ;;  %v7469_v27 = vld [vmem:[%s9960_s4 + $0xdc8] ss:$16 sps:$4 sm:$0xff]  }
 0x29e   :  { %4790 = vmatprep.subr.bf16.mxu0 %v7411_v31  ;;  %v7474_v31 = vld [vmem:[%s9960_s4 + $0xfa4] ss:$16 sps:$4 sm:$0xff]  }
 0x2a0   :  { %3969 = vmatpush2.bf16.msra.mxu1 %v7406_v61  ;;  %v7477_v61 = vld [vmem:[%s9960_s4 + $0xdac] ss:$16 sps:$4 sm:$0xff]  }
 0x2a1   :  { %4791 = vmatpush2.bf16.msra.mxu0 %v7409_v62  ;;  %4801 = vmatprep.subr.bf16.mxu1 %v7414_v17  ;;  %v7472_v62 = vld [vmem:[%s9960_s4 + $0xfa0] ss:$16 sps:$4 sm:$0xff]   ;;  %v7475_v17 = vld [vmem:[%s9960_s4 + $0xda8] ss:$16 sps:$4 sm:$0xff]  }
 0x2a2   :  { %4842 = vmatprep.subr.bf16.mxu0 %v7417_v1  ;;  %v7480_v1 = vld [vmem:[%s9960_s4 + $0xf84] ss:$16 sps:$4 sm:$0xff]  }
 0x2a3   :  { %v2949_v14 = vpop.f32.mrf.mxu1  ;;  %3971 = vmatmul.mubr.bf16.vlgmr.msra.gmra.mxu1 %v3169_v46 }
 0x2a4   :  { %v9502_v5 = vadd.f32 %v2949_v14, %v9290_v13  ;;  %v2990_v10 = vpop.f32.mrf.mxu0  ;;  %4793 = vmatmul.mubr.bf16.vlgmr.msra.gmra.mxu0 %v4112_v9  ;;  %4802 = vmatpush1.bf16.msra.mxu1 %v7412_v3  ;;  %v7421_v13 = vld [vmem:[%s9960_s4 + $0xcc8] ss:$16 sps:$4 sm:$0xff]   ;;  %v7483_v3 = vld [vmem:[%s9960_s4 + $0xd8c] ss:$16 sps:$4 sm:$0xff]   ;;  %v7486_v14 = vld [vmem:[%s9960_s4 + $0xf64] ss:$16 sps:$4 sm:$0xff]  }
 0x2a5   :  { %v9510_v46 = vadd.f32 %v2990_v10, %v9287_v52  ;;  %4833 = vmatprep.mubr.bf16.mxu1 %v4115_v15  ;;  %4843 = vmatpush1.bf16.msra.mxu0 %v7415_v8  ;;  %v2951_v21 = vpop.f32.mrf.mxu1  ;;  %v7478_v8 = vld [vmem:[%s9960_s4 + $0xf80] ss:$16 sps:$4 sm:$0xff]  }
 0x2a6   :  { %4874 = vmatprep.mubr.bf16.mxu0 %v4113_v53  ;;  %v9523_v24 = vadd.f32 %v2951_v21, %v9312_v57  ;;  %v2992_v52 = vpop.f32.mrf.mxu0  ;;  %4803 = vmatprep.subr.bf16.mxu1 %v7420_v12  ;;  %v7427_v57 = vld [vmem:[%s9960_s4 + $0xca8] ss:$16 sps:$4 sm:$0xff]   ;;  %v7484_v10 = vld [vmem:[%s9960_s4 + $0xf60] ss:$16 sps:$4 sm:$0xff]   ;;  %v7492_v21 = vld [vmem:[%s9960_s4 + $0xf44] ss:$16 sps:$4 sm:$0xff]  }
 0x2a7   :  { %v9529_v29 = vadd.f32 %v2992_v52, %v9309_v56  ;;  %v2953_v30 = vpop.f32.mrf.mxu1  ;;  %4844 = vmatprep.subr.bf16.mxu0 %v7423_v18  ;;  %v7432_v56 = vld [vmem:[%s9960_s4 + $0xe84] ss:$16 sps:$4 sm:$0xff]   ;;  %v7481_v12 = vld [vmem:[%s9960_s4 + $0xd88] ss:$16 sps:$4 sm:$0xff]   ;;  %v7489_v18 = vld [vmem:[%s9960_s4 + $0xd6c] ss:$16 sps:$4 sm:$0xff]  }
 0x2a8   :  { %v2994_v63 = vpop.f32.mrf.mxu0  ;;  %4804 = vmatpush1.bf16.msra.mxu1 %v7418_v19  ;;  %v7487_v19 = vld [vmem:[%s9960_s4 + $0xd68] ss:$16 sps:$4 sm:$0xff]   ;;  %v7501_v30 = vld [vmem:[%s9960_s4 + $0xd2c] ss:$16 sps:$4 sm:$0xff]  }
 0x2a9   :  { %4845 = vmatpush1.bf16.msra.mxu0 %v7421_v13  ;;  %v2954_v53 = vpop.f32.mrf.mxu1  ;;  %4805 = vmatprep.subr.bf16.mxu1 %v7426_v28  ;;  %v7495_v13 = vld [vmem:[%s9960_s4 + $0xd4c] ss:$16 sps:$4 sm:$0xff]   ;;  %v7490_v28 = vld [vmem:[%s9960_s4 + $0xf40] ss:$16 sps:$4 sm:$0xff]   ;;  %v7493_v52 = vld [vmem:[%s9960_s4 + $0xd48] ss:$16 sps:$4 sm:$0xff]  }
 0x2aa   :  { %v2995_v32 = vpop.f32.mrf.mxu0  ;;  %4846 = vmatprep.subr.bf16.mxu0 %v7429_v26  ;;  %v7498_v26 = vld [vmem:[%s9960_s4 + $0xf24] ss:$16 sps:$4 sm:$0xff]   ;;  %v7496_v63 = vld [vmem:[%s9960_s4 + $0xf20] ss:$16 sps:$4 sm:$0xff]  }
 0x2ab   :  { %v7504_v53 = vld [vmem:[%s9960_s4 + $0xf04] ss:$16 sps:$4 sm:$0xff]   ;;  %v7505_v32 = vld [vmem:[%s9960_s4 + $0xd08] ss:$16 sps:$4 sm:$0xff]  }
 0x2ac   :  { %4806 = vmatpush1.bf16.msra.mxu1 %v7424_v7  ;;  %v7499_v7 = vld [vmem:[%s9960_s4 + $0xd28] ss:$16 sps:$4 sm:$0xff]  }
 0x2ad   :  { %4847 = vmatpush1.bf16.msra.mxu0 %v7427_v57  ;;  %4807 = vmatprep.subr.bf16.mxu1 %v7432_v56  ;;  %v7507_v57 = vld [vmem:[%s9960_s4 + $0xd0c] ss:$16 sps:$4 sm:$0xff]   ;;  %v7502_v56 = vld [vmem:[%s9960_s4 + $0xf00] ss:$16 sps:$4 sm:$0xff]  }
 0x2ae   :  { %4848 = vmatprep.subr.bf16.mxu0 %v7435_v33  ;;  %v7510_v33 = vld [vmem:[%s9960_s4 + $0xeec] ss:$16 sps:$4 sm:$0xff]  }
 0x2b0   :  { %4808 = vmatpush1.bf16.msra.mxu1 %v7430_v34  ;;  %v7508_v34 = vld [vmem:[%s9960_s4 + $0xee8] ss:$16 sps:$4 sm:$0xff]  }
 0x2b1   :  { %4849 = vmatpush1.bf16.msra.mxu0 %v7433_v35  ;;  %4809 = vmatprep.subr.bf16.mxu1 %v7438_v36  ;;  %v4114_v35 = vrot.slane %v8455_v39, 3  ;;  %v7513_v36 = vld [vmem:[%s9960_s4 + $0xecc] ss:$16 sps:$4 sm:$0xff]  }
 0x2b2   :  { %4850 = vmatprep.subr.bf16.mxu0 %v7441_v37 }
 0x2b4   :  { %4810 = vmatpush1.bf16.msra.mxu1 %v7436_v0 }
 0x2b5   :  { %4851 = vmatpush1.bf16.msra.mxu0 %v7439_v2  ;;  %4811 = vmatprep.subr.bf16.mxu1 %v7444_v40  ;;  %v7511_v40 = vld [vmem:[%s9960_s4 + $0xec8] ss:$16 sps:$4 sm:$0xff]  }
 0x2b6   :  { %4852 = vmatprep.subr.bf16.mxu0 %v7447_v42 }
 0x2b8   :  { %4812 = vmatpush1.bf16.msra.mxu1 %v7442_v44 }
 0x2b9   :  { %4853 = vmatpush1.bf16.msra.mxu0 %v7445_v45  ;;  %4813 = vmatprep.subr.bf16.mxu1 %v7450_v48  ;;  %v7514_v48 = vld [vmem:[%s9960_s4 + $0xea8] ss:$16 sps:$4 sm:$0xff]  }
 0x2ba   :  { %4854 = vmatprep.subr.bf16.mxu0 %v7453_v49 }
 0x2bc   :  { %4814 = vmatpush1.bf16.msra.mxu1 %v7448_v50  ;;  %v7557_v50 = vld [vmem:[%s9962_s6 + $0x38] sm:$0xff]  }
 0x2bd   :  { %4855 = vmatpush1.bf16.msra.mxu0 %v7451_v4  ;;  %4815 = vmatprep.subr.bf16.mxu1 %v7456_v51  ;;  %v7558_v4 = vld [vmem:[%s9962_s6 + $0x70] sm:$0xff]   ;;  %v7517_v51 = vld [vmem:[%s9960_s4 + $0xe88] ss:$16 sps:$4 sm:$0xff]  }
 0x2be   :  { %4856 = vmatprep.subr.bf16.mxu0 %v7459_v54  ;;  %v7522_v54 = vld [vmem:[%s9960_s4 + $0xe6c] ss:$16 sps:$4 sm:$0xff]  }
 0x2c0   :  { %4816 = vmatpush1.bf16.msra.mxu1 %v7454_v55  ;;  %v7559_v55 = vld [vmem:[%s9962_s6 + $0x30] sm:$0xff]  }
 0x2c1   :  { %4857 = vmatpush1.bf16.msra.mxu0 %v7457_v22  ;;  %4817 = vmatprep.subr.bf16.mxu1 %v7462_v25  ;;  %v7560_v22 = vld [vmem:[%s9962_s6 + $0x68] sm:$0xff]  }
 0x2c2   :  { %4858 = vmatprep.subr.bf16.mxu0 %v7465_v16  ;;  %v7520_v25 = vld [vmem:[%s9960_s4 + $0xe68] ss:$16 sps:$4 sm:$0xff]   ;;  %v7525_v16 = vld [vmem:[%s9960_s4 + $0xe4c] ss:$16 sps:$4 sm:$0xff]  }
 0x2c4   :  { %4818 = vmatpush2.bf16.msra.mxu1 %v7460_v23  ;;  %v7561_v23 = vld [vmem:[%s9962_s6 + $0x28] sm:$0xff]  }
 0x2c5   :  { %4859 = vmatpush2.bf16.msra.mxu0 %v7463_v58  ;;  %4819 = vmatprep.subr.bf16.mxu1 %v7468_v47  ;;  %v7562_v58 = vld [vmem:[%s9962_s6 + $0x60] sm:$0xff]   ;;  %v7523_v47 = vld [vmem:[%s9960_s4 + $0xe48] ss:$16 sps:$4 sm:$0xff]  }
 0x2c6   :  { %4860 = vmatprep.subr.bf16.mxu0 %v7471_v59  ;;  %v7528_v59 = vld [vmem:[%s9960_s4 + $0xe2c] ss:$16 sps:$4 sm:$0xff]  }
 0x2c8   :  { %4820 = vmatpush2.bf16.msra.mxu1 %v7466_v60  ;;  %v7563_v60 = vld [vmem:[%s9962_s6 + $0x20] sm:$0xff]  }
 0x2c9   :  { %4861 = vmatpush2.bf16.msra.mxu0 %v7469_v27  ;;  %4821 = vmatprep.subr.bf16.mxu1 %v7474_v31  ;;  %v7564_v27 = vld [vmem:[%s9962_s6 + $0x58] sm:$0xff]  }
 0x2ca   :  { %4862 = vmatprep.subr.bf16.mxu0 %v7477_v61  ;;  %v7526_v31 = vld [vmem:[%s9960_s4 + $0xe28] ss:$16 sps:$4 sm:$0xff]   ;;  %v7531_v61 = vld [vmem:[%s9960_s4 + $0xe0c] ss:$16 sps:$4 sm:$0xff]  }
 0x2cc   :  { %4822 = vmatpush2.bf16.msra.mxu1 %v7472_v62  ;;  %v7565_v62 = vld [vmem:[%s9962_s6 + $0x18] sm:$0xff]  }
 0x2cd   :  { %4863 = vmatpush2.bf16.msra.mxu0 %v7475_v17  ;;  %4823 = vmatprep.subr.bf16.mxu1 %v7480_v1  ;;  %v7529_v17 = vld [vmem:[%s9960_s4 + $0xe08] ss:$16 sps:$4 sm:$0xff]   ;;  %v7534_v1 = vld [vmem:[%s9960_s4 + $0xfec] ss:$16 sps:$4 sm:$0xff]  }
 0x2ce   :  { %4864 = vmatprep.subr.bf16.mxu0 %v7483_v3  ;;  %v7532_v3 = vld [vmem:[%s9960_s4 + $0xfe8] ss:$16 sps:$4 sm:$0xff]  }
 0x2d0   :  { %4824 = vmatpush2.bf16.msra.mxu1 %v7478_v8  ;;  %v7537_v8 = vld [vmem:[%s9960_s4 + $0xfcc] ss:$16 sps:$4 sm:$0xff]  }
 0x2d1   :  { %4865 = vmatpush2.bf16.msra.mxu0 %v7481_v12  ;;  %4825 = vmatprep.subr.bf16.mxu1 %v7486_v14  ;;  %v7535_v12 = vld [vmem:[%s9960_s4 + $0xfc8] ss:$16 sps:$4 sm:$0xff]   ;;  %v7540_v14 = vld [vmem:[%s9960_s4 + $0xfac] ss:$16 sps:$4 sm:$0xff]  }
 0x2d2   :  { %4866 = vmatprep.subr.bf16.mxu0 %v7489_v18  ;;  %v7538_v18 = vld [vmem:[%s9960_s4 + $0xfa8] ss:$16 sps:$4 sm:$0xff]  }
 0x2d4   :  { %4826 = vmatpush2.bf16.msra.mxu1 %v7484_v10  ;;  %v7543_v10 = vld [vmem:[%s9960_s4 + $0xf8c] ss:$16 sps:$4 sm:$0xff]  }
 0x2d5   :  { %4867 = vmatpush2.bf16.msra.mxu0 %v7487_v19  ;;  %4827 = vmatprep.subr.bf16.mxu1 %v7492_v21  ;;  %v7541_v19 = vld [vmem:[%s9960_s4 + $0xf88] ss:$16 sps:$4 sm:$0xff]   ;;  %v7546_v21 = vld [vmem:[%s9960_s4 + $0xf6c] ss:$16 sps:$4 sm:$0xff]  }
 0x2d6   :  { %4868 = vmatprep.subr.bf16.mxu0 %v7495_v13  ;;  %v7544_v13 = vld [vmem:[%s9960_s4 + $0xf68] ss:$16 sps:$4 sm:$0xff]  }
 0x2d8   :  { %4828 = vmatpush2.bf16.msra.mxu1 %v7490_v28  ;;  %v7549_v28 = vld [vmem:[%s9960_s4 + $0xf4c] ss:$16 sps:$4 sm:$0xff]  }
 0x2d9   :  { %4869 = vmatpush2.bf16.msra.mxu0 %v7493_v52  ;;  %4829 = vmatprep.subr.bf16.mxu1 %v7498_v26  ;;  %v7547_v52 = vld [vmem:[%s9960_s4 + $0xf48] ss:$16 sps:$4 sm:$0xff]   ;;  %v7552_v26 = vld [vmem:[%s9960_s4 + $0xf2c] ss:$16 sps:$4 sm:$0xff]  }
 0x2da   :  { %4870 = vmatprep.subr.bf16.mxu0 %v7501_v30  ;;  %v7550_v30 = vld [vmem:[%s9960_s4 + $0xf28] ss:$16 sps:$4 sm:$0xff]  }
 0x2dc   :  { %4830 = vmatpush2.bf16.msra.mxu1 %v7496_v63  ;;  %v7555_v63 = vld [vmem:[%s9960_s4 + $0xf0c] ss:$16 sps:$4 sm:$0xff]  }
 0x2dd   :  { %4871 = vmatpush2.bf16.msra.mxu0 %v7499_v7  ;;  %4831 = vmatprep.subr.bf16.mxu1 %v7504_v53  ;;  %v7553_v7 = vld [vmem:[%s9960_s4 + $0xf08] ss:$16 sps:$4 sm:$0xff]  }
 0x2de   :  { %4872 = vmatprep.subr.bf16.mxu0 %v7507_v57 }
 0x2e0   :  { %4832 = vmatpush2.bf16.msra.mxu1 %v7502_v56 }
 0x2e1   :  { %4873 = vmatpush2.bf16.msra.mxu0 %v7505_v32  ;;  %4883 = vmatprep.subr.bf16.mxu1 %v7510_v33  ;;  %v7566_v33 = vld [vmem:[%s9962_s6 + $0x50] sm:$0xff]  }
 0x2e3   :  { %v3031_v37 = vpop.f32.mrf.mxu1  ;;  %4834 = vmatmul.mubr.bf16.vlgmr.msra.gmra.mxu1 %v4114_v35 }
 0x2e4   :  { %v9706_v0 = vadd.f32 %v3031_v37, %v9510_v46  ;;  %v9708_v2 = vpop.f32.mrf.mxu0  ;;  %4875 = vmatmul.mubr.bf16.vlgmr.msra.gmra.mxu0 %v4112_v9  ;;  %4884 = vmatpush1.bf16.msra.mxu1 %v7508_v34  ;;  %v7516_v46 = vld [vmem:[%s9960_s4 + $0xeac] ss:$16 sps:$4 sm:$0xff]  }
 0x2e5   :  { %4915 = vmatprep.mubr.bf16.mxu1 %v4115_v15  ;;  %v3033_v42 = vpop.f32.mrf.mxu1  ;;  %4885 = vmatprep.subr.bf16.mxu1 %v7513_v36  ;;  %v7519_v15 = vld [vmem:[%s9960_s4 + $0xe8c] ss:$16 sps:$4 sm:$0xff]  }
 0x2e6   :  { %v9721_v44 = vadd.f32 %v3033_v42, %v9529_v29  ;;  %v9723_v45 = vpop.f32.mrf.mxu0  ;;  %v7556_v29 = vld [vmem:[%s9962_s6 + $0x78] sm:$0xff]  }
 0x2e7   :  { %v3035_v6 = vpop.f32.mrf.mxu1  ;;  %6508 = vmatprep.subr.bf16.mxu0 %v7556_v29  ;;  %v7577_v29 = vld [vmem:[%s9962_s6 + $0xa8] sm:$0xff]  }
 0x2e8   :  { %v3853_v9 = vpop.f32.mrf.mxu0  ;;  %4886 = vmatpush1.bf16.msra.mxu1 %v7511_v40  ;;  %6509 = vmatpush3.bf16.msra.mxu0 %v7557_v50  ;;  %v7567_v40 = vld [vmem:[%s9962_s6 + $0x10] sm:$0xff]   ;;  %v7570_v6 = vld [vmem:[%s9962_s6 + $0x40] sm:$0xff]  }
 0x2e9   :  { %v3036_v43 = vpop.f32.mrf.mxu1  ;;  %4887 = vmatprep.subr.bf16.mxu1 %v7516_v46  ;;  %6510 = vmatprep.subr.bf16.mxu0 %v7558_v4  ;;  %v7572_v9 = vld [vmem:[%s9962_s6 + $0xf8] sm:$0xff]   ;;  %v7578_v50 = vld [vmem:[%s9962_s6 + $0xe0] sm:$0xff]  }
 0x2ea   :  { %v3854_v49 = vpop.f32.mrf.mxu0  ;;  %v7574_v43 = vld [vmem:[%s9962_s6 + $0xf0] sm:$0xff]   ;;  %v7579_v4 = vld [vmem:[%s9962_s6 + $0xa0] sm:$0xff]  }
 0x2eb   :  { %v7576_v49 = vld [vmem:[%s9962_s6 + $0xe8] sm:$0xff]  }
 0x2ec   :  { %4888 = vmatpush1.bf16.msra.mxu1 %v7514_v48  ;;  %6511 = vmatpush3.bf16.msra.mxu0 %v7559_v55  ;;  %v7573_v48 = vld [vmem:[%s9962_s6 + $0xb8] sm:$0xff]  }
 0x2ed   :  { %4889 = vmatprep.subr.bf16.mxu1 %v7519_v15  ;;  %6512 = vmatprep.subr.bf16.mxu0 %v7560_v22  ;;  %v7575_v15 = vld [vmem:[%s9962_s6 + $0xb0] sm:$0xff]  }
 0x2f0   :  { %4890 = vmatpush1.bf16.msra.mxu1 %v7517_v51  ;;  %6513 = vmatpush3.bf16.msra.mxu0 %v7561_v23  ;;  %v7580_v51 = vld [vmem:[%s9962_s6 + $0xd8] sm:$0xff]   ;;  %v7582_v23 = vld [vmem:[%s9962_s6 + $0xd0] sm:$0xff]  }
 0x2f1   :  { %4891 = vmatprep.subr.bf16.mxu1 %v7522_v54  ;;  %6514 = vmatprep.subr.bf16.mxu0 %v7562_v58  ;;  %v7581_v54 = vld [vmem:[%s9962_s6 + $0x98] sm:$0xff]  }
 0x2f4   :  { %4892 = vmatpush1.bf16.msra.mxu1 %v7520_v25  ;;  %6515 = vmatpush3.bf16.msra.mxu0 %v7563_v60  ;;  %v7583_v60 = vld [vmem:[%s9962_s6 + $0x90] sm:$0xff]  }
 0x2f5   :  { %4893 = vmatprep.subr.bf16.mxu1 %v7525_v16  ;;  %6516 = vmatprep.subr.bf16.mxu0 %v7564_v27 }
 0x2f8   :  { %4894 = vmatpush1.bf16.msra.mxu1 %v7523_v47  ;;  %6517 = vmatpush3.bf16.msra.mxu0 %v7565_v62 }
 0x2f9   :  { %4895 = vmatprep.subr.bf16.mxu1 %v7528_v59  ;;  %6518 = vmatprep.subr.bf16.mxu0 %v7566_v33 }
 0x2fc   :  { %4896 = vmatpush1.bf16.msra.mxu1 %v7526_v31  ;;  %6519 = vmatpush3.bf16.msra.mxu0 %v7567_v40 }
 0x2fd   :  { %4897 = vmatprep.subr.bf16.mxu1 %v7531_v61 }
 0x300   :  { %4898 = vmatpush1.bf16.msra.mxu1 %v7529_v17  ;;  %v7584_v17 = vld [vmem:[%s9962_s6 + $0xc8] sm:$0xff]  }
 0x301   :  { %4899 = vmatprep.subr.bf16.mxu1 %v7534_v1 }
 0x304   :  { %4900 = vmatpush2.bf16.msra.mxu1 %v7532_v3  ;;  %v7586_v3 = vld [vmem:[%s9962_s6 + $0xc0] sm:$0xff]  }
 0x305   :  { %4901 = vmatprep.subr.bf16.mxu1 %v7537_v8  ;;  %v4928_v8 = vld [vmem:[%s9961_s5] sm:$0xf] }
 0x306   :  { %v4941_v40 = vrot.slane %v4928_v8, %v8412_v38  ;;  %v7588_v38 = vld [vmem:[%s9964_s8 + $0x38] sm:$0xff]  }
 0x308   :  { %4902 = vmatpush2.bf16.msra.mxu1 %v7535_v12 }
 0x309   :  { %4903 = vmatprep.subr.bf16.mxu1 %v7540_v14 }
 0x30c   :  { %4904 = vmatpush2.bf16.msra.mxu1 %v7538_v18  ;;  %v4933_v18 = vrot.slane %v4928_v8, %v8317_v11 }
 0x30d   :  { %4905 = vmatprep.subr.bf16.mxu1 %v7543_v10 }
 0x310   :  { %4906 = vmatpush2.bf16.msra.mxu1 %v7541_v19 }
 0x311   :  { %4907 = vmatprep.subr.bf16.mxu1 %v7546_v21 }
 0x314   :  { %4908 = vmatpush2.bf16.msra.mxu1 %v7544_v13 }
 0x315   :  { %4909 = vmatprep.subr.bf16.mxu1 %v7549_v28  ;;  %v4937_v28 = vrot.slane %v4928_v8, %v8325_v20 }
 0x318   :  { %4910 = vmatpush2.bf16.msra.mxu1 %v7547_v52 }
 0x319   :  { %4911 = vmatprep.subr.bf16.mxu1 %v7552_v26 }
 0x31c   :  { %4912 = vmatpush2.bf16.msra.mxu1 %v7550_v30 }
 0x31d   :  { %4913 = vmatprep.subr.bf16.mxu1 %v7555_v63 }
 0x320   :  { %4914 = vmatpush2.bf16.msra.mxu1 %v7553_v7 }
 0x321   :  { %6530 = vmatprep.subr.bf16.mxu1 %v7572_v9 }
 0x323   :  { %v3890_v53 = vpop.f32.mrf.mxu1  ;;  %4916 = vmatmul.mubr.bf16.vlgmr.msra.gmra.mxu1 %v4114_v35 }
 0x324   :  { %v3891_v57 = vadd.f32 %v3890_v53, %v9708_v2  ;;  %v3931_v56 = vpop.f32.mrf.mxu0  ;;  %6531 = vmatpush3.bf16.msra.mxu1 %v7573_v48 }
 0x325   :  { %v3892_v32 = vpop.f32.mrf.mxu1  ;;  %6532 = vmatprep.subr.bf16.mxu1 %v7574_v43 }
 0x326   :  { %v9843_v34 = vadd.f32 %v3891_v57, %v9502_v5  ;;  %v3893_v36 = vadd.f32 %v3892_v32, %v9723_v45  ;;  %v3933_v37 = vpop.f32.mrf.mxu0  ;;  %v7568_v5 = vld [vmem:[%s9962_s6 + $0x48] sm:$0xff]  }
 0x327   :  { %v3894_v39 = vpop.f32.mrf.mxu1  ;;  %v7569_v45 = vld [vmem:[%s9962_s6 + $0x8] sm:$0xff]   ;;  %6520 = vmatprep.subr.bf16.mxu0 %v7568_v5 }
 0x328   :  { %v9850_v35 = vadd.f32 %v3893_v36, %v9523_v24  ;;  %v3935_v2 = vpop.f32.mrf.mxu0  ;;  %6521 = vmatpush3.bf16.msra.mxu0 %v7569_v45  ;;  %v7571_v24 = vld [vmem:[%s9962_s6] sm:$0xff]   ;;  %6533 = vmatpush3.bf16.msra.mxu1 %v7575_v15  ;;  %v7618_v15 = vmov 0.0  }
 0x329   :  { %v3895_v42 = vpop.f32.mrf.mxu1  ;;  %6522 = vmatprep.subr.bf16.mxu0 %v7570_v6  ;;  %6534 = vmatprep.subr.bf16.mxu1 %v7576_v49  ;;  %v7590_v49 = vld [vmem:[%s9964_s8 + $0x28] sm:$0xff]  }
 0x32a   :  { %v3936_v46 = vpop.f32.mrf.mxu0  ;;  %v4945_v42 = vrot.slane %v4928_v8, %v8415_v41  ;;  %v7589_v41 = vld [vmem:[%s9964_s8 + $0x30] sm:$0xff]  }
 0x32c   :  { %6523 = vmatpush3.bf16.msra.mxu0 %v7571_v24  ;;  %6535 = vmatpush3.bf16.msra.mxu1 %v7577_v29  ;;  %v7591_v29 = vld [vmem:[%s9964_s8 + $0x20] sm:$0xff]  }
 0x32d   :  { %6536 = vmatprep.subr.bf16.mxu1 %v7578_v50  ;;  %6561 = vmatprep.subr.bf16.mxu0 %v7618_v15  ;;  %v7592_v50 = vld [vmem:[%s9964_s8 + $0x18] sm:$0xff]  }
 0x330   :  { %6537 = vmatpush3.bf16.msra.mxu1 %v7579_v4  ;;  %v7593_v4 = vld [vmem:[%s9964_s8 + $0x10] sm:$0xff]  }
 0x331   :  { %6538 = vmatprep.subr.bf16.mxu1 %v7580_v51  ;;  %v7594_v51 = vld [vmem:[%s9964_s8 + $0x8] sm:$0xff]  }
 0x334   :  { %6539 = vmatpush3.bf16.msra.mxu1 %v7581_v54  ;;  %v7595_v54 = vld [vmem:[%s9964_s8] sm:$0xff]  }
 0x335   :  { %6540 = vmatprep.subr.bf16.mxu1 %v7582_v23 }
 0x338   :  { %6541 = vmatpush3.bf16.msra.mxu1 %v7583_v60 }
 0x339   :  { %6542 = vmatprep.subr.bf16.mxu1 %v7584_v17 }
 0x363   :  { %v3972_v55 = vpop.f32.mrf.mxu1 }
 0x364   :  { %v3973_v22 = vadd.f32 %v3972_v55, %v3931_v56  ;;  %v4794_v25 = vpop.f32.mrf.mxu0 }
 0x365   :  { %v3974_v16 = vpop.f32.mrf.mxu1 }
 0x366   :  { %v3981_v58 = vadd.f32 %v3973_v22, %v9706_v0  ;;  %v3975_v47 = vadd.f32 %v3974_v16, %v3933_v37  ;;  %v4796_v59 = vpop.f32.mrf.mxu0  ;;  %v7585_v0 = vld [vmem:[%s9962_s6 + $0x88] sm:$0xff]  }
 0x367   :  { %v3976_v27 = vpop.f32.mrf.mxu1  ;;  %6543 = vmatpush3.bf16.msra.mxu1 %v7585_v0  ;;  %v6499_v0 = vld [vmem:[%s9965_s9] ss:$0 sm:$0xff] }
 0x368   :  { %v3982_v31 = vadd.f32 %v3975_v47, %v9721_v44  ;;  %v4798_v61 = vpop.f32.mrf.mxu0  ;;  %v7587_v44 = vld [vmem:[%s9962_s6 + $0x80] sm:$0xff]   ;;  %6544 = vmatprep.subr.bf16.mxu1 %v7586_v3 }
 0x369   :  { %v3977_v62 = vpop.f32.mrf.mxu1 }
 0x36a   :  { %v4799_v1 = vpop.f32.mrf.mxu0 }
 0x36b   :  { %6545 = vmatpush3.bf16.msra.mxu1 %v7587_v44 }
 0x3a3   :  { %v4835_v12 = vpop.f32.mrf.mxu1 }
 0x3a4   :  { %v4836_v14 = vadd.f32 %v4835_v12, %v4794_v25  ;;  %v4876_v10 = vpop.f32.mrf.mxu0 }
 0x3a5   :  { %v4837_v19 = vpop.f32.mrf.mxu1 }
 0x3a6   :  { %v4924_v21 = vadd.f32 %v4836_v14, %v9843_v34  ;;  %v4838_v13 = vadd.f32 %v4837_v19, %v4796_v59  ;;  %v4878_v52 = vpop.f32.mrf.mxu0 }
 0x3a7   :  { %v4839_v26 = vpop.f32.mrf.mxu1 }
 0x3a8   :  { %v4950_v30 = vadd.f32 %v4933_v18, %v4924_v21  ;;  %v4925_v63 = vadd.f32 %v4838_v13, %v9850_v35  ;;  %v4880_v7 = vpop.f32.mrf.mxu0 }
 0x3a9   :  { %v4840_v53 = vpop.f32.mrf.mxu1 }
 0x3aa   :  { %v4951_v57 = vadd.f32 %v4937_v28, %v4925_v63  ;;  %v4881_v56 = vpop.f32.mrf.mxu0  ;;  %v4954_v32 = vmax.f32 %v4950_v30, 0.0 }
 0x3ac   :  { %v4955_v33 = vmax.f32 %v4951_v57, 0.0  ;;  %v4958_v11 = vpack.c.bf16 %v4954_v32, %v4954_v32 }
 0x3ae   :  { %v4959_v36 = vpack.c.bf16 %v4955_v33, %v4955_v33 }
 0x3b0   :  { %5257 = vmatprep.mubr.bf16.mxu0 %v4959_v36 }
 0x3b1   :  { %5258 = vmatmul.mubr.bf16.vlgmr.msra.gmra.mxu0 %v4958_v11 }
 0x3b2   :  { %6562 = vmatpush3.bf16.msra.mxu0 %v7588_v38  ;;  %6577 = vmatprep.mubr.msk.bf16.mxu0 %vm7619_vm0, %v7618_v15 }
 0x3b3   :  { %6563 = vmatprep.subr.bf16.mxu0 %v7618_v15 }
 0x3b6   :  { %6564 = vmatpush3.bf16.msra.mxu0 %v7589_v41 }
 0x3b7   :  { %6565 = vmatprep.subr.bf16.mxu0 %v7618_v15 }
 0x3ba   :  { %6566 = vmatpush3.bf16.msra.mxu0 %v7590_v49 }
 0x3bb   :  { %6567 = vmatprep.subr.bf16.mxu0 %v7618_v15 }
 0x3be   :  { %6568 = vmatpush3.bf16.msra.mxu0 %v7591_v29 }
 0x3bf   :  { %6569 = vmatprep.subr.bf16.mxu0 %v7618_v15 }
 0x3c2   :  { %6570 = vmatpush3.bf16.msra.mxu0 %v7592_v50 }
 0x3c3   :  { %6571 = vmatprep.subr.bf16.mxu0 %v7618_v15 }
 0x3c6   :  { %6572 = vmatpush3.bf16.msra.mxu0 %v7593_v4 }
 0x3c7   :  { %6573 = vmatprep.subr.bf16.mxu0 %v7618_v15 }
 0x3ca   :  { %6574 = vmatpush3.bf16.msra.mxu0 %v7594_v51 }
 0x3cb   :  { %6575 = vmatprep.subr.bf16.mxu0 %v7618_v15 }
 0x3ce   :  { %6576 = vmatpush3.bf16.msra.mxu0 %v7595_v54 }
 0x3e3   :  { %v4917_v37 = vpop.f32.mrf.mxu1 }
 0x3e4   :  { %v4918_v34 = vadd.f32 %v4917_v37, %v4876_v10 }
 0x3e5   :  { %v4919_v20 = vpop.f32.mrf.mxu1 }
 0x3e6   :  { %v4926_v39 = vadd.f32 %v4918_v34, %v3981_v58  ;;  %v4920_v2 = vadd.f32 %v4919_v20, %v4878_v52  ;;  %v6466_v58 = vld [vmem:[%s9963_s7] ss:$0 sm:$0xff]  ;;  %s7596_s7 = scalar_lea.vmem %s5427_s13, 32 }
 0x3e7   :  { %v4921_v35 = vpop.f32.mrf.mxu1  ;;  %p7597_p0 = scmp.ne.s32.totalorder %s5427_s13, %s7596_s7  ;;  %p7602_p2 = scmp.lt.s32.totalorder %s7596_s7, %s7596_s7 }
 0x3e8   :  { %v4952_v5 = vadd.f32 %v4941_v40, %v4926_v39  ;;  %v4927_v46 = vadd.f32 %v4920_v2, %v3982_v31 }
 0x3e9   :  { %v4922_v45 = vpop.f32.mrf.mxu1  ;;  %p7603_p3 = por %p7602_p2, %p7601_p1 }
 0x3ea   :  { %v4953_v6 = vadd.f32 %v4945_v42, %v4927_v46  ;;  %v4956_v24 = vmax.f32 %v4952_v5, 0.0 }
 0x3eb   :  { %p7604_p4 = pnand %p7603_p3, %p7597_p0 }
 0x3ec   :  { %v4957_v9 = vmax.f32 %v4953_v6, 0.0  ;;  %v4960_v43 = vpack.c.bf16 %v4956_v24, %v4956_v24 }
 0x3ee   :  { %v4961_v48 = vpack.c.bf16 %v4957_v9, %v4957_v9 }
 0x3f0   :  { %5297 = vmatprep.mubr.bf16.mxu1 %v4961_v48 }
 0x3f1   :  { %5298 = vmatmul.mubr.bf16.vlgmr.msra.gmra.mxu1 %v4960_v43 }
 0x471   :  { %v6524_v55 = vpop.f32.mrf.mxu0 }
 0x473   :  { %v6525_v22 = vpop.f32.mrf.mxu0 }
 0x474   :  { %v6526_v23 = vadd.f32 %v6525_v22, %v6524_v55 }
 0x475   :  { %v6527_v25 = vpop.f32.mrf.mxu0 }
 0x476   :  { %v5260_v60 = vadd.f32 %v6526_v23, %v6466_v58 }
 0x477   :  { %v6528_v16 = vpop.f32.mrf.mxu0 }
 0x4b1   :  { %v6546_v47 = vpop.f32.mrf.mxu1 }
 0x4b3   :  { %v6547_v59 = vpop.f32.mrf.mxu1 }
 0x4b4   :  { %v6548_v27 = vadd.f32 %v6547_v59, %v6546_v47 }
 0x4b5   :  { %v6549_v31 = vpop.f32.mrf.mxu1 }
 0x4b6   :  { %v5300_v61 = vadd.f32 %v6548_v27, %v5260_v60 }
 0x4b7   :  { %v6550_v62 = vpop.f32.mrf.mxu1 }
 0x4b8   :  { %v5305_v17 = vmax.f32 %v5300_v61, 0.0 }
 0x4ba   :  { %v5306_v1 = vpack.c.bf16 %v5305_v17, %v5305_v17 }
 0x4bc   :  { %6578 = vmatmul.mubr.bf16.vlgmr.msra.gmra.mxu0 %v5306_v1 }
 0x57c   :  { %v5412_v3 = vpop.f32.mrf.mxu0 }
 0x57d   :  { %v5413_v44 = vadd.f32 %v6499_v0, %v5412_v3 }
 0x57e   :  { %v6579_v8 = vpop.f32.mrf.mxu0 }
 0x57f   :  { %5419 = vst.msk [vmem:[#allocation2] sm:$0x3] %vm5418_vm1, %v5413_v44 }
 0x580   :  { %v5415_v12 = vpop.f32.mrf.mxu0 }
 0x581   :  { %7607 = shalt.err (!%p7604_p4)
}
 0x582   :  { %5429 = dma.vmem_to_hbm [thread:$0]  %s5427_s13, 32, %s9966_s10, [#allocation3]   ;;  %v6580_v14 = vpop.f32.mrf.mxu0 }
 0x583   :  { %7616 = dma.done.wait [#allocation3], 32  }
 0x584   :  { %7617 = vsyncadd [#allocation3], 4294967264 }
 0x585   :  { %5433 = vsyncpa [#allocation3], 1 }

</bundles_post_ra>
